<compile_context>
chip_gen: v5e
topology: v5e:2x2
jax: 0.10.0
libtpu: 0.0.40
codegen_flags: <defaults>
</compile_context>

<pallas_src>
import jax
import jax.numpy as jnp
from jax import lax
from jax.experimental import pallas as pl
from jax.experimental.pallas import tpu as pltpu

KH = KW = 3                      # 3x3 convs
MXU_DTYPE = jnp.bfloat16         # matmul operand dtype (f32 accumulation)
LANE = 128                       # pad channels to this multiple for lane-dense stores


def basic_block_kernel(x_ref, w1_ref, w2_ref, b1_ref, b2_ref, o_ref, col_ref):
    # x_ref : (1, H, W, C)                input tile (channels already padded to C)
    # w*_ref: (3, 3*C, C)                 BN-scale-folded bf16 weights, dx folded into K
    # b*_ref: (1, C)                      folded BN bias (f32)
    # o_ref : (1, H, W, C)
    # col_ref: (H+2, W, 3*C) bf16 shared dx-im2col scratch:
    #          col[i, w, dx*C + c] = padded_act[i, w+dx, c]
    _, H, W, C = x_ref.shape

    # ---- zero ONLY the constant halo of the shared scratch (valid for both convs) ----
    col_ref[0:1, :, :] = jnp.zeros((1, W, KW * C), MXU_DTYPE)                 # top row
    col_ref[H + 1:H + 2, :, :] = jnp.zeros((1, W, KW * C), MXU_DTYPE)         # bottom row
    col_ref[1:H + 1, 0:1, 0:C] = jnp.zeros((H, 1, C), MXU_DTYPE)              # left, dx=0
    col_ref[1:H + 1, W - 1:W, 2 * C:3 * C] = jnp.zeros((H, 1, C), MXU_DTYPE)  # right, dx=2

    def fill_cols(a_bf16):
        # a_bf16: (H, W, C) bf16.  Interior slabs are fully overwritten each fill;
        # the halo stays zero from the one-time zeroing above.
        col_ref[1:H + 1, 1:W, 0:C] = a_bf16[:, 0:W - 1, :]            # dx = 0
        col_ref[1:H + 1, :, C:2 * C] = a_bf16                          # dx = 1
        col_ref[1:H + 1, 0:W - 1, 2 * C:3 * C] = a_bf16[:, 1:W, :]     # dx = 2

    def conv3x3(w_ref, b_ref):
        # 3 MXU matmuls (one per dy), K = 3*C.  Per-dy slices are read straight from
        # the bf16 scratch ref so only H rows are live per matmul.
        K, Co = w_ref.shape[-2], w_ref.shape[-1]
        acc = jnp.zeros((H * W, Co), jnp.float32)
        for dy in range(KH):                                           # static unroll
            acc = acc + jnp.dot(col_ref[dy:dy + H].reshape(H * W, K), w_ref[dy],
                                preferred_element_type=jnp.float32)
        return acc + b_ref[...]

    x_f32 = x_ref[0].astype(jnp.float32)                               # (H, W, C)

    # conv1 (+ folded BN) + ReLU -> intermediate stays in VMEM
    fill_cols(x_f32.astype(MXU_DTYPE))
    mid = jnp.maximum(conv3x3(w1_ref, b1_ref), 0.0)                    # (H*W, C) f32

    # conv2 (+ folded BN) + residual add + ReLU (scratch reused)
    fill_cols(mid.reshape(H, W, C).astype(MXU_DTYPE))
    y = jnp.maximum(conv3x3(w2_ref, b2_ref) + x_f32.reshape(H * W, C), 0.0)
    o_ref[...] = y.reshape(1, H, W, C).astype(o_ref.dtype)


def fold_bn(gamma, beta, running_mean, running_var, eps=1e-5):
    scale = gamma / jnp.sqrt(running_var + eps)
    bias = beta - running_mean * scale
    return scale.astype(jnp.float32), bias.astype(jnp.float32)


def oihw_to_hwio(w_oihw):
    """PyTorch Conv2d weight (Cout, Cin, KH, KW) -> HWIO (KH, KW, Cin, Cout)."""
    return jnp.transpose(w_oihw, (2, 3, 1, 0))


def _pad_axis(a, axis, target):
    if a.shape[axis] == target:
        return a
    pad = [(0, 0)] * a.ndim
    pad[axis] = (0, target - a.shape[axis])
    return jnp.pad(a, pad)


def basic_block_forward(x_nchw, params):
    """BasicBlock forward: x is NCHW (PyTorch convention); weights in params are HWIO."""
    x = jnp.transpose(x_nchw, (0, 2, 3, 1))                       # NCHW -> NHWC
    N, H, W, Cin = x.shape
    w1, w2 = params["w1"], params["w2"]
    Cmid, Cout = w1.shape[-1], w2.shape[-1]
    # Shared im2col scratch + residual add rely on equal channel counts (no downsample).
    assert Cin == Cmid == Cout, "no-downsample BasicBlock requires inplanes == planes"
    C = Cin
    Cp = ((C + LANE - 1) // LANE) * LANE                          # pad to lane width

    s1, b1 = fold_bn(*params["bn1"])
    s2, b2 = fold_bn(*params["bn2"])

    # Zero-pad channels (input, both weight Cin/Cout axes, scales, biases).
    xp = _pad_axis(x, 3, Cp)
    w1p = _pad_axis(_pad_axis(w1, 2, Cp), 3, Cp)
    w2p = _pad_axis(_pad_axis(w2, 2, Cp), 3, Cp)
    s1p, b1p = _pad_axis(s1, 0, Cp), _pad_axis(b1, 0, Cp)
    s2p, b2p = _pad_axis(s2, 0, Cp), _pad_axis(b2, 0, Cp)

    # Fold BN scale into the conv weights; reshape HWIO (3,3,Cp,Cp) -> (3, 3*Cp, Cp)
    # so the 3 dx taps live in the contraction dim; cast operands to bf16.
    w1f = (w1p * s1p).reshape(KH, KW * Cp, Cp).astype(MXU_DTYPE)
    w2f = (w2p * s2p).reshape(KH, KW * Cp, Cp).astype(MXU_DTYPE)
    b1p = b1p.reshape(1, Cp)
    b2p = b2p.reshape(1, Cp)

    # ---- VMEM budget & cost estimate from the actual block / scratch sizes ----
    itm = jnp.dtype(x.dtype).itemsize
    x_blk = H * W * Cp * itm
    out_blk = H * W * Cp * itm
    w_blk = KH * KW * Cp * Cp * 2                                  # bf16
    col_blk = (H + 2) * W * KW * Cp * 2                            # bf16 shared scratch
    vmem_needed = 2 * x_blk + 2 * out_blk + 2 * 2 * w_blk + col_blk + 4 * Cp * 4
    vmem_limit = int(min(max(int(vmem_needed * 1.3) + (4 << 20), 32 << 20), 100 << 20))

    flops = 2 * 2 * N * H * W * (KH * KW) * Cp * Cp               # 2 convs, MACs*2
    bytes_accessed = (N * H * W * Cp * itm) * 2 + 2 * w_blk + 2 * Cp * 4
    cost = pl.CostEstimate(flops=flops, transcendentals=0,
                           bytes_accessed=bytes_accessed)

    out = pl.pallas_call(
        basic_block_kernel,
        out_shape=jax.ShapeDtypeStruct((N, H, W, Cp), x.dtype),
        grid_spec=pltpu.PrefetchScalarGridSpec(
            num_scalar_prefetch=0,
            grid=(N,),
            in_specs=[
                pl.BlockSpec((1, H, W, Cp), lambda n: (n, 0, 0, 0)),
                pl.BlockSpec((KH, KW * Cp, Cp), lambda n: (0, 0, 0)),
                pl.BlockSpec((KH, KW * Cp, Cp), lambda n: (0, 0, 0)),
                pl.BlockSpec((1, Cp), lambda n: (0, 0)),
                pl.BlockSpec((1, Cp), lambda n: (0, 0)),
            ],
            out_specs=pl.BlockSpec((1, H, W, Cp), lambda n: (n, 0, 0, 0)),
            scratch_shapes=[
                pltpu.VMEM((H + 2, W, KW * Cp), MXU_DTYPE),        # shared dx-im2col
            ],
        ),
        compiler_params=pltpu.CompilerParams(
            dimension_semantics=("parallel",),
            vmem_limit_bytes=vmem_limit,
        ),
        cost_estimate=cost,
    )(xp, w1f, w2f, b1p, b2p)

    out = out[..., :C]                                             # drop channel padding
    return jnp.transpose(out, (0, 3, 1, 2))                        # NHWC -> NCHW


def reference_forward(x_nchw, params):
    """Pure-JAX f32 reference (NHWC conv via lax) for correctness checking."""
    x = jnp.transpose(x_nchw, (0, 2, 3, 1))
    dn = lax.conv_dimension_numbers(x.shape, params["w1"].shape,
                                    ("NHWC", "HWIO", "NHWC"))
    s1, b1 = fold_bn(*params["bn1"])
    s2, b2 = fold_bn(*params["bn2"])
    y = lax.conv_general_dilated(x, params["w1"], (1, 1), ((1, 1), (1, 1)),
                                 dimension_numbers=dn)
    y = jnp.maximum(y * s1 + b1, 0.0)
    z = lax.conv_general_dilated(y, params["w2"], (1, 1), ((1, 1), (1, 1)),
                                 dimension_numbers=dn)
    z = jnp.maximum(z * s2 + b2 + x, 0.0)
    return jnp.transpose(z, (0, 3, 1, 2))


if __name__ == "__main__":
    key = jax.random.PRNGKey(0)
    N, C, H, W = 2, 8, 16, 16          # inplanes = planes = 8, stride = 1
    k_x, k_w1, k_w2, k_bn = jax.random.split(key, 4)

    x = jax.random.normal(k_x, (N, C, H, W), dtype=jnp.float32)
    # Weights generated in the PyTorch Conv2d layout (Cout, Cin, KH, KW), converted.
    w1_oihw = jax.random.normal(k_w1, (C, C, KH, KW), dtype=jnp.float32) * 0.1
    w2_oihw = jax.random.normal(k_w2, (C, C, KH, KW), dtype=jnp.float32) * 0.1

    # Non-trivial (inference-mode) BN statistics to exercise the scale/bias folding.
    kb1, kb2, kb3, kb4 = jax.random.split(k_bn, 4)
    bn1 = (1.0 + 0.1 * jax.random.normal(kb1, (C,)),
           0.1 * jax.random.normal(kb2, (C,)),
           0.1 * jax.random.normal(kb3, (C,)),
           1.0 + 0.2 * jax.random.uniform(kb4, (C,)))
    bn2 = (1.0 + 0.1 * jax.random.normal(kb2, (C,)),
           0.1 * jax.random.normal(kb3, (C,)),
           0.1 * jax.random.normal(kb4, (C,)),
           1.0 + 0.2 * jax.random.uniform(kb1, (C,)))

    params = {
        "w1": oihw_to_hwio(w1_oihw),
        "w2": oihw_to_hwio(w2_oihw),
        "bn1": bn1,
        "bn2": bn2,
    }

    out = jax.block_until_ready(basic_block_forward(x, params))
    ref = jax.block_until_ready(reference_forward(x, params))

    assert out.shape == (N, C, H, W)
    max_err = float(jnp.max(jnp.abs(out - ref)))
    # bf16 matmul operands (f32 accumulation) vs f32 reference -> loosened tolerance.
    assert jnp.allclose(out, ref, atol=5e-2, rtol=5e-2), \
        f"mismatch vs reference (max abs err {max_err})"

    print("KERNEL_OK")
</pallas_src>

<mosaic_0001>
module attributes {stable_mosaic.version = 11 : i64} {
  func.func @basic_block_kernel(%arg0: i32, %arg1: memref<1x16x16x128xf32, #tpu.memory_space<vmem>>, %arg2: memref<3x384x128xbf16, #tpu.memory_space<vmem>>, %arg3: memref<3x384x128xbf16, #tpu.memory_space<vmem>>, %arg4: memref<1x128xf32, #tpu.memory_space<vmem>>, %arg5: memref<1x128xf32, #tpu.memory_space<vmem>>, %arg6: memref<1x16x16x128xf32, #tpu.memory_space<vmem>>, %arg7: memref<18x16x384xbf16, #tpu.memory_space<vmem>>) attributes {dimension_semantics = [#tpu.dimension_semantics<parallel>], iteration_bounds = array<i64: 2>, scalar_prefetch = 0 : i64, scratch_operands = 1 : i64, tpu.core_type = #tpu.core_type<tc>, window_params = [{transform_indices = @transform_0, window_bounds = array<i64: 1, 16, 16, 128>}, {pipeline_mode = #tpu.pipeline_mode<synchronous>, transform_indices = @transform_1, window_bounds = array<i64: 3, 384, 128>}, {pipeline_mode = #tpu.pipeline_mode<synchronous>, transform_indices = @transform_2, window_bounds = array<i64: 3, 384, 128>}, {pipeline_mode = #tpu.pipeline_mode<synchronous>, transform_indices = @transform_3, window_bounds = array<i64: 1, 128>}, {pipeline_mode = #tpu.pipeline_mode<synchronous>, transform_indices = @transform_4, window_bounds = array<i64: 1, 128>}, {transform_indices = @transform_5, window_bounds = array<i64: 1, 16, 16, 128>}]} {
    %cst = arith.constant 0.000000e+00 : bf16
    %0 = vector.broadcast %cst : bf16 to vector<1x16x384xbf16>
    %c0 = arith.constant 0 : index
    %c0_0 = arith.constant 0 : index
    %c0_1 = arith.constant 0 : index
    %1 = vector.load %arg7[%c0, %c0_0, %c0_1] : memref<18x16x384xbf16, #tpu.memory_space<vmem>>, vector<1x16x384xbf16>
    tpu.vector_store %arg7[%c0, %c0_0, %c0_1], %0 {strides = array<i32>} : memref<18x16x384xbf16, #tpu.memory_space<vmem>>, vector<1x16x384xbf16>,
    %cst_2 = arith.constant 0.000000e+00 : bf16
    %2 = vector.broadcast %cst_2 : bf16 to vector<1x16x384xbf16>
    %c17 = arith.constant 17 : index
    %c0_3 = arith.constant 0 : index
    %c0_4 = arith.constant 0 : index
    %3 = vector.load %arg7[%c17, %c0_3, %c0_4] : memref<18x16x384xbf16, #tpu.memory_space<vmem>>, vector<1x16x384xbf16>
    tpu.vector_store %arg7[%c17, %c0_3, %c0_4], %2 {strides = array<i32>} : memref<18x16x384xbf16, #tpu.memory_space<vmem>>, vector<1x16x384xbf16>,
    %cst_5 = arith.constant 0.000000e+00 : bf16
    %4 = vector.broadcast %cst_5 : bf16 to vector<16x1x128xbf16>
    %c1 = arith.constant 1 : index
    %c0_6 = arith.constant 0 : index
    %c0_7 = arith.constant 0 : index
    %5 = vector.load %arg7[%c1, %c0_6, %c0_7] : memref<18x16x384xbf16, #tpu.memory_space<vmem>>, vector<16x1x128xbf16>
    tpu.vector_store %arg7[%c1, %c0_6, %c0_7], %4 {strides = array<i32>} : memref<18x16x384xbf16, #tpu.memory_space<vmem>>, vector<16x1x128xbf16>,
    %cst_8 = arith.constant 0.000000e+00 : bf16
    %6 = vector.broadcast %cst_8 : bf16 to vector<16x1x128xbf16>
    %c1_9 = arith.constant 1 : index
    %c15 = arith.constant 15 : index
    %c256 = arith.constant 256 : index
    %7 = vector.load %arg7[%c1_9, %c15, %c256] : memref<18x16x384xbf16, #tpu.memory_space<vmem>>, vector<16x1x128xbf16>
    tpu.vector_store %arg7[%c1_9, %c15, %c256], %6 {strides = array<i32>} : memref<18x16x384xbf16, #tpu.memory_space<vmem>>, vector<16x1x128xbf16>,
    %c0_10 = arith.constant 0 : index
    %c0_11 = arith.constant 0 : index
    %c0_12 = arith.constant 0 : index
    %c0_13 = arith.constant 0 : index
    %8 = vector.load %arg1[%c0_10, %c0_11, %c0_12, %c0_13] : memref<1x16x16x128xf32, #tpu.memory_space<vmem>>, vector<1x16x16x128xf32>
    %9 = vector.shape_cast %8 : vector<1x16x16x128xf32> to vector<16x16x128xf32>
    %10 = arith.truncf %9 : vector<16x16x128xf32> to vector<16x16x128xbf16>
    %11 = vector.extract_strided_slice %10 {offsets = [0, 0, 0], sizes = [16, 15, 128], strides = [1, 1, 1]} : vector<16x16x128xbf16> to vector<16x15x128xbf16>
    %c1_14 = arith.constant 1 : index
    %c1_15 = arith.constant 1 : index
    %c0_16 = arith.constant 0 : index
    %12 = vector.load %arg7[%c1_14, %c1_15, %c0_16] : memref<18x16x384xbf16, #tpu.memory_space<vmem>>, vector<16x15x128xbf16>
    tpu.vector_store %arg7[%c1_14, %c1_15, %c0_16], %11 {strides = array<i32>} : memref<18x16x384xbf16, #tpu.memory_space<vmem>>, vector<16x15x128xbf16>,
    %c1_17 = arith.constant 1 : index
    %c0_18 = arith.constant 0 : index
    %c128 = arith.constant 128 : index
    %13 = vector.load %arg7[%c1_17, %c0_18, %c128] : memref<18x16x384xbf16, #tpu.memory_space<vmem>>, vector<16x16x128xbf16>
    tpu.vector_store %arg7[%c1_17, %c0_18, %c128], %10 {strides = array<i32>} : memref<18x16x384xbf16, #tpu.memory_space<vmem>>, vector<16x16x128xbf16>,
    %14 = vector.extract_strided_slice %10 {offsets = [0, 1, 0], sizes = [16, 15, 128], strides = [1, 1, 1]} : vector<16x16x128xbf16> to vector<16x15x128xbf16>
    %c1_19 = arith.constant 1 : index
    %c0_20 = arith.constant 0 : index
    %c256_21 = arith.constant 256 : index
    %15 = vector.load %arg7[%c1_19, %c0_20, %c256_21] : memref<18x16x384xbf16, #tpu.memory_space<vmem>>, vector<16x15x128xbf16>
    tpu.vector_store %arg7[%c1_19, %c0_20, %c256_21], %14 {strides = array<i32>} : memref<18x16x384xbf16, #tpu.memory_space<vmem>>, vector<16x15x128xbf16>,
    %cst_22 = arith.constant 0.000000e+00 : f32
    %16 = vector.broadcast %cst_22 : f32 to vector<256x128xf32>
    %c0_23 = arith.constant 0 : index
    %c0_24 = arith.constant 0 : index
    %c0_25 = arith.constant 0 : index
    %17 = vector.load %arg7[%c0_23, %c0_24, %c0_25] : memref<18x16x384xbf16, #tpu.memory_space<vmem>>, vector<16x16x384xbf16>
    %18 = vector.shape_cast %17 : vector<16x16x384xbf16> to vector<256x384xbf16>
    %c0_26 = arith.constant 0 : index
    %c0_27 = arith.constant 0 : index
    %c0_28 = arith.constant 0 : index
    %19 = vector.load %arg2[%c0_26, %c0_27, %c0_28] : memref<3x384x128xbf16, #tpu.memory_space<vmem>>, vector<1x384x128xbf16>
    %20 = vector.shape_cast %19 : vector<1x384x128xbf16> to vector<384x128xbf16>
    %cst_29 = arith.constant dense<0.000000e+00> : vector<256x128xf32>
    %21 = tpu.matmul %18, %20, %cst_29 {dimension_numbers = #tpu.dot_dimension_numbers<[1], [0], [0], [1], [0, 0, 1, 1], [], []>} : vector<256x384xbf16>, vector<384x128xbf16>, vector<256x128xf32> -> vector<256x128xf32>
    %22 = arith.addf %16, %21 : vector<256x128xf32>
    %c1_30 = arith.constant 1 : index
    %c0_31 = arith.constant 0 : index
    %c0_32 = arith.constant 0 : index
    %23 = vector.load %arg7[%c1_30, %c0_31, %c0_32] : memref<18x16x384xbf16, #tpu.memory_space<vmem>>, vector<16x16x384xbf16>
    %24 = vector.shape_cast %23 : vector<16x16x384xbf16> to vector<256x384xbf16>
    %c1_33 = arith.constant 1 : index
    %c0_34 = arith.constant 0 : index
    %c0_35 = arith.constant 0 : index
    %25 = vector.load %arg2[%c1_33, %c0_34, %c0_35] : memref<3x384x128xbf16, #tpu.memory_space<vmem>>, vector<1x384x128xbf16>
    %26 = vector.shape_cast %25 : vector<1x384x128xbf16> to vector<384x128xbf16>
    %cst_36 = arith.constant dense<0.000000e+00> : vector<256x128xf32>
    %27 = tpu.matmul %24, %26, %cst_36 {dimension_numbers = #tpu.dot_dimension_numbers<[1], [0], [0], [1], [0, 0, 1, 1], [], []>} : vector<256x384xbf16>, vector<384x128xbf16>, vector<256x128xf32> -> vector<256x128xf32>
    %28 = arith.addf %22, %27 : vector<256x128xf32>
    %c2 = arith.constant 2 : index
    %c0_37 = arith.constant 0 : index
    %c0_38 = arith.constant 0 : index
    %29 = vector.load %arg7[%c2, %c0_37, %c0_38] : memref<18x16x384xbf16, #tpu.memory_space<vmem>>, vector<16x16x384xbf16>
    %30 = vector.shape_cast %29 : vector<16x16x384xbf16> to vector<256x384xbf16>
    %c2_39 = arith.constant 2 : index
    %c0_40 = arith.constant 0 : index
    %c0_41 = arith.constant 0 : index
    %31 = vector.load %arg2[%c2_39, %c0_40, %c0_41] : memref<3x384x128xbf16, #tpu.memory_space<vmem>>, vector<1x384x128xbf16>
    %32 = vector.shape_cast %31 : vector<1x384x128xbf16> to vector<384x128xbf16>
    %cst_42 = arith.constant dense<0.000000e+00> : vector<256x128xf32>
    %33 = tpu.matmul %30, %32, %cst_42 {dimension_numbers = #tpu.dot_dimension_numbers<[1], [0], [0], [1], [0, 0, 1, 1], [], []>} : vector<256x384xbf16>, vector<384x128xbf16>, vector<256x128xf32> -> vector<256x128xf32>
    %34 = arith.addf %28, %33 : vector<256x128xf32>
    %c0_43 = arith.constant 0 : index
    %c0_44 = arith.constant 0 : index
    %35 = vector.load %arg4[%c0_43, %c0_44] : memref<1x128xf32, #tpu.memory_space<vmem>>, vector<1x128xf32>
    %36 = vector.broadcast %35 : vector<1x128xf32> to vector<256x128xf32>
    %37 = arith.addf %34, %36 : vector<256x128xf32>
    %cst_45 = arith.constant 0.000000e+00 : f32
    %38 = vector.broadcast %cst_45 : f32 to vector<256x128xf32>
    %39 = arith.maximumf %37, %38 : vector<256x128xf32>
    %40 = vector.shape_cast %39 : vector<256x128xf32> to vector<16x16x128xf32>
    %41 = arith.truncf %40 : vector<16x16x128xf32> to vector<16x16x128xbf16>
    %42 = vector.extract_strided_slice %41 {offsets = [0, 0, 0], sizes = [16, 15, 128], strides = [1, 1, 1]} : vector<16x16x128xbf16> to vector<16x15x128xbf16>
    %c1_46 = arith.constant 1 : index
    %c1_47 = arith.constant 1 : index
    %c0_48 = arith.constant 0 : index
    %43 = vector.load %arg7[%c1_46, %c1_47, %c0_48] : memref<18x16x384xbf16, #tpu.memory_space<vmem>>, vector<16x15x128xbf16>
    tpu.vector_store %arg7[%c1_46, %c1_47, %c0_48], %42 {strides = array<i32>} : memref<18x16x384xbf16, #tpu.memory_space<vmem>>, vector<16x15x128xbf16>,
    %c1_49 = arith.constant 1 : index
    %c0_50 = arith.constant 0 : index
    %c128_51 = arith.constant 128 : index
    %44 = vector.load %arg7[%c1_49, %c0_50, %c128_51] : memref<18x16x384xbf16, #tpu.memory_space<vmem>>, vector<16x16x128xbf16>
    tpu.vector_store %arg7[%c1_49, %c0_50, %c128_51], %41 {strides = array<i32>} : memref<18x16x384xbf16, #tpu.memory_space<vmem>>, vector<16x16x128xbf16>,
    %45 = vector.extract_strided_slice %41 {offsets = [0, 1, 0], sizes = [16, 15, 128], strides = [1, 1, 1]} : vector<16x16x128xbf16> to vector<16x15x128xbf16>
    %c1_52 = arith.constant 1 : index
    %c0_53 = arith.constant 0 : index
    %c256_54 = arith.constant 256 : index
    %46 = vector.load %arg7[%c1_52, %c0_53, %c256_54] : memref<18x16x384xbf16, #tpu.memory_space<vmem>>, vector<16x15x128xbf16>
    tpu.vector_store %arg7[%c1_52, %c0_53, %c256_54], %45 {strides = array<i32>} : memref<18x16x384xbf16, #tpu.memory_space<vmem>>, vector<16x15x128xbf16>,
    %cst_55 = arith.constant 0.000000e+00 : f32
    %47 = vector.broadcast %cst_55 : f32 to vector<256x128xf32>
    %c0_56 = arith.constant 0 : index
    %c0_57 = arith.constant 0 : index
    %c0_58 = arith.constant 0 : index
    %48 = vector.load %arg7[%c0_56, %c0_57, %c0_58] : memref<18x16x384xbf16, #tpu.memory_space<vmem>>, vector<16x16x384xbf16>
    %49 = vector.shape_cast %48 : vector<16x16x384xbf16> to vector<256x384xbf16>
    %c0_59 = arith.constant 0 : index
    %c0_60 = arith.constant 0 : index
    %c0_61 = arith.constant 0 : index
    %50 = vector.load %arg3[%c0_59, %c0_60, %c0_61] : memref<3x384x128xbf16, #tpu.memory_space<vmem>>, vector<1x384x128xbf16>
    %51 = vector.shape_cast %50 : vector<1x384x128xbf16> to vector<384x128xbf16>
    %cst_62 = arith.constant dense<0.000000e+00> : vector<256x128xf32>
    %52 = tpu.matmul %49, %51, %cst_62 {dimension_numbers = #tpu.dot_dimension_numbers<[1], [0], [0], [1], [0, 0, 1, 1], [], []>} : vector<256x384xbf16>, vector<384x128xbf16>, vector<256x128xf32> -> vector<256x128xf32>
    %53 = arith.addf %47, %52 : vector<256x128xf32>
    %c1_63 = arith.constant 1 : index
    %c0_64 = arith.constant 0 : index
    %c0_65 = arith.constant 0 : index
    %54 = vector.load %arg7[%c1_63, %c0_64, %c0_65] : memref<18x16x384xbf16, #tpu.memory_space<vmem>>, vector<16x16x384xbf16>
    %55 = vector.shape_cast %54 : vector<16x16x384xbf16> to vector<256x384xbf16>
    %c1_66 = arith.constant 1 : index
    %c0_67 = arith.constant 0 : index
    %c0_68 = arith.constant 0 : index
    %56 = vector.load %arg3[%c1_66, %c0_67, %c0_68] : memref<3x384x128xbf16, #tpu.memory_space<vmem>>, vector<1x384x128xbf16>
    %57 = vector.shape_cast %56 : vector<1x384x128xbf16> to vector<384x128xbf16>
    %cst_69 = arith.constant dense<0.000000e+00> : vector<256x128xf32>
    %58 = tpu.matmul %55, %57, %cst_69 {dimension_numbers = #tpu.dot_dimension_numbers<[1], [0], [0], [1], [0, 0, 1, 1], [], []>} : vector<256x384xbf16>, vector<384x128xbf16>, vector<256x128xf32> -> vector<256x128xf32>
    %59 = arith.addf %53, %58 : vector<256x128xf32>
    %c2_70 = arith.constant 2 : index
    %c0_71 = arith.constant 0 : index
    %c0_72 = arith.constant 0 : index
    %60 = vector.load %arg7[%c2_70, %c0_71, %c0_72] : memref<18x16x384xbf16, #tpu.memory_space<vmem>>, vector<16x16x384xbf16>
    %61 = vector.shape_cast %60 : vector<16x16x384xbf16> to vector<256x384xbf16>
    %c2_73 = arith.constant 2 : index
    %c0_74 = arith.constant 0 : index
    %c0_75 = arith.constant 0 : index
    %62 = vector.load %arg3[%c2_73, %c0_74, %c0_75] : memref<3x384x128xbf16, #tpu.memory_space<vmem>>, vector<1x384x128xbf16>
    %63 = vector.shape_cast %62 : vector<1x384x128xbf16> to vector<384x128xbf16>
    %cst_76 = arith.constant dense<0.000000e+00> : vector<256x128xf32>
    %64 = tpu.matmul %61, %63, %cst_76 {dimension_numbers = #tpu.dot_dimension_numbers<[1], [0], [0], [1], [0, 0, 1, 1], [], []>} : vector<256x384xbf16>, vector<384x128xbf16>, vector<256x128xf32> -> vector<256x128xf32>
    %65 = arith.addf %59, %64 : vector<256x128xf32>
    %c0_77 = arith.constant 0 : index
    %c0_78 = arith.constant 0 : index
    %66 = vector.load %arg5[%c0_77, %c0_78] : memref<1x128xf32, #tpu.memory_space<vmem>>, vector<1x128xf32>
    %67 = vector.broadcast %66 : vector<1x128xf32> to vector<256x128xf32>
    %68 = arith.addf %65, %67 : vector<256x128xf32>
    %69 = vector.shape_cast %9 : vector<16x16x128xf32> to vector<256x128xf32>
    %70 = arith.addf %68, %69 : vector<256x128xf32>
    %cst_79 = arith.constant 0.000000e+00 : f32
    %71 = vector.broadcast %cst_79 : f32 to vector<256x128xf32>
    %72 = arith.maximumf %70, %71 : vector<256x128xf32>
    %73 = vector.shape_cast %72 : vector<256x128xf32> to vector<1x16x16x128xf32>
    %c0_80 = arith.constant 0 : index
    %c0_81 = arith.constant 0 : index
    %c0_82 = arith.constant 0 : index
    %c0_83 = arith.constant 0 : index
    %74 = vector.load %arg6[%c0_80, %c0_81, %c0_82, %c0_83] : memref<1x16x16x128xf32, #tpu.memory_space<vmem>>, vector<1x16x16x128xf32>
    tpu.vector_store %arg6[%c0_80, %c0_81, %c0_82, %c0_83], %73 {strides = array<i32>} : memref<1x16x16x128xf32, #tpu.memory_space<vmem>>, vector<1x16x16x128xf32>,
    return
  }
  func.func @transform_0(%arg0: i32) -> (i32, i32, i32, i32) {
    %c0_i32 = arith.constant 0 : i32
    %c0_i32_0 = arith.constant 0 : i32
    %c0_i32_1 = arith.constant 0 : i32
    %c0_i32_2 = arith.constant 0 : i32
    return %arg0, %c0_i32, %c0_i32_0, %c0_i32_1 : i32, i32, i32, i32
  }
  func.func @transform_1(%arg0: i32) -> (i32, i32, i32) {
    %c0_i32 = arith.constant 0 : i32
    %c0_i32_0 = arith.constant 0 : i32
    %c0_i32_1 = arith.constant 0 : i32
    %c0_i32_2 = arith.constant 0 : i32
    return %c0_i32, %c0_i32_0, %c0_i32_1 : i32, i32, i32
  }
  func.func @transform_2(%arg0: i32) -> (i32, i32, i32) {
    %c0_i32 = arith.constant 0 : i32
    %c0_i32_0 = arith.constant 0 : i32
    %c0_i32_1 = arith.constant 0 : i32
    %c0_i32_2 = arith.constant 0 : i32
    return %c0_i32, %c0_i32_0, %c0_i32_1 : i32, i32, i32
  }
  func.func @transform_3(%arg0: i32) -> (i32, i32) {
    %c0_i32 = arith.constant 0 : i32
    %c0_i32_0 = arith.constant 0 : i32
    %c0_i32_1 = arith.constant 0 : i32
    return %c0_i32, %c0_i32_0 : i32, i32
  }
  func.func @transform_4(%arg0: i32) -> (i32, i32) {
    %c0_i32 = arith.constant 0 : i32
    %c0_i32_0 = arith.constant 0 : i32
    %c0_i32_1 = arith.constant 0 : i32
    return %c0_i32, %c0_i32_0 : i32, i32
  }
  func.func @transform_5(%arg0: i32) -> (i32, i32, i32, i32) {
    %c0_i32 = arith.constant 0 : i32
    %c0_i32_0 = arith.constant 0 : i32
    %c0_i32_1 = arith.constant 0 : i32
    %c0_i32_2 = arith.constant 0 : i32
    return %arg0, %c0_i32, %c0_i32_0, %c0_i32_1 : i32, i32, i32, i32
  }
}

</mosaic_0001>

<bundles_post_ra>
// kernel: tpu_custom_call.1
= control target key start
LH: loop header
LB: loop body
LE: loop exit
PB: predicated region body
PF: predicated region fallthrough
CT: control target
= control target key end

     0   :  { %10 = vsyncpa [#allocation4], 0  ;;  %s11053_s0 = inlined_call_operand.hbm [shape: f32[2,16,16,128], index: 0, kind: input, shape index: {}]   ;;  %s11054_s1 = inlined_call_operand.hbm [shape: bf16[3,384,128], index: 1, kind: input, shape index: {}]   ;;  %s11055_s2 = inlined_call_operand.hbm [shape: bf16[3,384,128], index: 2, kind: input, shape index: {}]   ;;  %s11056_s3 = inlined_call_operand.vmem [shape: f32[1,128], index: 3, kind: input, shape index: {}]   ;;  %s11057_s4 = inlined_call_operand.vmem [shape: f32[1,128], index: 4, kind: input, shape index: {}]   ;;  %s11058_s5 = inlined_call_operand.hbm [shape: f32[2,16,16,128], index: 5, kind: output, shape index: {}]  }
   0x1   :  { %12 = vsyncpa [#allocation4 + $0x1], 0 }
   0x2   :  { %13 = vsyncpa [#allocation7], 0 }
   0x3   :  { %14 = vsyncpa [#allocation5], 0 }
   0x4   :  { %16 = vsyncpa [#allocation5 + $0x1], 0  ;;  %s9302_s18 = smov 0   ;;  %s9304_s19 = smov 0  }
   0x5   :  { %s9306_s20 = smov 0   ;;  %s9308_s21 = smov 0  }
   0x6 LB: > { %s9323_s22 = sadd.s32 4294967295, %s9261_s21   ;;  %s6795_s23 = sadd.s32 4294967294, %s9261_s21   ;;  %s9261_s21 = sphi %s9308_s21, %s11228_s21   ;;  %s9257_s20 = sphi %s9306_s20, %s11227_s20   ;;  %s9253_s19 = sphi %s9304_s19, %s11226_s19   ;;  %s9249_s18 = sphi %s9302_s18, %s11225_s18  }
   0x7   : > { %p42_p0 = scmp.ne.s32.totalorder %s9253_s19, %s9249_s18  ;;  %p43_p1 = scmp.eq.s32.totalorder %s9323_s22, 0 }
   0x8   : > { %p150_p2 = scmp.eq.s32.totalorder %s9323_s22, 1  ;;  %p156_p3 = scmp.eq.s32.totalorder %s6795_s23, 1 }
   0x9   : > { %p9332_p4 = por %p43_p1, %p42_p0  ;;  %p6796_p5 = scmp.ge.s32.totalorder %s9261_s21, 1 }
   0xa   : > { %p9337_p6 = por %p156_p3, %p42_p0  ;;  %p163_p7 = scmp.lt.s32.totalorder %s9261_s21, 3 }
   0xb   : > { %s174_s28 = sshll.u32 %s11054_s1, 4  ;;  %s9263_s30 = smov [#allocation6]   ;;  %s175_s28 = int_to_ptr.hbm [resolvable:$true] %s174_s28 }
   0xc   : > { %p9345_p8 = pnand %p6796_p5, %p163_p7  ;;  %s176_s6 = sshll.u32 %s9263_s30, 4  ;;  %s177_s6 = int_to_ptr.vmem [resolvable:$true] %s176_s6 }
   0xd   : > { %s188_s9 = sshll.u32 %s11055_s2, 4  ;;  %s9264_s10 = smov 64   ;;  %s189_s9 = int_to_ptr.hbm [resolvable:$true] %s188_s9 }
   0xe   : > { %p9003_p9 = pneg %p9345_p8  ;;  %s9265_s11 = smov 4  }
   0xf   : > { %s9266_s12 = smov [#allocation8]   ;;  %s9358_s14 = sadd.s32 1, %s9261_s21  }
  0x10   : > { %p9004_p10 = pnand %p9003_p9, %p43_p1  ;;  %s190_s13 = sshll.u32 %s9266_s12, 4  ;;  %s191_s13 = int_to_ptr.vmem [resolvable:$true] %s190_s13 }
  0x11   : > { %s29_s15 = sadd.s32 1, %s9257_s20  ;;  %s26_s16 = ssub.s32 %s9261_s21, %s9358_s14 }
  0x12   : > { %9006 = dma.hbm_to_vmem [thread:$0]  (!%p9004_p10), %s175_s28, 9216, %s177_s6, [#allocation7], %s9264_s10, %s9264_s10, %s9265_s11  }
  0x13   : > { %9009 = dma.hbm_to_vmem [thread:$0]  (!%p9004_p10), %s189_s9, 9216, %s191_s13, [#allocation7], %s9264_s10, %s9264_s10, %s9265_s11  }
  0x14   : > { %p36_p12 = scmp.ne.s32.totalorder %s9257_s20, %s9253_s19  ;;  %p27_p13 = scmp.eq.s32.totalorder %s26_s16, 0 }
  0x15   : > { %p37_p0 = scmp.eq.s32.totalorder %s9261_s21, 0  ;;  %p9020_p5 = scmp.lt.s32.totalorder %s9261_s21, 2 }
  0x16   : > { %p9368_p3 = por %p150_p2, %p36_p12  ;;  %s210_s26 = sand.u32 1, %s9257_s20  }
  0x17   : > { %s9374_s23 = scalar_select %p27_p13, %s9257_s20, %s29_s15  }
  0x18   : > { %p38_p7 = por %p37_p0, %p36_p12  ;;  %s6800_s27 = sshll.u32 %s210_s26, 8 }
  0x19   : > { %s8541_s28 = sshll.u32 %s9261_s21, 8  ;;  %s214_s8 = scalar_lea.vmem [#allocation3], %s6800_s27 }
  0x1a   : > { %s219_s7 = scalar_lea.hbm %s11053_s0, %s8541_s28  ;;  %s222_s9 = sshll.u32 %s214_s8, 4  ;;  %s223_s9 = int_to_ptr.vmem [resolvable:$true] %s222_s9 }
  0x1b   : > { %s220_s10 = sshll.u32 %s219_s7, 4  ;;  %p9381_p2 = pnand %p9020_p5, %p38_p7  ;;  %s221_s10 = int_to_ptr.hbm [resolvable:$true] %s220_s10 }
  0x1c   : > { %s211_s12 = scalar_lea.sflag [#allocation4], %s210_s26  ;;  %s9161_s13 = sshra.s32 %s221_s10, 4  ;;  %s9162_s13 = int_to_ptr.hbm [resolvable:$true] %s9161_s13 }
  0x1d   : > { %s9163_s15 = scalar_lea.hbm %s9162_s13, 256  ;;  %p9165_p10 = pneg %p9381_p2 }
  0x1e   : > { %p9164_p9 = scmp.ne.s32.totalorder %s9162_s13, %s9163_s15  ;;  %s9168_s28 = scalar_lea.hbm %s11053_s0, 512 }
  0x1f   : > { %p9169_p0 = scmp.lt.s32.totalorder %s9162_s13, %s11053_s0  ;;  %p9170_p5 = scmp.lt.s32.totalorder %s9168_s28, %s9163_s15 }
  0x20   : > { %p9166_p12 = pnand %p9165_p10, %p9164_p9 }
  0x21   : > { %p9171_p7 = por %p9170_p5, %p9169_p0 }
  0x22   : > { %p9167_p13 = pneg %p9166_p12 }
  0x24   : > { %p9172_p11 = pnand %p9171_p7, %p9167_p13 }
  0x26   : > { %9175 = shalt.err (!%p9172_p11)
}
  0x27   : > { %s9267_s26 = smov 128   ;;  %s9268_s7 = smov 8  }
  0x28   : > { %9013 = dma.hbm_to_vmem [thread:$0]  (!%p9381_p2), %s221_s10, 4096, %s223_s9, %s211_s12, %s9267_s26, %s9267_s26, %s9268_s7  }
  0x29   : > { %234 = sbr.rel (%p9345_p8) target bundleno = 1541 (0x605), region = 40 }
  0x2e   : > { %s9398_s8 = sand.u32 1, %s9253_s19  }
  0x2f   : > { %s6804_s13 = sshll.u32 %s9398_s8, 8  ;;  %s237_s15 = scalar_lea.sflag [#allocation4], %s9398_s8 }
  0x30   : > { %s9404_s16 = scalar_lea.vmem [#allocation3], %s6804_s13 }
  0x31   : > { %9236 = dma.done.wait (%p9332_p4), %s237_s15, 4096  }
  0x32   : > { %9238 = vsyncadd (%p9332_p4), %s237_s15, 4294963200 }
  0x33   : > { %9240 = dma.done.wait (%p43_p1), [#allocation7], 18432  }
  0x34   : > { %9242 = vsyncadd (%p43_p1), [#allocation7], 4294948864  ;;  %v8669_v0 = vld [vmem:[#allocation6 + $0xf8] sm:$0xff]  ;;  %vm289_vm0 = vcmask 1040384   ;;  %vm290_vm1 = vsmask.f32 256 }
  0x35   : > { %v8677_v1 = vld [vmem:[#allocation6 + $0x138] sm:$0xff]  ;;  %1713 = vmatpush.bf16.msra.mxu0 %v8669_v0  ;;  %8975 = vmatpush.bf16.msra.mxu2 %v8669_v0  ;;  %v8668_v2 = vld [vmem:[#allocation6 + $0xf0] sm:$0xff]  ;;  %vm9415_vm2 = vmand %vm289_vm0, %vm290_vm1  ;;  %vm455_vm3 = vsmask.f32 4368  ;;  %vm746_vm4 = vsmask.f32 7938 }
  0x36   : > { %1802 = vmatpush.bf16.msra.mxu1 %v8677_v1  ;;  %8983 = vmatpush.bf16.msra.mxu3 %v8677_v1  ;;  %v8676_v3 = vld [vmem:[#allocation6 + $0x130] sm:$0xff]  ;;  %v8667_v5 = vld [vmem:[#allocation6 + $0xe8] sm:$0xff]  ;;  %v391_v7 = vld [vmem:[%s9404_s16] sm:$0xff]  ;;  %vm745_vm5 = vcmask 1043456   ;;  %v11126_v33 = vmov 0  ;;  %v11129_v39 = vmov 0 }
  0x37   : > { %v292_v6 = vld [vmem:[#allocation2 + $0x18] sm:$0x1]  ;;  %v9423_v10 = vpack.c.bf16 %v391_v7, %v391_v7  ;;  %v407_v12 = vld [vmem:[%s9404_s16 + $0x80] sm:$0xff]  ;;  %v393_v22 = vld [vmem:[%s9404_s16 + $0x10] sm:$0xff]  ;;  %vm340_vm8 = vcmask 1043459   ;;  %s10818_s30 = scalar_lea.vmem [#allocation9], %s6804_s13 }
  0x38   : > { %v293_v8 = vsel %vm9415_vm2, 0, %v292_v6  ;;  %v392_v9 = vld [vmem:[%s9404_s16 + $0x8] sm:$0xff]  ;;  %v9431_v17 = vpack.c.bf16 %v407_v12, %v407_v12  ;;  %v8666_v18 = vld [vmem:[#allocation6 + $0xe0] sm:$0xff]  ;;  %v394_v30 = vld [vmem:[%s9404_s16 + $0x18] sm:$0xff]  ;;  %v9449_v31 = vpack.c.bf16 %v393_v22, %v393_v22  ;;  %vm341_vm9 = vsmask.f32 7950 }
  0x39   : > { %1714 = vmatpush.bf16.msra.mxu0 %v8668_v2  ;;  %8976 = vmatpush.bf16.msra.mxu2 %v8668_v2  ;;  %v316_v11 = vld [vmem:[#allocation2 + $0xd8] sm:$0x1]  ;;  %294 = vst [vmem:[#allocation2 + $0x18] sm:$0x1] %v293_v8  ;;  %v9426_v14 = vpack.c.bf16 %v392_v9, %v392_v9  ;;  %v458_v19 = vshrl.u32 %v9423_v10, 16  ;;  %v461_v20 = vshll.u32 %v9423_v10, 16  ;;  %vm9453_vm6 = vmor %vm290_vm1, %vm455_vm3  ;;  %v9462_v36 = vpack.c.bf16 %v394_v30, %v394_v30 }
  0x3a   : > { %1803 = vmatpush.bf16.msra.mxu1 %v8676_v3  ;;  %8984 = vmatpush.bf16.msra.mxu3 %v8676_v3  ;;  %v8675_v13 = vld [vmem:[#allocation6 + $0x128] sm:$0xff]  ;;  %v317_v15 = vsel %vm9415_vm2, 0, %v316_v11  ;;  %812 = vst [vmem:[#allocation2 + $0x1c] sm:$0xf] %v9423_v10  ;;  %v11074_v25 = vshrl.u32 %v9431_v17, 16  ;;  %v11073_v26 = vshll.u32 %v9431_v17, 16  ;;  %vm9468_vm7 = vmand %vm745_vm5, %vm746_vm4 }
  0x3b   : > { %v408_v16 = vld [vmem:[%s9404_s16 + $0x88] sm:$0xff]  ;;  %v466_v23 = vshrl.u32 %v9426_v14, 16  ;;  %v469_v24 = vshll.u32 %v9426_v14, 16  ;;  %813 = vst [vmem:[#allocation2 + $0x28] sm:$0xf] %v9426_v14  ;;  %v460_v27 = vrot.slane %v458_v19, 7  ;;  %vm9862_vm10 = vmand %vm340_vm8, %vm341_vm9 }
  0x3c   : > { %v9436_v21 = vpack.c.bf16 %v408_v16, %v408_v16  ;;  %318 = vst [vmem:[#allocation2 + $0xd8] sm:$0x1] %v317_v15  ;;  %v8674_v32 = vld [vmem:[#allocation6 + $0x120] sm:$0xff]  ;;  %v11127_v33 = vsel %vm9453_vm6, 4294967295, %v11126_v33  ;;  %v588_v35 = vrot.slane %v11074_v25, 7  ;;  %v11130_v39 = vsel %vm9468_vm7, 4294967295, %v11129_v39 }
  0x3d   : > { %1715 = vmatpush.bf16.msra.mxu0 %v8667_v5  ;;  %8977 = vmatpush.bf16.msra.mxu2 %v8667_v5  ;;  %11128 = vst [vmem:[#allocation13_spill] sm:$0xff] %v11127_v33  ;;  %v468_v34 = vrot.slane %v466_v23, 7  ;;  %v463_v37 = vor.u32 %v461_v20, %v460_v27  ;;  %v464_v38 = vrot.slane %v460_v27, 4  ;;  %v409_v41 = vld [vmem:[%s9404_s16 + $0x90] sm:$0xff]  ;;  %v410_v42 = vld [vmem:[%s9404_s16 + $0x98] sm:$0xff]  ;;  %v474_v47 = vshrl.u32 %v9449_v31, 16 }
  0x3e   : > { %v11075_v28 = vshrl.u32 %v9436_v21, 16  ;;  %v11071_v29 = vshll.u32 %v9436_v21, 16  ;;  %1804 = vmatpush.bf16.msra.mxu1 %v8675_v13  ;;  %8985 = vmatpush.bf16.msra.mxu3 %v8675_v13  ;;  %828 = vst [vmem:[#allocation2 + $0xdc] sm:$0xf] %v9431_v17  ;;  %v591_v44 = vor.u32 %v11073_v26, %v588_v35  ;;  %v592_v45 = vrot.slane %v588_v35, 4  ;;  %v8665_v48 = vld [vmem:[#allocation6 + $0xd8] sm:$0xff] }
  0x3f   : > { %11131 = vst [vmem:[#allocation14_spill] sm:$0xff] %v11130_v39  ;;  %v471_v43 = vor.u32 %v469_v24, %v468_v34  ;;  %v295_v46 = vld [vmem:[#allocation2 + $0x30] sm:$0x1]  ;;  %v477_v52 = vshll.u32 %v9449_v31, 16  ;;  %v482_v53 = vshrl.u32 %v9462_v36, 16  ;;  %v8673_v54 = vld [vmem:[#allocation6 + $0x118] sm:$0xff]  ;;  %v9500_v61 = vpack.c.bf16 %v409_v41, %v409_v41 }
  0x40   : > { %v596_v40 = vrot.slane %v11075_v28, 7  ;;  %829 = vst [vmem:[#allocation2 + $0xe8] sm:$0xf] %v9436_v21  ;;  %v748_v49 = vld [vmem:[#allocation2 + $0x18] sm:$0xf]  ;;  %v296_v51 = vsel %vm9415_vm2, 0, %v295_v46  ;;  %v9502_v62 = vpack.c.bf16 %v410_v42, %v410_v42 }
  0x41   : > { %814 = vst [vmem:[#allocation2 + $0x34] sm:$0xf] %v9449_v31  ;;  %1716 = vmatpush.bf16.msra.mxu0 %v8666_v18  ;;  %8978 = vmatpush.bf16.msra.mxu2 %v8666_v18  ;;  %v472_v55 = vsel %vm9453_vm6, %v464_v38, %v471_v43  ;;  %v749_v56 = vsel %vm9468_vm7, %v463_v37, %v748_v49  ;;  %v476_v57 = vrot.slane %v474_v47, 7  ;;  %v485_v58 = vshll.u32 %v9462_v36, 16  ;;  %v8664_v1 = vld [vmem:[#allocation6 + $0xd0] sm:$0xff]  ;;  %v395_v6 = vld [vmem:[%s9404_s16 + $0x20] sm:$0xff] }
  0x42   : > { %v599_v50 = vor.u32 %v11071_v29, %v596_v40  ;;  %1805 = vmatpush.bf16.msra.mxu1 %v8674_v32  ;;  %8986 = vmatpush.bf16.msra.mxu3 %v8674_v32  ;;  %297 = vst [vmem:[#allocation2 + $0x30] sm:$0x1] %v296_v51  ;;  %v484_v60 = vrot.slane %v482_v53, 7  ;;  %v319_v5 = vld [vmem:[#allocation2 + $0xf0] sm:$0x1]  ;;  %v8672_v7 = vld [vmem:[#allocation6 + $0x110] sm:$0xff]  ;;  %v9522_v27 = vpack.c.bf16 %v395_v6, %v395_v6 }
  0x43   : > { %750 = vst [vmem:[#allocation2 + $0x18] sm:$0xf] %v749_v56  ;;  %v780_v63 = vld [vmem:[#allocation2 + $0xd8] sm:$0xf]  ;;  %v480_v0 = vrot.slane %v476_v57, 4  ;;  %v479_v8 = vor.u32 %v477_v52, %v476_v57  ;;  %v320_v9 = vsel %vm9415_vm2, 0, %v319_v5 }
  0x44   : > { %v600_v59 = vsel %vm9453_vm6, %v592_v45, %v599_v50  ;;  %751 = vst [vmem:[#allocation2 + $0x24] sm:$0xf] %v472_v55  ;;  %v781_v2 = vsel %vm9468_vm7, %v591_v44, %v780_v63  ;;  %v487_v3 = vor.u32 %v485_v58, %v484_v60  ;;  %v11069_v11 = vshrl.u32 %v9500_v61, 16  ;;  %v396_v12 = vld [vmem:[%s9404_s16 + $0x28] sm:$0xff]  ;;  %v411_v30 = vld [vmem:[%s9404_s16 + $0xa0] sm:$0xff]  ;;  %s8974_s6 = sshll.u32 %s9323_s22, 8 }
  0x45   : > { %1717 = vmatpush.bf16.msra.mxu0 %v8665_v48  ;;  %8979 = vmatpush.bf16.msra.mxu2 %v8665_v48  ;;  %783 = vst [vmem:[#allocation2 + $0xe4] sm:$0xf] %v600_v59  ;;  %v11070_v15 = vshrl.u32 %v9502_v62, 16  ;;  %v8663_v16 = vld [vmem:[#allocation6 + $0xc8] sm:$0xff]  ;;  %v11063_v22 = vshll.u32 %v9502_v62, 16  ;;  %v11065_v34 = vshll.u32 %v9500_v61, 16  ;;  %v9528_v37 = vpack.c.bf16 %v396_v12, %v396_v12  ;;  %s6699_s13 = scalar_lea.hbm %s11058_s5, %s8974_s6 }
  0x46   : > { %1806 = vmatpush.bf16.msra.mxu1 %v8673_v54  ;;  %8987 = vmatpush.bf16.msra.mxu3 %v8673_v54  ;;  %782 = vst [vmem:[#allocation2 + $0xd8] sm:$0xf] %v781_v2  ;;  %v488_v13 = vsel %vm9453_vm6, %v480_v0, %v487_v3  ;;  %v604_v18 = vrot.slane %v11069_v11, 7  ;;  %v8671_v38 = vld [vmem:[#allocation6 + $0x108] sm:$0xff]  ;;  %v9534_v42 = vld [vmem:[#allocation2 + $0x24] sm:$0xf0]  ;;  %v9549_v57 = vpack.c.bf16 %v411_v30, %v411_v30 }
  0x47   : > { %815 = vst [vmem:[#allocation2 + $0x40] sm:$0xf] %v9462_v36  ;;  %v612_v35 = vrot.slane %v11070_v15, 7  ;;  %v9532_v41 = vld [vmem:[#allocation2 + $0x1c] sm:$0xf]  ;;  %v8662_v48 = vld [vmem:[#allocation6 + $0xc0] sm:$0xff] }
  0x48   : > { %755 = vst [vmem:[#allocation2 + $0x3c] sm:$0xf] %v488_v13  ;;  %v9536_v43 = vld [vmem:[#allocation2 + $0xdc] sm:$0xf]  ;;  %v9538_v44 = vld [vmem:[#allocation2 + $0xe4] sm:$0xf0]  ;;  %v607_v60 = vor.u32 %v11065_v34, %v604_v18 }
  0x49   : > { %1718 = vmatpush.bf16.msra.mxu0 %v8664_v1  ;;  %8980 = vmatpush.bf16.msra.mxu2 %v8664_v1  ;;  %v752_v32 = vld [vmem:[#allocation2 + $0x30] sm:$0xf]  ;;  %321 = vst [vmem:[#allocation2 + $0xf0] sm:$0x1] %v320_v9  ;;  %v608_v46 = vrot.slane %v604_v18, 4  ;;  %v615_v50 = vor.u32 %v11063_v22, %v612_v35  ;;  %v11113_v56 = vshrl.u32 %v9522_v27, 16 }
  0x4a   : > { %1807 = vmatpush.bf16.msra.mxu1 %v8672_v7  ;;  %8988 = vmatpush.bf16.msra.mxu3 %v8672_v7  ;;  %v9530_v40 = vld [vmem:[#allocation2 + $0x18] sm:$0xf]  ;;  %v753_v45 = vsel %vm9468_vm7, %v479_v8, %v752_v32  ;;  %830 = vst [vmem:[#allocation2 + $0xf4] sm:$0xf] %v9500_v61  ;;  %v298_v51 = vld [vmem:[#allocation2 + $0x48] sm:$0x1]  ;;  %v6815_v7 = vor.u32 %v9532_v41, %v9534_v42 }
  0x4b   : > { %v8615_v49 = vld [vmem:[#allocation2 + $0x20] sm:$0xf0]  ;;  %754 = vst [vmem:[#allocation2 + $0x30] sm:$0xf] %v753_v45  ;;  %v299_v55 = vsel %vm9415_vm2, 0, %v298_v51  ;;  %v616_v63 = vsel %vm9453_vm6, %v608_v46, %v615_v50  ;;  %v11110_v0 = vshll.u32 %v9522_v27, 16  ;;  %v6911_v8 = vor.u32 %v9536_v43, %v9538_v44 }
  0x4c   : > { %v8639_v54 = vld [vmem:[#allocation2 + $0xe0] sm:$0xf0]  ;;  %831 = vst [vmem:[#allocation2 + $0x100] sm:$0xf] %v9502_v62  ;;  %v11103_v1 = vshrl.u32 %v9528_v37, 16  ;;  %v8670_v2 = vld [vmem:[#allocation6 + $0x100] sm:$0xff]  ;;  %v6811_v6 = vor.u32 %v8615_v49, %v9530_v40 }
  0x4d   : > { %1719 = vmatpush.bf16.msra.mxu0 %v8663_v16  ;;  %8981 = vmatpush.bf16.msra.mxu2 %v8663_v16  ;;  %v6906_v59 = vld [vmem:[#allocation2 + $0xd8] sm:$0xf]  ;;  %300 = vst [vmem:[#allocation2 + $0x48] sm:$0x1] %v299_v55  ;;  %v492_v3 = vrot.slane %v11113_v56, 7  ;;  %v11104_v5 = vshll.u32 %v9528_v37, 16 }
  0x4e   : > { %1808 = vmatpush.bf16.msra.mxu1 %v8671_v38  ;;  %8989 = vmatpush.bf16.msra.mxu3 %v8671_v38  ;;  %787 = vst [vmem:[#allocation2 + $0xfc] sm:$0xf] %v616_v63  ;;  %v8685_v9 = vld [vmem:[#allocation6 + $0x178] sm:$0xff]  ;;  %v500_v13 = vrot.slane %v11103_v1, 7  ;;  %v412_v16 = vld [vmem:[%s9404_s16 + $0xa8] sm:$0xff]  ;;  %v6907_v18 = vor.u32 %v8639_v54, %v6906_v59  ;;  %v11061_v38 = vshrl.u32 %v9549_v57, 16 }
  0x4f   : > { %v8597_v12 = vld [vmem:[#allocation6 + $0x38] sm:$0xff]  ;;  %816 = vst [vmem:[#allocation2 + $0x4c] sm:$0xf] %v9522_v27  ;;  %v496_v32 = vrot.slane %v492_v3, 4  ;;  %v9570_v35 = vpack.c.bf16 %v412_v16, %v412_v16  ;;  %v495_v41 = vor.u32 %v11110_v0, %v492_v3  ;;  %v397_v44 = vld [vmem:[%s9404_s16 + $0x30] sm:$0xff]  ;;  %v11060_v49 = vshll.u32 %v9549_v57, 16 }
  0x50   : > { %v784_v30 = vld [vmem:[#allocation2 + $0xf0] sm:$0xf]  ;;  %817 = vst [vmem:[#allocation2 + $0x58] sm:$0xf] %v9528_v37  ;;  %v503_v42 = vor.u32 %v11104_v5, %v500_v13  ;;  %v322_v43 = vld [vmem:[#allocation2 + $0x108] sm:$0x1] }
  0x51   : > { %1720 = vmatpush.bf16.msra.mxu0 %v8662_v48  ;;  %8982 = vmatpush.bf16.msra.mxu2 %v8662_v48  ;;  %v785_v40 = vsel %vm9468_vm7, %v607_v60, %v784_v30  ;;  %v8605_v45 = vld [vmem:[#allocation6 + $0x78] sm:$0xff]  ;;  %v323_v46 = vsel %vm9415_vm2, 0, %v322_v43  ;;  %v620_v48 = vrot.slane %v11061_v38, 7  ;;  %v8684_v50 = vld [vmem:[#allocation6 + $0x170] sm:$0xff]  ;;  %v11062_v55 = vshrl.u32 %v9570_v35, 16  ;;  %v8683_v16 = vld [vmem:[#allocation6 + $0x168] sm:$0xff] }
  0x52   : > { %1809 = vmatpush.bf16.msra.mxu1 %v8670_v2  ;;  %8990 = vmatpush.bf16.msra.mxu3 %v8670_v2  ;;  %786 = vst [vmem:[#allocation2 + $0xf0] sm:$0xf] %v785_v40  ;;  %v8596_v51 = vld [vmem:[#allocation6 + $0x30] sm:$0xff]  ;;  %v504_v54 = vsel %vm9453_vm6, %v496_v32, %v503_v42  ;;  %v11059_v59 = vshll.u32 %v9570_v35, 16  ;;  %v9589_v60 = vpack.c.bf16 %v397_v44, %v397_v44  ;;  %v398_v2 = vld [vmem:[%s9404_s16 + $0x38] sm:$0xff]  ;;  %v8603_v44 = vld [vmem:[#allocation6 + $0x68] sm:$0xff] }
  0x53   : > { %324 = vst [vmem:[#allocation2 + $0x108] sm:$0x1] %v323_v46  ;;  %v9597_v13 = vpack.c.bf16 %v398_v2, %v398_v2  ;;  %v301_v32 = vld [vmem:[#allocation2 + $0x60] sm:$0x1]  ;;  %v8618_v2 = vld [vmem:[#allocation2 + $0x38] sm:$0xf0] }
  0x54   : > { %1721 = vmatmul.bf16.vlgmr.msra.gmra.mxu0 %v6811_v6  ;;  %1761 = vmatmul.bf16.vlgmr.msra.gmra.mxu2 %v6907_v18  ;;  %v756_v63 = vld [vmem:[#allocation2 + $0x48] sm:$0xf]  ;;  %759 = vst [vmem:[#allocation2 + $0x54] sm:$0xf] %v504_v54  ;;  %v8604_v6 = vld [vmem:[#allocation6 + $0x70] sm:$0xff]  ;;  %v8595_v18 = vld [vmem:[#allocation6 + $0x28] sm:$0xff] }
  0x55   : > { %1891 = vmatpush.bf16.msrb.mxu2 %v8685_v9  ;;  %1810 = vmatmul.bf16.vlgmr.msra.gmra.mxu1 %v6815_v7  ;;  %v757_v3 = vsel %vm9468_vm7, %v495_v41, %v756_v63  ;;  %v624_v9 = vrot.slane %v620_v48, 4  ;;  %832 = vst [vmem:[#allocation2 + $0x10c] sm:$0xf] %v9549_v57  ;;  %v623_v7 = vor.u32 %v11060_v49, %v620_v48  ;;  %v11101_v30 = vshrl.u32 %v9589_v60, 16  ;;  %v413_v42 = vld [vmem:[%s9404_s16 + $0xb0] sm:$0xff]  ;;  %v414_v54 = vld [vmem:[%s9404_s16 + $0xb8] sm:$0xff] }
  0x56   : > { %2380 = vmatpush.bf16.msrb.mxu3 %v8597_v12  ;;  %v628_v12 = vrot.slane %v11062_v55, 7  ;;  %2469 = vmatpush.bf16.msrb.mxu0 %v8605_v45  ;;  %758 = vst [vmem:[#allocation2 + $0x48] sm:$0xf] %v757_v3  ;;  %v11091_v40 = vshrl.u32 %v9597_v13, 16  ;;  %v11099_v41 = vshll.u32 %v9597_v13, 16  ;;  %v302_v45 = vsel %vm9415_vm2, 0, %v301_v32 }
  0x57   : > { %1850 = vmatmul.bf16.vlgmr.msra.gmra.mxu3 %v6911_v8  ;;  %833 = vst [vmem:[#allocation2 + $0x118] sm:$0xf] %v9570_v35  ;;  %v508_v46 = vrot.slane %v11101_v30, 7  ;;  %v9615_v48 = vpack.c.bf16 %v413_v42, %v413_v42  ;;  %v6822_v63 = vld [vmem:[#allocation2 + $0x30] sm:$0xf]  ;;  %v9626_v38 = vpack.c.bf16 %v414_v54, %v414_v54  ;;  %v406_v1 = vld [vmem:[%s9404_s16 + $0x78] sm:$0xff] }
  0x58   : > { %v631_v8 = vor.u32 %v11059_v59, %v628_v12  ;;  %818 = vst [vmem:[#allocation2 + $0x64] sm:$0xf] %v9589_v60  ;;  %v8617_v32 = vld [vmem:[#allocation2 + $0x34] sm:$0xf]  ;;  %v6824_v42 = vld [vmem:[#allocation2 + $0x3c] sm:$0xf0]  ;;  %v6823_v55 = vor.u32 %v8618_v2, %v6822_v63  ;;  %v9817_v5 = vpack.c.bf16 %v406_v1, %v406_v1 }
  0x59   : > { %1892 = vmatpush.bf16.msrb.mxu2 %v8684_v50  ;;  %303 = vst [vmem:[#allocation2 + $0x60] sm:$0x1] %v302_v45  ;;  %v512_v12 = vrot.slane %v508_v46, 4  ;;  %v325_v49 = vld [vmem:[#allocation2 + $0x120] sm:$0x1]  ;;  %v11068_v54 = vshrl.u32 %v9626_v38, 16 }
  0x5a   : > { %2381 = vmatpush.bf16.msrb.mxu3 %v8596_v51  ;;  %v632_v43 = vsel %vm9453_vm6, %v624_v9, %v631_v8  ;;  %2470 = vmatpush.bf16.msrb.mxu0 %v8604_v6  ;;  %v788_v50 = vld [vmem:[#allocation2 + $0x108] sm:$0xf]  ;;  %v516_v51 = vrot.slane %v11091_v40, 7  ;;  %v11100_v9 = vshll.u32 %v9589_v60, 16  ;;  %v11064_v8 = vshrl.u32 %v9615_v48, 16  ;;  %v8606_v31 = vld [vmem:[#allocation6 + $0x80] sm:$0xff] }
  0x5b   : > { %791 = vst [vmem:[#allocation2 + $0x114] sm:$0xf] %v632_v43  ;;  %v789_v3 = vsel %vm9468_vm7, %v623_v7, %v788_v50  ;;  %v8642_v6 = vld [vmem:[#allocation2 + $0xf8] sm:$0xf0]  ;;  %v8641_v43 = vld [vmem:[#allocation2 + $0xf4] sm:$0xf] }
  0x5c   : > { %790 = vst [vmem:[#allocation2 + $0x108] sm:$0xf] %v789_v3  ;;  %v519_v59 = vor.u32 %v11099_v41, %v516_v51  ;;  %v6918_v7 = vld [vmem:[#allocation2 + $0xf0] sm:$0xf]  ;;  %v6920_v45 = vld [vmem:[#allocation2 + $0xfc] sm:$0xf0]  ;;  %v511_v3 = vor.u32 %v11100_v9, %v508_v46 }
  0x5d   : > { %1893 = vmatpush.bf16.msrb.mxu2 %v8683_v16  ;;  %819 = vst [vmem:[#allocation2 + $0x70] sm:$0xf] %v9597_v13  ;;  %v326_v16 = vsel %vm9415_vm2, 0, %v325_v49  ;;  %v11067_v51 = vshll.u32 %v9615_v48, 16  ;;  %v11066_v49 = vshll.u32 %v9626_v38, 16  ;;  %v6919_v22 = vor.u32 %v8642_v6, %v6918_v7  ;;  %s6700_s15 = sshll.u32 %s10818_s30, 4  ;;  %s6701_s15 = int_to_ptr.vmem [resolvable:$true] %s6700_s15 }
  0x5e   : > { %2382 = vmatpush.bf16.msrb.mxu3 %v8595_v18  ;;  %v636_v18 = vrot.slane %v11064_v8, 7  ;;  %2471 = vmatpush.bf16.msrb.mxu0 %v8603_v44  ;;  %v520_v50 = vsel %vm9453_vm6, %v512_v12, %v519_v59  ;;  %327 = vst [vmem:[#allocation2 + $0x120] sm:$0x1] %v326_v16  ;;  %v644_v44 = vrot.slane %v11068_v54, 7  ;;  %v304_v59 = vld [vmem:[#allocation2 + $0x78] sm:$0x1]  ;;  %v6827_v12 = vor.u32 %v8617_v32, %v6824_v42 }
  0x5f   : > { %763 = vst [vmem:[#allocation2 + $0x6c] sm:$0xf] %v520_v50  ;;  %v6923_v16 = vor.u32 %v8641_v43, %v6920_v45  ;;  %v305_v46 = vsel %vm9415_vm2, 0, %v304_v59  ;;  %v399_v50 = vld [vmem:[%s9404_s16 + $0x40] sm:$0xff]  ;;  %v400_v42 = vld [vmem:[%s9404_s16 + $0x48] sm:$0xff]  ;;  %s6702_s24 = sshll.u32 %s6699_s13, 4  ;;  %s6703_s24 = int_to_ptr.hbm [resolvable:$true] %s6702_s24 }
  0x60   : > { %v640_v8 = vrot.slane %v636_v18, 4  ;;  %834 = vst [vmem:[#allocation2 + $0x124] sm:$0xf] %v9615_v48  ;;  %v760_v34 = vld [vmem:[#allocation2 + $0x60] sm:$0xf]  ;;  %v639_v63 = vor.u32 %v11067_v51, %v636_v18  ;;  %v647_v2 = vor.u32 %v11066_v49, %v644_v44  ;;  %v9651_v6 = vpack.c.bf16 %v399_v50, %v399_v50  ;;  %v8682_v44 = vld [vmem:[#allocation6 + $0x160] sm:$0xff] }
  0x61   : > { %835 = vst [vmem:[#allocation2 + $0x130] sm:$0xf] %v9626_v38  ;;  %v761_v32 = vsel %vm9468_vm7, %v511_v3, %v760_v34  ;;  %v328_v45 = vld [vmem:[#allocation2 + $0x138] sm:$0x1]  ;;  %v8594_v59 = vld [vmem:[#allocation6 + $0x20] sm:$0xff]  ;;  %1894 = vmatpush.bf16.msrb.mxu2 %v8682_v44  ;;  %s6688_s22 = scalar_lea.sflag [#allocation5], %s9398_s8 }
  0x62   : > { %306 = vst [vmem:[#allocation2 + $0x78] sm:$0x1] %v305_v46  ;;  %v648_v43 = vsel %vm9453_vm6, %v640_v8, %v647_v2  ;;  %v11078_v7 = vshrl.u32 %v9651_v6, 16  ;;  %v9659_v46 = vpack.c.bf16 %v400_v42, %v400_v42  ;;  %v11077_v8 = vshll.u32 %v9651_v6, 16  ;;  %2383 = vmatpush.bf16.msrb.mxu3 %v8594_v59  ;;  %v6834_v44 = vld [vmem:[#allocation2 + $0x48] sm:$0xf] }
  0x63   : > { %762 = vst [vmem:[#allocation2 + $0x60] sm:$0xf] %v761_v32  ;;  %v8621_v59 = vld [vmem:[#allocation2 + $0x50] sm:$0xf0]  ;;  %v6930_v51 = vld [vmem:[#allocation2 + $0x108] sm:$0xf] }
  0x64   : > { %1726 = vmatmul.bf16.gmra.mxu0 %v6823_v55  ;;  %1766 = vmatmul.bf16.gmra.mxu2 %v6919_v22  ;;  %795 = vst [vmem:[#allocation2 + $0x12c] sm:$0xf] %v648_v43  ;;  %v8602_v22 = vld [vmem:[#allocation6 + $0x60] sm:$0xff]  ;;  %v524_v55 = vrot.slane %v11078_v7, 7  ;;  %v11089_v3 = vshrl.u32 %v9659_v46, 16  ;;  %v401_v7 = vld [vmem:[%s9404_s16 + $0x50] sm:$0xff] }
  0x65   : > { %1815 = vmatmul.bf16.gmra.mxu1 %v6827_v12  ;;  %v792_v18 = vld [vmem:[#allocation2 + $0x120] sm:$0xf]  ;;  %v11076_v12 = vshll.u32 %v9659_v46, 16  ;;  %2472 = vmatpush.bf16.msrb.mxu0 %v8602_v22  ;;  %820 = vst [vmem:[#allocation2 + $0x7c] sm:$0xf] %v9651_v6  ;;  %s9205_s29 = sshra.s32 %s6703_s24, 4  ;;  %s9206_s29 = int_to_ptr.hbm [resolvable:$true] %s9205_s29 }
  0x66   : > { %v793_v34 = vsel %vm9468_vm7, %v639_v63, %v792_v18  ;;  %v527_v50 = vor.u32 %v11077_v8, %v524_v55  ;;  %v415_v63 = vld [vmem:[%s9404_s16 + $0xc0] sm:$0xff]  ;;  %v528_v2 = vrot.slane %v524_v55, 4  ;;  %v532_v32 = vrot.slane %v11089_v3, 7  ;;  %821 = vst [vmem:[#allocation2 + $0x88] sm:$0xf] %v9659_v46  ;;  %s9207_s9 = scalar_lea.hbm %s9206_s29, 256  ;;  %p9212_p11 = scmp.lt.s32.totalorder %s9206_s29, %s11058_s5 }
  0x67   : > { %1855 = vmatmul.bf16.gmra.mxu3 %v6923_v16  ;;  %794 = vst [vmem:[#allocation2 + $0x120] sm:$0xf] %v793_v34  ;;  %v329_v16 = vsel %vm9415_vm2, 0, %v328_v45  ;;  %v9677_v43 = vpack.c.bf16 %v415_v63, %v415_v63  ;;  %v416_v45 = vld [vmem:[%s9404_s16 + $0xc8] sm:$0xff]  ;;  %v8645_v63 = vld [vmem:[#allocation2 + $0x110] sm:$0xf0]  ;;  %p9208_p1 = scmp.ne.s32.totalorder %s9206_s29, %s9207_s9 }
  0x68   : > { %330 = vst [vmem:[#allocation2 + $0x138] sm:$0x1] %v329_v16  ;;  %v535_v34 = vor.u32 %v11076_v12, %v532_v32  ;;  %v9684_v22 = vpack.c.bf16 %v416_v45, %v416_v45  ;;  %v8620_v54 = vld [vmem:[#allocation2 + $0x4c] sm:$0xf]  ;;  %v6836_v11 = vld [vmem:[#allocation2 + $0x54] sm:$0xf0] }
  0x69   : > { %v764_v42 = vld [vmem:[#allocation2 + $0x78] sm:$0xf]  ;;  %v11072_v55 = vshrl.u32 %v9677_v43, 16  ;;  %v11079_v49 = vshll.u32 %v9677_v43, 16  ;;  %836 = vst [vmem:[#allocation2 + $0x13c] sm:$0xf] %v9677_v43  ;;  %v6839_v25 = vor.u32 %v8620_v54, %v6836_v11  ;;  %p9209_p4 = pnand %p9208_p1, %p9368_p3 }
  0x6a   : > { %v765_v18 = vsel %vm9468_vm7, %v527_v50, %v764_v42  ;;  %v536_v16 = vsel %vm9453_vm6, %v528_v2, %v535_v34  ;;  %v11080_v32 = vshrl.u32 %v9684_v22, 16  ;;  %v11083_v42 = vshll.u32 %v9684_v22, 16  ;;  %837 = vst [vmem:[#allocation2 + $0x148] sm:$0xf] %v9684_v22  ;;  %v6932_v45 = vld [vmem:[#allocation2 + $0x114] sm:$0xf0] }
  0x6b   : > { %766 = vst [vmem:[#allocation2 + $0x78] sm:$0xf] %v765_v18  ;;  %v652_v50 = vrot.slane %v11072_v55, 7  ;;  %v8644_v18 = vld [vmem:[#allocation2 + $0x10c] sm:$0xf]  ;;  %v6835_v34 = vor.u32 %v8621_v59, %v6834_v44  ;;  %v6931_v55 = vor.u32 %v8645_v63, %v6930_v51  ;;  %v417_v54 = vld [vmem:[%s9404_s16 + $0xd0] sm:$0xff]  ;;  %p9210_p8 = pneg %p9209_p4 }
  0x6c   : > { %767 = vst [vmem:[#allocation2 + $0x84] sm:$0xf] %v536_v16  ;;  %v660_v2 = vrot.slane %v11080_v32, 7  ;;  %v307_v26 = vld [vmem:[#allocation2 + $0x90] sm:$0x1]  ;;  %v6935_v28 = vor.u32 %v8644_v18, %v6932_v45  ;;  %v402_v16 = vld [vmem:[%s9404_s16 + $0x58] sm:$0xff]  ;;  %v9708_v32 = vpack.c.bf16 %v401_v7, %v401_v7 }
  0x6d   : > { %v655_v15 = vor.u32 %v11079_v49, %v652_v50  ;;  %v656_v29 = vrot.slane %v652_v50, 4  ;;  %v308_v50 = vsel %vm9415_vm2, 0, %v307_v26  ;;  %v9710_v44 = vpack.c.bf16 %v402_v16, %v402_v16  ;;  %v331_v51 = vld [vmem:[#allocation2 + $0x150] sm:$0x1]  ;;  %v418_v59 = vld [vmem:[%s9404_s16 + $0xd8] sm:$0xff]  ;;  %s9211_s12 = scalar_lea.hbm %s11058_s5, 512 }
  0x6e   : > { %v663_v12 = vor.u32 %v11083_v42, %v660_v2  ;;  %v11085_v63 = vshrl.u32 %v9708_v32, 16  ;;  %v8681_v26 = vld [vmem:[#allocation6 + $0x158] sm:$0xff]  ;;  %309 = vst [vmem:[#allocation2 + $0x90] sm:$0x1] %v308_v50  ;;  %vm844_vm11 = vsmask.f32 3328  ;;  %p9213_p2 = scmp.lt.s32.totalorder %s9211_s12, %s9207_s9 }
  0x6f   : > { %v796_v8 = vld [vmem:[#allocation2 + $0x138] sm:$0xf]  ;;  %v8593_v7 = vld [vmem:[#allocation6 + $0x18] sm:$0xff]  ;;  %v11086_v18 = vshrl.u32 %v9710_v44, 16  ;;  %822 = vst [vmem:[#allocation2 + $0x94] sm:$0xf] %v9708_v32  ;;  %1895 = vmatpush.bf16.msrb.mxu2 %v8681_v26  ;;  %vm9881_vm14 = vmand %vm745_vm5, %vm844_vm11 }
  0x70   : > { %v797_v49 = vsel %vm9468_vm7, %v655_v15, %v796_v8  ;;  %v664_v11 = vsel %vm9453_vm6, %v656_v29, %v663_v12  ;;  %v9717_v15 = vpack.c.bf16 %v417_v54, %v417_v54  ;;  %v9719_v8 = vpack.c.bf16 %v418_v59, %v418_v59  ;;  %2384 = vmatpush.bf16.msrb.mxu3 %v8593_v7  ;;  %p9214_p9 = por %p9213_p2, %p9212_p11 }
  0x71   : > { %798 = vst [vmem:[#allocation2 + $0x138] sm:$0xf] %v797_v49  ;;  %v332_v29 = vsel %vm9415_vm2, 0, %v331_v51  ;;  %v8601_v49 = vld [vmem:[#allocation6 + $0x58] sm:$0xff]  ;;  %v540_v12 = vrot.slane %v11085_v63, 7 }
  0x72   : > { %799 = vst [vmem:[#allocation2 + $0x144] sm:$0xf] %v664_v11  ;;  %v11082_v45 = vshrl.u32 %v9719_v8, 16  ;;  %2473 = vmatpush.bf16.msrb.mxu0 %v8601_v49  ;;  %v11090_v16 = vshll.u32 %v9717_v15, 16  ;;  %v11087_v54 = vshll.u32 %v9719_v8, 16  ;;  %p9215_p10 = pnand %p9214_p9, %p9210_p8 }
  0x73   : > { %823 = vst [vmem:[#allocation2 + $0xa0] sm:$0xf] %v9710_v44  ;;  %v544_v2 = vrot.slane %v540_v12, 4  ;;  %v8624_v49 = vld [vmem:[#allocation2 + $0x68] sm:$0xf0] }
  0x74   : > { %1731 = vmatmul.bf16.gmra.mxu0 %v6835_v34  ;;  %1771 = vmatmul.bf16.gmra.mxu2 %v6931_v55  ;;  %v11084_v55 = vshll.u32 %v9708_v32, 16  ;;  %v548_v34 = vrot.slane %v11086_v18, 7  ;;  %333 = vst [vmem:[#allocation2 + $0x150] sm:$0x1] %v332_v29  ;;  %v676_v11 = vrot.slane %v11082_v45, 7 }
  0x75   : > { %1820 = vmatmul.bf16.gmra.mxu1 %v6839_v25  ;;  %v11088_v25 = vshll.u32 %v9710_v44, 16  ;;  %838 = vst [vmem:[#allocation2 + $0x154] sm:$0xf] %v9717_v15  ;;  %v6846_v29 = vld [vmem:[#allocation2 + $0x60] sm:$0xf] }
  0x76   : > { %v543_v50 = vor.u32 %v11084_v55, %v540_v12  ;;  %839 = vst [vmem:[#allocation2 + $0x160] sm:$0xf] %v9719_v8  ;;  %v679_v7 = vor.u32 %v11087_v54, %v676_v11  ;;  %v8623_v12 = vld [vmem:[#allocation2 + $0x64] sm:$0xf]  ;;  %v768_v42 = vld [vmem:[#allocation2 + $0x90] sm:$0xf] }
  0x77   : > { %1860 = vmatmul.bf16.gmra.mxu3 %v6935_v28  ;;  %v11081_v28 = vshrl.u32 %v9717_v15, 16  ;;  %v551_v59 = vor.u32 %v11088_v25, %v548_v34  ;;  %v6942_v63 = vld [vmem:[#allocation2 + $0x120] sm:$0xf]  ;;  %v8648_v18 = vld [vmem:[#allocation2 + $0x128] sm:$0xf0] }
  0x78   : > { %v769_v34 = vsel %vm9468_vm7, %v543_v50, %v768_v42  ;;  %v8647_v54 = vld [vmem:[#allocation2 + $0x124] sm:$0xf]  ;;  %v6944_v25 = vld [vmem:[#allocation2 + $0x12c] sm:$0xf0]  ;;  %827 = vst [vmem:[#allocation2 + $0xd0] sm:$0xf] %v9817_v5 }
  0x79   : > { %v668_v51 = vrot.slane %v11081_v28, 7  ;;  %v6848_v28 = vld [vmem:[#allocation2 + $0x6c] sm:$0xf0]  ;;  %v552_v45 = vsel %vm9453_vm6, %v544_v2, %v551_v59  ;;  %770 = vst [vmem:[#allocation2 + $0x90] sm:$0xf] %v769_v34  ;;  %v6847_v2 = vor.u32 %v8624_v49, %v6846_v29  ;;  %v6947_v50 = vor.u32 %v8647_v54, %v6944_v25  ;;  %v8592_v25 = vld [vmem:[#allocation6 + $0x10] sm:$0xff] }
  0x7a   : > { %771 = vst [vmem:[#allocation2 + $0x9c] sm:$0xf] %v552_v45  ;;  %v6851_v42 = vor.u32 %v8623_v12, %v6848_v28  ;;  %v419_v29 = vld [vmem:[%s9404_s16 + $0xe0] sm:$0xff]  ;;  %v8600_v12 = vld [vmem:[#allocation6 + $0x50] sm:$0xff]  ;;  %2385 = vmatpush.bf16.msrb.mxu3 %v8592_v25  ;;  %vm845_vm12 = vsmask.f32 7440 }
  0x7b   : > { %v672_v26 = vrot.slane %v668_v51, 4  ;;  %v671_v55 = vor.u32 %v11090_v16, %v668_v51  ;;  %v800_v3 = vld [vmem:[#allocation2 + $0x150] sm:$0xf]  ;;  %v6943_v51 = vor.u32 %v8648_v18, %v6942_v63  ;;  %v310_v16 = vld [vmem:[#allocation2 + $0xa8] sm:$0x1]  ;;  %v420_v63 = vld [vmem:[%s9404_s16 + $0xe8] sm:$0xff]  ;;  %v9772_v54 = vpack.c.bf16 %v419_v29, %v419_v29  ;;  %2474 = vmatpush.bf16.msrb.mxu0 %v8600_v12 }
  0x7c   : > { %v311_v45 = vsel %vm9415_vm2, 0, %v310_v16  ;;  %v8680_v18 = vld [vmem:[#allocation6 + $0x150] sm:$0xff]  ;;  %v9774_v49 = vpack.c.bf16 %v420_v63, %v420_v63  ;;  %vm9876_vm13 = vmor %vm844_vm11, %vm845_vm12 }
  0x7d   : > { %v680_v11 = vsel %vm9453_vm6, %v672_v26, %v679_v7  ;;  %v801_v59 = vsel %vm9468_vm7, %v671_v55, %v800_v3  ;;  %v403_v26 = vld [vmem:[%s9404_s16 + $0x60] sm:$0xff]  ;;  %v404_v7 = vld [vmem:[%s9404_s16 + $0x68] sm:$0xff]  ;;  %312 = vst [vmem:[#allocation2 + $0xa8] sm:$0x1] %v311_v45  ;;  %1896 = vmatpush.bf16.msrb.mxu2 %v8680_v18  ;;  %v11102_v63 = vshll.u32 %v9772_v54, 16 }
  0x7e   : > { %803 = vst [vmem:[#allocation2 + $0x15c] sm:$0xf] %v680_v11  ;;  %v9762_v40 = vpack.c.bf16 %v403_v26, %v403_v26  ;;  %v9764_v34 = vpack.c.bf16 %v404_v7, %v404_v7  ;;  %v334_v11 = vld [vmem:[#allocation2 + $0x168] sm:$0x1]  ;;  %v11098_v45 = vshll.u32 %v9774_v49, 16 }
  0x7f   : > { %802 = vst [vmem:[#allocation2 + $0x150] sm:$0xf] %v801_v59  ;;  %v335_v59 = vsel %vm9415_vm2, 0, %v334_v11 }
  0x80   : > { %v11095_v3 = vshrl.u32 %v9762_v40, 16  ;;  %v11097_v55 = vshrl.u32 %v9764_v34, 16  ;;  %v11094_v28 = vshll.u32 %v9762_v40, 16  ;;  %v11093_v16 = vshll.u32 %v9764_v34, 16  ;;  %824 = vst [vmem:[#allocation2 + $0xac] sm:$0xf] %v9762_v40 }
  0x81   : > { %825 = vst [vmem:[#allocation2 + $0xb8] sm:$0xf] %v9764_v34 }
  0x82   : > { %336 = vst [vmem:[#allocation2 + $0x168] sm:$0x1] %v335_v59 }
  0x83   : > { %840 = vst [vmem:[#allocation2 + $0x16c] sm:$0xf] %v9772_v54 }
  0x84   : > { %1736 = vmatmul.bf16.gmra.mxu0 %v6847_v2  ;;  %1776 = vmatmul.bf16.gmra.mxu2 %v6943_v51  ;;  %v556_v2 = vrot.slane %v11095_v3, 7  ;;  %v564_v51 = vrot.slane %v11097_v55, 7  ;;  %v772_v12 = vld [vmem:[#allocation2 + $0xa8] sm:$0xf]  ;;  %v8651_v55 = vld [vmem:[#allocation2 + $0x140] sm:$0xf0] }
  0x85   : > { %1825 = vmatmul.bf16.gmra.mxu1 %v6851_v42  ;;  %v11092_v42 = vshrl.u32 %v9772_v54, 16  ;;  %v6860_v3 = vld [vmem:[#allocation2 + $0x84] sm:$0xf0]  ;;  %841 = vst [vmem:[#allocation2 + $0x178] sm:$0xf] %v9774_v49 }
  0x86   : > { %v559_v26 = vor.u32 %v11094_v28, %v556_v2  ;;  %v560_v7 = vrot.slane %v556_v2, 4  ;;  %v567_v29 = vor.u32 %v11093_v16, %v564_v51  ;;  %v6858_v2 = vld [vmem:[#allocation2 + $0x78] sm:$0xf]  ;;  %v8627_v16 = vld [vmem:[#allocation2 + $0x80] sm:$0xf0] }
  0x87   : > { %1865 = vmatmul.bf16.gmra.mxu3 %v6947_v50  ;;  %v11096_v50 = vshrl.u32 %v9774_v49, 16  ;;  %v684_v11 = vrot.slane %v11092_v42, 7  ;;  %v8626_v28 = vld [vmem:[#allocation2 + $0x7c] sm:$0xf] }
  0x88   : > { %v568_v25 = vsel %vm9453_vm6, %v560_v7, %v567_v29  ;;  %v773_v51 = vsel %vm9468_vm7, %v559_v26, %v772_v12  ;;  %v8650_v29 = vld [vmem:[#allocation2 + $0x13c] sm:$0xf]  ;;  %v6863_v41 = vor.u32 %v8626_v28, %v6860_v3 }
  0x89   : > { %v692_v18 = vrot.slane %v11096_v50, 7  ;;  %775 = vst [vmem:[#allocation2 + $0xb4] sm:$0xf] %v568_v25  ;;  %v688_v59 = vrot.slane %v684_v11, 4  ;;  %v6954_v50 = vld [vmem:[#allocation2 + $0x138] sm:$0xf]  ;;  %v687_v7 = vor.u32 %v11102_v63, %v684_v11 }
  0x8a   : > { %774 = vst [vmem:[#allocation2 + $0xa8] sm:$0xf] %v773_v51  ;;  %v6956_v25 = vld [vmem:[#allocation2 + $0x144] sm:$0xf0]  ;;  %v6955_v12 = vor.u32 %v8651_v55, %v6954_v50  ;;  %v313_v51 = vld [vmem:[#allocation2 + $0xc0] sm:$0x1] }
  0x8b   : > { %v695_v42 = vor.u32 %v11098_v45, %v692_v18  ;;  %v6859_v18 = vor.u32 %v8627_v16, %v6858_v2  ;;  %v804_v45 = vld [vmem:[#allocation2 + $0x168] sm:$0xf]  ;;  %v6959_v9 = vor.u32 %v8650_v29, %v6956_v25  ;;  %v314_v11 = vsel %vm9415_vm2, 0, %v313_v51  ;;  %v405_v63 = vld [vmem:[%s9404_s16 + $0x70] sm:$0xff]  ;;  %v8679_v28 = vld [vmem:[#allocation6 + $0x148] sm:$0xff] }
  0x8c   : > { %v805_v30 = vsel %vm9468_vm7, %v687_v7, %v804_v45  ;;  %v337_v16 = vld [vmem:[#allocation2 + $0x180] sm:$0x1]  ;;  %315 = vst [vmem:[#allocation2 + $0xc0] sm:$0x1] %v314_v11  ;;  %v8591_v50 = vld [vmem:[#allocation6 + $0x8] sm:$0xff]  ;;  %v8613_v2 = vld [vmem:[#allocation6 + $0xb8] sm:$0xff]  ;;  %1897 = vmatpush.bf16.msrb.mxu2 %v8679_v28 }
  0x8d   : > { %v696_v26 = vsel %vm9453_vm6, %v688_v59, %v695_v42  ;;  %v421_v42 = vld [vmem:[%s9404_s16 + $0xf0] sm:$0xff]  ;;  %806 = vst [vmem:[#allocation2 + $0x168] sm:$0xf] %v805_v30  ;;  %v9815_v59 = vpack.c.bf16 %v405_v63, %v405_v63  ;;  %v11109_v30 = vshrl.u32 %v9817_v5, 16  ;;  %v338_v1 = vsel %vm9415_vm2, 0, %v337_v16  ;;  %v8599_v63 = vld [vmem:[#allocation6 + $0x48] sm:$0xff]  ;;  %2386 = vmatpush.bf16.msrb.mxu3 %v8591_v50  ;;  %2558 = vmatpush.bf16.msrb.mxu1 %v8613_v2 }
  0x8e   : > { %807 = vst [vmem:[#allocation2 + $0x174] sm:$0xf] %v696_v26  ;;  %v9819_v55 = vpack.c.bf16 %v421_v42, %v421_v42  ;;  %v11106_v26 = vshll.u32 %v9817_v5, 16  ;;  %2475 = vmatpush.bf16.msrb.mxu0 %v8599_v63  ;;  %v8630_v28 = vld [vmem:[#allocation2 + $0x98] sm:$0xf0] }
  0x8f   : > { %v11108_v3 = vshrl.u32 %v9815_v59, 16  ;;  %v11107_v45 = vshll.u32 %v9815_v59, 16  ;;  %826 = vst [vmem:[#allocation2 + $0xc4] sm:$0xf] %v9815_v59  ;;  %v6870_v63 = vld [vmem:[#allocation2 + $0x90] sm:$0xf] }
  0x90   : > { %v11105_v4 = vshrl.u32 %v9819_v55, 16  ;;  %339 = vst [vmem:[#allocation2 + $0x180] sm:$0x1] %v338_v1  ;;  %v8629_v2 = vld [vmem:[#allocation2 + $0x94] sm:$0xf] }
  0x91   : > { %v572_v7 = vrot.slane %v11108_v3, 7  ;;  %842 = vst [vmem:[#allocation2 + $0x184] sm:$0xf] %v9819_v55  ;;  %v6872_v3 = vld [vmem:[#allocation2 + $0x9c] sm:$0xf0] }
  0x92   : > { %v700_v11 = vrot.slane %v11105_v4, 7 }
  0x93   : > { %v575_v29 = vor.u32 %v11107_v45, %v572_v7  ;;  %v576_v25 = vrot.slane %v572_v7, 4  ;;  %v776_v1 = vld [vmem:[#allocation2 + $0xc0] sm:$0xf]  ;;  %v8654_v45 = vld [vmem:[#allocation2 + $0x158] sm:$0xf0] }
  0x94   : > { %1741 = vmatmul.bf16.gmra.mxu0 %v6859_v18  ;;  %1781 = vmatmul.bf16.gmra.mxu2 %v6955_v12  ;;  %v11111_v12 = vshll.u32 %v9819_v55, 16 }
  0x95   : > { %1830 = vmatmul.bf16.gmra.mxu1 %v6863_v41  ;;  %v580_v41 = vrot.slane %v11109_v30, 7  ;;  %v777_v7 = vsel %vm9468_vm7, %v575_v29, %v776_v1  ;;  %v8653_v30 = vld [vmem:[#allocation2 + $0x154] sm:$0xf]  ;;  %v6871_v29 = vor.u32 %v8630_v28, %v6870_v63  ;;  %v851_v63 = vrot.slane %v469_v24, 5 }
  0x96   : > { %778 = vst [vmem:[#allocation2 + $0xc0] sm:$0xf] %v777_v7  ;;  %v343_v7 = vld [vmem:[#allocation2 + $0x2c] sm:$0x8]  ;;  %v8590_v28 = vld [vmem:[#allocation6] sm:$0xff] }
  0x97   : > { %1870 = vmatmul.bf16.gmra.mxu3 %v6959_v9  ;;  %v422_v9 = vld [vmem:[%s9404_s16 + $0xf8] sm:$0xff]  ;;  %v583_v51 = vor.u32 %v11106_v26, %v580_v41  ;;  %v703_v41 = vor.u32 %v11111_v12, %v700_v11  ;;  %v6966_v26 = vld [vmem:[#allocation2 + $0x150] sm:$0xf]  ;;  %v808_v0 = vld [vmem:[#allocation2 + $0x180] sm:$0xf] }
  0x98   : > { %v9837_v18 = vpack.c.bf16 %v422_v9, %v422_v9  ;;  %v704_v9 = vrot.slane %v700_v11, 4  ;;  %2387 = vmatpush.bf16.msrb.mxu3 %v8590_v28  ;;  %v8633_v24 = vld [vmem:[#allocation2 + $0xb0] sm:$0xf0] }
  0x99   : > { %v584_v50 = vsel %vm9453_vm6, %v576_v25, %v583_v51  ;;  %v6968_v25 = vld [vmem:[#allocation2 + $0x15c] sm:$0xf0]  ;;  %v809_v1 = vsel %vm9468_vm7, %v703_v41, %v808_v0  ;;  %v8678_v0 = vld [vmem:[#allocation6 + $0x140] sm:$0xff] }
  0x9a   : > { %v11112_v42 = vshrl.u32 %v9837_v18, 16  ;;  %v11114_v16 = vshll.u32 %v9837_v18, 16  ;;  %843 = vst [vmem:[#allocation2 + $0x190] sm:$0xf] %v9837_v18  ;;  %v6971_v56 = vor.u32 %v8653_v30, %v6968_v25  ;;  %v848_v30 = vrot.slane %v461_v20, 5  ;;  %1898 = vmatpush.bf16.msrb.mxu2 %v8678_v0  ;;  %v8610_v20 = vld [vmem:[#allocation6 + $0xa0] sm:$0xff] }
  0x9b   : > { %779 = vst [vmem:[#allocation2 + $0xcc] sm:$0xf] %v584_v50  ;;  %v6967_v50 = vor.u32 %v8654_v45, %v6966_v26  ;;  %v853_v45 = vrot.slane %v466_v23, 4  ;;  %v8612_v26 = vld [vmem:[#allocation6 + $0xb0] sm:$0xff]  ;;  %v8598_v23 = vld [vmem:[#allocation6 + $0x40] sm:$0xff] }
  0x9c   : > { %v708_v4 = vrot.slane %v11112_v42, 7  ;;  %v6875_v42 = vor.u32 %v8629_v2, %v6872_v3  ;;  %810 = vst [vmem:[#allocation2 + $0x180] sm:$0xf] %v809_v1  ;;  %v847_v3 = vrot.slane %v458_v19, 4  ;;  %2559 = vmatpush.bf16.msrb.mxu1 %v8612_v26  ;;  %v8611_v2 = vld [vmem:[#allocation6 + $0xa8] sm:$0xff]  ;;  %2476 = vmatpush.bf16.msrb.mxu0 %v8598_v23 }
  0x9d   : > { %v6980_v26 = vld [vmem:[#allocation2 + $0x174] sm:$0xf0] }
  0x9e   : > { %v711_v51 = vor.u32 %v11114_v16, %v708_v4  ;;  %v344_v4 = vsel %vm9862_vm10, 0, %v343_v7  ;;  %v849_v41 = vor.u32 %v848_v30, %v847_v3  ;;  %v6978_v7 = vld [vmem:[#allocation2 + $0x168] sm:$0xf]  ;;  %v346_v30 = vld [vmem:[#allocation2 + $0x44] sm:$0x8] }
  0x9f   : > { %345 = vst [vmem:[#allocation2 + $0x2c] sm:$0x8] %v344_v4  ;;  %v8657_v4 = vld [vmem:[#allocation2 + $0x170] sm:$0xf0]  ;;  %v8609_v3 = vld [vmem:[#allocation6 + $0x98] sm:$0xff]  ;;  %v347_v23 = vsel %vm9862_vm10, 0, %v346_v30 }
  0xa0   : > { %v712_v11 = vsel %vm9453_vm6, %v704_v9, %v711_v51  ;;  %v854_v9 = vor.u32 %v853_v45, %v851_v63  ;;  %v850_v19 = vrot.slane %v849_v41, 4  ;;  %2560 = vmatpush.bf16.msrb.mxu1 %v8611_v2  ;;  %v9269_v51 = vmov 0   ;;  %v8656_v45 = vld [vmem:[#allocation2 + $0x16c] sm:$0xf]  ;;  %v8608_v41 = vld [vmem:[#allocation6 + $0x90] sm:$0xff] }
  0xa1   : > { %811 = vst [vmem:[#allocation2 + $0x18c] sm:$0xf] %v712_v11  ;;  %v6884_v11 = vld [vmem:[#allocation2 + $0xb4] sm:$0xf0]  ;;  %v6979_v28 = vor.u32 %v8657_v4, %v6978_v7  ;;  %v6983_v2 = vor.u32 %v8656_v45, %v6980_v26  ;;  %v8635_v4 = vld [vmem:[#allocation2 + $0xc4] sm:$0xf] }
  0xa2   : > { %v855_v10 = vrot.slane %v854_v9, 4  ;;  %279 = vst [vmem:[#allocation2] sm:$0xff] %v9269_v51  ;;  %v856_v9 = vrot.slane %v474_v47, 4  ;;  %v8636_v7 = vld [vmem:[#allocation2 + $0xc8] sm:$0xf0] }
  0xa3   : > { %281 = vst [vmem:[#allocation2 + $0xc] sm:$0xff] %v9269_v51  ;;  %v6896_v45 = vld [vmem:[#allocation2 + $0xcc] sm:$0xf0]  ;;  %v8659_v26 = vld [vmem:[#allocation2 + $0x184] sm:$0xf] }
  0xa4   : > { %1746 = vmatmul.bf16.gmra.mxu0 %v6871_v29  ;;  %1786 = vmatmul.bf16.gmra.mxu2 %v6967_v50  ;;  %v6882_v29 = vld [vmem:[#allocation2 + $0xa8] sm:$0xf]  ;;  %v8632_v50 = vld [vmem:[#allocation2 + $0xac] sm:$0xf]  ;;  %280 = vst [vmem:[#allocation2 + $0x8] sm:$0xf] %v9269_v51 }
  0xa5   : > { %1835 = vmatmul.bf16.gmra.mxu1 %v6875_v42  ;;  %v852_v42 = vsel %vm9876_vm13, %v850_v19, %v851_v63  ;;  %v6883_v0 = vor.u32 %v8633_v24, %v6882_v29  ;;  %282 = vst [vmem:[#allocation2 + $0x14] sm:$0xf] %v9269_v51  ;;  %v6887_v63 = vor.u32 %v8632_v50, %v6884_v11  ;;  %v8741_v19 = vld [vmem:[#allocation6 + $0x1b8] sm:$0xff]  ;;  %v860_v24 = vrot.slane %v485_v58, 5  ;;  %v6990_v58 = vld [vmem:[#allocation2 + $0x180] sm:$0xf] }
  0xa6   : > { %v1025_v25 = vld [vmem:[#allocation2 + $0x2c] sm:$0xf]  ;;  %1023 = vst [vmem:[#allocation2 + $0x20] sm:$0xf] %v852_v42  ;;  %2561 = vmatpush.bf16.msrb.mxu1 %v8610_v20  ;;  %v862_v42 = vrot.slane %v482_v53, 4  ;;  %3161 = vmatpush.bf16.msra.mxu2 %v8741_v19 }
  0xa7   : > { %1875 = vmatmul.bf16.gmra.mxu3 %v6971_v56  ;;  %v1026_v1 = vsel %vm9881_vm14, %v855_v10, %v1025_v25  ;;  %284 = vst [vmem:[#allocation2 + $0x198] sm:$0xff] %v9269_v51  ;;  %v857_v10 = vrot.slane %v477_v52, 5  ;;  %v8749_v20 = vld [vmem:[#allocation6 + $0x1f8] sm:$0xff] }
  0xa8   : > { %1027 = vst [vmem:[#allocation2 + $0x2c] sm:$0xf] %v1026_v1  ;;  %3250 = vmatpush.bf16.msra.mxu3 %v8749_v20  ;;  %v863_v47 = vor.u32 %v862_v42, %v860_v24  ;;  %v8757_v11 = vld [vmem:[#allocation6 + $0x238] sm:$0xff]  ;;  %v6894_v1 = vld [vmem:[#allocation2 + $0xc0] sm:$0xf] }
  0xa9   : > { %285 = vst [vmem:[#allocation2 + $0x1a0] sm:$0xf] %v9269_v51  ;;  %v858_v25 = vor.u32 %v857_v10, %v856_v9  ;;  %v8660_v36 = vld [vmem:[#allocation2 + $0x188] sm:$0xf0]  ;;  %3339 = vmatpush.bf16.msra.mxu0 %v8757_v11  ;;  %v11138_v9 = vshrl.u32 %v9522_v27, 16  ;;  %v11139_v10 = vshll.u32 %v9522_v27, 16 }
  0xaa   : > { %2562 = vmatpush.bf16.msrb.mxu1 %v8609_v3  ;;  %286 = vst [vmem:[#allocation2 + $0x1a4] sm:$0xff] %v9269_v51  ;;  %v864_v50 = vrot.slane %v863_v47, 4  ;;  %v6895_v3 = vor.u32 %v8636_v7, %v6894_v1  ;;  %v6991_v30 = vor.u32 %v8660_v36, %v6990_v58  ;;  %v7098_v1 = vld [vmem:[#allocation2] sm:$0xf]  ;;  %v8542_v7 = vld [vmem:[#allocation2 + $0x4] sm:$0xf] }
  0xab   : > { %287 = vst [vmem:[#allocation2 + $0x1ac] sm:$0xf] %v9269_v51  ;;  %v8607_v51 = vld [vmem:[#allocation6 + $0x88] sm:$0xff]  ;;  %v859_v29 = vrot.slane %v858_v25, 4  ;;  %v865_v19 = vrot.slane %v11138_v9, 4  ;;  %v866_v20 = vrot.slane %v11139_v10, 5 }
  0xac   : > { %348 = vst [vmem:[#allocation2 + $0x44] sm:$0x8] %v347_v23  ;;  %v11141_v25 = vshrl.u32 %v9528_v37, 16  ;;  %v7100_v36 = vld [vmem:[#allocation2 + $0xc] sm:$0xf0]  ;;  %v11142_v9 = vshrl.u32 %v9589_v60, 16 }
  0xad   : > { %v861_v52 = vsel %vm9876_vm13, %v859_v29, %v860_v24  ;;  %v11140_v24 = vshll.u32 %v9528_v37, 16  ;;  %v867_v47 = vor.u32 %v866_v20, %v865_v19  ;;  %v8543_v37 = vld [vmem:[#allocation2 + $0x8] sm:$0xf0]  ;;  %v11143_v10 = vshll.u32 %v9589_v60, 16 }
  0xae   : > { %2563 = vmatpush.bf16.msrb.mxu1 %v8608_v41  ;;  %1028 = vst [vmem:[#allocation2 + $0x38] sm:$0xf] %v861_v52  ;;  %v874_v19 = vrot.slane %v11142_v9, 4 }
  0xaf   : > { %v869_v42 = vrot.slane %v11140_v24, 5  ;;  %v8616_v58 = vld [vmem:[#allocation2 + $0x28] sm:$0xf0]  ;;  %v875_v20 = vrot.slane %v11143_v10, 5  ;;  %v8740_v24 = vld [vmem:[#allocation6 + $0x1b0] sm:$0xff] }
  0xb0   : > { %3162 = vmatpush.bf16.msra.mxu2 %v8740_v24 }
  0xb2   : > { %2564 = vmatpush.bf16.msrb.mxu1 %v8607_v51  ;;  %v871_v51 = vrot.slane %v11141_v25, 4  ;;  %v11144_v25 = vshll.u32 %v9597_v13, 16 }
  0xb3   : > { %v1029_v53 = vld [vmem:[#allocation2 + $0x44] sm:$0xf] }
  0xb4   : > { %1751 = vmatmul.bf16.gmra.mxu0 %v6883_v0  ;;  %1791 = vmatmul.bf16.gmra.mxu2 %v6979_v28  ;;  %v6992_v0 = vld [vmem:[#allocation2 + $0x18c] sm:$0xf0]  ;;  %v1030_v28 = vsel %vm9881_vm14, %v864_v50, %v1029_v53  ;;  %v872_v29 = vor.u32 %v871_v51, %v869_v42  ;;  %v868_v50 = vrot.slane %v867_v47, 4  ;;  %v7106_v53 = vld [vmem:[#allocation2 + $0x8] sm:$0xf]  ;;  %v878_v51 = vrot.slane %v11144_v25, 5 }
  0xb5   : > { %1840 = vmatmul.bf16.gmra.mxu1 %v6887_v63  ;;  %1031 = vst [vmem:[#allocation2 + $0x44] sm:$0xf] %v1030_v28  ;;  %v349_v63 = vld [vmem:[#allocation2 + $0x5c] sm:$0x8]  ;;  %v6995_v23 = vor.u32 %v8659_v26, %v6992_v0  ;;  %v7103_v0 = vor.u32 %v8542_v7, %v7100_v36  ;;  %v352_v28 = vld [vmem:[#allocation2 + $0x74] sm:$0x8] }
  0xb6   : > { %2565 = vmatpush.bf16.msrb.mxu1 %v8606_v31  ;;  %v350_v41 = vsel %vm9862_vm10, 0, %v349_v63  ;;  %v873_v11 = vrot.slane %v872_v29, 4  ;;  %v870_v31 = vsel %vm9876_vm13, %v868_v50, %v869_v42  ;;  %v8748_v42 = vld [vmem:[#allocation6 + $0x1f0] sm:$0xff]  ;;  %v11145_v47 = vshrl.u32 %v9597_v13, 16 }
  0xb7   : > { %1880 = vmatmul.bf16.gmra.mxu3 %v6983_v2  ;;  %v6899_v2 = vor.u32 %v8635_v4, %v6896_v45  ;;  %351 = vst [vmem:[#allocation2 + $0x5c] sm:$0x8] %v350_v41  ;;  %v6818_v4 = vld [vmem:[#allocation2 + $0x20] sm:$0xf]  ;;  %v8544_v45 = vld [vmem:[#allocation2 + $0x10] sm:$0xf0]  ;;  %v876_v50 = vor.u32 %v875_v20, %v874_v19 }
  0xb8   : > { %1032 = vst [vmem:[#allocation2 + $0x50] sm:$0xf] %v870_v31  ;;  %v6819_v26 = vor.u32 %v8616_v58, %v6818_v4  ;;  %v7107_v63 = vor.u32 %v8544_v45, %v7106_v53  ;;  %v880_v29 = vrot.slane %v11145_v47, 4  ;;  %3251 = vmatpush.bf16.msra.mxu3 %v8748_v42  ;;  %v6830_v53 = vld [vmem:[#allocation2 + $0x38] sm:$0xf] }
  0xb9   : > { %v7110_v45 = vld [vmem:[#allocation2 + $0x18] sm:$0xf]  ;;  %v355_v20 = vld [vmem:[#allocation2 + $0x8c] sm:$0x8] }
  0xba   : > { %v881_v31 = vor.u32 %v880_v29, %v878_v51  ;;  %v356_v47 = vsel %vm9862_vm10, 0, %v355_v20  ;;  %v11146_v29 = vshrl.u32 %v9659_v46, 16  ;;  %v7124_v20 = vld [vmem:[#allocation2 + $0x3c] sm:$0xf0] }
  0xbb   : > { %357 = vst [vmem:[#allocation2 + $0x8c] sm:$0x8] %v356_v47 }
  0xbc   : > { %v882_v7 = vrot.slane %v881_v31, 4 }
  0xbe   : > { %v1033_v52 = vld [vmem:[#allocation2 + $0x5c] sm:$0xf] }
  0xbf   : > { %v1034_v27 = vsel %vm9881_vm14, %v873_v11, %v1033_v52 }
  0xc0   : > { %1035 = vst [vmem:[#allocation2 + $0x5c] sm:$0xf] %v1034_v27  ;;  %v877_v27 = vrot.slane %v876_v50, 4  ;;  %v889_v50 = vrot.slane %v11146_v29, 4 }
  0xc2   : > { %v879_v58 = vsel %vm9876_vm13, %v877_v27, %v878_v51 }
  0xc3   : > { %1036 = vst [vmem:[#allocation2 + $0x68] sm:$0xf] %v879_v58 }
  0xc4   : > { %1756 = vmatmul.bf16.gmra.mxu0 %v6895_v3  ;;  %1796 = vmatmul.bf16.gmra.mxu2 %v6991_v30  ;;  %v7099_v30 = vor.u32 %v8543_v37, %v7098_v1  ;;  %v8756_v37 = vld [vmem:[#allocation6 + $0x230] sm:$0xff] }
  0xc5   : > { %1845 = vmatmul.bf16.gmra.mxu1 %v6899_v2  ;;  %v353_v2 = vsel %vm9862_vm10, 0, %v352_v28  ;;  %v8619_v28 = vld [vmem:[#allocation2 + $0x40] sm:$0xf0]  ;;  %3340 = vmatpush.bf16.msra.mxu0 %v8756_v37 }
  0xc6   : > { %354 = vst [vmem:[#allocation2 + $0x74] sm:$0x8] %v353_v2  ;;  %v8547_v2 = vld [vmem:[#allocation2 + $0x28] sm:$0xf0]  ;;  %v6831_v19 = vor.u32 %v8619_v28, %v6830_v53 }
  0xc7   : > { %1885 = vmatmul.bf16.gmra.mxu3 %v6995_v23 }
  0xcd   : > { %v1037_v13 = vld [vmem:[#allocation2 + $0x74] sm:$0xf] }
  0xd1   : > { %v1722_v3 = vpop.f32.mrf.mxu0 }
  0xd2   : > { %v1811_v23 = vpop.f32.mrf.mxu1 }
  0xd3   : > { %v9919_v41 = vadd.f32 %v1811_v23, %v1722_v3  ;;  %v7112_v3 = vld [vmem:[#allocation2 + $0x24] sm:$0xf0] }
  0xd4   : > { %1899 = vmatmul.bf16.vlgmr.msrb.gmra.mxu2 %v6819_v26  ;;  %2477 = vmatmul.bf16.vlgmr.msrb.gmra.mxu0 %v7103_v0  ;;  %v8545_v26 = vld [vmem:[#allocation2 + $0x1c] sm:$0xf]  ;;  %v1038_v0 = vsel %vm9881_vm14, %v882_v7, %v1037_v13 }
  0xd5   : > { %2566 = vmatmul.bf16.vlgmr.msrb.gmra.mxu1 %v7107_v63  ;;  %1039 = vst [vmem:[#allocation2 + $0x74] sm:$0xf] %v1038_v0  ;;  %v7118_v63 = vld [vmem:[#allocation2 + $0x20] sm:$0xf]  ;;  %v7115_v10 = vor.u32 %v8545_v26, %v7112_v3 }
  0xd6   : > { %v7119_v51 = vor.u32 %v8547_v2, %v7118_v63 }
  0xd7   : > { %2388 = vmatmul.bf16.vlgmr.msrb.gmra.mxu3 %v7099_v30  ;;  %v1762_v11 = vpop.f32.mrf.mxu2  ;;  %v8546_v30 = vld [vmem:[#allocation2 + $0x20] sm:$0xf0] }
  0xd8   : > { %v7111_v25 = vor.u32 %v8546_v30, %v7110_v45 }
  0xd9   : > { %v1724_v60 = vpop.f32.mrf.mxu0 }
  0xda   : > { %v1851_v52 = vpop.f32.mrf.mxu3  ;;  %v1813_v4 = vpop.f32.mrf.mxu1 }
  0xdb   : > { %v9929_v1 = vadd.f32 %v1851_v52, %v1762_v11  ;;  %v9933_v36 = vadd.f32 %v1813_v4, %v1724_v60  ;;  %v11147_v52 = vshrl.u32 %v9651_v6, 16  ;;  %v11148_v60 = vshll.u32 %v9651_v6, 16  ;;  %v1041_v6 = vld [vmem:[#allocation2 + $0x8c] sm:$0xf] }
  0xdc   : > { %v11149_v4 = vshll.u32 %v9659_v46, 16 }
  0xdd   : > { %v883_v27 = vrot.slane %v11147_v52, 4  ;;  %v884_v7 = vrot.slane %v11148_v60, 5  ;;  %v358_v52 = vld [vmem:[#allocation2 + $0xa4] sm:$0x8] }
  0xde   : > { %v887_v58 = vrot.slane %v11149_v4, 5 }
  0xdf   : > { %v1764_v23 = vpop.f32.mrf.mxu2  ;;  %v885_v37 = vor.u32 %v884_v7, %v883_v27 }
  0xe0   : > { %v890_v13 = vor.u32 %v889_v50, %v887_v58 }
  0xe1   : > { %v1727_v42 = vpop.f32.mrf.mxu0  ;;  %v886_v26 = vrot.slane %v885_v37, 4 }
  0xe2   : > { %v1853_v9 = vpop.f32.mrf.mxu3  ;;  %v1816_v11 = vpop.f32.mrf.mxu1  ;;  %v891_v0 = vrot.slane %v890_v13, 4  ;;  %v11150_v13 = vshrl.u32 %v9710_v44, 16 }
  0xe3   : > { %v9937_v24 = vadd.f32 %v1853_v9, %v1764_v23  ;;  %v9943_v31 = vadd.f32 %v1816_v11, %v1727_v42  ;;  %v888_v63 = vsel %vm9876_vm13, %v886_v26, %v887_v58  ;;  %v6842_v23 = vld [vmem:[#allocation2 + $0x50] sm:$0xf]  ;;  %v8549_v42 = vld [vmem:[#allocation2 + $0x38] sm:$0xf0]  ;;  %v359_v58 = vsel %vm9862_vm10, 0, %v358_v52 }
  0xe4   : > { %1904 = vmatmul.bf16.gmra.mxu2 %v6831_v19  ;;  %2482 = vmatmul.bf16.gmra.mxu0 %v7115_v10  ;;  %1040 = vst [vmem:[#allocation2 + $0x80] sm:$0xf] %v888_v63  ;;  %v1042_v46 = vsel %vm9881_vm14, %v891_v0, %v1041_v6  ;;  %v7122_v9 = vld [vmem:[#allocation2 + $0x30] sm:$0xf]  ;;  %v8622_v19 = vld [vmem:[#allocation2 + $0x58] sm:$0xf0] }
  0xe5   : > { %2571 = vmatmul.bf16.gmra.mxu1 %v7119_v51  ;;  %1043 = vst [vmem:[#allocation2 + $0x8c] sm:$0xf] %v1042_v46  ;;  %v8548_v10 = vld [vmem:[#allocation2 + $0x34] sm:$0xf]  ;;  %v8550_v51 = vld [vmem:[#allocation2 + $0x40] sm:$0xf0]  ;;  %v6843_v50 = vor.u32 %v8622_v19, %v6842_v23  ;;  %v7123_v7 = vor.u32 %v8549_v42, %v7122_v9 }
  0xe6   : > { %v7127_v11 = vor.u32 %v8548_v10, %v7124_v20  ;;  %360 = vst [vmem:[#allocation2 + $0xa4] sm:$0x8] %v359_v58  ;;  %v11151_v26 = vshrl.u32 %v9708_v32, 16  ;;  %v8739_v63 = vld [vmem:[#allocation6 + $0x1a8] sm:$0xff]  ;;  %v11153_v46 = vshll.u32 %v9710_v44, 16 }
  0xe7   : > { %2393 = vmatmul.bf16.gmra.mxu3 %v7111_v25  ;;  %v1767_v53 = vpop.f32.mrf.mxu2  ;;  %v7130_v25 = vld [vmem:[#allocation2 + $0x38] sm:$0xf]  ;;  %3163 = vmatpush.bf16.msra.mxu2 %v8739_v63  ;;  %v6854_v52 = vld [vmem:[#allocation2 + $0x68] sm:$0xf]  ;;  %v8625_v58 = vld [vmem:[#allocation2 + $0x70] sm:$0xf0] }
  0xe8   : > { %v7131_v4 = vor.u32 %v8550_v51, %v7130_v25  ;;  %v892_v0 = vrot.slane %v11151_v26, 4  ;;  %v8747_v6 = vld [vmem:[#allocation6 + $0x1e8] sm:$0xff]  ;;  %v896_v23 = vrot.slane %v11153_v46, 5 }
  0xe9   : > { %v1729_v3 = vpop.f32.mrf.mxu0  ;;  %3252 = vmatpush.bf16.msra.mxu3 %v8747_v6  ;;  %v8553_v26 = vld [vmem:[#allocation2 + $0x58] sm:$0xf0] }
  0xea   : > { %v1856_v45 = vpop.f32.mrf.mxu3  ;;  %v1818_v30 = vpop.f32.mrf.mxu1  ;;  %v361_v6 = vld [vmem:[#allocation2 + $0xbc] sm:$0x8] }
  0xeb   : > { %v9951_v28 = vadd.f32 %v1856_v45, %v1767_v53  ;;  %v9955_v2 = vadd.f32 %v1818_v30, %v1729_v3  ;;  %v898_v53 = vrot.slane %v11150_v13, 4  ;;  %v11152_v3 = vshll.u32 %v9708_v32, 16  ;;  %v8552_v13 = vld [vmem:[#allocation2 + $0x50] sm:$0xf0] }
  0xed   : > { %v893_v30 = vrot.slane %v11152_v3, 5  ;;  %v899_v10 = vor.u32 %v898_v53, %v896_v23  ;;  %v1045_v44 = vld [vmem:[#allocation2 + $0xa4] sm:$0xf]  ;;  %v7142_v53 = vld [vmem:[#allocation2 + $0x50] sm:$0xf] }
  0xef   : > { %v1769_v47 = vpop.f32.mrf.mxu2  ;;  %v894_v9 = vor.u32 %v893_v30, %v892_v0  ;;  %v6855_v30 = vor.u32 %v8625_v58, %v6854_v52  ;;  %v11157_v52 = vshll.u32 %v9764_v34, 16 }
  0xf1   : > { %v1732_v60 = vpop.f32.mrf.mxu0  ;;  %v895_v42 = vrot.slane %v894_v9, 4 }
  0xf2   : > { %v1858_v29 = vpop.f32.mrf.mxu3  ;;  %v1821_v37 = vpop.f32.mrf.mxu1 }
  0xf3   : > { %v9959_v27 = vadd.f32 %v1858_v29, %v1769_v47  ;;  %v9965_v45 = vadd.f32 %v1821_v37, %v1732_v60  ;;  %v900_v47 = vrot.slane %v899_v10, 4  ;;  %v897_v29 = vsel %vm9876_vm13, %v895_v42, %v896_v23  ;;  %v7134_v60 = vld [vmem:[#allocation2 + $0x48] sm:$0xf]  ;;  %v7136_v37 = vld [vmem:[#allocation2 + $0x54] sm:$0xf0] }
  0xf4   : > { %1909 = vmatmul.bf16.gmra.mxu2 %v6843_v50  ;;  %2487 = vmatmul.bf16.gmra.mxu0 %v7127_v11  ;;  %v8755_v11 = vld [vmem:[#allocation6 + $0x228] sm:$0xff]  ;;  %1044 = vst [vmem:[#allocation2 + $0x98] sm:$0xf] %v897_v29  ;;  %v7135_v9 = vor.u32 %v8552_v13, %v7134_v60  ;;  %v362_v10 = vsel %vm9862_vm10, 0, %v361_v6  ;;  %v905_v60 = vrot.slane %v11157_v52, 5 }
  0xf5   : > { %2576 = vmatmul.bf16.gmra.mxu1 %v7131_v4  ;;  %v1046_v4 = vsel %vm9881_vm14, %v900_v47, %v1045_v44  ;;  %3341 = vmatpush.bf16.msra.mxu0 %v8755_v11  ;;  %363 = vst [vmem:[#allocation2 + $0xbc] sm:$0x8] %v362_v10  ;;  %v11156_v11 = vshll.u32 %v9762_v40, 16  ;;  %v6866_v6 = vld [vmem:[#allocation2 + $0x80] sm:$0xf] }
  0xf6   : > { %1047 = vst [vmem:[#allocation2 + $0xa4] sm:$0xf] %v1046_v4  ;;  %v7148_v10 = vld [vmem:[#allocation2 + $0x6c] sm:$0xf0]  ;;  %v364_v52 = vld [vmem:[#allocation2 + $0xd4] sm:$0x8] }
  0xf7   : > { %2398 = vmatmul.bf16.gmra.mxu3 %v7123_v7  ;;  %v1772_v19 = vpop.f32.mrf.mxu2  ;;  %v8551_v7 = vld [vmem:[#allocation2 + $0x4c] sm:$0xf]  ;;  %v902_v44 = vrot.slane %v11156_v11, 5 }
  0xf8   : > { %v7139_v63 = vor.u32 %v8551_v7, %v7136_v37 }
  0xf9   : > { %v1734_v51 = vpop.f32.mrf.mxu0 }
  0xfa   : > { %v1861_v20 = vpop.f32.mrf.mxu3  ;;  %v1823_v32 = vpop.f32.mrf.mxu1 }
  0xfb   : > { %v9973_v25 = vadd.f32 %v1861_v20, %v1772_v19  ;;  %v9977_v50 = vadd.f32 %v1823_v32, %v1734_v51  ;;  %v7143_v19 = vor.u32 %v8553_v26, %v7142_v53  ;;  %v11154_v20 = vshrl.u32 %v9764_v34, 16 }
  0xfc   : > { %v11155_v32 = vshrl.u32 %v9762_v40, 16  ;;  %v1049_v40 = vld [vmem:[#allocation2 + $0xbc] sm:$0xf] }
  0xfd   : > { %v907_v42 = vrot.slane %v11154_v20, 4  ;;  %v8555_v20 = vld [vmem:[#allocation2 + $0x68] sm:$0xf0] }
  0xfe   : > { %v901_v29 = vrot.slane %v11155_v32, 4 }
  0xff   : > { %v1774_v0 = vpop.f32.mrf.mxu2  ;;  %v908_v4 = vor.u32 %v907_v42, %v905_v60  ;;  %v7154_v42 = vld [vmem:[#allocation2 + $0x68] sm:$0xf] }
 0x100   : > { %v903_v7 = vor.u32 %v902_v44, %v901_v29 }
 0x101   : > { %v1737_v23 = vpop.f32.mrf.mxu0  ;;  %v909_v53 = vrot.slane %v908_v4, 4 }
 0x102   : > { %v1863_v3 = vpop.f32.mrf.mxu3  ;;  %v1826_v51 = vpop.f32.mrf.mxu1  ;;  %v904_v13 = vrot.slane %v903_v7, 4 }
 0x103   : > { %v9981_v46 = vadd.f32 %v1863_v3, %v1774_v0  ;;  %v9987_v47 = vadd.f32 %v1826_v51, %v1737_v23  ;;  %v1050_v34 = vsel %vm9881_vm14, %v909_v53, %v1049_v40  ;;  %v7146_v23 = vld [vmem:[#allocation2 + $0x60] sm:$0xf]  ;;  %v8556_v51 = vld [vmem:[#allocation2 + $0x70] sm:$0xf0]  ;;  %v11158_v53 = vshrl.u32 %v9817_v5, 16 }
 0x104   : > { %1914 = vmatmul.bf16.gmra.mxu2 %v6855_v30  ;;  %2492 = vmatmul.bf16.gmra.mxu0 %v7139_v63  ;;  %v906_v30 = vsel %vm9876_vm13, %v904_v13, %v905_v60  ;;  %1051 = vst [vmem:[#allocation2 + $0xbc] sm:$0xf] %v1050_v34  ;;  %v7147_v4 = vor.u32 %v8555_v20, %v7146_v23  ;;  %v11160_v34 = vshll.u32 %v9815_v59, 16  ;;  %v8738_v23 = vld [vmem:[#allocation6 + $0x1a0] sm:$0xff] }
 0x105   : > { %2581 = vmatmul.bf16.gmra.mxu1 %v7143_v19  ;;  %1048 = vst [vmem:[#allocation2 + $0xb0] sm:$0xf] %v906_v30  ;;  %v8554_v19 = vld [vmem:[#allocation2 + $0x64] sm:$0xf]  ;;  %v11159_v30 = vshrl.u32 %v9815_v59, 16  ;;  %3164 = vmatpush.bf16.msra.mxu2 %v8738_v23 }
 0x106   : > { %v7151_v44 = vor.u32 %v8554_v19, %v7148_v10  ;;  %v11161_v19 = vshll.u32 %v9817_v5, 16  ;;  %v8559_v23 = vld [vmem:[#allocation2 + $0x88] sm:$0xf0] }
 0x107   : > { %2403 = vmatmul.bf16.gmra.mxu3 %v7135_v9  ;;  %v1777_v58 = vpop.f32.mrf.mxu2  ;;  %v8628_v9 = vld [vmem:[#allocation2 + $0x88] sm:$0xf0]  ;;  %v910_v40 = vrot.slane %v11159_v30, 4  ;;  %v8631_v30 = vld [vmem:[#allocation2 + $0xa0] sm:$0xf0] }
 0x108   : > { %v6867_v11 = vor.u32 %v8628_v9, %v6866_v6  ;;  %v911_v6 = vrot.slane %v11160_v34, 5  ;;  %v8746_v9 = vld [vmem:[#allocation6 + $0x1e0] sm:$0xff]  ;;  %v914_v10 = vrot.slane %v11161_v19, 5  ;;  %v8558_v34 = vld [vmem:[#allocation2 + $0x80] sm:$0xf0] }
 0x109   : > { %v1739_v0 = vpop.f32.mrf.mxu0  ;;  %3253 = vmatpush.bf16.msra.mxu3 %v8746_v9 }
 0x10a   : > { %v1866_v37 = vpop.f32.mrf.mxu3  ;;  %v1828_v3 = vpop.f32.mrf.mxu1  ;;  %v912_v20 = vor.u32 %v911_v6, %v910_v40  ;;  %v7160_v40 = vld [vmem:[#allocation2 + $0x84] sm:$0xf0]  ;;  %v7166_v6 = vld [vmem:[#allocation2 + $0x80] sm:$0xf] }
 0x10b   : > { %v9995_v26 = vadd.f32 %v1866_v37, %v1777_v58  ;;  %v9999_v63 = vadd.f32 %v1828_v3, %v1739_v0  ;;  %v7155_v58 = vor.u32 %v8556_v51, %v7154_v42  ;;  %v365_v37 = vsel %vm9862_vm10, 0, %v364_v52 }
 0x10c   : > { %v916_v0 = vrot.slane %v11158_v53, 4  ;;  %366 = vst [vmem:[#allocation2 + $0xd4] sm:$0x8] %v365_v37  ;;  %v6878_v37 = vld [vmem:[#allocation2 + $0x98] sm:$0xf] }
 0x10d   : > { %v8557_v53 = vld [vmem:[#allocation2 + $0x7c] sm:$0xf] }
 0x10e   : > { %v917_v51 = vor.u32 %v916_v0, %v914_v10 }
 0x10f   : > { %v1779_v32 = vpop.f32.mrf.mxu2 }
 0x110   : > { %v918_v52 = vrot.slane %v917_v51, 4 }
 0x111   : > { %v1742_v7 = vpop.f32.mrf.mxu0 }
 0x112   : > { %v1868_v29 = vpop.f32.mrf.mxu3  ;;  %v1831_v13 = vpop.f32.mrf.mxu1 }
 0x113   : > { %v10003_v60 = vadd.f32 %v1868_v29, %v1779_v32  ;;  %v10009_v3 = vadd.f32 %v1831_v13, %v1742_v7  ;;  %v913_v29 = vrot.slane %v912_v20, 4  ;;  %v1053_v5 = vld [vmem:[#allocation2 + $0xd4] sm:$0xf]  ;;  %v7158_v13 = vld [vmem:[#allocation2 + $0x78] sm:$0xf]  ;;  %v7163_v20 = vor.u32 %v8557_v53, %v7160_v40 }
 0x114   : > { %1919 = vmatmul.bf16.gmra.mxu2 %v6867_v11  ;;  %2497 = vmatmul.bf16.gmra.mxu0 %v7151_v44  ;;  %v1054_v0 = vsel %vm9881_vm14, %v918_v52, %v1053_v5 }
 0x115   : > { %2586 = vmatmul.bf16.gmra.mxu1 %v7155_v58  ;;  %v915_v7 = vsel %vm9876_vm13, %v913_v29, %v914_v10  ;;  %v8754_v58 = vld [vmem:[#allocation6 + $0x220] sm:$0xff]  ;;  %1055 = vst [vmem:[#allocation2 + $0xd4] sm:$0xf] %v1054_v0  ;;  %v6879_v10 = vor.u32 %v8631_v30, %v6878_v37  ;;  %v7159_v29 = vor.u32 %v8558_v34, %v7158_v13  ;;  %v11163_v37 = vshrl.u32 %v9431_v17, 16 }
 0x116   : > { %1052 = vst [vmem:[#allocation2 + $0xc8] sm:$0xf] %v915_v7  ;;  %3342 = vmatpush.bf16.msra.mxu0 %v8754_v58  ;;  %v11164_v0 = vshll.u32 %v9431_v17, 16  ;;  %v11165_v13 = vshll.u32 %v9436_v21, 16 }
 0x117   : > { %2408 = vmatmul.bf16.gmra.mxu3 %v7147_v4  ;;  %v1782_v42 = vpop.f32.mrf.mxu2  ;;  %v919_v53 = vrot.slane %v11163_v37, 4  ;;  %v7172_v37 = vld [vmem:[#allocation2 + $0x9c] sm:$0xf0] }
 0x118   : > { %v920_v30 = vrot.slane %v11164_v0, 5  ;;  %v923_v40 = vrot.slane %v11165_v13, 5  ;;  %v7178_v0 = vld [vmem:[#allocation2 + $0x98] sm:$0xf] }
 0x119   : > { %v1744_v44 = vpop.f32.mrf.mxu0 }
 0x11a   : > { %v1871_v32 = vpop.f32.mrf.mxu3  ;;  %v1833_v59 = vpop.f32.mrf.mxu1  ;;  %v921_v34 = vor.u32 %v920_v30, %v919_v53  ;;  %v8561_v53 = vld [vmem:[#allocation2 + $0x98] sm:$0xf0]  ;;  %v8562_v30 = vld [vmem:[#allocation2 + $0xa0] sm:$0xf0] }
 0x11b   : > { %v10017_v11 = vadd.f32 %v1871_v32, %v1782_v42  ;;  %v10021_v4 = vadd.f32 %v1833_v59, %v1744_v44  ;;  %v367_v42 = vld [vmem:[#allocation2 + $0xec] sm:$0x8]  ;;  %v7167_v44 = vor.u32 %v8559_v23, %v7166_v6  ;;  %v11162_v59 = vshrl.u32 %v9436_v21, 16 }
 0x11c   : > { %v368_v52 = vsel %vm9862_vm10, 0, %v367_v42 }
 0x11d   : > { %v925_v7 = vrot.slane %v11162_v59, 4  ;;  %369 = vst [vmem:[#allocation2 + $0xec] sm:$0x8] %v368_v52 }
 0x11f   : > { %v1784_v9 = vpop.f32.mrf.mxu2  ;;  %v926_v6 = vor.u32 %v925_v7, %v923_v40  ;;  %v8634_v7 = vld [vmem:[#allocation2 + $0xb8] sm:$0xf0] }
 0x121   : > { %v1747_v32 = vpop.f32.mrf.mxu0  ;;  %v927_v42 = vrot.slane %v926_v6, 4 }
 0x122   : > { %v1873_v19 = vpop.f32.mrf.mxu3  ;;  %v1836_v58 = vpop.f32.mrf.mxu1 }
 0x123   : > { %v10025_v51 = vadd.f32 %v1873_v19, %v1784_v9  ;;  %v10031_v5 = vadd.f32 %v1836_v58, %v1747_v32  ;;  %v922_v19 = vrot.slane %v921_v34, 4  ;;  %v8560_v58 = vld [vmem:[#allocation2 + $0x94] sm:$0xf] }
 0x124   : > { %1924 = vmatmul.bf16.gmra.mxu2 %v6879_v10  ;;  %2502 = vmatmul.bf16.gmra.mxu0 %v7163_v20  ;;  %v1057_v17 = vld [vmem:[#allocation2 + $0xec] sm:$0xf] }
 0x125   : > { %2591 = vmatmul.bf16.gmra.mxu1 %v7167_v44  ;;  %v924_v52 = vsel %vm9876_vm13, %v922_v19, %v923_v40  ;;  %v1058_v21 = vsel %vm9881_vm14, %v927_v42, %v1057_v17  ;;  %v7170_v44 = vld [vmem:[#allocation2 + $0x90] sm:$0xf]  ;;  %v7175_v40 = vor.u32 %v8560_v58, %v7172_v37  ;;  %v11166_v17 = vshrl.u32 %v9502_v62, 16 }
 0x126   : > { %1056 = vst [vmem:[#allocation2 + $0xe0] sm:$0xf] %v924_v52  ;;  %v11168_v58 = vshll.u32 %v9500_v61, 16 }
 0x127   : > { %2413 = vmatmul.bf16.gmra.mxu3 %v7159_v29  ;;  %v1787_v23 = vpop.f32.mrf.mxu2  ;;  %v6890_v29 = vld [vmem:[#allocation2 + $0xb0] sm:$0xf]  ;;  %1059 = vst [vmem:[#allocation2 + $0xec] sm:$0xf] %v1058_v21  ;;  %v934_v21 = vrot.slane %v11166_v17, 4  ;;  %v8753_v17 = vld [vmem:[#allocation6 + $0x218] sm:$0xff] }
 0x128   : > { %v6891_v6 = vor.u32 %v8634_v7, %v6890_v29  ;;  %v11167_v29 = vshrl.u32 %v9500_v61, 16  ;;  %v929_v37 = vrot.slane %v11168_v58, 5  ;;  %v8563_v58 = vld [vmem:[#allocation2 + $0xac] sm:$0xf]  ;;  %3343 = vmatpush.bf16.msra.mxu0 %v8753_v17 }
 0x129   : > { %v1749_v10 = vpop.f32.mrf.mxu0 }
 0x12a   : > { %v1876_v9 = vpop.f32.mrf.mxu3  ;;  %v1838_v20 = vpop.f32.mrf.mxu1  ;;  %v928_v7 = vrot.slane %v11167_v29, 4  ;;  %v6902_v29 = vld [vmem:[#allocation2 + $0xc8] sm:$0xf] }
 0x12b   : > { %v10039_v32 = vadd.f32 %v1876_v9, %v1787_v23  ;;  %v10043_v59 = vadd.f32 %v1838_v20, %v1749_v10  ;;  %v370_v23 = vld [vmem:[#allocation2 + $0x104] sm:$0x8]  ;;  %v7171_v10 = vor.u32 %v8561_v53, %v7170_v44  ;;  %v7179_v20 = vor.u32 %v8562_v30, %v7178_v0  ;;  %v8737_v44 = vld [vmem:[#allocation6 + $0x198] sm:$0xff] }
 0x12c   : > { %v371_v42 = vsel %vm9862_vm10, 0, %v370_v23  ;;  %v8745_v53 = vld [vmem:[#allocation6 + $0x1d8] sm:$0xff]  ;;  %v11169_v0 = vshll.u32 %v9502_v62, 16  ;;  %3165 = vmatpush.bf16.msra.mxu2 %v8737_v44  ;;  %v7184_v44 = vld [vmem:[#allocation2 + $0xb4] sm:$0xf0] }
 0x12d   : > { %372 = vst [vmem:[#allocation2 + $0x104] sm:$0x8] %v371_v42  ;;  %3254 = vmatpush.bf16.msra.mxu3 %v8745_v53  ;;  %v8564_v53 = vld [vmem:[#allocation2 + $0xb0] sm:$0xf0] }
 0x12e   : > { %v932_v30 = vrot.slane %v11169_v0, 5  ;;  %v7190_v0 = vld [vmem:[#allocation2 + $0xb0] sm:$0xf] }
 0x12f   : > { %v1789_v13 = vpop.f32.mrf.mxu2 }
 0x131   : > { %v1752_v19 = vpop.f32.mrf.mxu0 }
 0x132   : > { %v1878_v34 = vpop.f32.mrf.mxu3  ;;  %v1841_v52 = vpop.f32.mrf.mxu1 }
 0x133   : > { %v10047_v9 = vadd.f32 %v1878_v34, %v1789_v13  ;;  %v10053_v16 = vadd.f32 %v1841_v52, %v1752_v19  ;;  %v930_v13 = vor.u32 %v929_v37, %v928_v7  ;;  %v7182_v7 = vld [vmem:[#allocation2 + $0xa8] sm:$0xf]  ;;  %v8637_v37 = vld [vmem:[#allocation2 + $0xd0] sm:$0xf0] }
 0x134   : > { %1929 = vmatmul.bf16.gmra.mxu2 %v6891_v6  ;;  %2507 = vmatmul.bf16.gmra.mxu0 %v7175_v40  ;;  %v935_v6 = vor.u32 %v934_v21, %v932_v30  ;;  %v1061_v62 = vld [vmem:[#allocation2 + $0x104] sm:$0xf] }
 0x135   : > { %2596 = vmatmul.bf16.gmra.mxu1 %v7179_v20  ;;  %v931_v23 = vrot.slane %v930_v13, 4  ;;  %v8565_v13 = vld [vmem:[#allocation2 + $0xb8] sm:$0xf0] }
 0x136   : > { %v936_v52 = vrot.slane %v935_v6, 4  ;;  %v7191_v33 = vor.u32 %v8565_v13, %v7190_v0 }
 0x137   : > { %2418 = vmatmul.bf16.gmra.mxu3 %v7171_v10  ;;  %v1792_v34 = vpop.f32.mrf.mxu2  ;;  %v933_v10 = vsel %vm9876_vm13, %v931_v23, %v932_v30  ;;  %v6903_v30 = vor.u32 %v8637_v37, %v6902_v29  ;;  %v373_v23 = vld [vmem:[#allocation2 + $0x11c] sm:$0x8]  ;;  %v11173_v29 = vshrl.u32 %v9549_v57, 16  ;;  %v11174_v37 = vshll.u32 %v9549_v57, 16 }
 0x138   : > { %1060 = vst [vmem:[#allocation2 + $0xf8] sm:$0xf] %v933_v10  ;;  %v1062_v21 = vsel %vm9881_vm14, %v936_v52, %v1061_v62  ;;  %v7183_v10 = vor.u32 %v8564_v53, %v7182_v7  ;;  %v374_v17 = vsel %vm9862_vm10, 0, %v373_v23  ;;  %v11172_v52 = vshrl.u32 %v9570_v35, 16 }
 0x139   : > { %v1754_v42 = vpop.f32.mrf.mxu0  ;;  %1063 = vst [vmem:[#allocation2 + $0x104] sm:$0xf] %v1062_v21  ;;  %v11175_v7 = vshll.u32 %v9570_v35, 16  ;;  %v6914_v35 = vld [vmem:[#allocation2 + $0xe0] sm:$0xf] }
 0x13a   : > { %v1881_v40 = vpop.f32.mrf.mxu3  ;;  %v1843_v61 = vpop.f32.mrf.mxu1  ;;  %v943_v62 = vrot.slane %v11172_v52, 4  ;;  %375 = vst [vmem:[#allocation2 + $0x11c] sm:$0x8] %v374_v17 }
 0x13b   : > { %v10061_v19 = vadd.f32 %v1881_v40, %v1792_v34  ;;  %v10065_v20 = vadd.f32 %v1843_v61, %v1754_v42  ;;  %v7187_v40 = vor.u32 %v8563_v58, %v7184_v44  ;;  %v937_v58 = vrot.slane %v11173_v29, 4  ;;  %v8566_v29 = vld [vmem:[#allocation2 + $0xc4] sm:$0xf] }
 0x13c   : > { %v938_v44 = vrot.slane %v11174_v37, 5  ;;  %v941_v53 = vrot.slane %v11175_v7, 5  ;;  %v8567_v37 = vld [vmem:[#allocation2 + $0xc8] sm:$0xf0]  ;;  %v8568_v7 = vld [vmem:[#allocation2 + $0xd0] sm:$0xf0] }
 0x13d   : > { %11170 = vst [vmem:[#allocation15_spill] sm:$0xff] %v10061_v19 }
 0x13e   : > { %v939_v0 = vor.u32 %v938_v44, %v937_v58  ;;  %v944_v13 = vor.u32 %v943_v62, %v941_v53  ;;  %v8640_v62 = vld [vmem:[#allocation2 + $0xe8] sm:$0xf0]  ;;  %v7196_v58 = vld [vmem:[#allocation2 + $0xcc] sm:$0xf0]  ;;  %v7202_v44 = vld [vmem:[#allocation2 + $0xc8] sm:$0xf] }
 0x13f   : > { %v1794_v34 = vpop.f32.mrf.mxu2 }
 0x140   : > { %v940_v23 = vrot.slane %v939_v0, 4 }
 0x141   : > { %v1757_v61 = vpop.f32.mrf.mxu0  ;;  %v1065_v57 = vld [vmem:[#allocation2 + $0x11c] sm:$0xf] }
 0x142   : > { %v1883_v6 = vpop.f32.mrf.mxu3  ;;  %v1846_v21 = vpop.f32.mrf.mxu1  ;;  %v942_v52 = vsel %vm9876_vm13, %v940_v23, %v941_v53  ;;  %v7199_v53 = vor.u32 %v8566_v29, %v7196_v58  ;;  %v8744_v58 = vld [vmem:[#allocation6 + $0x1d0] sm:$0xff] }
 0x143   : > { %v10069_v42 = vadd.f32 %v1883_v6, %v1794_v34  ;;  %v10075_v39 = vadd.f32 %v1846_v21, %v1757_v61  ;;  %v945_v61 = vrot.slane %v944_v13, 4  ;;  %1064 = vst [vmem:[#allocation2 + $0x110] sm:$0xf] %v942_v52  ;;  %v7203_v52 = vor.u32 %v8568_v7, %v7202_v44  ;;  %3255 = vmatpush.bf16.msra.mxu3 %v8744_v58  ;;  %v8569_v58 = vld [vmem:[#allocation2 + $0xdc] sm:$0xf] }
 0x144   : > { %1934 = vmatmul.bf16.gmra.mxu2 %v6903_v30  ;;  %2512 = vmatmul.bf16.gmra.mxu0 %v7187_v40 }
 0x145   : > { %11171 = vst [vmem:[#allocation16_spill] sm:$0xff] %v10069_v42  ;;  %2601 = vmatmul.bf16.gmra.mxu1 %v7191_v33  ;;  %v1066_v33 = vsel %vm9881_vm14, %v945_v61, %v1065_v57  ;;  %v11179_v42 = vshrl.u32 %v9615_v48, 16 }
 0x146   : > { %1067 = vst [vmem:[#allocation2 + $0x11c] sm:$0xf] %v1066_v33  ;;  %v11178_v33 = vshrl.u32 %v9626_v38, 16 }
 0x147   : > { %2423 = vmatmul.bf16.gmra.mxu3 %v7183_v10  ;;  %v1797_v34 = vpop.f32.mrf.mxu2  ;;  %v7194_v10 = vld [vmem:[#allocation2 + $0xc0] sm:$0xf] }
 0x149   : > { %v1759_v30 = vpop.f32.mrf.mxu0 }
 0x14a   : > { %v1886_v6 = vpop.f32.mrf.mxu3  ;;  %v1848_v40 = vpop.f32.mrf.mxu1 }
 0x14b   : > { %v10083_v17 = vadd.f32 %v1886_v6, %v1797_v34  ;;  %v10087_v21 = vadd.f32 %v1848_v40, %v1759_v30  ;;  %v6915_v34 = vor.u32 %v8640_v62, %v6914_v35  ;;  %v376_v6 = vld [vmem:[#allocation2 + $0x134] sm:$0x8]  ;;  %v7195_v40 = vor.u32 %v8567_v37, %v7194_v10  ;;  %v8736_v10 = vld [vmem:[#allocation6 + $0x190] sm:$0xff] }
 0x14c   : > { %v377_v61 = vsel %vm9862_vm10, 0, %v376_v6  ;;  %v946_v35 = vrot.slane %v11179_v42, 4  ;;  %v11180_v62 = vshll.u32 %v9615_v48, 16  ;;  %v11181_v37 = vshll.u32 %v9626_v38, 16  ;;  %3166 = vmatpush.bf16.msra.mxu2 %v8736_v10  ;;  %v8570_v10 = vld [vmem:[#allocation2 + $0xe0] sm:$0xf0] }
 0x14d   : > { %11176 = vst [vmem:[#allocation17_spill] sm:$0xff] %v10083_v17  ;;  %v952_v17 = vrot.slane %v11178_v33, 4 }
 0x14e   : > { %378 = vst [vmem:[#allocation2 + $0x134] sm:$0x8] %v377_v61  ;;  %v947_v29 = vrot.slane %v11180_v62, 5  ;;  %v950_v44 = vrot.slane %v11181_v37, 5  ;;  %v6926_v62 = vld [vmem:[#allocation2 + $0xf8] sm:$0xf] }
 0x14f   : > { %v1799_v0 = vpop.f32.mrf.mxu2  ;;  %v7208_v37 = vld [vmem:[#allocation2 + $0xe4] sm:$0xf0] }
 0x150   : > { %v948_v7 = vor.u32 %v947_v29, %v946_v35  ;;  %v7206_v29 = vld [vmem:[#allocation2 + $0xd8] sm:$0xf] }
 0x151   : > { %v2478_v30 = vpop.f32.mrf.mxu0 }
 0x152   : > { %v1888_v13 = vpop.f32.mrf.mxu3  ;;  %v2567_v57 = vpop.f32.mrf.mxu1  ;;  %v949_v6 = vrot.slane %v948_v7, 4 }
 0x153   : > { %v10091_v23 = vadd.f32 %v1888_v13, %v1799_v0  ;;  %v953_v13 = vor.u32 %v952_v17, %v950_v44  ;;  %v8643_v17 = vld [vmem:[#allocation2 + $0x100] sm:$0xf0] }
 0x154   : > { %1939 = vmatmul.bf16.gmra.mxu2 %v6915_v34  ;;  %2517 = vmatmul.bf16.gmra.mxu0 %v7199_v53 }
 0x155   : > { %11177 = vst [vmem:[#allocation18_spill] sm:$0xff] %v10091_v23  ;;  %2606 = vmatmul.bf16.gmra.mxu1 %v7203_v52  ;;  %v954_v61 = vrot.slane %v953_v13, 4  ;;  %v951_v52 = vsel %vm9876_vm13, %v949_v6, %v950_v44  ;;  %v1069_v38 = vld [vmem:[#allocation2 + $0x134] sm:$0xf]  ;;  %v8571_v13 = vld [vmem:[#allocation2 + $0xe8] sm:$0xf0]  ;;  %v7207_v23 = vor.u32 %v8570_v10, %v7206_v29 }
 0x156   : > { %1068 = vst [vmem:[#allocation2 + $0x128] sm:$0xf] %v951_v52  ;;  %v379_v52 = vld [vmem:[#allocation2 + $0x14c] sm:$0x8]  ;;  %v11185_v29 = vshll.u32 %v9684_v22, 16 }
 0x157   : > { %2428 = vmatmul.bf16.gmra.mxu3 %v7195_v40  ;;  %v1900_v0 = vpop.f32.mrf.mxu2  ;;  %v8752_v40 = vld [vmem:[#allocation6 + $0x210] sm:$0xff] }
 0x158   : > { %v1901_v34 = vadd.f32 %v1900_v0, %v9919_v41  ;;  %3344 = vmatpush.bf16.msra.mxu0 %v8752_v40  ;;  %v1070_v41 = vsel %vm9881_vm14, %v954_v61, %v1069_v38  ;;  %v7214_v0 = vld [vmem:[#allocation2 + $0xe0] sm:$0xf]  ;;  %v380_v61 = vsel %vm9862_vm10, 0, %v379_v52  ;;  %v959_v10 = vrot.slane %v11185_v29, 5 }
 0x159   : > { %v2480_v42 = vpop.f32.mrf.mxu0  ;;  %1071 = vst [vmem:[#allocation2 + $0x134] sm:$0xf] %v1070_v41  ;;  %v7215_v19 = vor.u32 %v8571_v13, %v7214_v0 }
 0x15a   : > { %v2389_v53 = vpop.f32.mrf.mxu3  ;;  %v2569_v33 = vpop.f32.mrf.mxu1  ;;  %381 = vst [vmem:[#allocation2 + $0x14c] sm:$0x8] %v380_v61 }
 0x15b   : > { %v2390_v48 = vadd.f32 %v2389_v53, %v1901_v34  ;;  %v8885_v34 = vld [vmem:[#allocation8 + $0xf8] sm:$0xff] }
 0x15c   : > { %4809 = vmatpush.bf16.msra.mxu1 %v8885_v34 }
 0x15d   : > { %v2479_v35 = vadd.f32 %v2478_v30, %v2390_v48  ;;  %v6927_v30 = vor.u32 %v8643_v17, %v6926_v62  ;;  %v7211_v48 = vor.u32 %v8569_v58, %v7208_v37  ;;  %v11183_v62 = vshrl.u32 %v9677_v43, 16 }
 0x15e   : > { %v11184_v17 = vshll.u32 %v9677_v43, 16 }
 0x15f   : > { %v10108_v7 = vadd.f32 %v2567_v57, %v2479_v35  ;;  %v1902_v44 = vpop.f32.mrf.mxu2  ;;  %v11182_v35 = vshrl.u32 %v9684_v22, 16  ;;  %v955_v58 = vrot.slane %v11183_v62, 4  ;;  %v8573_v62 = vld [vmem:[#allocation2 + $0xf8] sm:$0xf0] }
 0x160   : > { %v1903_v53 = vadd.f32 %v1902_v44, %v9933_v36  ;;  %v956_v37 = vrot.slane %v11184_v17, 5  ;;  %v8574_v17 = vld [vmem:[#allocation2 + $0x100] sm:$0xf0] }
 0x161   : > { %v2483_v40 = vpop.f32.mrf.mxu0  ;;  %v961_v41 = vrot.slane %v11182_v35, 4  ;;  %v8646_v35 = vld [vmem:[#allocation2 + $0x118] sm:$0xf0] }
 0x162   : > { %v2391_v6 = vpop.f32.mrf.mxu3  ;;  %v2572_v57 = vpop.f32.mrf.mxu1  ;;  %v957_v13 = vor.u32 %v956_v37, %v955_v58  ;;  %v7226_v58 = vld [vmem:[#allocation2 + $0xf8] sm:$0xf] }
 0x163   : > { %v2392_v38 = vadd.f32 %v2391_v6, %v1903_v53  ;;  %v962_v44 = vor.u32 %v961_v41, %v959_v10  ;;  %v7220_v41 = vld [vmem:[#allocation2 + $0xfc] sm:$0xf0] }
 0x164   : > { %1944 = vmatmul.bf16.gmra.mxu2 %v6927_v30  ;;  %2522 = vmatmul.bf16.gmra.mxu0 %v7211_v48 }
 0x165   : > { %v2481_v36 = vadd.f32 %v2480_v42, %v2392_v38  ;;  %2611 = vmatmul.bf16.gmra.mxu1 %v7215_v19  ;;  %v958_v42 = vrot.slane %v957_v13, 4  ;;  %v963_v48 = vrot.slane %v962_v44, 4  ;;  %v1073_v19 = vld [vmem:[#allocation2 + $0x14c] sm:$0xf]  ;;  %v7218_v38 = vld [vmem:[#allocation2 + $0xf0] sm:$0xf] }
 0x166   : > { %v382_v44 = vld [vmem:[#allocation2 + $0x164] sm:$0x8] }
 0x167   : > { %2433 = vmatmul.bf16.gmra.mxu3 %v7207_v23  ;;  %v10121_v0 = vadd.f32 %v2569_v33, %v2481_v36  ;;  %v1905_v34 = vpop.f32.mrf.mxu2  ;;  %v960_v43 = vsel %vm9876_vm13, %v958_v42, %v959_v10  ;;  %v1074_v22 = vsel %vm9881_vm14, %v963_v48, %v1073_v19  ;;  %v6938_v33 = vld [vmem:[#allocation2 + $0x110] sm:$0xf]  ;;  %v383_v42 = vsel %vm9862_vm10, 0, %v382_v44 }
 0x168   : > { %v1906_v53 = vadd.f32 %v1905_v34, %v9943_v31  ;;  %1072 = vst [vmem:[#allocation2 + $0x140] sm:$0xf] %v960_v43  ;;  %v8572_v31 = vld [vmem:[#allocation2 + $0xf4] sm:$0xf]  ;;  %v6939_v13 = vor.u32 %v8646_v35, %v6938_v33 }
 0x169   : > { %v2485_v30 = vpop.f32.mrf.mxu0  ;;  %1075 = vst [vmem:[#allocation2 + $0x14c] sm:$0xf] %v1074_v22  ;;  %v7223_v34 = vor.u32 %v8572_v31, %v7220_v41  ;;  %v8743_v22 = vld [vmem:[#allocation6 + $0x1c8] sm:$0xff]  ;;  %v11189_v31 = vshll.u32 %v9719_v8, 16 }
 0x16a   : > { %v2394_v6 = vpop.f32.mrf.mxu3  ;;  %v2574_v61 = vpop.f32.mrf.mxu1  ;;  %384 = vst [vmem:[#allocation2 + $0x164] sm:$0x8] %v383_v42  ;;  %3256 = vmatpush.bf16.msra.mxu3 %v8743_v22 }
 0x16b   : > { %v2395_v52 = vadd.f32 %v2394_v6, %v1906_v53  ;;  %v7227_v6 = vor.u32 %v8574_v17, %v7226_v58  ;;  %v968_v41 = vrot.slane %v11189_v31, 5 }
 0x16d   : > { %v2484_v23 = vadd.f32 %v2483_v40, %v2395_v52  ;;  %v7219_v40 = vor.u32 %v8573_v62, %v7218_v38  ;;  %v11188_v38 = vshll.u32 %v9717_v15, 16 }
 0x16f   : > { %v10128_v36 = vadd.f32 %v2572_v57, %v2484_v23  ;;  %v1907_v37 = vpop.f32.mrf.mxu2  ;;  %v11186_v57 = vshrl.u32 %v9719_v8, 16  ;;  %v11187_v23 = vshrl.u32 %v9717_v15, 16  ;;  %v965_v35 = vrot.slane %v11188_v38, 5  ;;  %v8751_v15 = vld [vmem:[#allocation6 + $0x208] sm:$0xff]  ;;  %v8884_v38 = vld [vmem:[#allocation8 + $0xf0] sm:$0xff] }
 0x170   : > { %v1908_v29 = vadd.f32 %v1907_v37, %v9955_v2  ;;  %v8735_v2 = vld [vmem:[#allocation6 + $0x188] sm:$0xff]  ;;  %3345 = vmatpush.bf16.msra.mxu0 %v8751_v15  ;;  %4810 = vmatpush.bf16.msra.mxu1 %v8884_v38 }
 0x171   : > { %v2488_v53 = vpop.f32.mrf.mxu0  ;;  %v970_v43 = vrot.slane %v11186_v57, 4  ;;  %v964_v33 = vrot.slane %v11187_v23, 4  ;;  %3167 = vmatpush.bf16.msra.mxu2 %v8735_v2  ;;  %v8576_v57 = vld [vmem:[#allocation2 + $0x110] sm:$0xf0]  ;;  %v7232_v2 = vld [vmem:[#allocation2 + $0x114] sm:$0xf0] }
 0x172   : > { %v2396_v10 = vpop.f32.mrf.mxu3  ;;  %v2577_v52 = vpop.f32.mrf.mxu1  ;;  %v7238_v23 = vld [vmem:[#allocation2 + $0x110] sm:$0xf] }
 0x173   : > { %v2397_v48 = vadd.f32 %v2396_v10, %v1908_v29  ;;  %v971_v17 = vor.u32 %v970_v43, %v968_v41  ;;  %v8649_v43 = vld [vmem:[#allocation2 + $0x130] sm:$0xf0] }
 0x174   : > { %1949 = vmatmul.bf16.gmra.mxu2 %v6939_v13  ;;  %2527 = vmatmul.bf16.gmra.mxu0 %v7223_v34 }
 0x175   : > { %v2486_v19 = vadd.f32 %v2485_v30, %v2397_v48  ;;  %2616 = vmatmul.bf16.gmra.mxu1 %v7227_v6  ;;  %v966_v30 = vor.u32 %v965_v35, %v964_v33  ;;  %v972_v34 = vrot.slane %v971_v17, 4  ;;  %v6950_v6 = vld [vmem:[#allocation2 + $0x128] sm:$0xf]  ;;  %v8577_v33 = vld [vmem:[#allocation2 + $0x118] sm:$0xf0] }
 0x176   : > { %v7230_v48 = vld [vmem:[#allocation2 + $0x108] sm:$0xf] }
 0x177   : > { %2438 = vmatmul.bf16.gmra.mxu3 %v7219_v40  ;;  %v10141_v62 = vadd.f32 %v2574_v61, %v2486_v19  ;;  %v1910_v58 = vpop.f32.mrf.mxu2  ;;  %v967_v13 = vrot.slane %v966_v30, 4  ;;  %v1077_v61 = vld [vmem:[#allocation2 + $0x164] sm:$0xf]  ;;  %v8575_v19 = vld [vmem:[#allocation2 + $0x10c] sm:$0xf] }
 0x178   : > { %v1911_v37 = vadd.f32 %v1910_v58, %v9965_v45  ;;  %v1078_v45 = vsel %vm9881_vm14, %v972_v34, %v1077_v61  ;;  %v7235_v58 = vor.u32 %v8575_v19, %v7232_v2  ;;  %v385_v30 = vld [vmem:[#allocation2 + $0x17c] sm:$0x8]  ;;  %v11192_v61 = vshll.u32 %v9772_v54, 16 }
 0x179   : > { %v2490_v10 = vpop.f32.mrf.mxu0  ;;  %v969_v8 = vsel %vm9876_vm13, %v967_v13, %v968_v41  ;;  %1079 = vst [vmem:[#allocation2 + $0x164] sm:$0xf] %v1078_v45  ;;  %v6951_v41 = vor.u32 %v8649_v43, %v6950_v6  ;;  %v386_v13 = vsel %vm9862_vm10, 0, %v385_v30  ;;  %v11191_v6 = vshrl.u32 %v9772_v54, 16  ;;  %v7242_v30 = vld [vmem:[#allocation2 + $0x120] sm:$0xf] }
 0x17a   : > { %v2399_v29 = vpop.f32.mrf.mxu3  ;;  %v2579_v40 = vpop.f32.mrf.mxu1  ;;  %1076 = vst [vmem:[#allocation2 + $0x158] sm:$0xf] %v969_v8 }
 0x17b   : > { %v2400_v44 = vadd.f32 %v2399_v29, %v1911_v37  ;;  %v7231_v37 = vor.u32 %v8576_v57, %v7230_v48  ;;  %v7239_v29 = vor.u32 %v8577_v33, %v7238_v23  ;;  %387 = vst [vmem:[#allocation2 + $0x17c] sm:$0x8] %v386_v13  ;;  %v973_v8 = vrot.slane %v11191_v6, 4 }
 0x17c   : > { %v11193_v48 = vshll.u32 %v9774_v49, 16 }
 0x17d   : > { %v2489_v42 = vadd.f32 %v2488_v53, %v2400_v44  ;;  %v11190_v44 = vshrl.u32 %v9774_v49, 16 }
 0x17e   : > { %v977_v57 = vrot.slane %v11193_v48, 5  ;;  %v388_v48 = vld [vmem:[#allocation2 + $0x194] sm:$0x8] }
 0x17f   : > { %v10148_v22 = vadd.f32 %v2577_v52, %v2489_v42  ;;  %v1912_v35 = vpop.f32.mrf.mxu2  ;;  %v979_v15 = vrot.slane %v11190_v44, 4  ;;  %v974_v42 = vrot.slane %v11192_v61, 5  ;;  %v7250_v44 = vld [vmem:[#allocation2 + $0x128] sm:$0xf] }
 0x180   : > { %v1913_v31 = vadd.f32 %v1912_v35, %v9977_v50 }
 0x181   : > { %v2493_v17 = vpop.f32.mrf.mxu0  ;;  %v975_v45 = vor.u32 %v974_v42, %v973_v8  ;;  %v980_v2 = vor.u32 %v979_v15, %v977_v57  ;;  %v8580_v15 = vld [vmem:[#allocation2 + $0x130] sm:$0xf0] }
 0x182   : > { %v2401_v53 = vpop.f32.mrf.mxu3  ;;  %v2582_v52 = vpop.f32.mrf.mxu1 }
 0x183   : > { %v2402_v34 = vadd.f32 %v2401_v53, %v1913_v31  ;;  %v981_v35 = vrot.slane %v980_v2, 4 }
 0x184   : > { %1954 = vmatmul.bf16.gmra.mxu2 %v6951_v41  ;;  %2532 = vmatmul.bf16.gmra.mxu0 %v7235_v58  ;;  %v1081_v41 = vld [vmem:[#allocation2 + $0x17c] sm:$0xf]  ;;  %v6962_v58 = vld [vmem:[#allocation2 + $0x140] sm:$0xf] }
 0x185   : > { %v2491_v50 = vadd.f32 %v2490_v10, %v2402_v34  ;;  %2621 = vmatmul.bf16.gmra.mxu1 %v7239_v29  ;;  %v976_v10 = vrot.slane %v975_v45, 4  ;;  %v1082_v49 = vsel %vm9881_vm14, %v981_v35, %v1081_v41  ;;  %v7244_v29 = vld [vmem:[#allocation2 + $0x12c] sm:$0xf0]  ;;  %v8579_v34 = vld [vmem:[#allocation2 + $0x128] sm:$0xf0]  ;;  %v7251_v45 = vor.u32 %v8580_v15, %v7250_v44 }
 0x186   : > { %1083 = vst [vmem:[#allocation2 + $0x17c] sm:$0xf] %v1082_v49  ;;  %v8742_v35 = vld [vmem:[#allocation6 + $0x1c0] sm:$0xff]  ;;  %v11196_v41 = vshll.u32 %v9819_v55, 16  ;;  %v11197_v49 = vshll.u32 %v9837_v18, 16 }
 0x187   : > { %2443 = vmatmul.bf16.gmra.mxu3 %v7231_v37  ;;  %v10161_v19 = vadd.f32 %v2579_v40, %v2491_v50  ;;  %v1915_v43 = vpop.f32.mrf.mxu2  ;;  %v978_v54 = vsel %vm9876_vm13, %v976_v10, %v977_v57  ;;  %v8652_v37 = vld [vmem:[#allocation2 + $0x148] sm:$0xf0] }
 0x188   : > { %v1916_v23 = vadd.f32 %v1915_v43, %v9987_v47  ;;  %1080 = vst [vmem:[#allocation2 + $0x170] sm:$0xf] %v978_v54  ;;  %v8578_v47 = vld [vmem:[#allocation2 + $0x124] sm:$0xf]  ;;  %v6963_v61 = vor.u32 %v8652_v37, %v6962_v58  ;;  %v389_v43 = vsel %vm9862_vm10, 0, %v388_v48  ;;  %v983_v12 = vrot.slane %v11196_v41, 5  ;;  %3257 = vmatpush.bf16.msra.mxu3 %v8742_v35 }
 0x189   : > { %v2495_v38 = vpop.f32.mrf.mxu0  ;;  %v7247_v42 = vor.u32 %v8578_v47, %v7244_v29  ;;  %390 = vst [vmem:[#allocation2 + $0x194] sm:$0x8] %v389_v43  ;;  %v8582_v48 = vld [vmem:[#allocation2 + $0x140] sm:$0xf0]  ;;  %v7256_v43 = vld [vmem:[#allocation2 + $0x144] sm:$0xf0] }
 0x18a   : > { %v2404_v33 = vpop.f32.mrf.mxu3  ;;  %v2584_v53 = vpop.f32.mrf.mxu1 }
 0x18b   : > { %v2405_v31 = vadd.f32 %v2404_v33, %v1916_v23 }
 0x18d   : > { %v2494_v40 = vadd.f32 %v2493_v17, %v2405_v31  ;;  %v7243_v17 = vor.u32 %v8579_v34, %v7242_v30  ;;  %v11195_v31 = vshrl.u32 %v9819_v55, 16  ;;  %v8750_v55 = vld [vmem:[#allocation6 + $0x200] sm:$0xff] }
 0x18e   : > { %3346 = vmatpush.bf16.msra.mxu0 %v8750_v55  ;;  %v7266_v55 = vld [vmem:[#allocation2 + $0x150] sm:$0xf] }
 0x18f   : > { %v10168_v13 = vadd.f32 %v2582_v52, %v2494_v40  ;;  %v1917_v50 = vpop.f32.mrf.mxu2  ;;  %v11194_v52 = vshrl.u32 %v9837_v18, 16  ;;  %v982_v54 = vrot.slane %v11195_v31, 4  ;;  %v986_v40 = vrot.slane %v11197_v49, 5 }
 0x190   : > { %v1918_v6 = vadd.f32 %v1917_v50, %v9999_v63  ;;  %v8734_v63 = vld [vmem:[#allocation6 + $0x180] sm:$0xff] }
 0x191   : > { %v2498_v57 = vpop.f32.mrf.mxu0  ;;  %v988_v33 = vrot.slane %v11194_v52, 4  ;;  %3168 = vmatpush.bf16.msra.mxu2 %v8734_v63  ;;  %v7262_v52 = vld [vmem:[#allocation2 + $0x140] sm:$0xf] }
 0x192   : > { %v2406_v8 = vpop.f32.mrf.mxu3  ;;  %v2587_v23 = vpop.f32.mrf.mxu1 }
 0x193   : > { %v2407_v2 = vadd.f32 %v2406_v8, %v1918_v6  ;;  %v989_v37 = vor.u32 %v988_v33, %v986_v40  ;;  %v8583_v33 = vld [vmem:[#allocation2 + $0x148] sm:$0xf0] }
 0x194   : > { %1959 = vmatmul.bf16.gmra.mxu2 %v6963_v61  ;;  %2537 = vmatmul.bf16.gmra.mxu0 %v7247_v42  ;;  %v6974_v61 = vld [vmem:[#allocation2 + $0x158] sm:$0xf]  ;;  %v7263_v49 = vor.u32 %v8583_v33, %v7262_v52 }
 0x195   : > { %v2496_v10 = vadd.f32 %v2495_v38, %v2407_v2  ;;  %2626 = vmatmul.bf16.gmra.mxu1 %v7251_v45  ;;  %v984_v38 = vor.u32 %v983_v12, %v982_v54  ;;  %v990_v15 = vrot.slane %v989_v37, 4  ;;  %v7254_v42 = vld [vmem:[#allocation2 + $0x138] sm:$0xf]  ;;  %v8655_v45 = vld [vmem:[#allocation2 + $0x160] sm:$0xf0] }
 0x196   : > { %v6975_v31 = vor.u32 %v8655_v45, %v6974_v61  ;;  %v7255_v12 = vor.u32 %v8582_v48, %v7254_v42  ;;  %v7274_v42 = vld [vmem:[#allocation2 + $0x158] sm:$0xf]  ;;  %v8586_v48 = vld [vmem:[#allocation2 + $0x160] sm:$0xf0] }
 0x197   : > { %2448 = vmatmul.bf16.gmra.mxu3 %v7243_v17  ;;  %v10181_v58 = vadd.f32 %v2584_v53, %v2496_v10  ;;  %v1920_v30 = vpop.f32.mrf.mxu2  ;;  %v985_v44 = vrot.slane %v984_v38, 4  ;;  %v1085_v53 = vld [vmem:[#allocation2 + $0x194] sm:$0xf]  ;;  %v8581_v17 = vld [vmem:[#allocation2 + $0x13c] sm:$0xf] }
 0x198   : > { %v1921_v47 = vadd.f32 %v1920_v30, %v10009_v3  ;;  %v1086_v3 = vsel %vm9881_vm14, %v990_v15, %v1085_v53  ;;  %v8883_v10 = vld [vmem:[#allocation8 + $0xe8] sm:$0xff]  ;;  %v7259_v54 = vor.u32 %v8581_v17, %v7256_v43  ;;  %v8584_v53 = vld [vmem:[#allocation2 + $0x154] sm:$0xf] }
 0x199   : > { %v2500_v34 = vpop.f32.mrf.mxu0  ;;  %v987_v18 = vsel %vm9876_vm13, %v985_v44, %v986_v40  ;;  %1087 = vst [vmem:[#allocation2 + $0x194] sm:$0xf] %v1086_v3  ;;  %4811 = vmatpush.bf16.msra.mxu1 %v8883_v10  ;;  %v7275_v10 = vor.u32 %v8586_v48, %v7274_v42 }
 0x19a   : > { %v2409_v29 = vpop.f32.mrf.mxu3  ;;  %v10184_v6 = vpop.f32.mrf.mxu1  ;;  %1084 = vst [vmem:[#allocation2 + $0x188] sm:$0xf] %v987_v18  ;;  %v8658_v18 = vld [vmem:[#allocation2 + $0x178] sm:$0xf0] }
 0x19b   : > { %v2410_v50 = vadd.f32 %v2409_v29, %v1921_v47 }
 0x19d   : > { %v2499_v8 = vadd.f32 %v2498_v57, %v2410_v50  ;;  %v6986_v50 = vld [vmem:[#allocation2 + $0x170] sm:$0xf] }
 0x19e   : > { %v6987_v45 = vor.u32 %v8658_v18, %v6986_v50  ;;  %v8882_v18 = vld [vmem:[#allocation8 + $0xe0] sm:$0xff] }
 0x19f   : > { %v10190_v2 = vadd.f32 %v2587_v23, %v2499_v8  ;;  %v1922_v63 = vpop.f32.mrf.mxu2  ;;  %v7268_v8 = vld [vmem:[#allocation2 + $0x15c] sm:$0xf0]  ;;  %4812 = vmatpush.bf16.msra.mxu1 %v8882_v18 }
 0x1a0   : > { %v1923_v57 = vadd.f32 %v1922_v63, %v10021_v4  ;;  %v7271_v43 = vor.u32 %v8584_v53, %v7268_v8 }
 0x1a1   : > { %v2503_v41 = vpop.f32.mrf.mxu0 }
 0x1a2   : > { %v2411_v35 = vpop.f32.mrf.mxu3  ;;  %v2592_v30 = vpop.f32.mrf.mxu1 }
 0x1a3   : > { %v2412_v40 = vadd.f32 %v2411_v35, %v1923_v57 }
 0x1a4   : > { %1964 = vmatmul.bf16.gmra.mxu2 %v6975_v31  ;;  %2542 = vmatmul.bf16.gmra.mxu0 %v7259_v54 }
 0x1a5   : > { %v10193_v38 = vadd.f32 %v2500_v34, %v2412_v40  ;;  %2631 = vmatmul.bf16.gmra.mxu1 %v7263_v49  ;;  %v8585_v34 = vld [vmem:[#allocation2 + $0x158] sm:$0xf0] }
 0x1a6   : > { %v7267_v33 = vor.u32 %v8585_v34, %v7266_v55  ;;  %v8589_v55 = vld [vmem:[#allocation2 + $0x178] sm:$0xf0] }
 0x1a7   : > { %2453 = vmatmul.bf16.gmra.mxu3 %v7255_v12  ;;  %v1925_v23 = vpop.f32.mrf.mxu2 }
 0x1a8   : > { %v1926_v37 = vadd.f32 %v1925_v23, %v10031_v5  ;;  %v8588_v23 = vld [vmem:[#allocation2 + $0x170] sm:$0xf0] }
 0x1a9   : > { %v2505_v4 = vpop.f32.mrf.mxu0 }
 0x1aa   : > { %v2414_v47 = vpop.f32.mrf.mxu3  ;;  %v10196_v44 = vpop.f32.mrf.mxu1 }
 0x1ab   : > { %v2415_v29 = vadd.f32 %v2414_v47, %v1926_v37  ;;  %v8587_v37 = vld [vmem:[#allocation2 + $0x16c] sm:$0xf]  ;;  %v6998_v47 = vld [vmem:[#allocation2 + $0x188] sm:$0xf] }
 0x1ad   : > { %v2504_v15 = vadd.f32 %v2503_v41, %v2415_v29  ;;  %v8661_v29 = vld [vmem:[#allocation2 + $0x190] sm:$0xf0] }
 0x1ae   : > { %v6999_v34 = vor.u32 %v8661_v29, %v6998_v47 }
 0x1af   : > { %v10198_v61 = vadd.f32 %v2592_v30, %v2504_v15  ;;  %v1927_v17 = vpop.f32.mrf.mxu2  ;;  %v7278_v30 = vld [vmem:[#allocation2 + $0x168] sm:$0xf]  ;;  %v7280_v15 = vld [vmem:[#allocation2 + $0x174] sm:$0xf0] }
 0x1b0   : > { %v1928_v3 = vadd.f32 %v1927_v17, %v10043_v59  ;;  %v7283_v42 = vor.u32 %v8587_v37, %v7280_v15  ;;  %v7279_v17 = vor.u32 %v8588_v23, %v7278_v30  ;;  %v8686_v23 = vld [vmem:[#allocation2 + $0x34] sm:$0xf] }
 0x1b1   : > { %v2508_v52 = vpop.f32.mrf.mxu0 }
 0x1b2   : > { %v2416_v5 = vpop.f32.mrf.mxu3  ;;  %v2597_v57 = vpop.f32.mrf.mxu1 }
 0x1b3   : > { %v2417_v63 = vadd.f32 %v2416_v5, %v1928_v3 }
 0x1b4   : > { %1969 = vmatmul.bf16.gmra.mxu2 %v6987_v45  ;;  %2547 = vmatmul.bf16.gmra.mxu0 %v7271_v43 }
 0x1b5   : > { %v10201_v35 = vadd.f32 %v2505_v4, %v2417_v63  ;;  %2636 = vmatmul.bf16.gmra.mxu1 %v7275_v10  ;;  %v7286_v4 = vld [vmem:[#allocation2 + $0x170] sm:$0xf] }
 0x1b6   : > { %v7287_v3 = vor.u32 %v8589_v55, %v7286_v4 }
 0x1b7   : > { %2458 = vmatmul.bf16.gmra.mxu3 %v7267_v33  ;;  %v1930_v31 = vpop.f32.mrf.mxu2 }
 0x1b8   : > { %v1931_v54 = vadd.f32 %v1930_v31, %v10053_v16 }
 0x1b9   : > { %v2510_v12 = vpop.f32.mrf.mxu0 }
 0x1ba   : > { %v2419_v41 = vpop.f32.mrf.mxu3  ;;  %v10204_v49 = vpop.f32.mrf.mxu1 }
 0x1bb   : > { %v2420_v59 = vadd.f32 %v2419_v41, %v1931_v54  ;;  %v7386_v54 = vld [vmem:[#allocation2 + $0x30] sm:$0xf]  ;;  %v8687_v41 = vld [vmem:[#allocation2 + $0x38] sm:$0xf0] }
 0x1bc   : > { %v7387_v15 = vor.u32 %v8687_v41, %v7386_v54 }
 0x1bd   : > { %v2509_v40 = vadd.f32 %v2508_v52, %v2420_v59  ;;  %v7394_v59 = vld [vmem:[#allocation2 + $0x38] sm:$0xf] }
 0x1bf   : > { %v10206_v50 = vadd.f32 %v2597_v57, %v2509_v40  ;;  %v1932_v53 = vpop.f32.mrf.mxu2  ;;  %v8688_v40 = vld [vmem:[#allocation2 + $0x40] sm:$0xf0] }
 0x1c0   : > { %v1933_v16 = vadd.f32 %v1932_v53, %v10065_v20 }
 0x1c1   : > { %v2513_v48 = vpop.f32.mrf.mxu0 }
 0x1c2   : > { %v2421_v8 = vpop.f32.mrf.mxu3  ;;  %v2602_v45 = vpop.f32.mrf.mxu1 }
 0x1c3   : > { %v2422_v5 = vadd.f32 %v2421_v8, %v1933_v16 }
 0x1c4   : > { %1974 = vmatmul.bf16.gmra.mxu2 %v6999_v34  ;;  %2552 = vmatmul.bf16.gmra.mxu0 %v7283_v42 }
 0x1c5   : > { %v10209_v43 = vadd.f32 %v2510_v12, %v2422_v5  ;;  %2641 = vmatmul.bf16.gmra.mxu1 %v7287_v3  ;;  %v7388_v12 = vld [vmem:[#allocation2 + $0x3c] sm:$0xf0]  ;;  %v7398_v5 = vld [vmem:[#allocation2 + $0x48] sm:$0xf] }
 0x1c6   : > { %v7391_v55 = vor.u32 %v8686_v23, %v7388_v12 }
 0x1c7   : > { %2463 = vmatmul.bf16.gmra.mxu3 %v7279_v17  ;;  %v1935_v52 = vpop.f32.mrf.mxu2 }
 0x1c8   : > { %v1936_v33 = vadd.f32 %v1935_v52, %v10075_v39  ;;  %v7395_v39 = vor.u32 %v8688_v40, %v7394_v59  ;;  %v7406_v52 = vld [vmem:[#allocation2 + $0x50] sm:$0xf] }
 0x1c9   : > { %v2515_v20 = vpop.f32.mrf.mxu0 }
 0x1ca   : > { %v2424_v10 = vpop.f32.mrf.mxu3  ;;  %v10212_v57 = vpop.f32.mrf.mxu1 }
 0x1cb   : > { %v2425_v63 = vadd.f32 %v2424_v10, %v1936_v33  ;;  %v8691_v33 = vld [vmem:[#allocation2 + $0x58] sm:$0xf0] }
 0x1cc   : > { %v7407_v40 = vor.u32 %v8691_v33, %v7406_v52 }
 0x1cd   : > { %v2514_v31 = vadd.f32 %v2513_v48, %v2425_v63  ;;  %v8689_v63 = vld [vmem:[#allocation2 + $0x4c] sm:$0xf] }
 0x1cf   : > { %v10214_v30 = vadd.f32 %v2602_v45, %v2514_v31  ;;  %v1937_v37 = vpop.f32.mrf.mxu2  ;;  %v8690_v45 = vld [vmem:[#allocation2 + $0x50] sm:$0xf0]  ;;  %v7400_v31 = vld [vmem:[#allocation2 + $0x54] sm:$0xf0] }
 0x1d0   : > { %v1938_v47 = vadd.f32 %v1937_v37, %v10087_v21  ;;  %v7403_v12 = vor.u32 %v8689_v63, %v7400_v31 }
 0x1d1   : > { %v2518_v4 = vpop.f32.mrf.mxu0 }
 0x1d2   : > { %v2426_v29 = vpop.f32.mrf.mxu3  ;;  %v2607_v53 = vpop.f32.mrf.mxu1 }
 0x1d3   : > { %v2427_v18 = vadd.f32 %v2426_v29, %v1938_v47 }
 0x1d4   : > { %3169 = vmatmul.bf16.vlgmr.msra.gmra.mxu2 %v7387_v15  ;;  %3347 = vmatmul.bf16.vlgmr.msra.gmra.mxu0 %v7395_v39 }
 0x1d5   : > { %v10217_v16 = vadd.f32 %v2515_v20, %v2427_v18  ;;  %v8881_v20 = vld [vmem:[#allocation8 + $0xd8] sm:$0xff] }
 0x1d6   : > { %4813 = vmatpush.bf16.msra.mxu1 %v8881_v20 }
 0x1d7   : > { %3258 = vmatmul.bf16.vlgmr.msra.gmra.mxu3 %v7391_v55  ;;  %v1940_v8 = vpop.f32.mrf.mxu2 }
 0x1d8   : > { %v1941_v34 = vadd.f32 %v1940_v8, %v9929_v1  ;;  %v7399_v1 = vor.u32 %v8690_v45, %v7398_v5  ;;  %v7410_v8 = vld [vmem:[#allocation2 + $0x60] sm:$0xf]  ;;  %v8692_v5 = vld [vmem:[#allocation2 + $0x64] sm:$0xf]  ;;  %v7412_v45 = vld [vmem:[#allocation2 + $0x6c] sm:$0xf0] }
 0x1d9   : > { %v2520_v48 = vpop.f32.mrf.mxu0  ;;  %v7415_v20 = vor.u32 %v8692_v5, %v7412_v45 }
 0x1da   : > { %v2429_v42 = vpop.f32.mrf.mxu3  ;;  %v10220_v3 = vpop.f32.mrf.mxu1 }
 0x1db   : > { %v2430_v17 = vadd.f32 %v2429_v42, %v1941_v34  ;;  %v8693_v34 = vld [vmem:[#allocation2 + $0x68] sm:$0xf0]  ;;  %v7418_v42 = vld [vmem:[#allocation2 + $0x68] sm:$0xf] }
 0x1dc   : > { %v7411_v63 = vor.u32 %v8693_v34, %v7410_v8  ;;  %v8695_v8 = vld [vmem:[#allocation2 + $0x7c] sm:$0xf]  ;;  %v7424_v34 = vld [vmem:[#allocation2 + $0x84] sm:$0xf0] }
 0x1dd   : > { %v2519_v21 = vadd.f32 %v2518_v4, %v2430_v17  ;;  %v8694_v17 = vld [vmem:[#allocation2 + $0x70] sm:$0xf0] }
 0x1df   : > { %v10222_v10 = vadd.f32 %v2607_v53, %v2519_v21  ;;  %v1942_v54 = vpop.f32.mrf.mxu2 }
 0x1e0   : > { %v1943_v41 = vadd.f32 %v1942_v54, %v9937_v24 }
 0x1e1   : > { %v2523_v23 = vpop.f32.mrf.mxu0 }
 0x1e2   : > { %v2431_v59 = vpop.f32.mrf.mxu3  ;;  %v2612_v47 = vpop.f32.mrf.mxu1 }
 0x1e3   : > { %v2432_v37 = vadd.f32 %v2431_v59, %v1943_v41 }
 0x1e4   : > { %3174 = vmatmul.bf16.gmra.mxu2 %v7399_v1  ;;  %3352 = vmatmul.bf16.gmra.mxu0 %v7407_v40 }
 0x1e5   : > { %v10225_v29 = vadd.f32 %v2520_v48, %v2432_v37 }
 0x1e7   : > { %3263 = vmatmul.bf16.gmra.mxu3 %v7403_v12  ;;  %v1945_v15 = vpop.f32.mrf.mxu2 }
 0x1e8   : > { %v1946_v39 = vadd.f32 %v1945_v15, %v9951_v28  ;;  %v7419_v28 = vor.u32 %v8694_v17, %v7418_v42  ;;  %v7422_v15 = vld [vmem:[#allocation2 + $0x78] sm:$0xf] }
 0x1e9   : > { %v2525_v55 = vpop.f32.mrf.mxu0 }
 0x1ea   : > { %v2434_v4 = vpop.f32.mrf.mxu3  ;;  %v10228_v24 = vpop.f32.mrf.mxu1 }
 0x1eb   : > { %v2435_v18 = vadd.f32 %v2434_v4, %v1946_v39  ;;  %v8696_v39 = vld [vmem:[#allocation2 + $0x80] sm:$0xf0]  ;;  %v7430_v4 = vld [vmem:[#allocation2 + $0x80] sm:$0xf] }
 0x1ed   : > { %v2524_v53 = vadd.f32 %v2523_v23, %v2435_v18  ;;  %v8697_v18 = vld [vmem:[#allocation2 + $0x88] sm:$0xf0] }
 0x1ee   : > { %v7431_v45 = vor.u32 %v8697_v18, %v7430_v4  ;;  %v8698_v4 = vld [vmem:[#allocation2 + $0x94] sm:$0xf]  ;;  %v7436_v18 = vld [vmem:[#allocation2 + $0x9c] sm:$0xf0] }
 0x1ef   : > { %v10230_v21 = vadd.f32 %v2612_v47, %v2524_v53  ;;  %v1947_v48 = vpop.f32.mrf.mxu2 }
 0x1f0   : > { %v1948_v52 = vadd.f32 %v1947_v48, %v9959_v27 }
 0x1f1   : > { %v2528_v31 = vpop.f32.mrf.mxu0 }
 0x1f2   : > { %v2436_v33 = vpop.f32.mrf.mxu3  ;;  %v2617_v41 = vpop.f32.mrf.mxu1 }
 0x1f3   : > { %v2437_v54 = vadd.f32 %v2436_v33, %v1948_v52  ;;  %v7427_v52 = vor.u32 %v8695_v8, %v7424_v34 }
 0x1f4   : > { %3179 = vmatmul.bf16.gmra.mxu2 %v7411_v63  ;;  %3357 = vmatmul.bf16.gmra.mxu0 %v7419_v28 }
 0x1f5   : > { %v10233_v59 = vadd.f32 %v2525_v55, %v2437_v54  ;;  %v8880_v55 = vld [vmem:[#allocation8 + $0xd0] sm:$0xff] }
 0x1f6   : > { %4814 = vmatpush.bf16.msra.mxu1 %v8880_v55 }
 0x1f7   : > { %3268 = vmatmul.bf16.gmra.mxu3 %v7415_v20  ;;  %v1950_v1 = vpop.f32.mrf.mxu2 }
 0x1f8   : > { %v1951_v40 = vadd.f32 %v1950_v1, %v9973_v25  ;;  %v7423_v25 = vor.u32 %v8696_v39, %v7422_v15  ;;  %v8700_v15 = vld [vmem:[#allocation2 + $0xa0] sm:$0xf0] }
 0x1f9   : > { %v2530_v12 = vpop.f32.mrf.mxu0 }
 0x1fa   : > { %v2439_v23 = vpop.f32.mrf.mxu3  ;;  %v10236_v47 = vpop.f32.mrf.mxu1 }
 0x1fb   : > { %v2440_v37 = vadd.f32 %v2439_v23, %v1951_v40  ;;  %v7434_v23 = vld [vmem:[#allocation2 + $0x90] sm:$0xf] }
 0x1fd   : > { %v2529_v27 = vadd.f32 %v2528_v31, %v2440_v37  ;;  %v8699_v37 = vld [vmem:[#allocation2 + $0x98] sm:$0xf0] }
 0x1fe   : > { %v7435_v55 = vor.u32 %v8699_v37, %v7434_v23  ;;  %v8703_v23 = vld [vmem:[#allocation2 + $0xb8] sm:$0xf0] }
 0x1ff   : > { %v10238_v53 = vadd.f32 %v2617_v41, %v2529_v27  ;;  %v1952_v42 = vpop.f32.mrf.mxu2  ;;  %v7442_v27 = vld [vmem:[#allocation2 + $0x98] sm:$0xf] }
 0x200   : > { %v1953_v17 = vadd.f32 %v1952_v42, %v9981_v46 }
 0x201   : > { %v2533_v48 = vpop.f32.mrf.mxu0 }
 0x202   : > { %v2441_v5 = vpop.f32.mrf.mxu3  ;;  %v2622_v63 = vpop.f32.mrf.mxu1 }
 0x203   : > { %v2442_v33 = vadd.f32 %v2441_v5, %v1953_v17  ;;  %v7439_v17 = vor.u32 %v8698_v4, %v7436_v18 }
 0x204   : > { %3184 = vmatmul.bf16.gmra.mxu2 %v7423_v25  ;;  %3362 = vmatmul.bf16.gmra.mxu0 %v7431_v45 }
 0x205   : > { %v10241_v28 = vadd.f32 %v2530_v12, %v2442_v33 }
 0x207   : > { %3273 = vmatmul.bf16.gmra.mxu3 %v7427_v52  ;;  %v1955_v31 = vpop.f32.mrf.mxu2 }
 0x208   : > { %v1956_v20 = vadd.f32 %v1955_v31, %v9995_v26  ;;  %v7443_v26 = vor.u32 %v8700_v15, %v7442_v27  ;;  %v8701_v27 = vld [vmem:[#allocation2 + $0xac] sm:$0xf]  ;;  %v7448_v15 = vld [vmem:[#allocation2 + $0xb4] sm:$0xf0] }
 0x209   : > { %v2535_v41 = vpop.f32.mrf.mxu0 }
 0x20a   : > { %v2444_v54 = vpop.f32.mrf.mxu3  ;;  %v10244_v46 = vpop.f32.mrf.mxu1 }
 0x20b   : > { %v2445_v1 = vadd.f32 %v2444_v54, %v1956_v20  ;;  %v7446_v54 = vld [vmem:[#allocation2 + $0xa8] sm:$0xf] }
 0x20d   : > { %v2534_v40 = vadd.f32 %v2533_v48, %v2445_v1  ;;  %v8702_v1 = vld [vmem:[#allocation2 + $0xb0] sm:$0xf0] }
 0x20f   : > { %v10246_v39 = vadd.f32 %v2622_v63, %v2534_v40  ;;  %v1957_v12 = vpop.f32.mrf.mxu2  ;;  %v7454_v40 = vld [vmem:[#allocation2 + $0xb0] sm:$0xf] }
 0x210   : > { %v1958_v8 = vadd.f32 %v1957_v12, %v10003_v60 }
 0x211   : > { %v2538_v42 = vpop.f32.mrf.mxu0 }
 0x212   : > { %v2446_v34 = vpop.f32.mrf.mxu3  ;;  %v2627_v25 = vpop.f32.mrf.mxu1 }
 0x213   : > { %v2447_v5 = vadd.f32 %v2446_v34, %v1958_v8  ;;  %v7455_v8 = vor.u32 %v8703_v23, %v7454_v40 }
 0x214   : > { %3189 = vmatmul.bf16.gmra.mxu2 %v7435_v55  ;;  %3367 = vmatmul.bf16.gmra.mxu0 %v7443_v26  ;;  %v7451_v55 = vor.u32 %v8701_v27, %v7448_v15  ;;  %v8704_v27 = vld [vmem:[#allocation2 + $0xc4] sm:$0xf]  ;;  %v7460_v15 = vld [vmem:[#allocation2 + $0xcc] sm:$0xf0] }
 0x215   : > { %v10249_v45 = vadd.f32 %v2535_v41, %v2447_v5  ;;  %v8879_v41 = vld [vmem:[#allocation8 + $0xc8] sm:$0xff] }
 0x216   : > { %4815 = vmatpush.bf16.msra.mxu1 %v8879_v41 }
 0x217   : > { %3278 = vmatmul.bf16.gmra.mxu3 %v7439_v17  ;;  %v1960_v48 = vpop.f32.mrf.mxu2 }
 0x218   : > { %v1961_v52 = vadd.f32 %v1960_v48, %v10017_v11  ;;  %v7447_v11 = vor.u32 %v8702_v1, %v7446_v54  ;;  %v7466_v54 = vld [vmem:[#allocation2 + $0xc8] sm:$0xf]  ;;  %v8706_v1 = vld [vmem:[#allocation2 + $0xd0] sm:$0xf0] }
 0x219   : > { %v2540_v63 = vpop.f32.mrf.mxu0 }
 0x21a   : > { %v2449_v33 = vpop.f32.mrf.mxu3  ;;  %v10252_v20 = vpop.f32.mrf.mxu1 }
 0x21b   : > { %v2450_v31 = vadd.f32 %v2449_v33, %v1961_v52  ;;  %11198 = vst [vmem:[#allocation19_spill] sm:$0xff] %v10252_v20 }
 0x21d   : > { %v2539_v60 = vadd.f32 %v2538_v42, %v2450_v31  ;;  %v7458_v31 = vld [vmem:[#allocation2 + $0xc0] sm:$0xf] }
 0x21f   : > { %v10254_v37 = vadd.f32 %v2627_v25, %v2539_v60  ;;  %v1962_v4 = vpop.f32.mrf.mxu2  ;;  %v8705_v60 = vld [vmem:[#allocation2 + $0xc8] sm:$0xf0] }
 0x220   : > { %v1963_v18 = vadd.f32 %v1962_v4, %v10025_v51 }
 0x221   : > { %v2543_v34 = vpop.f32.mrf.mxu0 }
 0x222   : > { %v2451_v12 = vpop.f32.mrf.mxu3  ;;  %v2632_v42 = vpop.f32.mrf.mxu1 }
 0x223   : > { %v2452_v26 = vadd.f32 %v2451_v12, %v1963_v18  ;;  %v7459_v18 = vor.u32 %v8705_v60, %v7458_v31  ;;  %v7478_v31 = vld [vmem:[#allocation2 + $0xe0] sm:$0xf]  ;;  %v8709_v60 = vld [vmem:[#allocation2 + $0xe8] sm:$0xf0] }
 0x224   : > { %3194 = vmatmul.bf16.gmra.mxu2 %v7447_v11  ;;  %3372 = vmatmul.bf16.gmra.mxu0 %v7455_v8  ;;  %v7463_v11 = vor.u32 %v8704_v27, %v7460_v15  ;;  %v7472_v27 = vld [vmem:[#allocation2 + $0xe4] sm:$0xf0] }
 0x225   : > { %v10257_v17 = vadd.f32 %v2540_v63, %v2452_v26 }
 0x227   : > { %11199 = vst [vmem:[#allocation20_spill] sm:$0xff] %v10257_v17  ;;  %3283 = vmatmul.bf16.gmra.mxu3 %v7451_v55  ;;  %v1965_v5 = vpop.f32.mrf.mxu2 }
 0x228   : > { %v1966_v25 = vadd.f32 %v1965_v5, %v10039_v32  ;;  %v7467_v32 = vor.u32 %v8706_v1, %v7466_v54  ;;  %v8707_v1 = vld [vmem:[#allocation2 + $0xdc] sm:$0xf] }
 0x229   : > { %v2545_v52 = vpop.f32.mrf.mxu0 }
 0x22a   : > { %v2454_v48 = vpop.f32.mrf.mxu3  ;;  %v10260_v40 = vpop.f32.mrf.mxu1 }
 0x22b   : > { %v2455_v33 = vadd.f32 %v2454_v48, %v1966_v25  ;;  %11200 = vst [vmem:[#allocation21_spill] sm:$0xff] %v10260_v40 }
 0x22d   : > { %v2544_v51 = vadd.f32 %v2543_v34, %v2455_v33 }
 0x22f   : > { %v10262_v23 = vadd.f32 %v2632_v42, %v2544_v51  ;;  %v1967_v63 = vpop.f32.mrf.mxu2  ;;  %v11203_v42 = vld [vmem:[#allocation15_spill] sm:$0xff] }
 0x230   : > { %v1968_v41 = vadd.f32 %v1967_v63, %v10047_v9  ;;  %v7470_v9 = vld [vmem:[#allocation2 + $0xd8] sm:$0xf]  ;;  %v8708_v63 = vld [vmem:[#allocation2 + $0xe0] sm:$0xf0] }
 0x231   : > { %11201 = vst [vmem:[#allocation22_spill] sm:$0xff] %v10262_v23  ;;  %v2548_v12 = vpop.f32.mrf.mxu0 }
 0x232   : > { %v2456_v4 = vpop.f32.mrf.mxu3  ;;  %v2637_v26 = vpop.f32.mrf.mxu1 }
 0x233   : > { %v2457_v8 = vadd.f32 %v2456_v4, %v1968_v41 }
 0x234   : > { %3199 = vmatmul.bf16.gmra.mxu2 %v7459_v18  ;;  %3377 = vmatmul.bf16.gmra.mxu0 %v7467_v32  ;;  %v7471_v18 = vor.u32 %v8708_v63, %v7470_v9  ;;  %v7479_v32 = vor.u32 %v8709_v60, %v7478_v31  ;;  %v7482_v9 = vld [vmem:[#allocation2 + $0xf0] sm:$0xf]  ;;  %v8711_v31 = vld [vmem:[#allocation2 + $0xf8] sm:$0xf0]  ;;  %v7490_v60 = vld [vmem:[#allocation2 + $0xf8] sm:$0xf] }
 0x235   : > { %v10265_v34 = vadd.f32 %v2545_v52, %v2457_v8  ;;  %v11205_v52 = vld [vmem:[#allocation16_spill] sm:$0xff]  ;;  %v7475_v8 = vor.u32 %v8707_v1, %v7472_v27  ;;  %v8878_v63 = vld [vmem:[#allocation8 + $0xc0] sm:$0xff]  ;;  %v8712_v1 = vld [vmem:[#allocation2 + $0x100] sm:$0xf0] }
 0x236   : > { %4816 = vmatpush.bf16.msra.mxu1 %v8878_v63  ;;  %v10284_v63 = vld [vmem:[%s11056_s3] ss:$0 sm:$0xff] }
 0x237   : > { %11202 = vst [vmem:[#allocation23_spill] sm:$0xff] %v10265_v34  ;;  %3288 = vmatmul.bf16.gmra.mxu3 %v7463_v11  ;;  %v1970_v55 = vpop.f32.mrf.mxu2  ;;  %v8821_v34 = vld [vmem:[#allocation8 + $0x78] sm:$0xff] }
 0x238   : > { %v1971_v5 = vadd.f32 %v1970_v55, %v11203_v42 }
 0x239   : > { %v2550_v48 = vpop.f32.mrf.mxu0 }
 0x23a   : > { %v2459_v25 = vpop.f32.mrf.mxu3  ;;  %v10271_v55 = vpop.f32.mrf.mxu1  ;;  %5565 = vmatpush.bf16.msrb.mxu1 %v8821_v34 }
 0x23b   : > { %v2460_v33 = vadd.f32 %v2459_v25, %v1971_v5  ;;  %11206 = vst [vmem:[#allocation16_spill] sm:$0xff] %v10271_v55  ;;  %v11208_v5 = vld [vmem:[#allocation17_spill] sm:$0xff] }
 0x23d   : > { %v2549_v51 = vadd.f32 %v2548_v12, %v2460_v33 }
 0x23f   : > { %v10268_v54 = vadd.f32 %v2637_v26, %v2549_v51  ;;  %v1972_v15 = vpop.f32.mrf.mxu2 }
 0x240   : > { %v1973_v41 = vadd.f32 %v1972_v15, %v11205_v52 }
 0x241   : > { %11204 = vst [vmem:[#allocation15_spill] sm:$0xff] %v10268_v54  ;;  %v2553_v11 = vpop.f32.mrf.mxu0 }
 0x242   : > { %v2461_v4 = vpop.f32.mrf.mxu3  ;;  %v2642_v15 = vpop.f32.mrf.mxu1 }
 0x243   : > { %v2462_v42 = vadd.f32 %v2461_v4, %v1973_v41  ;;  %v8710_v41 = vld [vmem:[#allocation2 + $0xf4] sm:$0xf]  ;;  %v7484_v4 = vld [vmem:[#allocation2 + $0xfc] sm:$0xf0] }
 0x244   : > { %3204 = vmatmul.bf16.gmra.mxu2 %v7471_v18  ;;  %3382 = vmatmul.bf16.gmra.mxu0 %v7479_v32  ;;  %v11210_v18 = vld [vmem:[#allocation18_spill] sm:$0xff] }
 0x245   : > { %v10273_v12 = vadd.f32 %v2550_v48, %v2462_v42  ;;  %v7483_v42 = vor.u32 %v8711_v31, %v7482_v9  ;;  %v7494_v9 = vld [vmem:[#allocation2 + $0x108] sm:$0xf] }
 0x247   : > { %11207 = vst [vmem:[#allocation24_spill] sm:$0xff] %v10273_v12  ;;  %3293 = vmatmul.bf16.gmra.mxu3 %v7475_v8  ;;  %v1975_v26 = vpop.f32.mrf.mxu2 }
 0x248   : > { %v1976_v25 = vadd.f32 %v1975_v26, %v11208_v5  ;;  %v7491_v26 = vor.u32 %v8712_v1, %v7490_v60  ;;  %v8714_v60 = vld [vmem:[#allocation2 + $0x110] sm:$0xf0]  ;;  %v7502_v1 = vld [vmem:[#allocation2 + $0x110] sm:$0xf] }
 0x249   : > { %v2555_v51 = vpop.f32.mrf.mxu0 }
 0x24a   : > { %v2464_v33 = vpop.f32.mrf.mxu3 }
 0x24b   : > { %v2465_v54 = vadd.f32 %v2464_v33, %v1976_v25  ;;  %v7487_v25 = vor.u32 %v8710_v41, %v7484_v4  ;;  %v8715_v41 = vld [vmem:[#allocation2 + $0x118] sm:$0xf0]  ;;  %v8713_v4 = vld [vmem:[#allocation2 + $0x10c] sm:$0xf] }
 0x24d   : > { %v2554_v52 = vadd.f32 %v2553_v11, %v2465_v54 }
 0x24f   : > { %v10276_v27 = vadd.f32 %v2642_v15, %v2554_v52  ;;  %v1977_v48 = vpop.f32.mrf.mxu2 }
 0x250   : > { %v1978_v32 = vadd.f32 %v1977_v48, %v11210_v18 }
 0x251   : > { %11209 = vst [vmem:[#allocation17_spill] sm:$0xff] %v10276_v27  ;;  %v3348_v5 = vpop.f32.mrf.mxu0 }
 0x252   : > { %v2466_v8 = vpop.f32.mrf.mxu3 }
 0x253   : > { %v2467_v33 = vadd.f32 %v2466_v8, %v1978_v32  ;;  %v7495_v8 = vor.u32 %v8714_v60, %v7494_v9 }
 0x254   : > { %3209 = vmatmul.bf16.gmra.mxu2 %v7483_v42  ;;  %3387 = vmatmul.bf16.gmra.mxu0 %v7491_v26  ;;  %v7503_v42 = vor.u32 %v8715_v41, %v7502_v1  ;;  %v3848_v1 = vld [vmem:[#allocation2 + $0x18] sm:$0xf] }
 0x255   : > { %v10279_v54 = vadd.f32 %v2555_v51, %v2467_v33  ;;  %v7496_v51 = vld [vmem:[#allocation2 + $0x114] sm:$0xf0] }
 0x256   : > { %v7499_v33 = vor.u32 %v8713_v4, %v7496_v51 }
 0x257   : > { %11211 = vst [vmem:[#allocation18_spill] sm:$0xff] %v10279_v54  ;;  %3298 = vmatmul.bf16.gmra.mxu3 %v7487_v25  ;;  %v3170_v11 = vpop.f32.mrf.mxu2  ;;  %v8901_v54 = vld [vmem:[#allocation8 + $0x178] sm:$0xff] }
 0x258   : > { %4987 = vmatpush.bf16.msrb.mxu3 %v8901_v54 }
 0x259   : > { %v3350_v27 = vpop.f32.mrf.mxu0 }
 0x25a   : > { %v3259_v15 = vpop.f32.mrf.mxu3 }
 0x25b   : > { %v3260_v52 = vadd.f32 %v3259_v15, %v3170_v11 }
 0x25d   : > { %v3349_v55 = vadd.f32 %v3348_v5, %v3260_v52 }
 0x25f   : > { %v3428_v31 = vadd.f32 %v3349_v55, %v10108_v7  ;;  %v3172_v18 = vpop.f32.mrf.mxu2 }
 0x261   : > { %v3464_v48 = vadd.f32 %v10284_v63, %v3428_v31  ;;  %v3353_v25 = vpop.f32.mrf.mxu0 }
 0x262   : > { %v3261_v32 = vpop.f32.mrf.mxu3 }
 0x263   : > { %v3496_v26 = vmax.f32 %v3464_v48, 0.0  ;;  %v3262_v5 = vadd.f32 %v3261_v32, %v3172_v18  ;;  %v7506_v18 = vld [vmem:[#allocation2 + $0x120] sm:$0xf]  ;;  %v8717_v32 = vld [vmem:[#allocation2 + $0x128] sm:$0xf0] }
 0x264   : > { %3214 = vmatmul.bf16.gmra.mxu2 %v7495_v8  ;;  %3392 = vmatmul.bf16.gmra.mxu0 %v7503_v42 }
 0x265   : > { %v3528_v11 = vpack.c.bf16 %v3496_v26, %v3496_v26  ;;  %v3351_v15 = vadd.f32 %v3350_v27, %v3262_v5  ;;  %v8716_v5 = vld [vmem:[#allocation2 + $0x124] sm:$0xf] }
 0x267   : > { %v3561_v7 = vshrl.u32 %v3528_v11, 16  ;;  %v3564_v55 = vshll.u32 %v3528_v11, 16  ;;  %3912 = vst [vmem:[#allocation2 + $0x1c] sm:$0xf] %v3528_v11  ;;  %v3429_v52 = vadd.f32 %v3351_v15, %v10121_v0  ;;  %3303 = vmatmul.bf16.gmra.mxu3 %v7499_v33  ;;  %v3175_v60 = vpop.f32.mrf.mxu2  ;;  %v7508_v33 = vld [vmem:[#allocation2 + $0x12c] sm:$0xf0] }
 0x268   : > { %v7514_v11 = vld [vmem:[#allocation2 + $0x128] sm:$0xf]  ;;  %v7511_v23 = vor.u32 %v8716_v5, %v7508_v33 }
 0x269   : > { %v3563_v31 = vrot.slane %v3561_v7, 7  ;;  %v3944_v12 = vrot.slane %v3561_v7, 4  ;;  %v3945_v40 = vrot.slane %v3564_v55, 5  ;;  %v3465_v9 = vadd.f32 %v10284_v63, %v3429_v52  ;;  %v3355_v51 = vpop.f32.mrf.mxu0  ;;  %v8893_v7 = vld [vmem:[#allocation8 + $0x138] sm:$0xff] }
 0x26a   : > { %v3264_v41 = vpop.f32.mrf.mxu3  ;;  %v8813_v52 = vld [vmem:[#allocation8 + $0x38] sm:$0xff]  ;;  %4898 = vmatpush.bf16.msrb.mxu2 %v8893_v7 }
 0x26b   : > { %v3566_v4 = vor.u32 %v3564_v55, %v3563_v31  ;;  %v3497_v27 = vmax.f32 %v3465_v9, 0.0  ;;  %v3265_v48 = vadd.f32 %v3264_v41, %v3175_v60  ;;  %v3946_v42 = vor.u32 %v3945_v40, %v3944_v12  ;;  %v8718_v9 = vld [vmem:[#allocation2 + $0x130] sm:$0xf0]  ;;  %5476 = vmatpush.bf16.msrb.mxu0 %v8813_v52 }
 0x26c   : > { %v7507_v41 = vor.u32 %v8717_v32, %v7506_v18  ;;  %v7515_v20 = vor.u32 %v8718_v9, %v7514_v11 }
 0x26d   : > { %v3849_v0 = vsel %vm9468_vm7, %v3566_v4, %v3848_v1  ;;  %v3529_v26 = vpack.c.bf16 %v3497_v27, %v3497_v27  ;;  %v3354_v15 = vadd.f32 %v3353_v25, %v3265_v48  ;;  %v3947_v1 = vrot.slane %v3946_v42, 4  ;;  %v4121_v42 = vld [vmem:[#allocation2 + $0x2c] sm:$0xf] }
 0x26e   : > { %3850 = vst [vmem:[#allocation2 + $0x18] sm:$0xf] %v3849_v0  ;;  %v3567_v0 = vrot.slane %v3563_v31, 4 }
 0x26f   : > { %v3569_v54 = vshrl.u32 %v3529_v26, 16  ;;  %v3572_v55 = vshll.u32 %v3529_v26, 16  ;;  %3913 = vst [vmem:[#allocation2 + $0x28] sm:$0xf] %v3529_v26  ;;  %v3430_v60 = vadd.f32 %v3354_v15, %v10128_v36  ;;  %v3177_v27 = vpop.f32.mrf.mxu2 }
 0x271   : > { %v3571_v40 = vrot.slane %v3569_v54, 7  ;;  %v3948_v12 = vrot.slane %v3572_v55, 5  ;;  %v3950_v4 = vrot.slane %v3569_v54, 4  ;;  %v3466_v25 = vadd.f32 %v10284_v63, %v3430_v60  ;;  %v3358_v32 = vpop.f32.mrf.mxu0 }
 0x272   : > { %v3266_v48 = vpop.f32.mrf.mxu3 }
 0x273   : > { %v3574_v17 = vor.u32 %v3572_v55, %v3571_v40  ;;  %v3949_v26 = vsel %vm9876_vm13, %v3947_v1, %v3948_v12  ;;  %v3951_v36 = vor.u32 %v3950_v4, %v3948_v12  ;;  %v3267_v18 = vadd.f32 %v3266_v48, %v3177_v27  ;;  %v3852_v12 = vld [vmem:[#allocation2 + $0x30] sm:$0xf] }
 0x274   : > { %4120 = vst [vmem:[#allocation2 + $0x20] sm:$0xf] %v3949_v26  ;;  %v3498_v15 = vmax.f32 %v3466_v25, 0.0  ;;  %3219 = vmatmul.bf16.gmra.mxu2 %v7507_v41  ;;  %3397 = vmatmul.bf16.gmra.mxu0 %v7515_v20  ;;  %v7518_v26 = vld [vmem:[#allocation2 + $0x138] sm:$0xf] }
 0x275   : > { %v3575_v52 = vsel %vm9453_vm6, %v3567_v0, %v3574_v17  ;;  %v3952_v34 = vrot.slane %v3951_v36, 4  ;;  %v3356_v31 = vadd.f32 %v3355_v51, %v3267_v18  ;;  %v8720_v36 = vld [vmem:[#allocation2 + $0x140] sm:$0xf0] }
 0x276   : > { %3851 = vst [vmem:[#allocation2 + $0x24] sm:$0xf] %v3575_v52  ;;  %v3530_v54 = vpack.c.bf16 %v3498_v15, %v3498_v15  ;;  %v8719_v15 = vld [vmem:[#allocation2 + $0x13c] sm:$0xf]  ;;  %v7520_v52 = vld [vmem:[#allocation2 + $0x144] sm:$0xf0] }
 0x277   : > { %v4122_v5 = vsel %vm9881_vm14, %v3952_v34, %v4121_v42  ;;  %v3431_v33 = vadd.f32 %v3356_v31, %v10141_v62  ;;  %3308 = vmatmul.bf16.gmra.mxu3 %v7511_v23  ;;  %v3180_v60 = vpop.f32.mrf.mxu2  ;;  %v7674_v23 = vld [vmem:[#allocation2 + $0x18] sm:$0xf]  ;;  %v7526_v34 = vld [vmem:[#allocation2 + $0x140] sm:$0xf] }
 0x278   : > { %4123 = vst [vmem:[#allocation2 + $0x2c] sm:$0xf] %v4122_v5  ;;  %v3577_v11 = vshrl.u32 %v3530_v54, 16  ;;  %v3580_v55 = vshll.u32 %v3530_v54, 16 }
 0x279   : > { %3914 = vst [vmem:[#allocation2 + $0x34] sm:$0xf] %v3530_v54  ;;  %v3467_v9 = vadd.f32 %v10284_v63, %v3431_v33  ;;  %v3360_v4 = vpop.f32.mrf.mxu0  ;;  %v8721_v33 = vld [vmem:[#allocation2 + $0x148] sm:$0xf0] }
 0x27a   : > { %v3579_v17 = vrot.slane %v3577_v11, 7  ;;  %v3953_v1 = vrot.slane %v3577_v11, 4  ;;  %v3954_v51 = vrot.slane %v3580_v55, 5  ;;  %v3269_v40 = vpop.f32.mrf.mxu3 }
 0x27b   : > { %v3499_v41 = vmax.f32 %v3467_v9, 0.0  ;;  %v3270_v20 = vadd.f32 %v3269_v40, %v3180_v60 }
 0x27c   : > { %v3582_v27 = vor.u32 %v3580_v55, %v3579_v17  ;;  %v3955_v0 = vor.u32 %v3954_v51, %v3953_v1  ;;  %v3583_v51 = vrot.slane %v3579_v17, 4 }
 0x27d   : > { %v3531_v25 = vpack.c.bf16 %v3499_v41, %v3499_v41  ;;  %v3359_v62 = vadd.f32 %v3358_v32, %v3270_v20  ;;  %v8831_v48 = vld [vmem:[#allocation2 + $0x20] sm:$0xf0]  ;;  %v7523_v41 = vor.u32 %v8719_v15, %v7520_v52  ;;  %v7527_v20 = vor.u32 %v8721_v33, %v7526_v34  ;;  %v3856_v33 = vld [vmem:[#allocation2 + $0x48] sm:$0xf] }
 0x27e   : > { %v3853_v18 = vsel %vm9468_vm7, %v3582_v27, %v3852_v12  ;;  %v7675_v42 = vor.u32 %v8831_v48, %v7674_v23  ;;  %v3956_v11 = vrot.slane %v3955_v0, 4  ;;  %v7519_v12 = vor.u32 %v8720_v36, %v7518_v26  ;;  %v8900_v34 = vld [vmem:[#allocation8 + $0x170] sm:$0xff] }
 0x27f   : > { %3854 = vst [vmem:[#allocation2 + $0x30] sm:$0xf] %v3853_v18  ;;  %v3585_v31 = vshrl.u32 %v3531_v25, 16  ;;  %v3588_v54 = vshll.u32 %v3531_v25, 16  ;;  %v3432_v5 = vadd.f32 %v3359_v62, %v10148_v22  ;;  %v3182_v1 = vpop.f32.mrf.mxu2  ;;  %4988 = vmatpush.bf16.msrb.mxu3 %v8900_v34 }
 0x280   : > { %3915 = vst [vmem:[#allocation2 + $0x40] sm:$0xf] %v3531_v25  ;;  %4817 = vmatmul.bf16.vlgmr.msra.gmra.mxu1 %v7675_v42  ;;  %v4125_v25 = vld [vmem:[#allocation2 + $0x44] sm:$0xf] }
 0x281   : > { %v3587_v32 = vrot.slane %v3585_v31, 7  ;;  %v3957_v55 = vrot.slane %v3588_v54, 5  ;;  %v3959_v9 = vrot.slane %v3585_v31, 4  ;;  %v3468_v60 = vadd.f32 %v10284_v63, %v3432_v5  ;;  %v3363_v0 = vpop.f32.mrf.mxu0 }
 0x282   : > { %v3271_v40 = vpop.f32.mrf.mxu3 }
 0x283   : > { %v3590_v27 = vor.u32 %v3588_v54, %v3587_v32  ;;  %v3958_v23 = vsel %vm9876_vm13, %v3956_v11, %v3957_v55  ;;  %v3960_v22 = vor.u32 %v3959_v9, %v3957_v55  ;;  %v3500_v62 = vmax.f32 %v3468_v60, 0.0 }
 0x284   : > { %4124 = vst [vmem:[#allocation2 + $0x38] sm:$0xf] %v3958_v23  ;;  %v3272_v48 = vadd.f32 %v3271_v40, %v3182_v1  ;;  %3224 = vmatmul.bf16.gmra.mxu2 %v7519_v12  ;;  %3402 = vmatmul.bf16.gmra.mxu0 %v7527_v20  ;;  %v7530_v40 = vld [vmem:[#allocation2 + $0x150] sm:$0xf] }
 0x285   : > { %v3591_v18 = vsel %vm9453_vm6, %v3583_v51, %v3590_v27  ;;  %v3961_v42 = vrot.slane %v3960_v22, 4  ;;  %v3532_v31 = vpack.c.bf16 %v3500_v62, %v3500_v62  ;;  %v8723_v27 = vld [vmem:[#allocation2 + $0x158] sm:$0xf0] }
 0x286   : > { %3855 = vst [vmem:[#allocation2 + $0x3c] sm:$0xf] %v3591_v18  ;;  %v3361_v17 = vadd.f32 %v3360_v4, %v3272_v48  ;;  %v7538_v48 = vld [vmem:[#allocation2 + $0x158] sm:$0xf]  ;;  %v8724_v18 = vld [vmem:[#allocation2 + $0x160] sm:$0xf0] }
 0x287   : > { %v4126_v26 = vsel %vm9881_vm14, %v3961_v42, %v4125_v25  ;;  %v3593_v36 = vshrl.u32 %v3532_v31, 16  ;;  %v3596_v15 = vshll.u32 %v3532_v31, 16  ;;  %3916 = vst [vmem:[#allocation2 + $0x4c] sm:$0xf] %v3532_v31  ;;  %3313 = vmatmul.bf16.gmra.mxu3 %v7523_v41  ;;  %v3185_v5 = vpop.f32.mrf.mxu2  ;;  %v8722_v25 = vld [vmem:[#allocation2 + $0x154] sm:$0xf] }
 0x288   : > { %4127 = vst [vmem:[#allocation2 + $0x44] sm:$0xf] %v4126_v26  ;;  %v3433_v52 = vadd.f32 %v3361_v17, %v10161_v19  ;;  %v7686_v19 = vld [vmem:[#allocation2 + $0x30] sm:$0xf]  ;;  %v8892_v31 = vld [vmem:[#allocation8 + $0x130] sm:$0xff] }
 0x289   : > { %v3595_v54 = vrot.slane %v3593_v36, 7  ;;  %v3962_v11 = vrot.slane %v3593_v36, 4  ;;  %v3963_v32 = vrot.slane %v3596_v15, 5  ;;  %v3365_v1 = vpop.f32.mrf.mxu0  ;;  %v8812_v17 = vld [vmem:[#allocation8 + $0x30] sm:$0xff]  ;;  %4899 = vmatpush.bf16.msrb.mxu2 %v8892_v31 }
 0x28a   : > { %v3469_v4 = vadd.f32 %v10284_v63, %v3433_v52  ;;  %v3274_v55 = vpop.f32.mrf.mxu3  ;;  %v8820_v26 = vld [vmem:[#allocation8 + $0x70] sm:$0xff]  ;;  %5477 = vmatpush.bf16.msrb.mxu0 %v8812_v17 }
 0x28b   : > { %v3598_v9 = vor.u32 %v3596_v15, %v3595_v54  ;;  %v3275_v60 = vadd.f32 %v3274_v55, %v3185_v5  ;;  %v3964_v23 = vor.u32 %v3963_v32, %v3962_v11  ;;  %v7531_v5 = vor.u32 %v8723_v27, %v7530_v40  ;;  %5566 = vmatpush.bf16.msrb.mxu1 %v8820_v26  ;;  %v4129_v40 = vld [vmem:[#allocation2 + $0x5c] sm:$0xf] }
 0x28c   : > { %v3501_v51 = vmax.f32 %v3469_v4, 0.0 }
 0x28d   : > { %v3857_v12 = vsel %vm9468_vm7, %v3598_v9, %v3856_v33  ;;  %v3364_v41 = vadd.f32 %v3363_v0, %v3275_v60  ;;  %v8834_v20 = vld [vmem:[#allocation2 + $0x38] sm:$0xf0]  ;;  %v7532_v0 = vld [vmem:[#allocation2 + $0x15c] sm:$0xf0]  ;;  %v7539_v33 = vor.u32 %v8724_v18, %v7538_v48  ;;  %v3965_v11 = vrot.slane %v3964_v23, 4 }
 0x28e   : > { %3858 = vst [vmem:[#allocation2 + $0x48] sm:$0xf] %v3857_v12  ;;  %v3533_v22 = vpack.c.bf16 %v3501_v51, %v3501_v51  ;;  %v7687_v62 = vor.u32 %v8834_v20, %v7686_v19  ;;  %v7535_v12 = vor.u32 %v8722_v25, %v7532_v0 }
 0x28f   : > { %v3434_v42 = vadd.f32 %v3364_v41, %v10168_v13  ;;  %v3187_v34 = vpop.f32.mrf.mxu2  ;;  %v3599_v41 = vrot.slane %v3595_v54, 4 }
 0x290   : > { %v3601_v36 = vshrl.u32 %v3533_v22, 16  ;;  %v3604_v15 = vshll.u32 %v3533_v22, 16  ;;  %3917 = vst [vmem:[#allocation2 + $0x58] sm:$0xf] %v3533_v22  ;;  %4822 = vmatmul.bf16.gmra.mxu1 %v7687_v62 }
 0x291   : > { %v3470_v52 = vadd.f32 %v10284_v63, %v3434_v42  ;;  %v3368_v51 = vpop.f32.mrf.mxu0 }
 0x292   : > { %v3603_v32 = vrot.slane %v3601_v36, 7  ;;  %v3966_v4 = vrot.slane %v3604_v15, 5  ;;  %v3968_v55 = vrot.slane %v3601_v36, 4  ;;  %v3276_v13 = vpop.f32.mrf.mxu3 }
 0x293   : > { %v3502_v9 = vmax.f32 %v3470_v52, 0.0  ;;  %v3277_v60 = vadd.f32 %v3276_v13, %v3187_v34  ;;  %v8725_v13 = vld [vmem:[#allocation2 + $0x16c] sm:$0xf] }
 0x294   : > { %v3606_v19 = vor.u32 %v3604_v15, %v3603_v32  ;;  %v3967_v20 = vsel %vm9876_vm13, %v3965_v11, %v3966_v4  ;;  %v3969_v22 = vor.u32 %v3968_v55, %v3966_v4  ;;  %3229 = vmatmul.bf16.gmra.mxu2 %v7531_v5  ;;  %3407 = vmatmul.bf16.gmra.mxu0 %v7539_v33  ;;  %v3860_v15 = vld [vmem:[#allocation2 + $0x60] sm:$0xf]  ;;  %v7542_v11 = vld [vmem:[#allocation2 + $0x168] sm:$0xf] }
 0x295   : > { %4128 = vst [vmem:[#allocation2 + $0x50] sm:$0xf] %v3967_v20  ;;  %v3534_v27 = vpack.c.bf16 %v3502_v9, %v3502_v9  ;;  %v3366_v62 = vadd.f32 %v3365_v1, %v3277_v60  ;;  %v7544_v9 = vld [vmem:[#allocation2 + $0x174] sm:$0xf0]  ;;  %v7550_v60 = vld [vmem:[#allocation2 + $0x170] sm:$0xf] }
 0x296   : > { %v3607_v23 = vsel %vm9453_vm6, %v3599_v41, %v3606_v19  ;;  %v3970_v48 = vrot.slane %v3969_v22, 4  ;;  %v7698_v41 = vld [vmem:[#allocation2 + $0x48] sm:$0xf] }
 0x297   : > { %3859 = vst [vmem:[#allocation2 + $0x54] sm:$0xf] %v3607_v23  ;;  %v3609_v18 = vshrl.u32 %v3534_v27, 16  ;;  %v3612_v42 = vshll.u32 %v3534_v27, 16  ;;  %v3435_v54 = vadd.f32 %v3366_v62, %v10181_v58  ;;  %3318 = vmatmul.bf16.gmra.mxu3 %v7535_v12  ;;  %v3190_v36 = vpop.f32.mrf.mxu2  ;;  %v8726_v58 = vld [vmem:[#allocation2 + $0x170] sm:$0xf0] }
 0x298   : > { %v4130_v25 = vsel %vm9881_vm14, %v3970_v48, %v4129_v40  ;;  %3918 = vst [vmem:[#allocation2 + $0x64] sm:$0xf] %v3534_v27  ;;  %v8727_v27 = vld [vmem:[#allocation2 + $0x178] sm:$0xf0]  ;;  %v7543_v23 = vor.u32 %v8726_v58, %v7542_v11  ;;  %v4133_v11 = vld [vmem:[#allocation2 + $0x74] sm:$0xf] }
 0x299   : > { %4131 = vst [vmem:[#allocation2 + $0x5c] sm:$0xf] %v4130_v25  ;;  %v3611_v31 = vrot.slane %v3609_v18, 7  ;;  %v3971_v17 = vrot.slane %v3609_v18, 4  ;;  %v3972_v1 = vrot.slane %v3612_v42, 5  ;;  %v3471_v26 = vadd.f32 %v10284_v63, %v3435_v54  ;;  %v3370_v5 = vpop.f32.mrf.mxu0  ;;  %v8899_v48 = vld [vmem:[#allocation8 + $0x168] sm:$0xff] }
 0x29a   : > { %v3279_v0 = vpop.f32.mrf.mxu3  ;;  %v8891_v18 = vld [vmem:[#allocation8 + $0x128] sm:$0xff]  ;;  %4989 = vmatpush.bf16.msrb.mxu3 %v8899_v48 }
 0x29b   : > { %v3614_v52 = vor.u32 %v3612_v42, %v3611_v31  ;;  %v3503_v34 = vmax.f32 %v3471_v26, 0.0  ;;  %v3280_v33 = vadd.f32 %v3279_v0, %v3190_v36  ;;  %v3973_v4 = vor.u32 %v3972_v1, %v3971_v17  ;;  %v8811_v42 = vld [vmem:[#allocation8 + $0x28] sm:$0xff]  ;;  %4900 = vmatpush.bf16.msrb.mxu2 %v8891_v18 }
 0x29c   : > { %v7547_v0 = vor.u32 %v8725_v13, %v7544_v9  ;;  %5478 = vmatpush.bf16.msrb.mxu0 %v8811_v42  ;;  %v2590_v13 = vadd.f32 %v10184_v6, %v10193_v38 }
 0x29d   : > { %v3861_v32 = vsel %vm9468_vm7, %v3614_v52, %v3860_v15  ;;  %v3535_v55 = vpack.c.bf16 %v3503_v34, %v3503_v34  ;;  %v3369_v12 = vadd.f32 %v3368_v51, %v3280_v33  ;;  %v3974_v54 = vrot.slane %v3973_v4, 4 }
 0x29e   : > { %3862 = vst [vmem:[#allocation2 + $0x60] sm:$0xf] %v3861_v32  ;;  %v8837_v19 = vld [vmem:[#allocation2 + $0x50] sm:$0xf0]  ;;  %v3615_v51 = vrot.slane %v3611_v31, 4  ;;  %v7551_v52 = vor.u32 %v8727_v27, %v7550_v60 }
 0x29f   : > { %v3617_v20 = vshrl.u32 %v3535_v55, 16  ;;  %v3620_v22 = vshll.u32 %v3535_v55, 16  ;;  %3919 = vst [vmem:[#allocation2 + $0x70] sm:$0xf] %v3535_v55  ;;  %v7699_v40 = vor.u32 %v8837_v19, %v7698_v41  ;;  %v3436_v62 = vadd.f32 %v3369_v12, %v10190_v2  ;;  %v3192_v26 = vpop.f32.mrf.mxu2  ;;  %v8890_v55 = vld [vmem:[#allocation8 + $0x120] sm:$0xff] }
 0x2a0   : > { %v8898_v31 = vld [vmem:[#allocation8 + $0x160] sm:$0xff]  ;;  %4901 = vmatpush.bf16.msrb.mxu2 %v8890_v55  ;;  %v8808_v55 = vld [vmem:[#allocation8 + $0x10] sm:$0xff] }
 0x2a1   : > { %v3619_v25 = vrot.slane %v3617_v20, 7  ;;  %v3975_v17 = vrot.slane %v3620_v22, 5  ;;  %v3977_v1 = vrot.slane %v3617_v20, 4  ;;  %4827 = vmatmul.bf16.gmra.mxu1 %v7699_v40  ;;  %v3472_v36 = vadd.f32 %v10284_v63, %v3436_v62  ;;  %v3373_v32 = vpop.f32.mrf.mxu0  ;;  %v8810_v12 = vld [vmem:[#allocation8 + $0x20] sm:$0xff]  ;;  %4990 = vmatpush.bf16.msrb.mxu3 %v8898_v31  ;;  %v8897_v62 = vld [vmem:[#allocation8 + $0x158] sm:$0xff] }
 0x2a2   : > { %v3281_v15 = vpop.f32.mrf.mxu3  ;;  %5479 = vmatpush.bf16.msrb.mxu0 %v8810_v12 }
 0x2a3   : > { %v3622_v34 = vor.u32 %v3620_v22, %v3619_v25  ;;  %v3976_v2 = vsel %vm9876_vm13, %v3974_v54, %v3975_v17  ;;  %v3978_v33 = vor.u32 %v3977_v1, %v3975_v17  ;;  %v3282_v58 = vadd.f32 %v3281_v15, %v3192_v26  ;;  %v8809_v54 = vld [vmem:[#allocation8 + $0x18] sm:$0xff]  ;;  %v3864_v25 = vld [vmem:[#allocation2 + $0x78] sm:$0xf]  ;;  %v8888_v15 = vld [vmem:[#allocation8 + $0x110] sm:$0xff] }
 0x2a4   : > { %4132 = vst [vmem:[#allocation2 + $0x68] sm:$0xf] %v3976_v2  ;;  %v3504_v4 = vmax.f32 %v3472_v36, 0.0  ;;  %3234 = vmatmul.bf16.gmra.mxu2 %v7543_v23  ;;  %3412 = vmatmul.bf16.gmra.mxu0 %v7551_v52 }
 0x2a5   : > { %v3623_v9 = vsel %vm9453_vm6, %v3615_v51, %v3622_v34  ;;  %v3979_v60 = vrot.slane %v3978_v33, 4  ;;  %v3371_v41 = vadd.f32 %v3370_v5, %v3282_v58  ;;  %v8889_v5 = vld [vmem:[#allocation8 + $0x118] sm:$0xff]  ;;  %4991 = vmatpush.bf16.msrb.mxu3 %v8897_v62  ;;  %v7710_v2 = vld [vmem:[#allocation2 + $0x60] sm:$0xf] }
 0x2a6   : > { %3863 = vst [vmem:[#allocation2 + $0x6c] sm:$0xf] %v3623_v9  ;;  %v3536_v19 = vpack.c.bf16 %v3504_v4, %v3504_v4  ;;  %4902 = vmatpush.bf16.msrb.mxu2 %v8889_v5  ;;  %5480 = vmatpush.bf16.msrb.mxu0 %v8809_v54  ;;  %v8729_v58 = vld [vmem:[#allocation2 + $0x188] sm:$0xf0]  ;;  %v8728_v4 = vld [vmem:[#allocation2 + $0x184] sm:$0xf] }
 0x2a7   : > { %v4134_v20 = vsel %vm9881_vm14, %v3979_v60, %v4133_v11  ;;  %v3437_v22 = vadd.f32 %v3371_v41, %v2590_v13  ;;  %3323 = vmatmul.bf16.gmra.mxu3 %v7547_v0  ;;  %v3195_v38 = vpop.f32.mrf.mxu2  ;;  %v8896_v0 = vld [vmem:[#allocation8 + $0x150] sm:$0xff]  ;;  %v7556_v13 = vld [vmem:[#allocation2 + $0x18c] sm:$0xf0]  ;;  %v7562_v9 = vld [vmem:[#allocation2 + $0x188] sm:$0xf] }
 0x2a8   : > { %4135 = vst [vmem:[#allocation2 + $0x74] sm:$0xf] %v4134_v20  ;;  %v3625_v40 = vshrl.u32 %v3536_v19, 16  ;;  %v3628_v27 = vshll.u32 %v3536_v19, 16  ;;  %v7554_v11 = vld [vmem:[#allocation2 + $0x180] sm:$0xf] }
 0x2a9   : > { %3920 = vst [vmem:[#allocation2 + $0x7c] sm:$0xf] %v3536_v19  ;;  %v3473_v6 = vadd.f32 %v10284_v63, %v3437_v22  ;;  %v10341_v26 = vpop.f32.mrf.mxu0  ;;  %v8819_v60 = vld [vmem:[#allocation8 + $0x68] sm:$0xff]  ;;  %v8730_v22 = vld [vmem:[#allocation2 + $0x190] sm:$0xf0]  ;;  %4992 = vmatpush.bf16.msrb.mxu3 %v8896_v0  ;;  %v7555_v54 = vor.u32 %v8729_v58, %v7554_v11 }
 0x2aa   : > { %v10339_v48 = vrot.slane %v3625_v40, 7  ;;  %v3980_v23 = vrot.slane %v3625_v40, 4  ;;  %v3981_v18 = vrot.slane %v3628_v27, 5  ;;  %v3284_v42 = vpop.f32.mrf.mxu3  ;;  %4903 = vmatpush.bf16.msrb.mxu2 %v8888_v15  ;;  %5567 = vmatpush.bf16.msrb.mxu1 %v8819_v60  ;;  %v8887_v40 = vld [vmem:[#allocation8 + $0x108] sm:$0xff] }
 0x2ab   : > { %v3505_v17 = vmax.f32 %v3473_v6, 0.0  ;;  %v3285_v1 = vadd.f32 %v3284_v42, %v3195_v38  ;;  %5481 = vmatpush.bf16.msrb.mxu0 %v8808_v55  ;;  %v2595_v55 = vadd.f32 %v10196_v44, %v10201_v35  ;;  %v3868_v44 = vld [vmem:[#allocation2 + $0x90] sm:$0xf] }
 0x2ac   : > { %v3630_v51 = vor.u32 %v3628_v27, %v10339_v48  ;;  %v3982_v36 = vor.u32 %v3981_v18, %v3980_v23  ;;  %v8895_v27 = vld [vmem:[#allocation8 + $0x148] sm:$0xff]  ;;  %v3631_v42 = vrot.slane %v10339_v48, 4 }
 0x2ad   : > { %v3537_v52 = vpack.c.bf16 %v3505_v17, %v3505_v17  ;;  %v3374_v34 = vadd.f32 %v3373_v32, %v3285_v1  ;;  %v8840_v33 = vld [vmem:[#allocation2 + $0x68] sm:$0xf0]  ;;  %v8807_v18 = vld [vmem:[#allocation8 + $0x8] sm:$0xff]  ;;  %v7563_v17 = vor.u32 %v8730_v22, %v7562_v9  ;;  %4993 = vmatpush.bf16.msrb.mxu3 %v8895_v27 }
 0x2ae   : > { %v3865_v31 = vsel %vm9468_vm7, %v3630_v51, %v3864_v25  ;;  %v7711_v12 = vor.u32 %v8840_v33, %v7710_v2  ;;  %v3983_v32 = vrot.slane %v3982_v36, 4  ;;  %v7559_v25 = vor.u32 %v8728_v4, %v7556_v13  ;;  %4904 = vmatpush.bf16.msrb.mxu2 %v8887_v40  ;;  %v8886_v2 = vld [vmem:[#allocation8 + $0x100] sm:$0xff] }
 0x2af   : > { %3866 = vst [vmem:[#allocation2 + $0x78] sm:$0xf] %v3865_v31  ;;  %v3633_v41 = vshrl.u32 %v3537_v52, 16  ;;  %v3636_v19 = vshll.u32 %v3537_v52, 16  ;;  %v3438_v20 = vadd.f32 %v3374_v34, %v10198_v61  ;;  %v3197_v23 = vpop.f32.mrf.mxu2  ;;  %v8894_v33 = vld [vmem:[#allocation8 + $0x140] sm:$0xff]  ;;  %5482 = vmatpush.bf16.msrb.mxu0 %v8807_v18 }
 0x2b0   : > { %3921 = vst [vmem:[#allocation2 + $0x88] sm:$0xf] %v3537_v52  ;;  %v4137_v52 = vld [vmem:[#allocation2 + $0x8c] sm:$0xf]  ;;  %v8806_v4 = vld [vmem:[#allocation8] sm:$0xff] }
 0x2b1   : > { %v3635_v6 = vrot.slane %v3633_v41, 7  ;;  %v3984_v38 = vrot.slane %v3636_v19, 5  ;;  %v3986_v5 = vrot.slane %v3633_v41, 4  ;;  %v3474_v62 = vadd.f32 %v10284_v63, %v3438_v20  ;;  %4832 = vmatmul.bf16.gmra.mxu1 %v7711_v12  ;;  %v3378_v0 = vpop.f32.mrf.mxu0  ;;  %4994 = vmatpush.bf16.msrb.mxu3 %v8894_v33 }
 0x2b2   : > { %v3286_v61 = vpop.f32.mrf.mxu3  ;;  %4905 = vmatpush.bf16.msrb.mxu2 %v8886_v2 }
 0x2b3   : > { %v3638_v1 = vor.u32 %v3636_v19, %v3635_v6  ;;  %v3985_v51 = vsel %vm9876_vm13, %v3983_v32, %v3984_v38  ;;  %v3987_v36 = vor.u32 %v3986_v5, %v3984_v38  ;;  %v3506_v15 = vmax.f32 %v3474_v62, 0.0  ;;  %5483 = vmatpush.bf16.msrb.mxu0 %v8806_v4  ;;  %v7566_v38 = vld [vmem:[#allocation2 + $0x198] sm:$0xf] }
 0x2b4   : > { %4136 = vst [vmem:[#allocation2 + $0x80] sm:$0xf] %v3985_v51  ;;  %v3287_v34 = vadd.f32 %v3286_v61, %v3197_v23  ;;  %3239 = vmatmul.bf16.gmra.mxu2 %v7555_v54  ;;  %3417 = vmatmul.bf16.gmra.mxu0 %v7563_v17  ;;  %v7574_v17 = vld [vmem:[#allocation2 + $0x1a0] sm:$0xf] }
 0x2b5   : > { %v3639_v48 = vsel %vm9453_vm6, %v3631_v42, %v3638_v1  ;;  %v3988_v11 = vrot.slane %v3987_v36, 4  ;;  %v3538_v58 = vpack.c.bf16 %v3506_v15, %v3506_v15  ;;  %v8732_v42 = vld [vmem:[#allocation2 + $0x1a0] sm:$0xf0]  ;;  %v8733_v1 = vld [vmem:[#allocation2 + $0x1a8] sm:$0xf0] }
 0x2b6   : > { %3867 = vst [vmem:[#allocation2 + $0x84] sm:$0xf] %v3639_v48  ;;  %v3376_v31 = vadd.f32 %v10341_v26, %v3287_v34  ;;  %v7722_v23 = vld [vmem:[#allocation2 + $0x78] sm:$0xf]  ;;  %v8731_v36 = vld [vmem:[#allocation2 + $0x19c] sm:$0xf]  ;;  %v7567_v33 = vor.u32 %v8732_v42, %v7566_v38  ;;  %v7575_v48 = vor.u32 %v8733_v1, %v7574_v17 }
 0x2b7   : > { %v4138_v12 = vsel %vm9881_vm14, %v3988_v11, %v4137_v52  ;;  %v3641_v13 = vshrl.u32 %v3538_v58, 16  ;;  %v3644_v9 = vshll.u32 %v3538_v58, 16  ;;  %3922 = vst [vmem:[#allocation2 + $0x94] sm:$0xf] %v3538_v58  ;;  %3328 = vmatmul.bf16.gmra.mxu3 %v7559_v25  ;;  %v3200_v19 = vpop.f32.mrf.mxu2  ;;  %v7568_v34 = vld [vmem:[#allocation2 + $0x1a4] sm:$0xf0] }
 0x2b8   : > { %4139 = vst [vmem:[#allocation2 + $0x8c] sm:$0xf] %v4138_v12  ;;  %v3439_v60 = vadd.f32 %v3376_v31, %v2595_v55  ;;  %v3872_v42 = vld [vmem:[#allocation2 + $0xa8] sm:$0xf] }
 0x2b9   : > { %v3643_v41 = vrot.slane %v3641_v13, 7  ;;  %v3989_v35 = vrot.slane %v3641_v13, 4  ;;  %v3990_v20 = vrot.slane %v3644_v9, 5  ;;  %v3380_v27 = vpop.f32.mrf.mxu0 }
 0x2ba   : > { %v3475_v26 = vadd.f32 %v10284_v63, %v3439_v60  ;;  %v3289_v22 = vpop.f32.mrf.mxu3 }
 0x2bb   : > { %v3646_v32 = vor.u32 %v3644_v9, %v3643_v41  ;;  %v3290_v40 = vadd.f32 %v3289_v22, %v3200_v19  ;;  %v3991_v61 = vor.u32 %v3990_v20, %v3989_v35  ;;  %v3647_v60 = vrot.slane %v3643_v41, 4 }
 0x2bc   : > { %v3507_v6 = vmax.f32 %v3475_v26, 0.0  ;;  %v2600_v20 = vadd.f32 %v10204_v49, %v10209_v43  ;;  %v4141_v26 = vld [vmem:[#allocation2 + $0xa4] sm:$0xf] }
 0x2bd   : > { %v3869_v5 = vsel %vm9468_vm7, %v3646_v32, %v3868_v44  ;;  %v3379_v62 = vadd.f32 %v3378_v0, %v3290_v40  ;;  %v8843_v18 = vld [vmem:[#allocation2 + $0x80] sm:$0xf0]  ;;  %v3992_v11 = vrot.slane %v3991_v61, 4 }
 0x2be   : > { %3870 = vst [vmem:[#allocation2 + $0x90] sm:$0xf] %v3869_v5  ;;  %v3539_v54 = vpack.c.bf16 %v3507_v6, %v3507_v6  ;;  %v7723_v25 = vor.u32 %v8843_v18, %v7722_v23 }
 0x2bf   : > { %v3440_v51 = vadd.f32 %v3379_v62, %v10206_v50  ;;  %v3202_v0 = vpop.f32.mrf.mxu2  ;;  %v7571_v50 = vor.u32 %v8731_v36, %v7568_v34  ;;  %v7962_v34 = vld [vmem:[#allocation2] sm:$0xf] }
 0x2c0   : > { %v3649_v15 = vshrl.u32 %v3539_v54, 16  ;;  %v3652_v52 = vshll.u32 %v3539_v54, 16  ;;  %3923 = vst [vmem:[#allocation2 + $0xa0] sm:$0xf] %v3539_v54 }
 0x2c1   : > { %v3476_v2 = vadd.f32 %v10284_v63, %v3440_v51  ;;  %4837 = vmatmul.bf16.gmra.mxu1 %v7723_v25  ;;  %v3383_v9 = vpop.f32.mrf.mxu0 }
 0x2c2   : > { %v3651_v58 = vrot.slane %v3649_v15, 7  ;;  %v3993_v4 = vrot.slane %v3652_v52, 5  ;;  %v3995_v55 = vrot.slane %v3649_v15, 4  ;;  %v3291_v31 = vpop.f32.mrf.mxu3 }
 0x2c3   : > { %v3508_v12 = vmax.f32 %v3476_v2, 0.0  ;;  %v3292_v13 = vadd.f32 %v3291_v31, %v3202_v0 }
 0x2c4   : > { %v3654_v19 = vor.u32 %v3652_v52, %v3651_v58  ;;  %v3994_v44 = vsel %vm9876_vm13, %v3992_v11, %v3993_v4  ;;  %v3996_v35 = vor.u32 %v3995_v55, %v3993_v4  ;;  %3244 = vmatmul.bf16.gmra.mxu2 %v7567_v33  ;;  %3422 = vmatmul.bf16.gmra.mxu0 %v7575_v48  ;;  %v8818_v33 = vld [vmem:[#allocation8 + $0x60] sm:$0xff]  ;;  %v8759_v4 = vld [vmem:[#allocation2 + $0x8] sm:$0xf0] }
 0x2c5   : > { %4140 = vst [vmem:[#allocation2 + $0x98] sm:$0xf] %v3994_v44  ;;  %v3540_v22 = vpack.c.bf16 %v3508_v12, %v3508_v12  ;;  %v3381_v32 = vadd.f32 %v3380_v27, %v3292_v13  ;;  %v7734_v52 = vld [vmem:[#allocation2 + $0x90] sm:$0xf]  ;;  %5568 = vmatpush.bf16.msrb.mxu1 %v8818_v33 }
 0x2c6   : > { %v3655_v40 = vsel %vm9453_vm6, %v3647_v60, %v3654_v19  ;;  %v3997_v6 = vrot.slane %v3996_v35, 4  ;;  %v7676_v19 = vld [vmem:[#allocation2 + $0x24] sm:$0xf0] }
 0x2c7   : > { %3871 = vst [vmem:[#allocation2 + $0x9c] sm:$0xf] %v3655_v40  ;;  %v3657_v41 = vshrl.u32 %v3540_v22, 16  ;;  %v3660_v38 = vshll.u32 %v3540_v22, 16  ;;  %v3441_v5 = vadd.f32 %v3381_v32, %v2600_v20  ;;  %3333 = vmatmul.bf16.gmra.mxu3 %v7571_v50  ;;  %v3205_v18 = vpop.f32.mrf.mxu2  ;;  %v8832_v20 = vld [vmem:[#allocation2 + $0x28] sm:$0xf0] }
 0x2c8   : > { %v4142_v62 = vsel %vm9881_vm14, %v3997_v6, %v4141_v26  ;;  %3924 = vst [vmem:[#allocation2 + $0xac] sm:$0xf] %v3540_v22  ;;  %v7963_v26 = vor.u32 %v8759_v4, %v7962_v34  ;;  %v3876_v34 = vld [vmem:[#allocation2 + $0xc0] sm:$0xf] }
 0x2c9   : > { %4143 = vst [vmem:[#allocation2 + $0xa4] sm:$0xf] %v4142_v62  ;;  %v3659_v49 = vrot.slane %v3657_v41, 7  ;;  %v3998_v43 = vrot.slane %v3657_v41, 4  ;;  %v3999_v23 = vrot.slane %v3660_v38, 5  ;;  %v3477_v27 = vadd.f32 %v10284_v63, %v3441_v5  ;;  %v3385_v17 = vpop.f32.mrf.mxu0 }
 0x2ca   : > { %v3294_v61 = vpop.f32.mrf.mxu3  ;;  %v8830_v41 = vld [vmem:[#allocation2 + $0x1c] sm:$0xf]  ;;  %v2605_v5 = vadd.f32 %v10212_v57, %v10217_v16 }
 0x2cb   : > { %v3662_v54 = vor.u32 %v3660_v38, %v3659_v49  ;;  %v3509_v25 = vmax.f32 %v3477_v27, 0.0  ;;  %v3295_v1 = vadd.f32 %v3294_v61, %v3205_v18  ;;  %v4000_v36 = vor.u32 %v3999_v23, %v3998_v43  ;;  %v7682_v38 = vld [vmem:[#allocation2 + $0x20] sm:$0xf]  ;;  %v4145_v62 = vld [vmem:[#allocation2 + $0xbc] sm:$0xf] }
 0x2cc   : > { %v3663_v44 = vrot.slane %v3659_v49, 4  ;;  %v7679_v43 = vor.u32 %v8830_v41, %v7676_v19  ;;  %v7683_v18 = vor.u32 %v8832_v20, %v7682_v38  ;;  %v8835_v41 = vld [vmem:[#allocation2 + $0x40] sm:$0xf0] }
 0x2cd   : > { %v3873_v51 = vsel %vm9468_vm7, %v3662_v54, %v3872_v42  ;;  %v3541_v15 = vpack.c.bf16 %v3509_v25, %v3509_v25  ;;  %v3384_v2 = vadd.f32 %v3383_v9, %v3295_v1  ;;  %v4001_v31 = vrot.slane %v4000_v36, 4  ;;  %v10387_v25 = vld [vmem:[%s11056_s3] ss:$0 sm:$0xff] }
 0x2ce   : > { %3874 = vst [vmem:[#allocation2 + $0xa8] sm:$0xf] %v3873_v51  ;;  %v8846_v0 = vld [vmem:[#allocation2 + $0x98] sm:$0xf0] }
 0x2cf   : > { %v3665_v48 = vshrl.u32 %v3541_v15, 16  ;;  %v3668_v11 = vshll.u32 %v3541_v15, 16  ;;  %3925 = vst [vmem:[#allocation2 + $0xb8] sm:$0xf] %v3541_v15  ;;  %v7735_v58 = vor.u32 %v8846_v0, %v7734_v52  ;;  %v3442_v55 = vadd.f32 %v3384_v2, %v10214_v30  ;;  %v3207_v60 = vpop.f32.mrf.mxu2 }
 0x2d1   : > { %v3667_v12 = vrot.slane %v3665_v48, 7  ;;  %v4002_v13 = vrot.slane %v3668_v11, 5  ;;  %v4004_v50 = vrot.slane %v3665_v48, 4  ;;  %4842 = vmatmul.bf16.gmra.mxu1 %v7735_v58  ;;  %v3478_v9 = vadd.f32 %v10284_v63, %v3442_v55  ;;  %v3388_v6 = vpop.f32.mrf.mxu0 }
 0x2d2   : > { %v3296_v35 = vpop.f32.mrf.mxu3 }
 0x2d3   : > { %v3670_v22 = vor.u32 %v3668_v11, %v3667_v12  ;;  %v4003_v32 = vsel %vm9876_vm13, %v4001_v31, %v4002_v13  ;;  %v4005_v40 = vor.u32 %v4004_v50, %v4002_v13  ;;  %v3297_v30 = vadd.f32 %v3296_v35, %v3207_v60 }
 0x2d4   : > { %4144 = vst [vmem:[#allocation2 + $0xb0] sm:$0xf] %v4003_v32  ;;  %v3510_v49 = vmax.f32 %v3478_v9, 0.0  ;;  %4906 = vmatmul.bf16.vlgmr.msrb.gmra.mxu2 %v7679_v43  ;;  %5484 = vmatmul.bf16.vlgmr.msrb.gmra.mxu0 %v7963_v26  ;;  %v8762_v9 = vld [vmem:[#allocation2 + $0x20] sm:$0xf0] }
 0x2d5   : > { %v3671_v63 = vsel %vm9453_vm6, %v3663_v44, %v3670_v22  ;;  %v4006_v23 = vrot.slane %v4005_v40, 4  ;;  %v3386_v27 = vadd.f32 %v3385_v17, %v3297_v30  ;;  %v7746_v55 = vld [vmem:[#allocation2 + $0xa8] sm:$0xf]  ;;  %v7688_v40 = vld [vmem:[#allocation2 + $0x3c] sm:$0xf0] }
 0x2d6   : > { %3875 = vst [vmem:[#allocation2 + $0xb4] sm:$0xf] %v3671_v63  ;;  %v3542_v42 = vpack.c.bf16 %v3510_v49, %v3510_v49  ;;  %v8833_v43 = vld [vmem:[#allocation2 + $0x34] sm:$0xf]  ;;  %v7974_v63 = vld [vmem:[#allocation2 + $0x18] sm:$0xf] }
 0x2d7   : > { %v4146_v61 = vsel %vm9881_vm14, %v4006_v23, %v4145_v62  ;;  %v3443_v54 = vadd.f32 %v3386_v27, %v2605_v5  ;;  %4995 = vmatmul.bf16.vlgmr.msrb.gmra.mxu3 %v7683_v18  ;;  %v3210_v1 = vpop.f32.mrf.mxu2  ;;  %v4149_v23 = vld [vmem:[#allocation2 + $0xd4] sm:$0xf]  ;;  %v7691_v18 = vor.u32 %v8833_v43, %v7688_v40  ;;  %v7700_v40 = vld [vmem:[#allocation2 + $0x54] sm:$0xf0] }
 0x2d8   : > { %4147 = vst [vmem:[#allocation2 + $0xbc] sm:$0xf] %v4146_v61  ;;  %v3673_v57 = vshrl.u32 %v3542_v42, 16  ;;  %v3676_v16 = vshll.u32 %v3542_v42, 16  ;;  %v7975_v61 = vor.u32 %v8762_v9, %v7974_v63  ;;  %v8838_v63 = vld [vmem:[#allocation2 + $0x58] sm:$0xf0] }
 0x2d9   : > { %3926 = vst [vmem:[#allocation2 + $0xc4] sm:$0xf] %v3542_v42  ;;  %v3479_v17 = vadd.f32 %v10387_v25, %v3443_v54  ;;  %v3390_v33 = vpop.f32.mrf.mxu0  ;;  %v7694_v42 = vld [vmem:[#allocation2 + $0x38] sm:$0xf] }
 0x2da   : > { %v3675_v51 = vrot.slane %v3673_v57, 7  ;;  %v4007_v36 = vrot.slane %v3673_v57, 4  ;;  %v4008_v15 = vrot.slane %v3676_v16, 5  ;;  %v3299_v52 = vpop.f32.mrf.mxu3 }
 0x2db   : > { %v3511_v2 = vmax.f32 %v3479_v17, 0.0  ;;  %v3300_v0 = vadd.f32 %v3299_v52, %v3210_v1  ;;  %v7695_v17 = vor.u32 %v8835_v41, %v7694_v42  ;;  %v2610_v1 = vadd.f32 %v10220_v3, %v10225_v29  ;;  %v8836_v41 = vld [vmem:[#allocation2 + $0x4c] sm:$0xf] }
 0x2dc   : > { %v3678_v48 = vor.u32 %v3676_v16, %v3675_v51  ;;  %v4009_v11 = vor.u32 %v4008_v15, %v4007_v36  ;;  %v3679_v30 = vrot.slane %v3675_v51, 4 }
 0x2dd   : > { %v3543_v58 = vpack.c.bf16 %v3511_v2, %v3511_v2  ;;  %v3389_v4 = vadd.f32 %v3388_v6, %v3300_v0  ;;  %v8849_v31 = vld [vmem:[#allocation2 + $0xb0] sm:$0xf0] }
 0x2de   : > { %v3877_v12 = vsel %vm9468_vm7, %v3678_v48, %v3876_v34  ;;  %v7747_v13 = vor.u32 %v8849_v31, %v7746_v55  ;;  %v4010_v44 = vrot.slane %v4009_v11, 4  ;;  %v3880_v48 = vld [vmem:[#allocation2 + $0xd8] sm:$0xf] }
 0x2df   : > { %3878 = vst [vmem:[#allocation2 + $0xc0] sm:$0xf] %v3877_v12  ;;  %v3681_v50 = vshrl.u32 %v3543_v58, 16  ;;  %v3684_v60 = vshll.u32 %v3543_v58, 16  ;;  %v3444_v19 = vadd.f32 %v3389_v4, %v10222_v10  ;;  %v3212_v32 = vpop.f32.mrf.mxu2 }
 0x2e0   : > { %3927 = vst [vmem:[#allocation2 + $0xd0] sm:$0xf] %v3543_v58 }
 0x2e1   : > { %v3683_v35 = vrot.slane %v3681_v50, 7  ;;  %v4011_v20 = vrot.slane %v3684_v60, 5  ;;  %v4013_v26 = vrot.slane %v3681_v50, 4  ;;  %v3480_v22 = vadd.f32 %v10387_v25, %v3444_v19  ;;  %4847 = vmatmul.bf16.gmra.mxu1 %v7747_v13  ;;  %v3393_v49 = vpop.f32.mrf.mxu0 }
 0x2e2   : > { %v3301_v6 = vpop.f32.mrf.mxu3 }
 0x2e3   : > { %v3686_v38 = vor.u32 %v3684_v60, %v3683_v35  ;;  %v4012_v5 = vsel %vm9876_vm13, %v4010_v44, %v4011_v20  ;;  %v4014_v62 = vor.u32 %v4013_v26, %v4011_v20  ;;  %v3512_v10 = vmax.f32 %v3480_v22, 0.0  ;;  %v8765_v20 = vld [vmem:[#allocation2 + $0x38] sm:$0xf0]  ;;  %v8817_v26 = vld [vmem:[#allocation8 + $0x58] sm:$0xff] }
 0x2e4   : > { %4148 = vst [vmem:[#allocation2 + $0xc8] sm:$0xf] %v4012_v5  ;;  %v3302_v27 = vadd.f32 %v3301_v6, %v3212_v32  ;;  %4911 = vmatmul.bf16.gmra.mxu2 %v7691_v18  ;;  %5489 = vmatmul.bf16.gmra.mxu0 %v7975_v61  ;;  %v7703_v18 = vor.u32 %v8836_v41, %v7700_v40  ;;  %v8768_v41 = vld [vmem:[#allocation2 + $0x50] sm:$0xf0] }
 0x2e5   : > { %v3687_v54 = vsel %vm9453_vm6, %v3679_v30, %v3686_v38  ;;  %v4015_v57 = vrot.slane %v4014_v62, 4  ;;  %v3544_v16 = vpack.c.bf16 %v3512_v10, %v3512_v10  ;;  %v7986_v38 = vld [vmem:[#allocation2 + $0x30] sm:$0xf]  ;;  %5569 = vmatpush.bf16.msrb.mxu1 %v8817_v26 }
 0x2e6   : > { %3879 = vst [vmem:[#allocation2 + $0xcc] sm:$0xf] %v3687_v54  ;;  %v3391_v51 = vadd.f32 %v3390_v33, %v3302_v27  ;;  %v7758_v50 = vld [vmem:[#allocation2 + $0xc0] sm:$0xf]  ;;  %v7987_v42 = vor.u32 %v8765_v20, %v7986_v38 }
 0x2e7   : > { %v4150_v36 = vsel %vm9881_vm14, %v4015_v57, %v4149_v23  ;;  %v3689_v15 = vshrl.u32 %v3544_v16, 16  ;;  %v3692_v52 = vshll.u32 %v3544_v16, 16  ;;  %3928 = vst [vmem:[#allocation2 + $0xdc] sm:$0xf] %v3544_v16  ;;  %5000 = vmatmul.bf16.gmra.mxu3 %v7695_v17  ;;  %v3215_v0 = vpop.f32.mrf.mxu2  ;;  %v7706_v17 = vld [vmem:[#allocation2 + $0x50] sm:$0xf] }
 0x2e8   : > { %4151 = vst [vmem:[#allocation2 + $0xd4] sm:$0xf] %v4150_v36  ;;  %v3445_v34 = vadd.f32 %v3391_v51, %v2610_v1  ;;  %v2615_v1 = vadd.f32 %v10228_v24, %v10233_v59  ;;  %v10411_v51 = vpop.f32.mrf.mxu1  ;;  %v4153_v36 = vld [vmem:[#allocation2 + $0xec] sm:$0xf] }
 0x2e9   : > { %v3691_v2 = vrot.slane %v3689_v15, 7  ;;  %v4016_v11 = vrot.slane %v3689_v15, 4  ;;  %v4017_v58 = vrot.slane %v3692_v52, 5  ;;  %v3395_v55 = vpop.f32.mrf.mxu0 }
 0x2ea   : > { %v3481_v3 = vadd.f32 %v10387_v25, %v3445_v34  ;;  %v3304_v29 = vpop.f32.mrf.mxu3  ;;  %v7707_v34 = vor.u32 %v8838_v63, %v7706_v17  ;;  %v7998_v17 = vld [vmem:[#allocation2 + $0x48] sm:$0xf] }
 0x2eb   : > { %v3694_v33 = vor.u32 %v3692_v52, %v3691_v2  ;;  %v3305_v4 = vadd.f32 %v3304_v29, %v3215_v0  ;;  %v4018_v19 = vor.u32 %v4017_v58, %v4016_v11  ;;  %v3695_v61 = vrot.slane %v3691_v2, 4 }
 0x2ec   : > { %v3513_v31 = vmax.f32 %v3481_v3, 0.0 }
 0x2ed   : > { %v3881_v12 = vsel %vm9468_vm7, %v3694_v33, %v3880_v48  ;;  %v3394_v13 = vadd.f32 %v3393_v49, %v3305_v4  ;;  %v8852_v60 = vld [vmem:[#allocation2 + $0xc8] sm:$0xf0]  ;;  %v4019_v5 = vrot.slane %v4018_v19, 4 }
 0x2ee   : > { %3882 = vst [vmem:[#allocation2 + $0xd8] sm:$0xf] %v3881_v12  ;;  %v3545_v44 = vpack.c.bf16 %v3513_v31, %v3513_v31  ;;  %v7759_v9 = vor.u32 %v8852_v60, %v7758_v50 }
 0x2ef   : > { %v3446_v35 = vadd.f32 %v3394_v13, %v10230_v21  ;;  %v3217_v6 = vpop.f32.mrf.mxu2 }
 0x2f0   : > { %v3697_v22 = vshrl.u32 %v3545_v44, 16  ;;  %v3700_v32 = vshll.u32 %v3545_v44, 16  ;;  %3929 = vst [vmem:[#allocation2 + $0xe8] sm:$0xf] %v3545_v44 }
 0x2f1   : > { %v3482_v30 = vadd.f32 %v10387_v25, %v3446_v35  ;;  %4852 = vmatmul.bf16.gmra.mxu1 %v7759_v9  ;;  %v3398_v27 = vpop.f32.mrf.mxu0 }
 0x2f2   : > { %v3699_v62 = vrot.slane %v3697_v22, 7  ;;  %v4020_v10 = vrot.slane %v3700_v32, 5  ;;  %v4022_v49 = vrot.slane %v3697_v22, 4  ;;  %v3306_v43 = vpop.f32.mrf.mxu3 }
 0x2f3   : > { %v3514_v21 = vmax.f32 %v3482_v30, 0.0  ;;  %v3307_v23 = vadd.f32 %v3306_v43, %v3217_v6  ;;  %v7712_v43 = vld [vmem:[#allocation2 + $0x6c] sm:$0xf0] }
 0x2f4   : > { %v3702_v54 = vor.u32 %v3700_v32, %v3699_v62  ;;  %v4021_v57 = vsel %vm9876_vm13, %v4019_v5, %v4020_v10  ;;  %v4023_v16 = vor.u32 %v4022_v49, %v4020_v10  ;;  %4916 = vmatmul.bf16.gmra.mxu2 %v7703_v18  ;;  %5494 = vmatmul.bf16.gmra.mxu0 %v7987_v42 }
 0x2f5   : > { %4152 = vst [vmem:[#allocation2 + $0xe0] sm:$0xf] %v4021_v57  ;;  %v3546_v15 = vpack.c.bf16 %v3514_v21, %v3514_v21  ;;  %v3396_v52 = vadd.f32 %v3395_v55, %v3307_v23  ;;  %v3884_v55 = vld [vmem:[#allocation2 + $0xf0] sm:$0xf]  ;;  %v7770_v26 = vld [vmem:[#allocation2 + $0xd8] sm:$0xf] }
 0x2f6   : > { %v3703_v0 = vsel %vm9453_vm6, %v3695_v61, %v3702_v54  ;;  %v4024_v2 = vrot.slane %v4023_v16, 4  ;;  %v8839_v57 = vld [vmem:[#allocation2 + $0x64] sm:$0xf]  ;;  %v7718_v16 = vld [vmem:[#allocation2 + $0x68] sm:$0xf] }
 0x2f7   : > { %3883 = vst [vmem:[#allocation2 + $0xe4] sm:$0xf] %v3703_v0  ;;  %v3705_v48 = vshrl.u32 %v3546_v15, 16  ;;  %v3708_v11 = vshll.u32 %v3546_v15, 16  ;;  %v3447_v58 = vadd.f32 %v3396_v52, %v2615_v1  ;;  %5005 = vmatmul.bf16.gmra.mxu3 %v7707_v34  ;;  %v3220_v4 = vpop.f32.mrf.mxu2  ;;  %v2620_v1 = vadd.f32 %v10236_v47, %v10241_v28 }
 0x2f8   : > { %v4154_v24 = vsel %vm9881_vm14, %v4024_v2, %v4153_v36  ;;  %3930 = vst [vmem:[#allocation2 + $0xf4] sm:$0xf] %v3546_v15  ;;  %v4157_v36 = vld [vmem:[#allocation2 + $0x104] sm:$0xf]  ;;  %v7715_v52 = vor.u32 %v8839_v57, %v7712_v43  ;;  %v7999_v34 = vor.u32 %v8768_v41, %v7998_v17 }
 0x2f9   : > { %4155 = vst [vmem:[#allocation2 + $0xec] sm:$0xf] %v4154_v24  ;;  %v3707_v59 = vrot.slane %v3705_v48, 7  ;;  %v4025_v3 = vrot.slane %v3705_v48, 4  ;;  %v4026_v29 = vrot.slane %v3708_v11, 5  ;;  %v3483_v33 = vadd.f32 %v10387_v25, %v3447_v58  ;;  %v3400_v50 = vpop.f32.mrf.mxu0  ;;  %v8816_v41 = vld [vmem:[#allocation8 + $0x50] sm:$0xff] }
 0x2fa   : > { %v3309_v31 = vpop.f32.mrf.mxu3  ;;  %5570 = vmatpush.bf16.msrb.mxu1 %v8816_v41 }
 0x2fb   : > { %v3710_v12 = vor.u32 %v3708_v11, %v3707_v59  ;;  %v3515_v13 = vmax.f32 %v3483_v33, 0.0  ;;  %v3310_v60 = vadd.f32 %v3309_v31, %v3220_v4  ;;  %v4027_v44 = vor.u32 %v4026_v29, %v4025_v3 }
 0x2fc   : > { %v3711_v63 = vrot.slane %v3707_v59, 4 }
 0x2fd   : > { %v3885_v19 = vsel %vm9468_vm7, %v3710_v12, %v3884_v55  ;;  %v3547_v9 = vpack.c.bf16 %v3515_v13, %v3515_v13  ;;  %v10420_v35 = vpop.f32.mrf.mxu1  ;;  %v3399_v20 = vadd.f32 %v3398_v27, %v3310_v60  ;;  %v4028_v38 = vrot.slane %v4027_v44, 4  ;;  %v8841_v27 = vld [vmem:[#allocation2 + $0x70] sm:$0xf0]  ;;  %v3888_v13 = vld [vmem:[#allocation2 + $0x108] sm:$0xf] }
 0x2fe   : > { %3886 = vst [vmem:[#allocation2 + $0xf0] sm:$0xf] %v3885_v19  ;;  %v8855_v22 = vld [vmem:[#allocation2 + $0xe0] sm:$0xf0]  ;;  %v7719_v58 = vor.u32 %v8841_v27, %v7718_v16 }
 0x2ff   : > { %v3713_v32 = vshrl.u32 %v3547_v9, 16  ;;  %v3716_v40 = vshll.u32 %v3547_v9, 16  ;;  %3931 = vst [vmem:[#allocation2 + $0x100] sm:$0xf] %v3547_v9  ;;  %v7771_v30 = vor.u32 %v8855_v22, %v7770_v26  ;;  %v3448_v6 = vadd.f32 %v3399_v20, %v10238_v53  ;;  %v3222_v49 = vpop.f32.mrf.mxu2 }
 0x301   : > { %v3715_v5 = vrot.slane %v3713_v32, 7  ;;  %v4029_v62 = vrot.slane %v3716_v40, 5  ;;  %v4031_v10 = vrot.slane %v3713_v32, 4  ;;  %4857 = vmatmul.bf16.gmra.mxu1 %v7771_v30  ;;  %v3484_v21 = vadd.f32 %v10387_v25, %v3448_v6  ;;  %v3403_v53 = vpop.f32.mrf.mxu0 }
 0x302   : > { %v3311_v23 = vpop.f32.mrf.mxu3 }
 0x303   : > { %v3718_v18 = vor.u32 %v3716_v40, %v3715_v5  ;;  %v4030_v42 = vsel %vm9876_vm13, %v4028_v38, %v4029_v62  ;;  %v4032_v61 = vor.u32 %v4031_v10, %v4029_v62  ;;  %v3312_v54 = vadd.f32 %v3311_v23, %v3222_v49  ;;  %v8771_v49 = vld [vmem:[#allocation2 + $0x68] sm:$0xf0] }
 0x304   : > { %4156 = vst [vmem:[#allocation2 + $0xf8] sm:$0xf] %v4030_v42  ;;  %v3516_v15 = vmax.f32 %v3484_v21, 0.0  ;;  %4921 = vmatmul.bf16.gmra.mxu2 %v7715_v52  ;;  %5499 = vmatmul.bf16.gmra.mxu0 %v7999_v34 }
 0x305   : > { %v3719_v0 = vsel %vm9453_vm6, %v3711_v63, %v3718_v18  ;;  %v4033_v2 = vrot.slane %v4032_v61, 4  ;;  %v3401_v48 = vadd.f32 %v3400_v50, %v3312_v54  ;;  %v10430_v11 = vpop.f32.mrf.mxu1  ;;  %v7782_v32 = vld [vmem:[#allocation2 + $0xf0] sm:$0xf]  ;;  %v7724_v18 = vld [vmem:[#allocation2 + $0x84] sm:$0xf0] }
 0x306   : > { %3887 = vst [vmem:[#allocation2 + $0xfc] sm:$0xf] %v3719_v0  ;;  %v3548_v24 = vpack.c.bf16 %v3516_v15, %v3516_v15  ;;  %v8844_v54 = vld [vmem:[#allocation2 + $0x88] sm:$0xf0]  ;;  %v4161_v15 = vld [vmem:[#allocation2 + $0x11c] sm:$0xf] }
 0x307   : > { %v4158_v47 = vsel %vm9881_vm14, %v4033_v2, %v4157_v36  ;;  %v3449_v28 = vadd.f32 %v3401_v48, %v2620_v1  ;;  %5010 = vmatmul.bf16.gmra.mxu3 %v7719_v58  ;;  %v3225_v33 = vpop.f32.mrf.mxu2  ;;  %v8842_v1 = vld [vmem:[#allocation2 + $0x7c] sm:$0xf]  ;;  %v8010_v36 = vld [vmem:[#allocation2 + $0x60] sm:$0xf] }
 0x308   : > { %4159 = vst [vmem:[#allocation2 + $0x104] sm:$0xf] %v4158_v47  ;;  %v3721_v59 = vshrl.u32 %v3548_v24, 16  ;;  %v3724_v3 = vshll.u32 %v3548_v24, 16  ;;  %v7727_v34 = vor.u32 %v8842_v1, %v7724_v18  ;;  %v7730_v0 = vld [vmem:[#allocation2 + $0x80] sm:$0xf]  ;;  %v8011_v2 = vor.u32 %v8771_v49, %v8010_v36 }
 0x309   : > { %3932 = vst [vmem:[#allocation2 + $0x10c] sm:$0xf] %v3548_v24  ;;  %v3485_v29 = vadd.f32 %v10387_v25, %v3449_v28  ;;  %v3405_v19 = vpop.f32.mrf.mxu0  ;;  %v7731_v28 = vor.u32 %v8844_v54, %v7730_v0  ;;  %v8022_v18 = vld [vmem:[#allocation2 + $0x78] sm:$0xf] }
 0x30a   : > { %v3723_v4 = vrot.slane %v3721_v59, 7  ;;  %v4034_v55 = vrot.slane %v3721_v59, 4  ;;  %v4035_v31 = vrot.slane %v3724_v3, 5  ;;  %v3314_v12 = vpop.f32.mrf.mxu3  ;;  %v2625_v59 = vadd.f32 %v10244_v46, %v10249_v45 }
 0x30b   : > { %v3517_v50 = vmax.f32 %v3485_v29, 0.0  ;;  %v3315_v60 = vadd.f32 %v3314_v12, %v3225_v33 }
 0x30c   : > { %v3726_v44 = vor.u32 %v3724_v3, %v3723_v4  ;;  %v4036_v9 = vor.u32 %v4035_v31, %v4034_v55  ;;  %v3727_v42 = vrot.slane %v3723_v4, 4 }
 0x30d   : > { %v3549_v20 = vpack.c.bf16 %v3517_v50, %v3517_v50  ;;  %v3404_v26 = vadd.f32 %v3403_v53, %v3315_v60  ;;  %v10435_v22 = vpop.f32.mrf.mxu1  ;;  %v8858_v40 = vld [vmem:[#allocation2 + $0xf8] sm:$0xf0] }
 0x30e   : > { %v3889_v30 = vsel %vm9468_vm7, %v3726_v44, %v3888_v13  ;;  %v7783_v6 = vor.u32 %v8858_v40, %v7782_v32  ;;  %v4037_v10 = vrot.slane %v4036_v9, 4  ;;  %v3892_v13 = vld [vmem:[#allocation2 + $0x120] sm:$0xf]  ;;  %v8789_v14 = vld [vmem:[#allocation2 + $0xf8] sm:$0xf0] }
 0x30f   : > { %3890 = vst [vmem:[#allocation2 + $0x108] sm:$0xf] %v3889_v30  ;;  %v3729_v38 = vshrl.u32 %v3549_v20, 16  ;;  %v3732_v5 = vshll.u32 %v3549_v20, 16  ;;  %v3450_v62 = vadd.f32 %v3404_v26, %v10246_v39  ;;  %v3227_v27 = vpop.f32.mrf.mxu2 }
 0x310   : > { %3933 = vst [vmem:[#allocation2 + $0x118] sm:$0xf] %v3549_v20 }
 0x311   : > { %v3731_v43 = vrot.slane %v3729_v38, 7  ;;  %v4038_v63 = vrot.slane %v3732_v5, 5  ;;  %v4040_v21 = vrot.slane %v3729_v38, 4  ;;  %v3486_v23 = vadd.f32 %v10387_v25, %v3450_v62  ;;  %4862 = vmatmul.bf16.gmra.mxu1 %v7783_v6  ;;  %v3408_v17 = vpop.f32.mrf.mxu0 }
 0x312   : > { %v3316_v61 = vpop.f32.mrf.mxu3 }
 0x313   : > { %v3734_v53 = vor.u32 %v3732_v5, %v3731_v43  ;;  %v4039_v57 = vsel %vm9876_vm13, %v4037_v10, %v4038_v63  ;;  %v4041_v39 = vor.u32 %v4040_v21, %v4038_v63  ;;  %v3518_v16 = vmax.f32 %v3486_v23, 0.0  ;;  %v8774_v10 = vld [vmem:[#allocation2 + $0x80] sm:$0xf0]  ;;  %v7736_v63 = vld [vmem:[#allocation2 + $0x9c] sm:$0xf0] }
 0x314   : > { %4160 = vst [vmem:[#allocation2 + $0x110] sm:$0xf] %v4039_v57  ;;  %v3317_v52 = vadd.f32 %v3316_v61, %v3227_v27  ;;  %4926 = vmatmul.bf16.gmra.mxu2 %v7727_v34  ;;  %5504 = vmatmul.bf16.gmra.mxu0 %v8011_v2  ;;  %v8845_v27 = vld [vmem:[#allocation2 + $0x94] sm:$0xf]  ;;  %v8023_v36 = vor.u32 %v8774_v10, %v8022_v18  ;;  %v7742_v2 = vld [vmem:[#allocation2 + $0x98] sm:$0xf] }
 0x315   : > { %v3735_v48 = vsel %vm9453_vm6, %v3727_v42, %v3734_v53  ;;  %v4042_v58 = vrot.slane %v4041_v39, 4  ;;  %v3550_v24 = vpack.c.bf16 %v3518_v16, %v3518_v16  ;;  %v10445_v47 = vpop.f32.mrf.mxu1  ;;  %v8847_v39 = vld [vmem:[#allocation2 + $0xa0] sm:$0xf0]  ;;  %v7739_v1 = vor.u32 %v8845_v27, %v7736_v63  ;;  %v8815_v63 = vld [vmem:[#allocation8 + $0x48] sm:$0xff] }
 0x316   : > { %3891 = vst [vmem:[#allocation2 + $0x114] sm:$0xf] %v3735_v48  ;;  %v3406_v3 = vadd.f32 %v3405_v19, %v3317_v52  ;;  %v7794_v40 = vld [vmem:[#allocation2 + $0x108] sm:$0xf]  ;;  %v11216_v18 = vld [vmem:[#allocation22_spill] sm:$0xff]  ;;  %5571 = vmatpush.bf16.msrb.mxu1 %v8815_v63 }
 0x317   : > { %v4162_v29 = vsel %vm9881_vm14, %v4042_v58, %v4161_v15  ;;  %v3737_v33 = vshrl.u32 %v3550_v24, 16  ;;  %v3740_v4 = vshll.u32 %v3550_v24, 16  ;;  %3934 = vst [vmem:[#allocation2 + $0x124] sm:$0xf] %v3550_v24  ;;  %5015 = vmatmul.bf16.gmra.mxu3 %v7731_v28  ;;  %v3230_v12 = vpop.f32.mrf.mxu2  ;;  %v11214_v48 = vld [vmem:[#allocation20_spill] sm:$0xff]  ;;  %v11215_v58 = vld [vmem:[#allocation19_spill] sm:$0xff] }
 0x318   : > { %4163 = vst [vmem:[#allocation2 + $0x11c] sm:$0xf] %v4162_v29  ;;  %v3451_v55 = vadd.f32 %v3406_v3, %v2625_v59  ;;  %v2630_v24 = vadd.f32 %v11215_v58, %v11214_v48  ;;  %v4165_v28 = vld [vmem:[#allocation2 + $0x134] sm:$0xf]  ;;  %v7743_v29 = vor.u32 %v8847_v39, %v7742_v2  ;;  %v8848_v58 = vld [vmem:[#allocation2 + $0xac] sm:$0xf] }
 0x319   : > { %v3739_v31 = vrot.slane %v3737_v33, 7  ;;  %v4043_v50 = vrot.slane %v3737_v33, 4  ;;  %v4044_v60 = vrot.slane %v3740_v4, 5  ;;  %v3410_v9 = vpop.f32.mrf.mxu0 }
 0x31a   : > { %v3487_v46 = vadd.f32 %v10387_v25, %v3451_v55  ;;  %v3319_v45 = vpop.f32.mrf.mxu3 }
 0x31b   : > { %v3742_v19 = vor.u32 %v3740_v4, %v3739_v31  ;;  %v3320_v44 = vadd.f32 %v3319_v45, %v3230_v12  ;;  %v4045_v6 = vor.u32 %v4044_v60, %v4043_v50  ;;  %v3743_v15 = vrot.slane %v3739_v31, 4 }
 0x31c   : > { %v3519_v20 = vmax.f32 %v3487_v46, 0.0 }
 0x31d   : > { %v3893_v26 = vsel %vm9468_vm7, %v3742_v19, %v3892_v13  ;;  %v3409_v32 = vadd.f32 %v3408_v17, %v3320_v44  ;;  %v8861_v30 = vld [vmem:[#allocation2 + $0x110] sm:$0xf0]  ;;  %v4046_v42 = vrot.slane %v4045_v6, 4 }
 0x31e   : > { %3894 = vst [vmem:[#allocation2 + $0x120] sm:$0xf] %v3893_v26  ;;  %v3551_v41 = vpack.c.bf16 %v3519_v20, %v3519_v20  ;;  %v10454_v38 = vpop.f32.mrf.mxu1  ;;  %v7795_v5 = vor.u32 %v8861_v30, %v7794_v40 }
 0x31f   : > { %v3452_v62 = vadd.f32 %v3409_v32, %v10254_v37  ;;  %v3232_v23 = vpop.f32.mrf.mxu2 }
 0x320   : > { %v3745_v49 = vshrl.u32 %v3551_v41, 16  ;;  %v3748_v43 = vshll.u32 %v3551_v41, 16  ;;  %3935 = vst [vmem:[#allocation2 + $0x130] sm:$0xf] %v3551_v41 }
 0x321   : > { %v3488_v21 = vadd.f32 %v10387_v25, %v3452_v62  ;;  %4867 = vmatmul.bf16.gmra.mxu1 %v7795_v5  ;;  %v3413_v37 = vpop.f32.mrf.mxu0 }
 0x322   : > { %v3747_v61 = vrot.slane %v3745_v49, 7  ;;  %v4047_v54 = vrot.slane %v3748_v43, 5  ;;  %v4049_v53 = vrot.slane %v3745_v49, 4  ;;  %v3321_v57 = vpop.f32.mrf.mxu3 }
 0x323   : > { %v3520_v16 = vmax.f32 %v3488_v21, 0.0  ;;  %v3322_v17 = vadd.f32 %v3321_v57, %v3232_v23 }
 0x324   : > { %v3750_v52 = vor.u32 %v3748_v43, %v3747_v61  ;;  %v4048_v34 = vsel %vm9876_vm13, %v4046_v42, %v4047_v54  ;;  %v4050_v0 = vor.u32 %v4049_v53, %v4047_v54  ;;  %4931 = vmatmul.bf16.gmra.mxu2 %v7739_v1  ;;  %5509 = vmatmul.bf16.gmra.mxu0 %v8023_v36  ;;  %v8777_v61 = vld [vmem:[#allocation2 + $0x98] sm:$0xf0] }
 0x325   : > { %4164 = vst [vmem:[#allocation2 + $0x128] sm:$0xf] %v4048_v34  ;;  %v3552_v59 = vpack.c.bf16 %v3520_v16, %v3520_v16  ;;  %v3411_v3 = vadd.f32 %v3410_v9, %v3322_v17  ;;  %v3896_v9 = vld [vmem:[#allocation2 + $0x138] sm:$0xf]  ;;  %v7806_v62 = vld [vmem:[#allocation2 + $0x120] sm:$0xf] }
 0x326   : > { %v3751_v33 = vsel %vm9453_vm6, %v3743_v15, %v3750_v52  ;;  %v4051_v4 = vrot.slane %v4050_v0, 4  ;;  %v10464_v55 = vpop.f32.mrf.mxu1  ;;  %v7748_v17 = vld [vmem:[#allocation2 + $0xb4] sm:$0xf0]  ;;  %v8850_v15 = vld [vmem:[#allocation2 + $0xb8] sm:$0xf0] }
 0x327   : > { %3895 = vst [vmem:[#allocation2 + $0x12c] sm:$0xf] %v3751_v33  ;;  %v3753_v31 = vshrl.u32 %v3552_v59, 16  ;;  %v3756_v12 = vshll.u32 %v3552_v59, 16  ;;  %v3453_v13 = vadd.f32 %v3411_v3, %v2630_v24  ;;  %5020 = vmatmul.bf16.gmra.mxu3 %v7743_v29  ;;  %v3235_v44 = vpop.f32.mrf.mxu2  ;;  %v7754_v24 = vld [vmem:[#allocation2 + $0xb0] sm:$0xf] }
 0x328   : > { %v4166_v50 = vsel %vm9881_vm14, %v4051_v4, %v4165_v28  ;;  %3936 = vst [vmem:[#allocation2 + $0x13c] sm:$0xf] %v3552_v59  ;;  %v8034_v28 = vld [vmem:[#allocation2 + $0x90] sm:$0xf]  ;;  %v11217_v59 = vld [vmem:[#allocation23_spill] sm:$0xff] }
 0x329   : > { %4167 = vst [vmem:[#allocation2 + $0x134] sm:$0xf] %v4166_v50  ;;  %v3755_v60 = vrot.slane %v3753_v31, 7  ;;  %v4052_v46 = vrot.slane %v3753_v31, 4  ;;  %v4053_v45 = vrot.slane %v3756_v12, 5  ;;  %v3489_v19 = vadd.f32 %v10387_v25, %v3453_v13  ;;  %v3415_v40 = vpop.f32.mrf.mxu0  ;;  %v11218_v3 = vld [vmem:[#allocation21_spill] sm:$0xff] }
 0x32a   : > { %v3324_v20 = vpop.f32.mrf.mxu3  ;;  %v2635_v29 = vadd.f32 %v11218_v3, %v11217_v59  ;;  %v4169_v33 = vld [vmem:[#allocation2 + $0x14c] sm:$0xf]  ;;  %v7751_v31 = vor.u32 %v8848_v58, %v7748_v17  ;;  %v11219_v17 = vld [vmem:[#allocation15_spill] sm:$0xff] }
 0x32b   : > { %v3758_v26 = vor.u32 %v3756_v12, %v3755_v60  ;;  %v3521_v32 = vmax.f32 %v3489_v19, 0.0  ;;  %v3325_v30 = vadd.f32 %v3324_v20, %v3235_v44  ;;  %v4054_v41 = vor.u32 %v4053_v45, %v4052_v46 }
 0x32c   : > { %v8035_v12 = vor.u32 %v8777_v61, %v8034_v28  ;;  %v7755_v46 = vor.u32 %v8850_v15, %v7754_v24  ;;  %v8853_v28 = vld [vmem:[#allocation2 + $0xd0] sm:$0xf0] }
 0x32d   : > { %v3897_v6 = vsel %vm9468_vm7, %v3758_v26, %v3896_v9  ;;  %v3553_v5 = vpack.c.bf16 %v3521_v32, %v3521_v32  ;;  %v3414_v10 = vadd.f32 %v3413_v37, %v3325_v30  ;;  %v4055_v54 = vrot.slane %v4054_v41, 4 }
 0x32e   : > { %3898 = vst [vmem:[#allocation2 + $0x138] sm:$0xf] %v3897_v6  ;;  %v10471_v49 = vpop.f32.mrf.mxu1  ;;  %v8864_v43 = vld [vmem:[#allocation2 + $0x128] sm:$0xf0]  ;;  %v3759_v37 = vrot.slane %v3755_v60, 4 }
 0x32f   : > { %v3761_v21 = vshrl.u32 %v3553_v5, 16  ;;  %v3764_v23 = vshll.u32 %v3553_v5, 16  ;;  %3937 = vst [vmem:[#allocation2 + $0x148] sm:$0xf] %v3553_v5  ;;  %v7807_v27 = vor.u32 %v8864_v43, %v7806_v62  ;;  %v3454_v42 = vadd.f32 %v3414_v10, %v11216_v18  ;;  %v3237_v16 = vpop.f32.mrf.mxu2  ;;  %v3900_v62 = vld [vmem:[#allocation2 + $0x150] sm:$0xf] }
 0x331   : > { %v3763_v53 = vrot.slane %v3761_v21, 7  ;;  %v4056_v57 = vrot.slane %v3764_v23, 5  ;;  %v4058_v39 = vrot.slane %v3761_v21, 4  ;;  %4872 = vmatmul.bf16.gmra.mxu1 %v7807_v27  ;;  %v3490_v1 = vadd.f32 %v10387_v25, %v3454_v42  ;;  %v3418_v48 = vpop.f32.mrf.mxu0 }
 0x332   : > { %v3326_v36 = vpop.f32.mrf.mxu3 }
 0x333   : > { %v3766_v52 = vor.u32 %v3764_v23, %v3763_v53  ;;  %v4057_v34 = vsel %vm9876_vm13, %v4055_v54, %v4056_v57  ;;  %v4059_v0 = vor.u32 %v4058_v39, %v4056_v57  ;;  %v3327_v2 = vadd.f32 %v3326_v36, %v3237_v16  ;;  %v8780_v36 = vld [vmem:[#allocation2 + $0xb0] sm:$0xf0] }
 0x334   : > { %4168 = vst [vmem:[#allocation2 + $0x140] sm:$0xf] %v4057_v34  ;;  %v3522_v4 = vmax.f32 %v3490_v1, 0.0  ;;  %4936 = vmatmul.bf16.gmra.mxu2 %v7751_v31  ;;  %5514 = vmatmul.bf16.gmra.mxu0 %v8035_v12  ;;  %v8851_v31 = vld [vmem:[#allocation2 + $0xc4] sm:$0xf] }
 0x335   : > { %v3767_v13 = vsel %vm9453_vm6, %v3759_v37, %v3766_v52  ;;  %v4060_v50 = vrot.slane %v4059_v0, 4  ;;  %v3416_v60 = vadd.f32 %v3415_v40, %v3327_v2  ;;  %v7818_v42 = vld [vmem:[#allocation2 + $0x138] sm:$0xf]  ;;  %v8046_v12 = vld [vmem:[#allocation2 + $0xa8] sm:$0xf] }
 0x336   : > { %3899 = vst [vmem:[#allocation2 + $0x144] sm:$0xf] %v3767_v13  ;;  %v3554_v45 = vpack.c.bf16 %v3522_v4, %v3522_v4  ;;  %v10481_v19 = vpop.f32.mrf.mxu1  ;;  %v4173_v13 = vld [vmem:[#allocation2 + $0x164] sm:$0xf] }
 0x337   : > { %v4170_v44 = vsel %vm9881_vm14, %v4060_v50, %v4169_v33  ;;  %v3455_v9 = vadd.f32 %v3416_v60, %v2635_v29  ;;  %5025 = vmatmul.bf16.gmra.mxu3 %v7755_v46  ;;  %v3240_v30 = vpop.f32.mrf.mxu2  ;;  %v7766_v46 = vld [vmem:[#allocation2 + $0xc8] sm:$0xf] }
 0x338   : > { %4171 = vst [vmem:[#allocation2 + $0x14c] sm:$0xf] %v4170_v44  ;;  %v3769_v20 = vshrl.u32 %v3554_v45, 16  ;;  %v3772_v26 = vshll.u32 %v3554_v45, 16 }
 0x339   : > { %3938 = vst [vmem:[#allocation2 + $0x154] sm:$0xf] %v3554_v45  ;;  %v3491_v32 = vadd.f32 %v10387_v25, %v3455_v9  ;;  %v3420_v63 = vpop.f32.mrf.mxu0  ;;  %v8047_v45 = vor.u32 %v8780_v36, %v8046_v12 }
 0x33a   : > { %v3771_v40 = vrot.slane %v3769_v20, 7  ;;  %v4061_v6 = vrot.slane %v3769_v20, 4  ;;  %v4062_v41 = vrot.slane %v3772_v26, 5  ;;  %v3329_v5 = vpop.f32.mrf.mxu3 }
 0x33b   : > { %v3523_v10 = vmax.f32 %v3491_v32, 0.0  ;;  %v3330_v43 = vadd.f32 %v3329_v5, %v3240_v30  ;;  %v11220_v32 = vld [vmem:[#allocation24_spill] sm:$0xff] }
 0x33c   : > { %v3774_v21 = vor.u32 %v3772_v26, %v3771_v40  ;;  %v4063_v23 = vor.u32 %v4062_v41, %v4061_v6  ;;  %v3775_v58 = vrot.slane %v3771_v40, 4  ;;  %v7767_v26 = vor.u32 %v8853_v28, %v7766_v46  ;;  %v11221_v30 = vld [vmem:[#allocation16_spill] sm:$0xff] }
 0x33d   : > { %v3555_v27 = vpack.c.bf16 %v3523_v10, %v3523_v10  ;;  %v3419_v18 = vadd.f32 %v3418_v48, %v3330_v43  ;;  %v8867_v61 = vld [vmem:[#allocation2 + $0x140] sm:$0xf0]  ;;  %v7760_v48 = vld [vmem:[#allocation2 + $0xcc] sm:$0xf0]  ;;  %v2640_v40 = vadd.f32 %v11221_v30, %v11220_v32 }
 0x33e   : > { %v3901_v54 = vsel %vm9468_vm7, %v3774_v21, %v3900_v62  ;;  %v10488_v53 = vpop.f32.mrf.mxu1  ;;  %v7819_v57 = vor.u32 %v8867_v61, %v7818_v42  ;;  %v4064_v1 = vrot.slane %v4063_v23, 4  ;;  %v7763_v60 = vor.u32 %v8851_v31, %v7760_v48  ;;  %v8814_v21 = vld [vmem:[#allocation8 + $0x40] sm:$0xff]  ;;  %v8058_v31 = vld [vmem:[#allocation2 + $0xc0] sm:$0xf] }
 0x33f   : > { %3902 = vst [vmem:[#allocation2 + $0x150] sm:$0xf] %v3901_v54  ;;  %v3777_v39 = vshrl.u32 %v3555_v27, 16  ;;  %v3780_v16 = vshll.u32 %v3555_v27, 16  ;;  %v3456_v37 = vadd.f32 %v3419_v18, %v11219_v17  ;;  %v3242_v2 = vpop.f32.mrf.mxu2  ;;  %v3904_v18 = vld [vmem:[#allocation2 + $0x168] sm:$0xf]  ;;  %5572 = vmatpush.bf16.msrb.mxu1 %v8814_v21 }
 0x340   : > { %3939 = vst [vmem:[#allocation2 + $0x160] sm:$0xf] %v3555_v27  ;;  %v11222_v48 = vld [vmem:[#allocation17_spill] sm:$0xff] }
 0x341   : > { %v3779_v15 = vrot.slane %v3777_v39, 7  ;;  %v4065_v52 = vrot.slane %v3780_v16, 5  ;;  %v4067_v34 = vrot.slane %v3777_v39, 4  ;;  %v3492_v0 = vadd.f32 %v10387_v25, %v3456_v37  ;;  %4877 = vmatmul.bf16.gmra.mxu1 %v7819_v57  ;;  %v3423_v4 = vpop.f32.mrf.mxu0 }
 0x342   : > { %v3331_v24 = vpop.f32.mrf.mxu3 }
 0x343   : > { %v3782_v59 = vor.u32 %v3780_v16, %v3779_v15  ;;  %v4066_v3 = vsel %vm9876_vm13, %v4064_v1, %v4065_v52  ;;  %v4068_v29 = vor.u32 %v4067_v34, %v4065_v52  ;;  %v3524_v33 = vmax.f32 %v3492_v0, 0.0 }
 0x344   : > { %4172 = vst [vmem:[#allocation2 + $0x158] sm:$0xf] %v4066_v3  ;;  %v3332_v50 = vadd.f32 %v3331_v24, %v3242_v2  ;;  %4941 = vmatmul.bf16.gmra.mxu2 %v7763_v60  ;;  %5519 = vmatmul.bf16.gmra.mxu0 %v8047_v45  ;;  %v8783_v24 = vld [vmem:[#allocation2 + $0xc8] sm:$0xf0]  ;;  %v7772_v3 = vld [vmem:[#allocation2 + $0xe4] sm:$0xf0] }
 0x345   : > { %v3783_v44 = vsel %vm9453_vm6, %v3775_v58, %v3782_v59  ;;  %v4069_v9 = vrot.slane %v4068_v29, 4  ;;  %v3556_v20 = vpack.c.bf16 %v3524_v33, %v3524_v33  ;;  %v8856_v45 = vld [vmem:[#allocation2 + $0xe8] sm:$0xf0]  ;;  %v8059_v32 = vor.u32 %v8783_v24, %v8058_v31 }
 0x346   : > { %3903 = vst [vmem:[#allocation2 + $0x15c] sm:$0xf] %v3783_v44  ;;  %v3421_v6 = vadd.f32 %v3420_v63, %v3332_v50  ;;  %v10498_v41 = vpop.f32.mrf.mxu1  ;;  %v7830_v36 = vld [vmem:[#allocation2 + $0x150] sm:$0xf] }
 0x347   : > { %v4174_v5 = vsel %vm9881_vm14, %v4069_v9, %v4173_v13  ;;  %v3785_v62 = vshrl.u32 %v3556_v20, 16  ;;  %v3788_v10 = vshll.u32 %v3556_v20, 16  ;;  %3940 = vst [vmem:[#allocation2 + $0x16c] sm:$0xf] %v3556_v20  ;;  %5030 = vmatmul.bf16.gmra.mxu3 %v7767_v26  ;;  %v3245_v27 = vpop.f32.mrf.mxu2 }
 0x348   : > { %4175 = vst [vmem:[#allocation2 + $0x164] sm:$0xf] %v4174_v5  ;;  %v3457_v43 = vadd.f32 %v3421_v6, %v2640_v40  ;;  %v7778_v5 = vld [vmem:[#allocation2 + $0xe0] sm:$0xf] }
 0x349   : > { %v3787_v23 = vrot.slane %v3785_v62, 7  ;;  %v4070_v42 = vrot.slane %v3785_v62, 4  ;;  %v4071_v61 = vrot.slane %v3788_v10, 5  ;;  %v3425_v16 = vpop.f32.mrf.mxu0  ;;  %v11223_v62 = vld [vmem:[#allocation18_spill] sm:$0xff] }
 0x34a   : > { %v3493_v63 = vadd.f32 %v10387_v25, %v3457_v43  ;;  %v3334_v54 = vpop.f32.mrf.mxu3  ;;  %v4177_v43 = vld [vmem:[#allocation2 + $0x17c] sm:$0xf] }
 0x34b   : > { %v3790_v57 = vor.u32 %v3788_v10, %v3787_v23  ;;  %v3335_v39 = vadd.f32 %v3334_v54, %v3245_v27  ;;  %v4072_v52 = vor.u32 %v4071_v61, %v4070_v42  ;;  %v3791_v30 = vrot.slane %v3787_v23, 4 }
 0x34c   : > { %v3525_v17 = vmax.f32 %v3493_v63, 0.0  ;;  %v2645_v10 = vadd.f32 %v10411_v51, %v11223_v62 }
 0x34d   : > { %v3905_v37 = vsel %vm9468_vm7, %v3790_v57, %v3904_v18  ;;  %v3424_v1 = vadd.f32 %v3423_v4, %v3335_v39  ;;  %v8870_v15 = vld [vmem:[#allocation2 + $0x158] sm:$0xf0]  ;;  %v4073_v12 = vrot.slane %v4072_v52, 4  ;;  %v7779_v18 = vor.u32 %v8856_v45, %v7778_v5  ;;  %v8957_v39 = vld [vmem:[#allocation8 + $0x1b8] sm:$0xff]  ;;  %v3908_v52 = vld [vmem:[#allocation2 + $0x180] sm:$0xf] }
 0x34e   : > { %3906 = vst [vmem:[#allocation2 + $0x168] sm:$0xf] %v3905_v37  ;;  %v3557_v34 = vpack.c.bf16 %v3525_v17, %v3525_v17  ;;  %v10505_v0 = vpop.f32.mrf.mxu1  ;;  %v7831_v2 = vor.u32 %v8870_v15, %v7830_v36  ;;  %v8854_v4 = vld [vmem:[#allocation2 + $0xdc] sm:$0xf]  ;;  %6256 = vmatpush.bf16.msra.mxu3 %v8957_v39  ;;  %v7784_v45 = vld [vmem:[#allocation2 + $0xfc] sm:$0xf0] }
 0x34f   : > { %v3458_v58 = vadd.f32 %v3424_v1, %v11222_v48  ;;  %v3247_v33 = vpop.f32.mrf.mxu2  ;;  %v7775_v26 = vor.u32 %v8854_v4, %v7772_v3  ;;  %v9068_v1 = vld [vmem:[%s11056_s3] ss:$0 sm:$0xff]  ;;  %v8859_v5 = vld [vmem:[#allocation2 + $0x100] sm:$0xf0] }
 0x350   : > { %v3793_v28 = vshrl.u32 %v3557_v34, 16  ;;  %v3796_v59 = vshll.u32 %v3557_v34, 16  ;;  %3941 = vst [vmem:[#allocation2 + $0x178] sm:$0xf] %v3557_v34 }
 0x351   : > { %v3494_v29 = vadd.f32 %v10387_v25, %v3458_v58  ;;  %4882 = vmatmul.bf16.gmra.mxu1 %v7831_v2  ;;  %v5485_v20 = vpop.f32.mrf.mxu0 }
 0x352   : > { %v3795_v13 = vrot.slane %v3793_v28, 7  ;;  %v4074_v50 = vrot.slane %v3796_v59, 5  ;;  %v4076_v60 = vrot.slane %v3793_v28, 4  ;;  %v3336_v46 = vpop.f32.mrf.mxu3 }
 0x353   : > { %v3526_v44 = vmax.f32 %v3494_v29, 0.0  ;;  %v3337_v9 = vadd.f32 %v3336_v46, %v3247_v33 }
 0x354   : > { %v3798_v40 = vor.u32 %v3796_v59, %v3795_v13  ;;  %v4075_v25 = vsel %vm9876_vm13, %v4073_v12, %v4074_v50  ;;  %v4077_v6 = vor.u32 %v4076_v60, %v4074_v50  ;;  %4946 = vmatmul.bf16.gmra.mxu2 %v7775_v26  ;;  %5524 = vmatmul.bf16.gmra.mxu0 %v8059_v32  ;;  %v8829_v59 = vld [vmem:[#allocation8 + $0xb8] sm:$0xff] }
 0x355   : > { %4176 = vst [vmem:[#allocation2 + $0x170] sm:$0xf] %v4075_v25  ;;  %v3558_v21 = vpack.c.bf16 %v3526_v44, %v3526_v44  ;;  %v3426_v27 = vadd.f32 %v3425_v16, %v3337_v9  ;;  %v7842_v4 = vld [vmem:[#allocation2 + $0x168] sm:$0xf]  ;;  %5654 = vmatpush.bf16.msra.mxu2 %v8829_v59  ;;  %v8786_v44 = vld [vmem:[#allocation2 + $0xe0] sm:$0xf0] }
 0x356   : > { %v3799_v42 = vsel %vm9453_vm6, %v3791_v30, %v3798_v40  ;;  %v4078_v61 = vrot.slane %v4077_v6, 4  ;;  %v10515_v63 = vpop.f32.mrf.mxu1  ;;  %v8965_v13 = vld [vmem:[#allocation8 + $0x1f8] sm:$0xff] }
 0x357   : > { %3907 = vst [vmem:[#allocation2 + $0x174] sm:$0xf] %v3799_v42  ;;  %v3801_v23 = vshrl.u32 %v3558_v21, 16  ;;  %v3804_v54 = vshll.u32 %v3558_v21, 16  ;;  %v3459_v57 = vadd.f32 %v3426_v27, %v2645_v10  ;;  %5035 = vmatmul.bf16.gmra.mxu3 %v7779_v18  ;;  %v4907_v15 = vpop.f32.mrf.mxu2  ;;  %6345 = vmatpush.bf16.msra.mxu0 %v8965_v13  ;;  %v8973_v40 = vld [vmem:[#allocation8 + $0x238] sm:$0xff] }
 0x358   : > { %v4178_v51 = vsel %vm9881_vm14, %v4078_v61, %v4177_v43  ;;  %3942 = vst [vmem:[#allocation2 + $0x184] sm:$0xf] %v3558_v21  ;;  %v4908_v34 = vadd.f32 %v4907_v15, %v10420_v35  ;;  %v8857_v27 = vld [vmem:[#allocation2 + $0xf4] sm:$0xf]  ;;  %v8070_v18 = vld [vmem:[#allocation2 + $0xd8] sm:$0xf]  ;;  %6434 = vmatpush.bf16.msra.mxu1 %v8973_v40 }
 0x359   : > { %4179 = vst [vmem:[#allocation2 + $0x17c] sm:$0xf] %v4178_v51  ;;  %v3803_v16 = vrot.slane %v3801_v23, 7  ;;  %v4079_v17 = vrot.slane %v3801_v23, 4  ;;  %v4080_v37 = vrot.slane %v3804_v54, 5  ;;  %v3495_v36 = vadd.f32 %v9068_v1, %v3459_v57  ;;  %v5487_v24 = vpop.f32.mrf.mxu0 }
 0x35a   : > { %v4996_v2 = vpop.f32.mrf.mxu3  ;;  %v4181_v42 = vld [vmem:[#allocation2 + $0x194] sm:$0xf]  ;;  %v7787_v23 = vor.u32 %v8857_v27, %v7784_v45  ;;  %v8071_v57 = vor.u32 %v8786_v44, %v8070_v18  ;;  %v8972_v18 = vld [vmem:[#allocation8 + $0x230] sm:$0xff] }
 0x35b   : > { %v3806_v48 = vor.u32 %v3804_v54, %v3803_v16  ;;  %v3527_v58 = vmax.f32 %v3495_v36, 0.0  ;;  %v4997_v28 = vadd.f32 %v4996_v2, %v4908_v34  ;;  %v4081_v29 = vor.u32 %v4080_v37, %v4079_v17  ;;  %v7790_v54 = vld [vmem:[#allocation2 + $0xf8] sm:$0xf]  ;;  %v8792_v27 = vld [vmem:[#allocation2 + $0x110] sm:$0xf0] }
 0x35c   : > { %v7791_v51 = vor.u32 %v8859_v5, %v7790_v54  ;;  %v8863_v54 = vld [vmem:[#allocation2 + $0x124] sm:$0xf]  ;;  %6435 = vmatpush.bf16.msra.mxu1 %v8972_v18  ;;  %v8963_v18 = vld [vmem:[#allocation8 + $0x1e8] sm:$0xff] }
 0x35d   : > { %v3909_v3 = vsel %vm9468_vm7, %v3806_v48, %v3908_v52  ;;  %v3559_v33 = vpack.c.bf16 %v3527_v58, %v3527_v58  ;;  %v10527_v50 = vadd.f32 %v5485_v20, %v4997_v28  ;;  %v4082_v8 = vrot.slane %v4081_v29, 4  ;;  %v7796_v28 = vld [vmem:[#allocation2 + $0x114] sm:$0xf0]  ;;  %v8862_v29 = vld [vmem:[#allocation2 + $0x118] sm:$0xf0] }
 0x35e   : > { %3910 = vst [vmem:[#allocation2 + $0x180] sm:$0xf] %v3909_v3  ;;  %v10525_v31 = vpop.f32.mrf.mxu1  ;;  %v8873_v12 = vld [vmem:[#allocation2 + $0x170] sm:$0xf0]  ;;  %v3807_v20 = vrot.slane %v3803_v16, 4 }
 0x35f   : > { %v3809_v35 = vshrl.u32 %v3559_v33, 16  ;;  %v3812_v60 = vshll.u32 %v3559_v33, 16  ;;  %3943 = vst [vmem:[#allocation2 + $0x190] sm:$0xf] %v3559_v33  ;;  %v7843_v46 = vor.u32 %v8873_v12, %v7842_v4  ;;  %v4909_v30 = vpop.f32.mrf.mxu2  ;;  %v8082_v4 = vld [vmem:[#allocation2 + $0xf0] sm:$0xf] }
 0x360   : > { %v4910_v25 = vadd.f32 %v4909_v30, %v10430_v11  ;;  %v7964_v30 = vld [vmem:[#allocation2 + $0xc] sm:$0xf0] }
 0x361   : > { %v3811_v9 = vrot.slane %v3809_v35, 7  ;;  %v4083_v26 = vrot.slane %v3812_v60, 5  ;;  %v4085_v32 = vrot.slane %v3809_v35, 4  ;;  %4887 = vmatmul.bf16.gmra.mxu1 %v7843_v46  ;;  %v5490_v21 = vpop.f32.mrf.mxu0  ;;  %v7802_v35 = vld [vmem:[#allocation2 + $0x110] sm:$0xf] }
 0x362   : > { %v4998_v6 = vpop.f32.mrf.mxu3  ;;  %v7803_v46 = vor.u32 %v8862_v29, %v7802_v35  ;;  %v7820_v29 = vld [vmem:[#allocation2 + $0x144] sm:$0xf0]  ;;  %v8106_v35 = vld [vmem:[#allocation2 + $0x120] sm:$0xf] }
 0x363   : > { %v3814_v62 = vor.u32 %v3812_v60, %v3811_v9  ;;  %v4084_v10 = vsel %vm9876_vm13, %v4082_v8, %v4083_v26  ;;  %v4086_v43 = vor.u32 %v4085_v32, %v4083_v26  ;;  %v4999_v61 = vadd.f32 %v4998_v6, %v4910_v25  ;;  %v8956_v8 = vld [vmem:[#allocation8 + $0x1b0] sm:$0xff] }
 0x364   : > { %4180 = vst [vmem:[#allocation2 + $0x188] sm:$0xf] %v4084_v10  ;;  %4951 = vmatmul.bf16.gmra.mxu2 %v7787_v23  ;;  %5529 = vmatmul.bf16.gmra.mxu0 %v8071_v57  ;;  %v8083_v60 = vor.u32 %v8789_v14, %v8082_v4  ;;  %v8758_v32 = vld [vmem:[#allocation2 + $0x4] sm:$0xf]  ;;  %v8094_v57 = vld [vmem:[#allocation2 + $0x108] sm:$0xf] }
 0x365   : > { %v3815_v11 = vsel %vm9453_vm6, %v3807_v20, %v3814_v62  ;;  %v4087_v39 = vrot.slane %v4086_v43, 4  ;;  %v10536_v56 = vadd.f32 %v5487_v24, %v4999_v61  ;;  %v7854_v52 = vld [vmem:[#allocation2 + $0x180] sm:$0xf]  ;;  %6257 = vmatpush.bf16.msra.mxu3 %v8956_v8  ;;  %v7967_v5 = vor.u32 %v8758_v32, %v7964_v30  ;;  %v8865_v61 = vld [vmem:[#allocation2 + $0x130] sm:$0xf0]  ;;  %v8955_v30 = vld [vmem:[#allocation8 + $0x1a8] sm:$0xff] }
 0x366   : > { %3911 = vst [vmem:[#allocation2 + $0x18c] sm:$0xf] %v3815_v11  ;;  %v10534_v16 = vpop.f32.mrf.mxu1  ;;  %v8828_v6 = vld [vmem:[#allocation8 + $0xb0] sm:$0xff] }
 0x367   : > { %v4182_v17 = vsel %vm9881_vm14, %v4087_v39, %v4181_v42  ;;  %5040 = vmatmul.bf16.gmra.mxu3 %v7791_v51  ;;  %v4912_v37 = vpop.f32.mrf.mxu2  ;;  %5655 = vmatpush.bf16.msra.mxu2 %v8828_v6  ;;  %v8964_v62 = vld [vmem:[#allocation8 + $0x1f0] sm:$0xff]  ;;  %v7814_v51 = vld [vmem:[#allocation2 + $0x128] sm:$0xf] }
 0x368   : > { %4183 = vst [vmem:[#allocation2 + $0x194] sm:$0xf] %v4182_v17  ;;  %v4913_v1 = vadd.f32 %v4912_v37, %v10435_v22  ;;  %v8860_v22 = vld [vmem:[#allocation2 + $0x10c] sm:$0xf]  ;;  %6346 = vmatpush.bf16.msra.mxu0 %v8964_v62  ;;  %v8095_v17 = vor.u32 %v8792_v27, %v8094_v57  ;;  %v7815_v37 = vor.u32 %v8865_v61, %v7814_v51  ;;  %v7826_v8 = vld [vmem:[#allocation2 + $0x140] sm:$0xf] }
 0x369   : > { %v5492_v7 = vpop.f32.mrf.mxu0  ;;  %v7799_v13 = vor.u32 %v8860_v22, %v7796_v28  ;;  %v8761_v28 = vld [vmem:[#allocation2 + $0x1c] sm:$0xf]  ;;  %6258 = vmatpush.bf16.msra.mxu3 %v8955_v30  ;;  %v7988_v62 = vld [vmem:[#allocation2 + $0x3c] sm:$0xf0]  ;;  %v8764_v27 = vld [vmem:[#allocation2 + $0x34] sm:$0xf] }
 0x36a   : > { %v5001_v36 = vpop.f32.mrf.mxu3  ;;  %v8971_v57 = vld [vmem:[#allocation8 + $0x228] sm:$0xff]  ;;  %v8767_v30 = vld [vmem:[#allocation2 + $0x4c] sm:$0xf] }
 0x36b   : > { %v5002_v15 = vadd.f32 %v5001_v36, %v4913_v1  ;;  %6436 = vmatpush.bf16.msra.mxu1 %v8971_v57  ;;  %v8130_v57 = vld [vmem:[#allocation2 + $0x150] sm:$0xf] }
 0x36c   : > { %6347 = vmatpush.bf16.msra.mxu0 %v8963_v18 }
 0x36d   : > { %v8876_v34 = vld [vmem:[#allocation2 + $0x188] sm:$0xf0]  ;;  %v10543_v58 = vadd.f32 %v5490_v21, %v5002_v15  ;;  %v7808_v21 = vld [vmem:[#allocation2 + $0x12c] sm:$0xf0] }
 0x36e   : > { %v10541_v2 = vpop.f32.mrf.mxu1  ;;  %v7855_v48 = vor.u32 %v8876_v34, %v7854_v52  ;;  %v7811_v39 = vor.u32 %v8863_v54, %v7808_v21  ;;  %v8798_v54 = vld [vmem:[#allocation2 + $0x140] sm:$0xf0] }
 0x36f   : > { %v4914_v24 = vpop.f32.mrf.mxu2 }
 0x370   : > { %v4915_v59 = vadd.f32 %v4914_v24, %v10445_v47 }
 0x371   : > { %4892 = vmatmul.bf16.gmra.mxu1 %v7855_v48  ;;  %v5495_v33 = vpop.f32.mrf.mxu0  ;;  %v7976_v48 = vld [vmem:[#allocation2 + $0x24] sm:$0xf0] }
 0x372   : > { %v5003_v3 = vpop.f32.mrf.mxu3 }
 0x373   : > { %v5004_v12 = vadd.f32 %v5003_v3, %v4915_v59  ;;  %v7979_v59 = vor.u32 %v8761_v28, %v7976_v48  ;;  %v8954_v48 = vld [vmem:[#allocation8 + $0x1a0] sm:$0xff] }
 0x374   : > { %4956 = vmatmul.bf16.gmra.mxu2 %v7799_v13  ;;  %5534 = vmatmul.bf16.gmra.mxu0 %v8083_v60  ;;  %v8962_v28 = vld [vmem:[#allocation8 + $0x1e0] sm:$0xff] }
 0x375   : > { %v10548_v44 = vadd.f32 %v5492_v7, %v5004_v12  ;;  %v8868_v12 = vld [vmem:[#allocation2 + $0x148] sm:$0xf0]  ;;  %6259 = vmatpush.bf16.msra.mxu3 %v8954_v48  ;;  %6348 = vmatpush.bf16.msra.mxu0 %v8962_v28 }
 0x376   : > { %v10546_v45 = vpop.f32.mrf.mxu1 }
 0x377   : > { %5045 = vmatmul.bf16.gmra.mxu3 %v7803_v46  ;;  %v4917_v9 = vpop.f32.mrf.mxu2 }
 0x378   : > { %v4918_v47 = vadd.f32 %v4917_v9, %v10454_v38 }
 0x379   : > { %v5497_v40 = vpop.f32.mrf.mxu0 }
 0x37a   : > { %v5006_v26 = vpop.f32.mrf.mxu3 }
 0x37b   : > { %v5007_v25 = vadd.f32 %v5006_v26, %v4918_v47  ;;  %v7827_v47 = vor.u32 %v8868_v12, %v7826_v8  ;;  %v8952_v8 = vld [vmem:[#allocation8 + $0x190] sm:$0xff] }
 0x37d   : > { %v10553_v10 = vadd.f32 %v5495_v33, %v5007_v25  ;;  %v8795_v33 = vld [vmem:[#allocation2 + $0x128] sm:$0xf0] }
 0x37e   : > { %v10551_v20 = vpop.f32.mrf.mxu1  ;;  %v8107_v9 = vor.u32 %v8795_v33, %v8106_v35  ;;  %v8953_v33 = vld [vmem:[#allocation8 + $0x198] sm:$0xff]  ;;  %v8000_v35 = vld [vmem:[#allocation2 + $0x54] sm:$0xf0] }
 0x37f   : > { %v4919_v43 = vpop.f32.mrf.mxu2  ;;  %6260 = vmatpush.bf16.msra.mxu3 %v8953_v33  ;;  %v8770_v33 = vld [vmem:[#allocation2 + $0x64] sm:$0xf] }
 0x380   : > { %v4920_v38 = vadd.f32 %v4919_v43, %v10464_v55  ;;  %v8827_v43 = vld [vmem:[#allocation8 + $0xa8] sm:$0xff] }
 0x381   : > { %5573 = vmatmul.bf16.vlgmr.msrb.gmra.mxu1 %v7967_v5  ;;  %v5500_v23 = vpop.f32.mrf.mxu0  ;;  %5656 = vmatpush.bf16.msra.mxu2 %v8827_v43  ;;  %v8959_v43 = vld [vmem:[#allocation8 + $0x1c8] sm:$0xff] }
 0x382   : > { %v5008_v42 = vpop.f32.mrf.mxu3 }
 0x383   : > { %v5009_v11 = vadd.f32 %v5008_v42, %v4920_v38  ;;  %v7991_v42 = vor.u32 %v8764_v27, %v7988_v62  ;;  %6261 = vmatpush.bf16.msra.mxu3 %v8952_v8  ;;  %v8951_v62 = vld [vmem:[#allocation8 + $0x188] sm:$0xff]  ;;  %v8877_v8 = vld [vmem:[#allocation2 + $0x190] sm:$0xf0] }
 0x384   : > { %4961 = vmatmul.bf16.gmra.mxu2 %v7811_v39  ;;  %5539 = vmatmul.bf16.gmra.mxu0 %v8095_v17  ;;  %v8871_v39 = vld [vmem:[#allocation2 + $0x160] sm:$0xf0]  ;;  %v8869_v17 = vld [vmem:[#allocation2 + $0x154] sm:$0xf] }
 0x385   : > { %v10558_v36 = vadd.f32 %v5497_v40, %v5009_v11 }
 0x386   : > { %v10556_v1 = vpop.f32.mrf.mxu1 }
 0x387   : > { %5050 = vmatmul.bf16.gmra.mxu3 %v7815_v37  ;;  %v4922_v7 = vpop.f32.mrf.mxu2  ;;  %v7838_v37 = vld [vmem:[#allocation2 + $0x158] sm:$0xf] }
 0x388   : > { %v4923_v55 = vadd.f32 %v4922_v7, %v10471_v49  ;;  %v8866_v49 = vld [vmem:[#allocation2 + $0x13c] sm:$0xf]  ;;  %v8118_v7 = vld [vmem:[#allocation2 + $0x138] sm:$0xf]  ;;  %6262 = vmatpush.bf16.msra.mxu3 %v8951_v62 }
 0x389   : > { %v5502_v52 = vpop.f32.mrf.mxu0  ;;  %v7823_v46 = vor.u32 %v8866_v49, %v7820_v29 }
 0x38a   : > { %v5011_v15 = vpop.f32.mrf.mxu3 }
 0x38b   : > { %v5012_v34 = vadd.f32 %v5011_v15, %v4923_v55 }
 0x38d   : > { %v10563_v14 = vadd.f32 %v5500_v23, %v5012_v34  ;;  %v7832_v23 = vld [vmem:[#allocation2 + $0x15c] sm:$0xf0]  ;;  %v8826_v34 = vld [vmem:[#allocation8 + $0xa0] sm:$0xff] }
 0x38e   : > { %v10561_v24 = vpop.f32.mrf.mxu1  ;;  %v7835_v15 = vor.u32 %v8869_v17, %v7832_v23  ;;  %5657 = vmatpush.bf16.msra.mxu2 %v8826_v34  ;;  %v8872_v23 = vld [vmem:[#allocation2 + $0x16c] sm:$0xf]  ;;  %v8950_v17 = vld [vmem:[#allocation8 + $0x180] sm:$0xff] }
 0x38f   : > { %v4924_v3 = vpop.f32.mrf.mxu2  ;;  %6263 = vmatpush.bf16.msra.mxu3 %v8950_v17 }
 0x390   : > { %v4925_v22 = vadd.f32 %v4924_v3, %v10481_v19 }
 0x391   : > { %5578 = vmatmul.bf16.gmra.mxu1 %v7979_v59  ;;  %v5505_v13 = vpop.f32.mrf.mxu0  ;;  %v7839_v59 = vor.u32 %v8871_v39, %v7838_v37  ;;  %v8958_v37 = vld [vmem:[#allocation8 + $0x1c0] sm:$0xff] }
 0x392   : > { %v5013_v4 = vpop.f32.mrf.mxu3 }
 0x393   : > { %v5014_v60 = vadd.f32 %v5013_v4, %v4925_v22  ;;  %v8961_v22 = vld [vmem:[#allocation8 + $0x1d8] sm:$0xff] }
 0x394   : > { %4966 = vmatmul.bf16.gmra.mxu2 %v7823_v46  ;;  %5544 = vmatmul.bf16.gmra.mxu0 %v8107_v9  ;;  %v8824_v46 = vld [vmem:[#allocation8 + $0x90] sm:$0xff] }
 0x395   : > { %v10568_v32 = vadd.f32 %v5502_v52, %v5014_v60  ;;  %v8119_v52 = vor.u32 %v8798_v54, %v8118_v7  ;;  %6349 = vmatpush.bf16.msra.mxu0 %v8961_v22  ;;  %v8960_v9 = vld [vmem:[#allocation8 + $0x1d0] sm:$0xff]  ;;  %v7850_v54 = vld [vmem:[#allocation2 + $0x170] sm:$0xf] }
 0x396   : > { %v10566_v26 = vpop.f32.mrf.mxu1 }
 0x397   : > { %5055 = vmatmul.bf16.gmra.mxu3 %v7827_v47  ;;  %v4927_v40 = vpop.f32.mrf.mxu2 }
 0x398   : > { %v4928_v19 = vadd.f32 %v4927_v40, %v10488_v53 }
 0x399   : > { %v5507_v6 = vpop.f32.mrf.mxu0  ;;  %6350 = vmatpush.bf16.msra.mxu0 %v8960_v9  ;;  %v8875_v9 = vld [vmem:[#allocation2 + $0x184] sm:$0xf] }
 0x39a   : > { %v5016_v25 = vpop.f32.mrf.mxu3 }
 0x39b   : > { %v5017_v5 = vadd.f32 %v5016_v25, %v4928_v19  ;;  %v8003_v19 = vor.u32 %v8767_v30, %v8000_v35  ;;  %v7844_v25 = vld [vmem:[#allocation2 + $0x174] sm:$0xf0]  ;;  %v8970_v35 = vld [vmem:[#allocation8 + $0x220] sm:$0xff]  ;;  %v8142_v30 = vld [vmem:[#allocation2 + $0x168] sm:$0xf] }
 0x39c   : > { %6437 = vmatpush.bf16.msra.mxu1 %v8970_v35 }
 0x39d   : > { %v10573_v38 = vadd.f32 %v5505_v13, %v5017_v5  ;;  %v8823_v5 = vld [vmem:[#allocation8 + $0x88] sm:$0xff]  ;;  %6351 = vmatpush.bf16.msra.mxu0 %v8959_v43 }
 0x39e   : > { %v10571_v21 = vpop.f32.mrf.mxu1 }
 0x39f   : > { %v4929_v61 = vpop.f32.mrf.mxu2 }
 0x3a0   : > { %v4930_v53 = vadd.f32 %v4929_v61, %v10498_v41  ;;  %v8825_v41 = vld [vmem:[#allocation8 + $0x98] sm:$0xff] }
 0x3a1   : > { %5583 = vmatmul.bf16.gmra.mxu1 %v7991_v42  ;;  %v5510_v51 = vpop.f32.mrf.mxu0  ;;  %5658 = vmatpush.bf16.msra.mxu2 %v8825_v41  ;;  %v8874_v42 = vld [vmem:[#allocation2 + $0x178] sm:$0xf0] }
 0x3a2   : > { %v5018_v11 = vpop.f32.mrf.mxu3  ;;  %v7851_v7 = vor.u32 %v8874_v42, %v7850_v54  ;;  %6352 = vmatpush.bf16.msra.mxu0 %v8958_v37  ;;  %v8252_v37 = vld [vmem:[#allocation2 + $0x3c] sm:$0xf0] }
 0x3a3   : > { %v5019_v55 = vadd.f32 %v5018_v11, %v4930_v53  ;;  %v7847_v11 = vor.u32 %v8872_v23, %v7844_v25  ;;  %v8024_v23 = vld [vmem:[#allocation2 + $0x84] sm:$0xf0] }
 0x3a4   : > { %4971 = vmatmul.bf16.gmra.mxu2 %v7835_v15  ;;  %5549 = vmatmul.bf16.gmra.mxu0 %v8119_v52 }
 0x3a5   : > { %v10578_v29 = vadd.f32 %v5507_v6, %v5019_v55  ;;  %5659 = vmatpush.bf16.msra.mxu2 %v8824_v46  ;;  %v8801_v6 = vld [vmem:[#allocation2 + $0x158] sm:$0xf0] }
 0x3a6   : > { %v10576_v3 = vpop.f32.mrf.mxu1  ;;  %v8131_v39 = vor.u32 %v8801_v6, %v8130_v57  ;;  %v7862_v6 = vld [vmem:[#allocation2 + $0x188] sm:$0xf]  ;;  %v8773_v57 = vld [vmem:[#allocation2 + $0x7c] sm:$0xf] }
 0x3a7   : > { %5060 = vmatmul.bf16.gmra.mxu3 %v7839_v59  ;;  %v4932_v4 = vpop.f32.mrf.mxu2  ;;  %v8012_v59 = vld [vmem:[#allocation2 + $0x6c] sm:$0xf0] }
 0x3a8   : > { %v4933_v12 = vadd.f32 %v4932_v4, %v10505_v0  ;;  %v8015_v4 = vor.u32 %v8770_v33, %v8012_v59  ;;  %v8250_v59 = vld [vmem:[#allocation2 + $0x30] sm:$0xf] }
 0x3a9   : > { %v5512_v49 = vpop.f32.mrf.mxu0  ;;  %5660 = vmatpush.bf16.msra.mxu2 %v8823_v5  ;;  %v7863_v5 = vor.u32 %v8877_v8, %v7862_v6  ;;  %v8036_v8 = vld [vmem:[#allocation2 + $0x9c] sm:$0xf0]  ;;  %v8763_v6 = vld [vmem:[#allocation2 + $0x28] sm:$0xf0] }
 0x3aa   : > { %v5021_v13 = vpop.f32.mrf.mxu3 }
 0x3ab   : > { %v5022_v60 = vadd.f32 %v5021_v13, %v4933_v12  ;;  %v7856_v13 = vld [vmem:[#allocation2 + $0x18c] sm:$0xf0] }
 0x3ac   : > { %v7859_v25 = vor.u32 %v8875_v9, %v7856_v13  ;;  %v8776_v9 = vld [vmem:[#allocation2 + $0x94] sm:$0xf] }
 0x3ad   : > { %v10583_v40 = vadd.f32 %v5510_v51, %v5022_v60  ;;  %v8822_v51 = vld [vmem:[#allocation8 + $0x80] sm:$0xff] }
 0x3ae   : > { %v10581_v47 = vpop.f32.mrf.mxu1  ;;  %5661 = vmatpush.bf16.msra.mxu2 %v8822_v51  ;;  %v8760_v51 = vld [vmem:[#allocation2 + $0x10] sm:$0xf0] }
 0x3af   : > { %v4934_v0 = vpop.f32.mrf.mxu2 }
 0x3b0   : > { %v4935_v27 = vadd.f32 %v4934_v0, %v10515_v63 }
 0x3b1   : > { %5588 = vmatmul.bf16.gmra.mxu1 %v8003_v19  ;;  %v5515_v61 = vpop.f32.mrf.mxu0 }
 0x3b2   : > { %v5023_v18 = vpop.f32.mrf.mxu3 }
 0x3b3   : > { %v5024_v53 = vadd.f32 %v5023_v18, %v4935_v27 }
 0x3b4   : > { %4976 = vmatmul.bf16.gmra.mxu2 %v7847_v11  ;;  %5554 = vmatmul.bf16.gmra.mxu0 %v8131_v39  ;;  %v8027_v11 = vor.u32 %v8773_v57, %v8024_v23  ;;  %v7970_v39 = vld [vmem:[#allocation2 + $0x8] sm:$0xf] }
 0x3b5   : > { %v10588_v63 = vadd.f32 %v5512_v49, %v5024_v53  ;;  %v8804_v49 = vld [vmem:[#allocation2 + $0x170] sm:$0xf0] }
 0x3b6   : > { %v10586_v55 = vpop.f32.mrf.mxu1  ;;  %v8143_v0 = vor.u32 %v8804_v49, %v8142_v30 }
 0x3b7   : > { %5065 = vmatmul.bf16.gmra.mxu3 %v7851_v7  ;;  %v4937_v15 = vpop.f32.mrf.mxu2 }
 0x3b8   : > { %v4938_v52 = vadd.f32 %v4937_v15, %v10525_v31 }
 0x3b9   : > { %v5517_v48 = vpop.f32.mrf.mxu0 }
 0x3ba   : > { %v5026_v34 = vpop.f32.mrf.mxu3 }
 0x3bb   : > { %v5027_v28 = vadd.f32 %v5026_v34, %v4938_v52  ;;  %v7971_v52 = vor.u32 %v8760_v51, %v7970_v39 }
 0x3bd   : > { %v10593_v22 = vadd.f32 %v5515_v61, %v5027_v28 }
 0x3be   : > { %v10591_v41 = vpop.f32.mrf.mxu1 }
 0x3bf   : > { %v4939_v12 = vpop.f32.mrf.mxu2 }
 0x3c0   : > { %v4940_v60 = vadd.f32 %v4939_v12, %v10534_v16 }
 0x3c1   : > { %5593 = vmatmul.bf16.gmra.mxu1 %v8015_v4  ;;  %v5520_v31 = vpop.f32.mrf.mxu0 }
 0x3c2   : > { %v5028_v46 = vpop.f32.mrf.mxu3 }
 0x3c3   : > { %v5029_v19 = vadd.f32 %v5028_v46, %v4940_v60 }
 0x3c4   : > { %4981 = vmatmul.bf16.gmra.mxu2 %v7859_v25  ;;  %5559 = vmatmul.bf16.gmra.mxu0 %v8143_v0  ;;  %v8264_v0 = vld [vmem:[#allocation2 + $0x54] sm:$0xf0] }
 0x3c5   : > { %v10598_v43 = vadd.f32 %v5517_v48, %v5029_v19  ;;  %v8902_v48 = vld [vmem:[#allocation2 + $0x34] sm:$0xf]  ;;  %v8039_v19 = vor.u32 %v8776_v9, %v8036_v8  ;;  %v8908_v9 = vld [vmem:[#allocation2 + $0x64] sm:$0xf] }
 0x3c6   : > { %v10596_v62 = vpop.f32.mrf.mxu1  ;;  %v8255_v33 = vor.u32 %v8902_v48, %v8252_v37 }
 0x3c7   : > { %5070 = vmatmul.bf16.gmra.mxu3 %v7863_v5  ;;  %v4942_v27 = vpop.f32.mrf.mxu2  ;;  %v8969_v5 = vld [vmem:[#allocation8 + $0x218] sm:$0xff] }
 0x3c8   : > { %v4943_v16 = vadd.f32 %v4942_v27, %v10541_v2  ;;  %v8903_v2 = vld [vmem:[#allocation2 + $0x38] sm:$0xf0]  ;;  %6438 = vmatpush.bf16.msra.mxu1 %v8969_v5 }
 0x3c9   : > { %v5522_v42 = vpop.f32.mrf.mxu0  ;;  %v8251_v4 = vor.u32 %v8903_v2, %v8250_v59 }
 0x3ca   : > { %v5031_v18 = vpop.f32.mrf.mxu3 }
 0x3cb   : > { %v5032_v61 = vadd.f32 %v5031_v18, %v4943_v16  ;;  %v8906_v18 = vld [vmem:[#allocation2 + $0x50] sm:$0xf0] }
 0x3cd   : > { %v10603_v53 = vadd.f32 %v5520_v31, %v5032_v61  ;;  %v8905_v61 = vld [vmem:[#allocation2 + $0x4c] sm:$0xf] }
 0x3ce   : > { %v10601_v54 = vpop.f32.mrf.mxu1  ;;  %v8267_v39 = vor.u32 %v8905_v61, %v8264_v0 }
 0x3cf   : > { %v4944_v17 = vpop.f32.mrf.mxu2 }
 0x3d0   : > { %v4945_v7 = vadd.f32 %v4944_v17, %v10546_v45 }
 0x3d1   : > { %5598 = vmatmul.bf16.gmra.mxu1 %v8027_v11  ;;  %v5525_v34 = vpop.f32.mrf.mxu0  ;;  %v8262_v11 = vld [vmem:[#allocation2 + $0x48] sm:$0xf] }
 0x3d2   : > { %v5033_v15 = vpop.f32.mrf.mxu3  ;;  %v8263_v51 = vor.u32 %v8906_v18, %v8262_v11  ;;  %v8782_v11 = vld [vmem:[#allocation2 + $0xc4] sm:$0xf] }
 0x3d3   : > { %v5034_v28 = vadd.f32 %v5033_v15, %v4945_v7 }
 0x3d4   : > { %5662 = vmatmul.bf16.vlgmr.msra.gmra.mxu2 %v7971_v52  ;;  %6353 = vmatmul.bf16.vlgmr.msra.gmra.mxu0 %v8255_v33 }
 0x3d5   : > { %v10608_v13 = vadd.f32 %v5522_v42, %v5034_v28  ;;  %v7982_v42 = vld [vmem:[#allocation2 + $0x20] sm:$0xf]  ;;  %v8779_v28 = vld [vmem:[#allocation2 + $0xac] sm:$0xf] }
 0x3d6   : > { %v10606_v12 = vpop.f32.mrf.mxu1  ;;  %v7983_v57 = vor.u32 %v8763_v6, %v7982_v42  ;;  %v8274_v6 = vld [vmem:[#allocation2 + $0x60] sm:$0xf] }
 0x3d7   : > { %6264 = vmatmul.bf16.vlgmr.msra.gmra.mxu3 %v8251_v4  ;;  %v4947_v49 = vpop.f32.mrf.mxu2 }
 0x3d8   : > { %v4948_v35 = vadd.f32 %v4947_v49, %v10551_v20  ;;  %v8766_v49 = vld [vmem:[#allocation2 + $0x40] sm:$0xf0] }
 0x3d9   : > { %v5527_v60 = vpop.f32.mrf.mxu0 }
 0x3da   : > { %v5036_v45 = vpop.f32.mrf.mxu3 }
 0x3db   : > { %v5037_v46 = vadd.f32 %v5036_v45, %v4948_v35  ;;  %v8276_v35 = vld [vmem:[#allocation2 + $0x6c] sm:$0xf0] }
 0x3dc   : > { %v8279_v0 = vor.u32 %v8908_v9, %v8276_v35 }
 0x3dd   : > { %v10613_v30 = vadd.f32 %v5525_v34, %v5037_v46  ;;  %v8048_v34 = vld [vmem:[#allocation2 + $0xb4] sm:$0xf0]  ;;  %v8909_v46 = vld [vmem:[#allocation2 + $0x68] sm:$0xf0] }
 0x3de   : > { %v10611_v31 = vpop.f32.mrf.mxu1  ;;  %v8051_v33 = vor.u32 %v8779_v28, %v8048_v34  ;;  %v8275_v5 = vor.u32 %v8909_v46, %v8274_v6  ;;  %v8912_v28 = vld [vmem:[#allocation2 + $0x80] sm:$0xf0] }
 0x3df   : > { %v4949_v25 = vpop.f32.mrf.mxu2 }
 0x3e0   : > { %v4950_v27 = vadd.f32 %v4949_v25, %v10556_v1 }
 0x3e1   : > { %5603 = vmatmul.bf16.gmra.mxu1 %v8039_v19  ;;  %v5530_v20 = vpop.f32.mrf.mxu0 }
 0x3e2   : > { %v5038_v16 = vpop.f32.mrf.mxu3 }
 0x3e3   : > { %v5039_v23 = vadd.f32 %v5038_v16, %v4950_v27 }
 0x3e4   : > { %5667 = vmatmul.bf16.gmra.mxu2 %v7983_v57  ;;  %6358 = vmatmul.bf16.gmra.mxu0 %v8267_v39 }
 0x3e5   : > { %v10618_v37 = vadd.f32 %v5527_v60, %v5039_v23  ;;  %v8060_v23 = vld [vmem:[#allocation2 + $0xcc] sm:$0xf0] }
 0x3e6   : > { %v10616_v17 = vpop.f32.mrf.mxu1 }
 0x3e7   : > { %6269 = vmatmul.bf16.gmra.mxu3 %v8263_v51  ;;  %v4952_v7 = vpop.f32.mrf.mxu2 }
 0x3e8   : > { %v4953_v1 = vadd.f32 %v4952_v7, %v10561_v24  ;;  %v7994_v24 = vld [vmem:[#allocation2 + $0x38] sm:$0xf]  ;;  %v8063_v7 = vor.u32 %v8782_v11, %v8060_v23 }
 0x3e9   : > { %v5532_v52 = vpop.f32.mrf.mxu0  ;;  %v7995_v25 = vor.u32 %v8766_v49, %v7994_v24  ;;  %v8911_v49 = vld [vmem:[#allocation2 + $0x7c] sm:$0xf] }
 0x3ea   : > { %v5041_v15 = vpop.f32.mrf.mxu3 }
 0x3eb   : > { %v5042_v2 = vadd.f32 %v5041_v15, %v4953_v1  ;;  %v8769_v15 = vld [vmem:[#allocation2 + $0x58] sm:$0xf0] }
 0x3ed   : > { %v10623_v59 = vadd.f32 %v5530_v20, %v5042_v2  ;;  %v8968_v2 = vld [vmem:[#allocation8 + $0x210] sm:$0xff] }
 0x3ee   : > { %v10621_v48 = vpop.f32.mrf.mxu1  ;;  %6439 = vmatpush.bf16.msra.mxu1 %v8968_v2 }
 0x3ef   : > { %v4954_v4 = vpop.f32.mrf.mxu2 }
 0x3f0   : > { %v4955_v45 = vadd.f32 %v4954_v4, %v10566_v26  ;;  %v8006_v4 = vld [vmem:[#allocation2 + $0x50] sm:$0xf] }
 0x3f1   : > { %5608 = vmatmul.bf16.gmra.mxu1 %v8051_v33  ;;  %v5535_v8 = vpop.f32.mrf.mxu0 }
 0x3f2   : > { %v5043_v60 = vpop.f32.mrf.mxu3 }
 0x3f3   : > { %v5044_v19 = vadd.f32 %v5043_v60, %v4955_v45  ;;  %v8007_v45 = vor.u32 %v8769_v15, %v8006_v4  ;;  %v8286_v60 = vld [vmem:[#allocation2 + $0x78] sm:$0xf]  ;;  %v8018_v15 = vld [vmem:[#allocation2 + $0x68] sm:$0xf] }
 0x3f4   : > { %5672 = vmatmul.bf16.gmra.mxu2 %v7995_v25  ;;  %6363 = vmatmul.bf16.gmra.mxu0 %v8279_v0 }
 0x3f5   : > { %v10628_v16 = vadd.f32 %v5532_v52, %v5044_v19  ;;  %v8288_v52 = vld [vmem:[#allocation2 + $0x84] sm:$0xf0] }
 0x3f6   : > { %v10626_v27 = vpop.f32.mrf.mxu1  ;;  %v8291_v46 = vor.u32 %v8911_v49, %v8288_v52  ;;  %v8914_v52 = vld [vmem:[#allocation2 + $0x94] sm:$0xf] }
 0x3f7   : > { %6274 = vmatmul.bf16.gmra.mxu3 %v8275_v5  ;;  %v4957_v18 = vpop.f32.mrf.mxu2  ;;  %v8072_v5 = vld [vmem:[#allocation2 + $0xe4] sm:$0xf0] }
 0x3f8   : > { %v4958_v26 = vadd.f32 %v4957_v18, %v10571_v21 }
 0x3f9   : > { %v5537_v42 = vpop.f32.mrf.mxu0 }
 0x3fa   : > { %v5046_v20 = vpop.f32.mrf.mxu3 }
 0x3fb   : > { %v5047_v61 = vadd.f32 %v5046_v20, %v4958_v26  ;;  %v8785_v26 = vld [vmem:[#allocation2 + $0xdc] sm:$0xf] }
 0x3fd   : > { %v10631_v39 = vadd.f32 %v5535_v8, %v5047_v61 }
 0x3fe   : > { %v5574_v57 = vpop.f32.mrf.mxu1 }
 0x3ff   : > { %v10634_v51 = vadd.f32 %v5574_v57, %v10527_v50  ;;  %v4959_v1 = vpop.f32.mrf.mxu2  ;;  %v8287_v50 = vor.u32 %v8912_v28, %v8286_v60  ;;  %v8300_v57 = vld [vmem:[#allocation2 + $0x9c] sm:$0xf0] }
 0x400   : > { %v4960_v34 = vadd.f32 %v4959_v1, %v10576_v3  ;;  %v8303_v28 = vor.u32 %v8914_v52, %v8300_v57  ;;  %v8917_v57 = vld [vmem:[#allocation2 + $0xac] sm:$0xf] }
 0x401   : > { %5613 = vmatmul.bf16.gmra.mxu1 %v8063_v7  ;;  %v5540_v33 = vpop.f32.mrf.mxu0 }
 0x402   : > { %v5048_v21 = vpop.f32.mrf.mxu3 }
 0x403   : > { %v5049_v35 = vadd.f32 %v5048_v21, %v4960_v34  ;;  %v8298_v21 = vld [vmem:[#allocation2 + $0x90] sm:$0xf] }
 0x404   : > { %5677 = vmatmul.bf16.gmra.mxu2 %v8007_v45  ;;  %6368 = vmatmul.bf16.gmra.mxu0 %v8291_v46 }
 0x405   : > { %v10637_v24 = vadd.f32 %v5537_v42, %v5049_v35  ;;  %v8075_v42 = vor.u32 %v8785_v26, %v8072_v5  ;;  %v8312_v5 = vld [vmem:[#allocation2 + $0xb4] sm:$0xf0] }
 0x406   : > { %v5576_v8 = vpop.f32.mrf.mxu1 }
 0x407   : > { %v10640_v9 = vadd.f32 %v5576_v8, %v10536_v56  ;;  %6279 = vmatmul.bf16.gmra.mxu3 %v8287_v50  ;;  %v4962_v3 = vpop.f32.mrf.mxu2  ;;  %v8772_v56 = vld [vmem:[#allocation2 + $0x70] sm:$0xf0]  ;;  %v8084_v50 = vld [vmem:[#allocation2 + $0xfc] sm:$0xf0] }
 0x408   : > { %v4963_v19 = vadd.f32 %v4962_v3, %v10581_v47  ;;  %v8915_v47 = vld [vmem:[#allocation2 + $0x98] sm:$0xf0]  ;;  %v8019_v34 = vor.u32 %v8772_v56, %v8018_v15  ;;  %v8788_v3 = vld [vmem:[#allocation2 + $0xf4] sm:$0xf]  ;;  %v8030_v56 = vld [vmem:[#allocation2 + $0x80] sm:$0xf] }
 0x409   : > { %v5542_v6 = vpop.f32.mrf.mxu0 }
 0x40a   : > { %v5051_v25 = vpop.f32.mrf.mxu3 }
 0x40b   : > { %v5052_v0 = vadd.f32 %v5051_v25, %v4963_v19 }
 0x40d   : > { %v10643_v20 = vadd.f32 %v5540_v33, %v5052_v0  ;;  %v8299_v33 = vor.u32 %v8915_v47, %v8298_v21  ;;  %v8310_v47 = vld [vmem:[#allocation2 + $0xa8] sm:$0xf] }
 0x40e   : > { %v5579_v18 = vpop.f32.mrf.mxu1 }
 0x40f   : > { %v10646_v61 = vadd.f32 %v5579_v18, %v10543_v58  ;;  %v4964_v23 = vpop.f32.mrf.mxu2  ;;  %v8967_v18 = vld [vmem:[#allocation8 + $0x208] sm:$0xff] }
 0x410   : > { %v4965_v11 = vadd.f32 %v4964_v23, %v10586_v55  ;;  %6440 = vmatpush.bf16.msra.mxu1 %v8967_v18 }
 0x411   : > { %5618 = vmatmul.bf16.gmra.mxu1 %v8075_v42  ;;  %v5545_v1 = vpop.f32.mrf.mxu0  ;;  %v8918_v42 = vld [vmem:[#allocation2 + $0xb0] sm:$0xf0] }
 0x412   : > { %v5053_v7 = vpop.f32.mrf.mxu3 }
 0x413   : > { %v5054_v2 = vadd.f32 %v5053_v7, %v4965_v11 }
 0x414   : > { %5682 = vmatmul.bf16.gmra.mxu2 %v8019_v34  ;;  %6373 = vmatmul.bf16.gmra.mxu0 %v8303_v28 }
 0x415   : > { %v10649_v58 = vadd.f32 %v5542_v6, %v5054_v2  ;;  %v8087_v6 = vor.u32 %v8788_v3, %v8084_v50 }
 0x416   : > { %v5581_v4 = vpop.f32.mrf.mxu1 }
 0x417   : > { %v10652_v49 = vadd.f32 %v5581_v4, %v10548_v44  ;;  %6284 = vmatmul.bf16.gmra.mxu3 %v8299_v33  ;;  %v4967_v55 = vpop.f32.mrf.mxu2  ;;  %v8775_v44 = vld [vmem:[#allocation2 + $0x88] sm:$0xf0]  ;;  %v8096_v4 = vld [vmem:[#allocation2 + $0x114] sm:$0xf0] }
 0x418   : > { %v4968_v35 = vadd.f32 %v4967_v55, %v10591_v41  ;;  %v8031_v7 = vor.u32 %v8775_v44, %v8030_v56  ;;  %v8042_v44 = vld [vmem:[#allocation2 + $0x98] sm:$0xf] }
 0x419   : > { %v5547_v60 = vpop.f32.mrf.mxu0 }
 0x41a   : > { %v5056_v45 = vpop.f32.mrf.mxu3 }
 0x41b   : > { %v5057_v46 = vadd.f32 %v5056_v45, %v4968_v35  ;;  %v8791_v35 = vld [vmem:[#allocation2 + $0x10c] sm:$0xf] }
 0x41d   : > { %v10655_v19 = vadd.f32 %v5545_v1, %v5057_v46  ;;  %v8315_v1 = vor.u32 %v8917_v57, %v8312_v5  ;;  %v8920_v5 = vld [vmem:[#allocation2 + $0xc4] sm:$0xf] }
 0x41e   : > { %v5584_v8 = vpop.f32.mrf.mxu1 }
 0x41f   : > { %v10658_v25 = vadd.f32 %v5584_v8, %v10553_v10  ;;  %v4969_v0 = vpop.f32.mrf.mxu2  ;;  %v8311_v10 = vor.u32 %v8918_v42, %v8310_v47  ;;  %v8324_v8 = vld [vmem:[#allocation2 + $0xcc] sm:$0xf0] }
 0x420   : > { %v4970_v26 = vadd.f32 %v4969_v0, %v10596_v62  ;;  %v8327_v42 = vor.u32 %v8920_v5, %v8324_v8  ;;  %v8923_v8 = vld [vmem:[#allocation2 + $0xdc] sm:$0xf] }
 0x421   : > { %5623 = vmatmul.bf16.gmra.mxu1 %v8087_v6  ;;  %v5550_v23 = vpop.f32.mrf.mxu0 }
 0x422   : > { %v5058_v41 = vpop.f32.mrf.mxu3 }
 0x423   : > { %v5059_v11 = vadd.f32 %v5058_v41, %v4970_v26  ;;  %v8322_v41 = vld [vmem:[#allocation2 + $0xc0] sm:$0xf] }
 0x424   : > { %5687 = vmatmul.bf16.gmra.mxu2 %v8031_v7  ;;  %6378 = vmatmul.bf16.gmra.mxu0 %v8315_v1 }
 0x425   : > { %v10661_v52 = vadd.f32 %v5547_v60, %v5059_v11  ;;  %v8099_v60 = vor.u32 %v8791_v35, %v8096_v4  ;;  %v8336_v4 = vld [vmem:[#allocation2 + $0xe4] sm:$0xf0] }
 0x426   : > { %v5586_v15 = vpop.f32.mrf.mxu1 }
 0x427   : > { %v10664_v2 = vadd.f32 %v5586_v15, %v10558_v36  ;;  %6289 = vmatmul.bf16.gmra.mxu3 %v8311_v10  ;;  %v4972_v62 = vpop.f32.mrf.mxu2  ;;  %v8778_v36 = vld [vmem:[#allocation2 + $0xa0] sm:$0xf0]  ;;  %v8108_v10 = vld [vmem:[#allocation2 + $0x12c] sm:$0xf0] }
 0x428   : > { %v4973_v34 = vadd.f32 %v4972_v62, %v10601_v54  ;;  %v8921_v54 = vld [vmem:[#allocation2 + $0xc8] sm:$0xf0]  ;;  %v8043_v26 = vor.u32 %v8778_v36, %v8042_v44  ;;  %v8794_v62 = vld [vmem:[#allocation2 + $0x124] sm:$0xf]  ;;  %v8054_v36 = vld [vmem:[#allocation2 + $0xb0] sm:$0xf] }
 0x429   : > { %v5552_v28 = vpop.f32.mrf.mxu0 }
 0x42a   : > { %v5061_v21 = vpop.f32.mrf.mxu3 }
 0x42b   : > { %v5062_v33 = vadd.f32 %v5061_v21, %v4973_v34 }
 0x42d   : > { %v10667_v45 = vadd.f32 %v5550_v23, %v5062_v33  ;;  %v8323_v23 = vor.u32 %v8921_v54, %v8322_v41  ;;  %v8334_v54 = vld [vmem:[#allocation2 + $0xd8] sm:$0xf] }
 0x42e   : > { %v5589_v55 = vpop.f32.mrf.mxu1 }
 0x42f   : > { %v10670_v46 = vadd.f32 %v5589_v55, %v10563_v14  ;;  %v4974_v50 = vpop.f32.mrf.mxu2  ;;  %v8966_v55 = vld [vmem:[#allocation8 + $0x200] sm:$0xff] }
 0x430   : > { %v4975_v3 = vadd.f32 %v4974_v50, %v10606_v12  ;;  %6441 = vmatpush.bf16.msra.mxu1 %v8966_v55 }
 0x431   : > { %5628 = vmatmul.bf16.gmra.mxu1 %v8099_v60  ;;  %v5555_v0 = vpop.f32.mrf.mxu0  ;;  %v8924_v60 = vld [vmem:[#allocation2 + $0xe0] sm:$0xf0] }
 0x432   : > { %v5063_v6 = vpop.f32.mrf.mxu3 }
 0x433   : > { %v5064_v18 = vadd.f32 %v5063_v6, %v4975_v3 }
 0x434   : > { %5692 = vmatmul.bf16.gmra.mxu2 %v8043_v26  ;;  %6383 = vmatmul.bf16.gmra.mxu0 %v8327_v42 }
 0x435   : > { %v10673_v14 = vadd.f32 %v5552_v28, %v5064_v18  ;;  %v8111_v28 = vor.u32 %v8794_v62, %v8108_v10 }
 0x436   : > { %v5591_v56 = vpop.f32.mrf.mxu1 }
 0x437   : > { %v10676_v57 = vadd.f32 %v5591_v56, %v10568_v32  ;;  %6294 = vmatmul.bf16.gmra.mxu3 %v8323_v23  ;;  %v4977_v12 = vpop.f32.mrf.mxu2  ;;  %v8781_v32 = vld [vmem:[#allocation2 + $0xb8] sm:$0xf0]  ;;  %v8120_v56 = vld [vmem:[#allocation2 + $0x144] sm:$0xf0] }
 0x438   : > { %v4978_v11 = vadd.f32 %v4977_v12, %v10611_v31  ;;  %v8055_v6 = vor.u32 %v8781_v32, %v8054_v36  ;;  %v8066_v32 = vld [vmem:[#allocation2 + $0xc8] sm:$0xf] }
 0x439   : > { %v5557_v47 = vpop.f32.mrf.mxu0 }
 0x43a   : > { %v5066_v7 = vpop.f32.mrf.mxu3 }
 0x43b   : > { %v5067_v1 = vadd.f32 %v5066_v7, %v4978_v11  ;;  %v8797_v11 = vld [vmem:[#allocation2 + $0x13c] sm:$0xf] }
 0x43d   : > { %v10679_v34 = vadd.f32 %v5555_v0, %v5067_v1  ;;  %v8339_v0 = vor.u32 %v8923_v8, %v8336_v4  ;;  %v8926_v4 = vld [vmem:[#allocation2 + $0xf4] sm:$0xf] }
 0x43e   : > { %v5594_v15 = vpop.f32.mrf.mxu1 }
 0x43f   : > { %v10682_v21 = vadd.f32 %v5594_v15, %v10573_v38  ;;  %v4979_v33 = vpop.f32.mrf.mxu2  ;;  %v8335_v38 = vor.u32 %v8924_v60, %v8334_v54  ;;  %v8348_v15 = vld [vmem:[#allocation2 + $0xfc] sm:$0xf0] }
 0x440   : > { %v4980_v35 = vadd.f32 %v4979_v33, %v10616_v17  ;;  %v8351_v60 = vor.u32 %v8926_v4, %v8348_v15 }
 0x441   : > { %5633 = vmatmul.bf16.gmra.mxu1 %v8111_v28  ;;  %v5560_v50 = vpop.f32.mrf.mxu0 }
 0x442   : > { %v5068_v31 = vpop.f32.mrf.mxu3 }
 0x443   : > { %v5069_v3 = vadd.f32 %v5068_v31, %v4980_v35  ;;  %v8346_v31 = vld [vmem:[#allocation2 + $0xf0] sm:$0xf] }
 0x444   : > { %5697 = vmatmul.bf16.gmra.mxu2 %v8055_v6  ;;  %6388 = vmatmul.bf16.gmra.mxu0 %v8339_v0 }
 0x445   : > { %v10685_v5 = vadd.f32 %v5557_v47, %v5069_v3  ;;  %v8123_v47 = vor.u32 %v8797_v11, %v8120_v56 }
 0x446   : > { %v5596_v44 = vpop.f32.mrf.mxu1 }
 0x447   : > { %v10688_v18 = vadd.f32 %v5596_v44, %v10578_v29  ;;  %6299 = vmatmul.bf16.gmra.mxu3 %v8335_v38  ;;  %v4982_v17 = vpop.f32.mrf.mxu2  ;;  %v8784_v29 = vld [vmem:[#allocation2 + $0xd0] sm:$0xf0]  ;;  %v8132_v38 = vld [vmem:[#allocation2 + $0x15c] sm:$0xf0] }
 0x448   : > { %v4983_v26 = vadd.f32 %v4982_v17, %v10621_v48  ;;  %v8927_v48 = vld [vmem:[#allocation2 + $0xf8] sm:$0xf0]  ;;  %v8067_v35 = vor.u32 %v8784_v29, %v8066_v32  ;;  %v8800_v17 = vld [vmem:[#allocation2 + $0x154] sm:$0xf] }
 0x449   : > { %v5562_v42 = vpop.f32.mrf.mxu0 }
 0x44a   : > { %v5071_v41 = vpop.f32.mrf.mxu3 }
 0x44b   : > { %v5072_v23 = vadd.f32 %v5071_v41, %v4983_v26  ;;  %v8135_v41 = vor.u32 %v8800_v17, %v8132_v38 }
 0x44d   : > { %v10691_v7 = vadd.f32 %v5560_v50, %v5072_v23  ;;  %v8347_v50 = vor.u32 %v8927_v48, %v8346_v31  ;;  %v8360_v23 = vld [vmem:[#allocation2 + $0x114] sm:$0xf0] }
 0x44e   : > { %v5599_v12 = vpop.f32.mrf.mxu1 }
 0x44f   : > { %v10694_v1 = vadd.f32 %v5599_v12, %v10583_v40  ;;  %v4984_v10 = vpop.f32.mrf.mxu2  ;;  %v8930_v12 = vld [vmem:[#allocation2 + $0x110] sm:$0xf0] }
 0x450   : > { %v4985_v62 = vadd.f32 %v4984_v10, %v10626_v27  ;;  %v8929_v10 = vld [vmem:[#allocation2 + $0x10c] sm:$0xf] }
 0x451   : > { %5638 = vmatmul.bf16.gmra.mxu1 %v8123_v47  ;;  %v6354_v33 = vpop.f32.mrf.mxu0  ;;  %v8078_v47 = vld [vmem:[#allocation2 + $0xe0] sm:$0xf] }
 0x452   : > { %v5073_v28 = vpop.f32.mrf.mxu3 }
 0x453   : > { %v5074_v55 = vadd.f32 %v5073_v28, %v4985_v62  ;;  %v8358_v62 = vld [vmem:[#allocation2 + $0x108] sm:$0xf]  ;;  %v8363_v28 = vor.u32 %v8929_v10, %v8360_v23  ;;  %v8370_v23 = vld [vmem:[#allocation2 + $0x120] sm:$0xf] }
 0x454   : > { %5702 = vmatmul.bf16.gmra.mxu2 %v8067_v35  ;;  %6393 = vmatmul.bf16.gmra.mxu0 %v8351_v60  ;;  %v8144_v35 = vld [vmem:[#allocation2 + $0x174] sm:$0xf0] }
 0x455   : > { %v10697_v40 = vadd.f32 %v5562_v42, %v5074_v55 }
 0x456   : > { %v5601_v36 = vpop.f32.mrf.mxu1 }
 0x457   : > { %v10700_v8 = vadd.f32 %v5601_v36, %v10588_v63  ;;  %6304 = vmatmul.bf16.gmra.mxu3 %v8347_v50  ;;  %v5663_v27 = vpop.f32.mrf.mxu2  ;;  %v8787_v63 = vld [vmem:[#allocation2 + $0xe8] sm:$0xf0] }
 0x458   : > { %v10703_v3 = vadd.f32 %v5663_v27, %v10634_v51  ;;  %v8079_v15 = vor.u32 %v8787_v63, %v8078_v47  ;;  %v8803_v50 = vld [vmem:[#allocation2 + $0x16c] sm:$0xf] }
 0x459   : > { %v6356_v0 = vpop.f32.mrf.mxu0  ;;  %v8147_v27 = vor.u32 %v8803_v50, %v8144_v35 }
 0x45a   : > { %v6265_v6 = vpop.f32.mrf.mxu3 }
 0x45b   : > { %v10705_v54 = vadd.f32 %v6354_v33, %v6265_v6 }
 0x45e   : > { %v5604_v44 = vpop.f32.mrf.mxu1 }
 0x45f   : > { %v10708_v26 = vadd.f32 %v5604_v44, %v10593_v22  ;;  %v5665_v42 = vpop.f32.mrf.mxu2  ;;  %v8359_v22 = vor.u32 %v8930_v12, %v8358_v62  ;;  %v8933_v44 = vld [vmem:[#allocation2 + $0x128] sm:$0xf0] }
 0x460   : > { %v10711_v56 = vadd.f32 %v5665_v42, %v10640_v9  ;;  %v8932_v42 = vld [vmem:[#allocation2 + $0x124] sm:$0xf]  ;;  %v8371_v12 = vor.u32 %v8933_v44, %v8370_v23  ;;  %v8382_v44 = vld [vmem:[#allocation2 + $0x138] sm:$0xf] }
 0x461   : > { %5643 = vmatmul.bf16.gmra.mxu1 %v8135_v41  ;;  %v6359_v29 = vpop.f32.mrf.mxu0  ;;  %v8090_v41 = vld [vmem:[#allocation2 + $0xf8] sm:$0xf] }
 0x462   : > { %v6267_v51 = vpop.f32.mrf.mxu3 }
 0x463   : > { %v10713_v11 = vadd.f32 %v6356_v0, %v6267_v51  ;;  %v8372_v0 = vld [vmem:[#allocation2 + $0x12c] sm:$0xf0] }
 0x464   : > { %5707 = vmatmul.bf16.gmra.mxu2 %v8079_v15  ;;  %6398 = vmatmul.bf16.gmra.mxu0 %v8363_v28  ;;  %v8375_v51 = vor.u32 %v8932_v42, %v8372_v0  ;;  %v8904_v28 = vld [vmem:[#allocation2 + $0x40] sm:$0xf0]  ;;  %v8935_v0 = vld [vmem:[#allocation2 + $0x13c] sm:$0xf] }
 0x466   : > { %v5606_v48 = vpop.f32.mrf.mxu1 }
 0x467   : > { %v10716_v33 = vadd.f32 %v5606_v48, %v10598_v43  ;;  %6309 = vmatmul.bf16.gmra.mxu3 %v8359_v22  ;;  %v5668_v9 = vpop.f32.mrf.mxu2  ;;  %v8790_v43 = vld [vmem:[#allocation2 + $0x100] sm:$0xf0]  ;;  %v8258_v48 = vld [vmem:[#allocation2 + $0x38] sm:$0xf] }
 0x468   : > { %v10719_v32 = vadd.f32 %v5668_v9, %v10646_v61  ;;  %v8091_v63 = vor.u32 %v8790_v43, %v8090_v41  ;;  %v8102_v43 = vld [vmem:[#allocation2 + $0x110] sm:$0xf] }
 0x469   : > { %v6361_v31 = vpop.f32.mrf.mxu0 }
 0x46a   : > { %v6270_v4 = vpop.f32.mrf.mxu3 }
 0x46b   : > { %v10721_v55 = vadd.f32 %v6359_v29, %v6270_v4  ;;  %v8259_v4 = vor.u32 %v8904_v28, %v8258_v48  ;;  %v8796_v28 = vld [vmem:[#allocation2 + $0x130] sm:$0xf0] }
 0x46e   : > { %v5609_v60 = vpop.f32.mrf.mxu1 }
 0x46f   : > { %v10724_v36 = vadd.f32 %v5609_v60, %v10603_v53  ;;  %v5670_v6 = vpop.f32.mrf.mxu2 }
 0x470   : > { %v10727_v38 = vadd.f32 %v5670_v6, %v10652_v49 }
 0x471   : > { %5648 = vmatmul.bf16.gmra.mxu1 %v8147_v27  ;;  %v6364_v10 = vpop.f32.mrf.mxu0  ;;  %v8936_v27 = vld [vmem:[#allocation2 + $0x140] sm:$0xf0] }
 0x472   : > { %v6272_v61 = vpop.f32.mrf.mxu3 }
 0x473   : > { %v10729_v17 = vadd.f32 %v6361_v31, %v6272_v61  ;;  %v8384_v31 = vld [vmem:[#allocation2 + $0x144] sm:$0xf0] }
 0x474   : > { %5712 = vmatmul.bf16.gmra.mxu2 %v8091_v63  ;;  %6403 = vmatmul.bf16.gmra.mxu0 %v8375_v51  ;;  %v8387_v41 = vor.u32 %v8935_v0, %v8384_v31  ;;  %v8907_v51 = vld [vmem:[#allocation2 + $0x58] sm:$0xf0]  ;;  %v8282_v0 = vld [vmem:[#allocation2 + $0x68] sm:$0xf] }
 0x476   : > { %v5611_v53 = vpop.f32.mrf.mxu1 }
 0x477   : > { %v10732_v47 = vadd.f32 %v5611_v53, %v10608_v13  ;;  %6314 = vmatmul.bf16.gmra.mxu3 %v8371_v12  ;;  %v5673_v49 = vpop.f32.mrf.mxu2  ;;  %v8793_v13 = vld [vmem:[#allocation2 + $0x118] sm:$0xf0]  ;;  %v8270_v53 = vld [vmem:[#allocation2 + $0x50] sm:$0xf] }
 0x478   : > { %v10735_v29 = vadd.f32 %v5673_v49, %v10658_v25  ;;  %v8103_v61 = vor.u32 %v8793_v13, %v8102_v43  ;;  %v8271_v49 = vor.u32 %v8907_v51, %v8270_v53 }
 0x479   : > { %v6366_v60 = vpop.f32.mrf.mxu0 }
 0x47a   : > { %v6275_v15 = vpop.f32.mrf.mxu3 }
 0x47b   : > { %v10737_v62 = vadd.f32 %v6364_v10, %v6275_v15 }
 0x47e   : > { %v5614_v22 = vpop.f32.mrf.mxu1 }
 0x47f   : > { %v10740_v9 = vadd.f32 %v5614_v22, %v10613_v30  ;;  %v5675_v35 = vpop.f32.mrf.mxu2  ;;  %v8383_v30 = vor.u32 %v8936_v27, %v8382_v44  ;;  %v8396_v22 = vld [vmem:[#allocation2 + $0x15c] sm:$0xf0]  ;;  %v8910_v27 = vld [vmem:[#allocation2 + $0x70] sm:$0xf0]  ;;  %v8799_v44 = vld [vmem:[#allocation2 + $0x148] sm:$0xf0] }
 0x480   : > { %v10743_v50 = vadd.f32 %v5675_v35, %v10664_v2  ;;  %v8938_v35 = vld [vmem:[#allocation2 + $0x154] sm:$0xf] }
 0x481   : > { %6442 = vmatmul.bf16.vlgmr.msra.gmra.mxu1 %v8259_v4  ;;  %v8114_v4 = vld [vmem:[#allocation2 + $0x128] sm:$0xf]  ;;  %v8399_v31 = vor.u32 %v8938_v35, %v8396_v22  ;;  %v8294_v22 = vld [vmem:[#allocation2 + $0x80] sm:$0xf]  ;;  %v8802_v35 = vld [vmem:[#allocation2 + $0x160] sm:$0xf0] }
 0x482   : > { %v6277_v25 = vpop.f32.mrf.mxu3  ;;  %v8115_v13 = vor.u32 %v8796_v28, %v8114_v4 }
 0x483   : > { %v10745_v6 = vadd.f32 %v6366_v60, %v6277_v25 }
 0x484   : > { %5717 = vmatmul.bf16.gmra.mxu2 %v8103_v61  ;;  %6408 = vmatmul.bf16.gmra.mxu0 %v8387_v41  ;;  %v8283_v61 = vor.u32 %v8910_v27, %v8282_v0  ;;  %v8408_v41 = vld [vmem:[#allocation2 + $0x174] sm:$0xf0]  ;;  %v8418_v27 = vld [vmem:[#allocation2 + $0x180] sm:$0xf] }
 0x486   : > { %v5616_v42 = vpop.f32.mrf.mxu1 }
 0x487   : > { %v10748_v63 = vadd.f32 %v5616_v42, %v10618_v37  ;;  %6319 = vmatmul.bf16.gmra.mxu3 %v8383_v30  ;;  %v5678_v23 = vpop.f32.mrf.mxu2  ;;  %v8939_v37 = vld [vmem:[#allocation2 + $0x158] sm:$0xf0]  ;;  %v8942_v30 = vld [vmem:[#allocation2 + $0x170] sm:$0xf0]  ;;  %v8126_v42 = vld [vmem:[#allocation2 + $0x140] sm:$0xf] }
 0x488   : > { %v10751_v2 = vadd.f32 %v5678_v23, %v10670_v46  ;;  %v8394_v46 = vld [vmem:[#allocation2 + $0x150] sm:$0xf]  ;;  %v8941_v23 = vld [vmem:[#allocation2 + $0x16c] sm:$0xf]  ;;  %v8127_v51 = vor.u32 %v8799_v44, %v8126_v42 }
 0x489   : > { %v8395_v60 = vor.u32 %v8939_v37, %v8394_v46  ;;  %v8411_v53 = vor.u32 %v8941_v23, %v8408_v41  ;;  %v8945_v46 = vld [vmem:[#allocation2 + $0x188] sm:$0xf0]  ;;  %v8306_v41 = vld [vmem:[#allocation2 + $0x98] sm:$0xf]  ;;  %v8805_v23 = vld [vmem:[#allocation2 + $0x178] sm:$0xf0] }
 0x48a   : > { %v8419_v0 = vor.u32 %v8945_v46, %v8418_v27  ;;  %v8330_v46 = vld [vmem:[#allocation2 + $0xc8] sm:$0xf] }
 0x48e   : > { %v5619_v12 = vpop.f32.mrf.mxu1 }
 0x48f   : > { %v10754_v10 = vadd.f32 %v5619_v12, %v10623_v59  ;;  %v5680_v15 = vpop.f32.mrf.mxu2  ;;  %v8406_v12 = vld [vmem:[#allocation2 + $0x168] sm:$0xf] }
 0x490   : > { %v10757_v48 = vadd.f32 %v5680_v15, %v10676_v57 }
 0x491   : > { %6447 = vmatmul.bf16.gmra.mxu1 %v8271_v49  ;;  %v8407_v49 = vor.u32 %v8942_v30, %v8406_v12 }
 0x494   : > { %5722 = vmatmul.bf16.gmra.mxu2 %v8115_v13  ;;  %6413 = vmatmul.bf16.gmra.mxu0 %v8399_v31  ;;  %v8420_v13 = vld [vmem:[#allocation2 + $0x18c] sm:$0xf0]  ;;  %v8138_v31 = vld [vmem:[#allocation2 + $0x158] sm:$0xf] }
 0x496   : > { %v5621_v25 = vpop.f32.mrf.mxu1 }
 0x497   : > { %v10760_v59 = vadd.f32 %v5621_v25, %v10628_v16  ;;  %6324 = vmatmul.bf16.gmra.mxu3 %v8395_v60  ;;  %v8944_v60 = vld [vmem:[#allocation2 + $0x184] sm:$0xf]  ;;  %v8139_v25 = vor.u32 %v8802_v35, %v8138_v31  ;;  %v8922_v35 = vld [vmem:[#allocation2 + $0xd0] sm:$0xf0] }
 0x49e   : > { %v5624_v43 = vpop.f32.mrf.mxu1 }
 0x49f   : > { %v10763_v57 = vadd.f32 %v5624_v43, %v10631_v39  ;;  %v8913_v39 = vld [vmem:[#allocation2 + $0x88] sm:$0xf0]  ;;  %v8423_v43 = vor.u32 %v8944_v60, %v8420_v13 }
 0x4a0   : > { %v8295_v4 = vor.u32 %v8913_v39, %v8294_v22  ;;  %v8318_v39 = vld [vmem:[#allocation2 + $0xb0] sm:$0xf] }
 0x4a1   : > { %6452 = vmatmul.bf16.gmra.mxu1 %v8283_v61 }
 0x4a4   : > { %5727 = vmatmul.bf16.gmra.mxu2 %v8127_v51  ;;  %6418 = vmatmul.bf16.gmra.mxu0 %v8411_v53  ;;  %v8150_v51 = vld [vmem:[#allocation2 + $0x170] sm:$0xf] }
 0x4a5   : > { %v8151_v12 = vor.u32 %v8805_v23, %v8150_v51 }
 0x4a6   : > { %v5626_v16 = vpop.f32.mrf.mxu1 }
 0x4a7   : > { %v10766_v15 = vadd.f32 %v5626_v16, %v10637_v24  ;;  %6329 = vmatmul.bf16.gmra.mxu3 %v8407_v49  ;;  %v8919_v16 = vld [vmem:[#allocation2 + $0xb8] sm:$0xf0] }
 0x4a8   : > { %v8319_v22 = vor.u32 %v8919_v16, %v8318_v39 }
 0x4ae   : > { %v5629_v28 = vpop.f32.mrf.mxu1 }
 0x4af   : > { %v10769_v37 = vadd.f32 %v5629_v28, %v10643_v20  ;;  %v8916_v20 = vld [vmem:[#allocation2 + $0xa0] sm:$0xf0] }
 0x4b0   : > { %v8307_v42 = vor.u32 %v8916_v20, %v8306_v41  ;;  %v8928_v41 = vld [vmem:[#allocation2 + $0x100] sm:$0xf0] }
 0x4b1   : > { %6457 = vmatmul.bf16.gmra.mxu1 %v8295_v4 }
 0x4b4   : > { %5732 = vmatmul.bf16.gmra.mxu2 %v8139_v25  ;;  %6423 = vmatmul.bf16.gmra.mxu0 %v8423_v43  ;;  %v8342_v43 = vld [vmem:[#allocation2 + $0xe0] sm:$0xf] }
 0x4b6   : > { %v5631_v24 = vpop.f32.mrf.mxu1 }
 0x4b7   : > { %v10772_v61 = vadd.f32 %v5631_v24, %v10649_v58  ;;  %6334 = vmatmul.bf16.gmra.mxu3 %v8419_v0 }
 0x4be   : > { %v5634_v44 = vpop.f32.mrf.mxu1 }
 0x4bf   : > { %v10775_v30 = vadd.f32 %v5634_v44, %v10655_v19  ;;  %v10800_v44 = vpop.f32.mrf.mxu3 }
 0x4c1   : > { %6462 = vmatmul.bf16.gmra.mxu1 %v8307_v42  ;;  %v8354_v42 = vld [vmem:[#allocation2 + $0xf8] sm:$0xf] }
 0x4c2   : > { %v8355_v51 = vor.u32 %v8928_v41, %v8354_v42  ;;  %v9071_v42 = vld [vmem:[%s9404_s16 + $0x10] sm:$0xff] }
 0x4c4   : > { %5737 = vmatmul.bf16.gmra.mxu2 %v8151_v12 }
 0x4c6   : > { %v5636_v53 = vpop.f32.mrf.mxu1 }
 0x4c7   : > { %v10778_v49 = vadd.f32 %v5636_v53, %v10661_v52  ;;  %v8331_v52 = vor.u32 %v8922_v35, %v8330_v46  ;;  %v10812_v16 = vpop.f32.mrf.mxu3 }
 0x4ce   : > { %v5639_v58 = vpop.f32.mrf.mxu1 }
 0x4cf   : > { %v10781_v28 = vadd.f32 %v5639_v58, %v10667_v45  ;;  %v8925_v45 = vld [vmem:[#allocation2 + $0xe8] sm:$0xf0]  ;;  %v9069_v58 = vld [vmem:[%s9404_s16] sm:$0xff] }
 0x4d1   : > { %6467 = vmatmul.bf16.gmra.mxu1 %v8319_v22 }
 0x4d6   : > { %v5641_v19 = vpop.f32.mrf.mxu1 }
 0x4d7   : > { %v10784_v4 = vadd.f32 %v5641_v19, %v10673_v14  ;;  %v8343_v14 = vor.u32 %v8925_v45, %v8342_v43  ;;  %v8366_v43 = vld [vmem:[#allocation2 + $0x110] sm:$0xf] }
 0x4de   : > { %v5644_v13 = vpop.f32.mrf.mxu1 }
 0x4df   : > { %v10787_v31 = vadd.f32 %v5644_v13, %v10679_v34  ;;  %v10798_v34 = vpop.f32.mrf.mxu0  ;;  %v8931_v13 = vld [vmem:[#allocation2 + $0x118] sm:$0xf0] }
 0x4e0   : > { %v8367_v41 = vor.u32 %v8931_v13, %v8366_v43  ;;  %v8378_v13 = vld [vmem:[#allocation2 + $0x128] sm:$0xf] }
 0x4e1   : > { %6472 = vmatmul.bf16.gmra.mxu1 %v8331_v52  ;;  %v10825_v52 = vpop.f32.mrf.mxu2 }
 0x4e6   : > { %v5646_v60 = vpop.f32.mrf.mxu1 }
 0x4e7   : > { %v10790_v25 = vadd.f32 %v5646_v60, %v10685_v5  ;;  %v9070_v60 = vld [vmem:[%s9404_s16 + $0x8] sm:$0xff] }
 0x4ee   : > { %v5649_v27 = vpop.f32.mrf.mxu1 }
 0x4ef   : > { %v10793_v0 = vadd.f32 %v5649_v27, %v10691_v7  ;;  %v10806_v7 = vld [vmem:[%s11057_s4] ss:$0 sm:$0xff]  ;;  %v10828_v27 = vpop.f32.mrf.mxu3 }
 0x4f1   : > { %6477 = vmatmul.bf16.gmra.mxu1 %v8343_v14 }
 0x4f6   : > { %v5651_v24 = vpop.f32.mrf.mxu1 }
 0x4f7   : > { %v10796_v20 = vadd.f32 %v5651_v24, %v10697_v40  ;;  %v10809_v40 = vpop.f32.mrf.mxu0 }
 0x4fe   : > { %v6443_v5 = vpop.f32.mrf.mxu1 }
 0x4ff   : > { %v6444_v23 = vadd.f32 %v6443_v5, %v10705_v54  ;;  %v10823_v46 = vpop.f32.mrf.mxu0 }
 0x501   : > { %v6523_v12 = vadd.f32 %v6444_v23, %v10703_v3  ;;  %6482 = vmatmul.bf16.gmra.mxu1 %v8355_v51 }
 0x503   : > { %v6559_v53 = vadd.f32 %v10806_v7, %v6523_v12 }
 0x505   : > { %v6591_v39 = vadd.f32 %v9069_v58, %v6559_v53  ;;  %v10837_v53 = vpop.f32.mrf.mxu2 }
 0x506   : > { %v6445_v22 = vpop.f32.mrf.mxu1 }
 0x507   : > { %v6623_v54 = vmax.f32 %v6591_v39, 0.0  ;;  %v6446_v19 = vadd.f32 %v6445_v22, %v10713_v11  ;;  %v10835_v12 = vpop.f32.mrf.mxu0 }
 0x509   : > { %6655 = vst [vmem:[%s10818_s30] sm:$0xff] %v6623_v54  ;;  %v6524_v3 = vadd.f32 %v6446_v19, %v10711_v56  ;;  %v8934_v54 = vld [vmem:[#allocation2 + $0x130] sm:$0xf0]  ;;  %v9072_v19 = vld [vmem:[%s9404_s16 + $0x18] sm:$0xff] }
 0x50b   : > { %v6560_v35 = vadd.f32 %v10806_v7, %v6524_v3 }
 0x50d   : > { %v6592_v45 = vadd.f32 %v9070_v60, %v6560_v35 }
 0x50e   : > { %v6448_v11 = vpop.f32.mrf.mxu1 }
 0x50f   : > { %v6624_v14 = vmax.f32 %v6592_v45, 0.0  ;;  %v6449_v24 = vadd.f32 %v6448_v11, %v10721_v55  ;;  %v10840_v55 = vpop.f32.mrf.mxu3  ;;  %v8379_v11 = vor.u32 %v8934_v54, %v8378_v13  ;;  %v10847_v43 = vpop.f32.mrf.mxu0  ;;  %v9074_v54 = vld [vmem:[%s9404_s16 + $0x28] sm:$0xff] }
 0x511   : > { %6656 = vst [vmem:[%s10818_s30 + $0x8] sm:$0xff] %v6624_v14  ;;  %v6525_v56 = vadd.f32 %v6449_v24, %v10719_v32  ;;  %6487 = vmatmul.bf16.gmra.mxu1 %v8367_v41  ;;  %v9073_v41 = vld [vmem:[%s9404_s16 + $0x20] sm:$0xff] }
 0x513   : > { %v6561_v5 = vadd.f32 %v10806_v7, %v6525_v56 }
 0x515   : > { %v6593_v23 = vadd.f32 %v9071_v42, %v6561_v5 }
 0x516   : > { %v6450_v51 = vpop.f32.mrf.mxu1 }
 0x517   : > { %v6625_v58 = vmax.f32 %v6593_v23, 0.0  ;;  %v6451_v39 = vadd.f32 %v6450_v51, %v10729_v17  ;;  %v10849_v17 = vpop.f32.mrf.mxu2  ;;  %v10853_v14 = vpop.f32.mrf.mxu3 }
 0x518   : > { %v10860_v51 = vpop.f32.mrf.mxu0 }
 0x519   : > { %6657 = vst [vmem:[%s10818_s30 + $0x10] sm:$0xff] %v6625_v58  ;;  %v6526_v22 = vadd.f32 %v6451_v39, %v10727_v38 }
 0x51b   : > { %v6562_v32 = vadd.f32 %v10806_v7, %v6526_v22  ;;  %v8937_v22 = vld [vmem:[#allocation2 + $0x148] sm:$0xf0] }
 0x51d   : > { %v6594_v3 = vadd.f32 %v9072_v19, %v6562_v32  ;;  %v6370_v32 = vadd.f32 %v10798_v34, %v10800_v44  ;;  %v9075_v44 = vld [vmem:[%s9404_s16 + $0x30] sm:$0xff] }
 0x51e   : > { %v6453_v35 = vpop.f32.mrf.mxu1 }
 0x51f   : > { %v6626_v60 = vmax.f32 %v6594_v3, 0.0  ;;  %v6454_v45 = vadd.f32 %v6453_v35, %v10737_v62  ;;  %v10862_v58 = vpop.f32.mrf.mxu2  ;;  %v10865_v39 = vpop.f32.mrf.mxu3  ;;  %v8390_v3 = vld [vmem:[#allocation2 + $0x140] sm:$0xf] }
 0x520   : > { %v8391_v13 = vor.u32 %v8937_v22, %v8390_v3 }
 0x521   : > { %6658 = vst [vmem:[%s10818_s30 + $0x18] sm:$0xff] %v6626_v60  ;;  %v6527_v38 = vadd.f32 %v6454_v45, %v10735_v29  ;;  %6492 = vmatmul.bf16.gmra.mxu1 %v8379_v11  ;;  %v6372_v11 = vadd.f32 %v10809_v40, %v10812_v16  ;;  %v6375_v40 = vadd.f32 %v10823_v46, %v10828_v27  ;;  %v9076_v16 = vld [vmem:[%s9404_s16 + $0x38] sm:$0xff] }
 0x523   : > { %v6563_v24 = vadd.f32 %v10806_v7, %v6527_v38  ;;  %v10875_v38 = vpop.f32.mrf.mxu0 }
 0x525   : > { %v6595_v56 = vadd.f32 %v9073_v41, %v6563_v24 }
 0x526   : > { %v6455_v5 = vpop.f32.mrf.mxu1 }
 0x527   : > { %v6627_v42 = vmax.f32 %v6595_v56, 0.0  ;;  %v6456_v62 = vadd.f32 %v6455_v5, %v10745_v6  ;;  %v10877_v34 = vpop.f32.mrf.mxu2  ;;  %v10880_v41 = vpop.f32.mrf.mxu3 }
 0x529   : > { %6659 = vst [vmem:[%s10818_s30 + $0x20] sm:$0xff] %v6627_v42  ;;  %v6528_v23 = vadd.f32 %v6456_v62, %v10743_v50 }
 0x52b   : > { %v6564_v29 = vadd.f32 %v10806_v7, %v6528_v23  ;;  %v8940_v23 = vld [vmem:[#allocation2 + $0x160] sm:$0xf0] }
 0x52d   : > { %v6596_v19 = vadd.f32 %v9074_v54, %v6564_v29  ;;  %v5684_v54 = vadd.f32 %v10825_v52, %v10682_v21 }
 0x52e   : > { %v6458_v6 = vpop.f32.mrf.mxu1 }
 0x52f   : > { %v6628_v35 = vmax.f32 %v6596_v19, 0.0  ;;  %v6459_v50 = vadd.f32 %v6458_v6, %v6370_v32  ;;  %v8402_v32 = vld [vmem:[#allocation2 + $0x158] sm:$0xf]  ;;  %v10890_v19 = vpop.f32.mrf.mxu0  ;;  %v10892_v6 = vpop.f32.mrf.mxu2 }
 0x531   : > { %6660 = vst [vmem:[%s10818_s30 + $0x28] sm:$0xff] %v6628_v35  ;;  %v6529_v60 = vadd.f32 %v6459_v50, %v10751_v2  ;;  %6497 = vmatmul.bf16.gmra.mxu1 %v8391_v13  ;;  %v8403_v35 = vor.u32 %v8940_v23, %v8402_v32  ;;  %v10894_v50 = vpop.f32.mrf.mxu3  ;;  %v6377_v13 = vadd.f32 %v10835_v12, %v10840_v55  ;;  %v8943_v23 = vld [vmem:[#allocation2 + $0x178] sm:$0xf0] }
 0x533   : > { %v6565_v45 = vadd.f32 %v10806_v7, %v6529_v60  ;;  %v9077_v60 = vld [vmem:[%s9404_s16 + $0x40] sm:$0xff] }
 0x535   : > { %v6597_v24 = vadd.f32 %v9075_v44, %v6565_v45  ;;  %v5686_v45 = vadd.f32 %v10837_v53, %v10688_v18  ;;  %v6380_v18 = vadd.f32 %v10847_v43, %v10853_v14  ;;  %v9078_v53 = vld [vmem:[%s9404_s16 + $0x48] sm:$0xff] }
 0x536   : > { %v6460_v56 = vpop.f32.mrf.mxu1 }
 0x537   : > { %v6629_v5 = vmax.f32 %v6597_v24, 0.0  ;;  %v6461_v42 = vadd.f32 %v6460_v56, %v6372_v11  ;;  %v10903_v24 = vpop.f32.mrf.mxu0  ;;  %v10905_v56 = vpop.f32.mrf.mxu2 }
 0x539   : > { %6661 = vst [vmem:[%s10818_s30 + $0x30] sm:$0xff] %v6629_v5  ;;  %v6530_v2 = vadd.f32 %v6461_v42, %v10757_v48  ;;  %v8430_v42 = vld [vmem:[#allocation2 + $0x198] sm:$0xf] }
 0x53b   : > { %v6566_v62 = vadd.f32 %v10806_v7, %v6530_v2  ;;  %v8948_v2 = vld [vmem:[#allocation2 + $0x1a0] sm:$0xf0] }
 0x53c   : > { %v8431_v12 = vor.u32 %v8948_v2, %v8430_v42  ;;  %v8946_v2 = vld [vmem:[#allocation2 + $0x190] sm:$0xf0] }
 0x53d   : > { %v6598_v29 = vadd.f32 %v9076_v16, %v6566_v62  ;;  %v10908_v62 = vpop.f32.mrf.mxu3 }
 0x53e   : > { %v6463_v22 = vpop.f32.mrf.mxu1  ;;  %6339 = vmatmul.bf16.gmra.mxu3 %v8431_v12  ;;  %v6385_v12 = vadd.f32 %v10875_v38, %v10880_v41  ;;  %v6387_v41 = vadd.f32 %v10890_v19, %v10894_v50  ;;  %v6390_v19 = vadd.f32 %v10903_v24, %v10908_v62  ;;  %v9082_v50 = vld [vmem:[%s9404_s16 + $0x68] sm:$0xff] }
 0x53f   : > { %v6630_v3 = vmax.f32 %v6598_v29, 0.0  ;;  %v6464_v48 = vadd.f32 %v6463_v22, %v6375_v40  ;;  %v8414_v29 = vld [vmem:[#allocation2 + $0x170] sm:$0xf]  ;;  %v5689_v22 = vadd.f32 %v10849_v17, %v10694_v1  ;;  %v10917_v43 = vpop.f32.mrf.mxu2  ;;  %v6382_v1 = vadd.f32 %v10860_v51, %v10865_v39  ;;  %v9079_v17 = vld [vmem:[%s9404_s16 + $0x50] sm:$0xff]  ;;  %v9080_v39 = vld [vmem:[%s9404_s16 + $0x58] sm:$0xff] }
 0x541   : > { %6662 = vst [vmem:[%s10818_s30 + $0x38] sm:$0xff] %v6630_v3  ;;  %v6531_v46 = vadd.f32 %v6464_v48, %v5684_v54  ;;  %6502 = vmatmul.bf16.gmra.mxu1 %v8403_v35  ;;  %v8415_v3 = vor.u32 %v8943_v23, %v8414_v29  ;;  %v8947_v48 = vld [vmem:[#allocation2 + $0x19c] sm:$0xf]  ;;  %v8432_v35 = vld [vmem:[#allocation2 + $0x1a4] sm:$0xf0] }
 0x543   : > { %v6567_v27 = vadd.f32 %v10806_v7, %v6531_v46 }
 0x545   : > { %v6599_v21 = vadd.f32 %v9077_v60, %v6567_v27  ;;  %v8435_v27 = vor.u32 %v8947_v48, %v8432_v35  ;;  %v6302_v60 = vpop.f32.mrf.mxu3  ;;  %v5696_v48 = vadd.f32 %v10892_v6, %v10716_v33  ;;  %v5699_v6 = vadd.f32 %v10905_v56, %v10724_v36 }
 0x546   : > { %v6465_v52 = vpop.f32.mrf.mxu1 }
 0x547   : > { %v6631_v11 = vmax.f32 %v6599_v21, 0.0  ;;  %v6466_v44 = vadd.f32 %v6465_v52, %v6377_v13  ;;  %v6391_v13 = vpop.f32.mrf.mxu0  ;;  %6428 = vmatmul.bf16.gmra.mxu0 %v8435_v27  ;;  %v5703_v51 = vpop.f32.mrf.mxu2 }
 0x548   : > { %v6392_v62 = vadd.f32 %v6391_v13, %v6302_v60 }
 0x549   : > { %6663 = vst [vmem:[%s10818_s30 + $0x40] sm:$0xff] %v6631_v11  ;;  %v6532_v5 = vadd.f32 %v6466_v44, %v5686_v45  ;;  %v5691_v45 = vadd.f32 %v10862_v58, %v10700_v8  ;;  %v5694_v8 = vadd.f32 %v10877_v34, %v10708_v26 }
 0x54b   : > { %v6568_v55 = vadd.f32 %v10806_v7, %v6532_v5 }
 0x54d   : > { %v6600_v40 = vadd.f32 %v9078_v53, %v6568_v55 }
 0x54e   : > { %v6468_v16 = vpop.f32.mrf.mxu1 }
 0x54f   : > { %v6632_v32 = vmax.f32 %v6600_v40, 0.0  ;;  %v6469_v54 = vadd.f32 %v6468_v16, %v6380_v18  ;;  %v6394_v55 = vpop.f32.mrf.mxu0  ;;  %v6305_v18 = vpop.f32.mrf.mxu3  ;;  %v8426_v40 = vld [vmem:[#allocation2 + $0x188] sm:$0xf] }
 0x550   : > { %v8427_v29 = vor.u32 %v8946_v2, %v8426_v40  ;;  %v5705_v34 = vpop.f32.mrf.mxu2  ;;  %v5701_v40 = vadd.f32 %v10917_v43, %v10732_v47 }
 0x551   : > { %6664 = vst [vmem:[%s10818_s30 + $0x48] sm:$0xff] %v6632_v32  ;;  %v6533_v46 = vadd.f32 %v6469_v54, %v5689_v22  ;;  %6507 = vmatmul.bf16.gmra.mxu1 %v8415_v3  ;;  %v9081_v32 = vld [vmem:[%s9404_s16 + $0x60] sm:$0xff] }
 0x553   : > { %v6569_v14 = vadd.f32 %v10806_v7, %v6533_v46 }
 0x555   : > { %v6601_v21 = vadd.f32 %v9079_v17, %v6569_v14  ;;  %v8949_v17 = vld [vmem:[#allocation2 + $0x1a8] sm:$0xf0] }
 0x556   : > { %v6470_v52 = vpop.f32.mrf.mxu1 }
 0x557   : > { %v6633_v11 = vmax.f32 %v6601_v21, 0.0  ;;  %v6471_v44 = vadd.f32 %v6470_v52, %v6382_v1  ;;  %v6396_v26 = vpop.f32.mrf.mxu0  ;;  %v6307_v27 = vpop.f32.mrf.mxu3  ;;  %v8438_v1 = vld [vmem:[#allocation2 + $0x1a0] sm:$0xf] }
 0x559   : > { %6665 = vst [vmem:[%s10818_s30 + $0x50] sm:$0xff] %v6633_v11  ;;  %v6534_v5 = vadd.f32 %v6471_v44, %v5691_v45  ;;  %v8439_v45 = vor.u32 %v8949_v17, %v8438_v1 }
 0x55b   : > { %v6570_v42 = vadd.f32 %v10806_v7, %v6534_v5 }
 0x55d   : > { %v6602_v23 = vadd.f32 %v9080_v39, %v6570_v42  ;;  %v5708_v42 = vpop.f32.mrf.mxu2  ;;  %v9083_v39 = vld [vmem:[%s9404_s16 + $0x70] sm:$0xff] }
 0x55e   : > { %v6473_v53 = vpop.f32.mrf.mxu1 }
 0x55f   : > { %v6634_v58 = vmax.f32 %v6602_v23, 0.0  ;;  %v6474_v16 = vadd.f32 %v6473_v53, %v6385_v12  ;;  %v6399_v5 = vpop.f32.mrf.mxu0  ;;  %v6310_v12 = vpop.f32.mrf.mxu3 }
 0x561   : > { %6666 = vst [vmem:[%s10818_s30 + $0x58] sm:$0xff] %v6634_v58  ;;  %v6535_v22 = vadd.f32 %v6474_v16, %v5694_v8  ;;  %6512 = vmatmul.bf16.gmra.mxu1 %v8427_v29 }
 0x563   : > { %v6571_v38 = vadd.f32 %v10806_v7, %v6535_v22 }
 0x565   : > { %v6603_v54 = vadd.f32 %v9081_v32, %v6571_v38  ;;  %v5710_v16 = vpop.f32.mrf.mxu2  ;;  %v6395_v38 = vadd.f32 %v6394_v55, %v6305_v18  ;;  %v5704_v32 = vadd.f32 %v5703_v51, %v10740_v9  ;;  %v5706_v18 = vadd.f32 %v5705_v34, %v10748_v63 }
 0x566   : > { %v6475_v3 = vpop.f32.mrf.mxu1 }
 0x567   : > { %v6635_v35 = vmax.f32 %v6603_v54, 0.0  ;;  %v6476_v46 = vadd.f32 %v6475_v3, %v6387_v41  ;;  %v6401_v58 = vpop.f32.mrf.mxu0  ;;  %v6312_v22 = vpop.f32.mrf.mxu3  ;;  %v9084_v41 = vld [vmem:[%s9404_s16 + $0x78] sm:$0xff] }
 0x569   : > { %6667 = vst [vmem:[%s10818_s30 + $0x60] sm:$0xff] %v6635_v35  ;;  %v6536_v14 = vadd.f32 %v6476_v46, %v5696_v48  ;;  %v6397_v48 = vadd.f32 %v6396_v26, %v6307_v27  ;;  %v5709_v27 = vadd.f32 %v5708_v42, %v10754_v10 }
 0x56b   : > { %v6572_v21 = vadd.f32 %v10806_v7, %v6536_v14  ;;  %v9085_v14 = vld [vmem:[%s9404_s16 + $0x80] sm:$0xff] }
 0x56d   : > { %v6604_v52 = vadd.f32 %v9082_v50, %v6572_v21  ;;  %v5713_v46 = vpop.f32.mrf.mxu2  ;;  %v6400_v50 = vadd.f32 %v6399_v5, %v6310_v12  ;;  %v5711_v12 = vadd.f32 %v5710_v16, %v10760_v59 }
 0x56e   : > { %v6478_v33 = vpop.f32.mrf.mxu1 }
 0x56f   : > { %v6636_v11 = vmax.f32 %v6604_v52, 0.0  ;;  %v6479_v44 = vadd.f32 %v6478_v33, %v6390_v19  ;;  %v6404_v35 = vpop.f32.mrf.mxu0  ;;  %v6315_v17 = vpop.f32.mrf.mxu3  ;;  %v9086_v52 = vld [vmem:[%s9404_s16 + $0x88] sm:$0xff] }
 0x571   : > { %6668 = vst [vmem:[%s10818_s30 + $0x68] sm:$0xff] %v6636_v11  ;;  %v6537_v2 = vadd.f32 %v6479_v44, %v5699_v6  ;;  %6517 = vmatmul.bf16.gmra.mxu1 %v8439_v45 }
 0x573   : > { %v6573_v24 = vadd.f32 %v10806_v7, %v6537_v2 }
 0x575   : > { %v6605_v23 = vadd.f32 %v9083_v39, %v6573_v24  ;;  %v5715_v6 = vpop.f32.mrf.mxu2  ;;  %v6402_v24 = vadd.f32 %v6401_v58, %v6312_v22  ;;  %v5714_v22 = vadd.f32 %v5713_v46, %v10763_v57 }
 0x576   : > { %v6480_v53 = vpop.f32.mrf.mxu1 }
 0x577   : > { %v6637_v36 = vmax.f32 %v6605_v23, 0.0  ;;  %v6481_v56 = vadd.f32 %v6480_v53, %v6392_v62  ;;  %v6406_v33 = vpop.f32.mrf.mxu0  ;;  %v6317_v63 = vpop.f32.mrf.mxu3  ;;  %v9087_v62 = vld [vmem:[%s9404_s16 + $0x90] sm:$0xff] }
 0x579   : > { %6669 = vst [vmem:[%s10818_s30 + $0x70] sm:$0xff] %v6637_v36  ;;  %v6538_v8 = vadd.f32 %v6481_v56, %v5701_v40 }
 0x57b   : > { %v6574_v29 = vadd.f32 %v10806_v7, %v6538_v8  ;;  %v6405_v8 = vadd.f32 %v6404_v35, %v6315_v17  ;;  %v5716_v35 = vadd.f32 %v5715_v6, %v10766_v15 }
 0x57d   : > { %v6606_v13 = vadd.f32 %v9084_v41, %v6574_v29  ;;  %v5718_v53 = vpop.f32.mrf.mxu2  ;;  %v9088_v29 = vld [vmem:[%s9404_s16 + $0x98] sm:$0xff] }
 0x57e   : > { %v6483_v60 = vpop.f32.mrf.mxu1 }
 0x57f   : > { %v6638_v54 = vmax.f32 %v6606_v13, 0.0  ;;  %v6484_v47 = vadd.f32 %v6483_v60, %v6395_v38  ;;  %v6409_v42 = vpop.f32.mrf.mxu0  ;;  %v6320_v36 = vpop.f32.mrf.mxu3 }
 0x580   : > { %v6410_v17 = vadd.f32 %v6409_v42, %v6320_v36 }
 0x581   : > { %6670 = vst [vmem:[%s10818_s30 + $0x78] sm:$0xff] %v6638_v54  ;;  %v6539_v43 = vadd.f32 %v6484_v47, %v5704_v32  ;;  %v6407_v47 = vadd.f32 %v6406_v33, %v6317_v63  ;;  %v9091_v33 = vld [vmem:[%s9404_s16 + $0xb0] sm:$0xff] }
 0x583   : > { %v6575_v3 = vadd.f32 %v10806_v7, %v6539_v43  ;;  %v9089_v43 = vld [vmem:[%s9404_s16 + $0xa0] sm:$0xff] }
 0x585   : > { %v6607_v1 = vadd.f32 %v9085_v14, %v6575_v3  ;;  %v5720_v60 = vpop.f32.mrf.mxu2 }
 0x586   : > { %v6485_v55 = vpop.f32.mrf.mxu1 }
 0x587   : > { %v6639_v21 = vmax.f32 %v6607_v1, 0.0  ;;  %v6486_v9 = vadd.f32 %v6485_v55, %v6397_v48  ;;  %v6411_v13 = vpop.f32.mrf.mxu0  ;;  %v6322_v54 = vpop.f32.mrf.mxu3 }
 0x589   : > { %6671 = vst [vmem:[%s10818_s30 + $0x80] sm:$0xff] %v6639_v21  ;;  %v6540_v51 = vadd.f32 %v6486_v9, %v5706_v18  ;;  %v9090_v21 = vld [vmem:[%s9404_s16 + $0xa8] sm:$0xff] }
 0x58b   : > { %v6576_v19 = vadd.f32 %v10806_v7, %v6540_v51 }
 0x58d   : > { %v6608_v45 = vadd.f32 %v9086_v52, %v6576_v19  ;;  %v5723_v18 = vpop.f32.mrf.mxu2 }
 0x58e   : > { %v6488_v26 = vpop.f32.mrf.mxu1  ;;  %v5724_v42 = vadd.f32 %v5723_v18, %v10775_v30 }
 0x58f   : > { %v6640_v11 = vmax.f32 %v6608_v45, 0.0  ;;  %v6489_v44 = vadd.f32 %v6488_v26, %v6400_v50  ;;  %v6414_v55 = vpop.f32.mrf.mxu0  ;;  %v6325_v51 = vpop.f32.mrf.mxu3  ;;  %v5719_v50 = vadd.f32 %v5718_v53, %v10769_v37 }
 0x591   : > { %6672 = vst [vmem:[%s10818_s30 + $0x88] sm:$0xff] %v6640_v11  ;;  %v6541_v34 = vadd.f32 %v6489_v44, %v5709_v27  ;;  %v6412_v27 = vadd.f32 %v6411_v13, %v6322_v54  ;;  %v5721_v44 = vadd.f32 %v5720_v60, %v10772_v61 }
 0x593   : > { %v6577_v2 = vadd.f32 %v10806_v7, %v6541_v34 }
 0x595   : > { %v6609_v39 = vadd.f32 %v9087_v62, %v6577_v2  ;;  %v5725_v34 = vpop.f32.mrf.mxu2 }
 0x596   : > { %v6490_v5 = vpop.f32.mrf.mxu1 }
 0x597   : > { %v6641_v23 = vmax.f32 %v6609_v39, 0.0  ;;  %v6491_v10 = vadd.f32 %v6490_v5, %v6402_v24  ;;  %v6416_v63 = vpop.f32.mrf.mxu0  ;;  %v6327_v37 = vpop.f32.mrf.mxu3  ;;  %v6415_v5 = vadd.f32 %v6414_v55, %v6325_v51 }
 0x599   : > { %6673 = vst [vmem:[%s10818_s30 + $0x90] sm:$0xff] %v6641_v23  ;;  %v6542_v40 = vadd.f32 %v6491_v10, %v5711_v12  ;;  %v9092_v12 = vld [vmem:[%s9404_s16 + $0xb8] sm:$0xff] }
 0x59b   : > { %v6578_v56 = vadd.f32 %v10806_v7, %v6542_v40 }
 0x59d   : > { %v6610_v38 = vadd.f32 %v9088_v29, %v6578_v56  ;;  %v5728_v36 = vpop.f32.mrf.mxu2 }
 0x59e   : > { %v6493_v58 = vpop.f32.mrf.mxu1 }
 0x59f   : > { %v6642_v41 = vmax.f32 %v6610_v38, 0.0  ;;  %v6494_v59 = vadd.f32 %v6493_v58, %v6405_v8  ;;  %v6419_v40 = vpop.f32.mrf.mxu0  ;;  %v6330_v8 = vpop.f32.mrf.mxu3  ;;  %v6417_v38 = vadd.f32 %v6416_v63, %v6327_v37  ;;  %v9093_v58 = vld [vmem:[%s9404_s16 + $0xc0] sm:$0xff] }
 0x5a1   : > { %6674 = vst [vmem:[%s10818_s30 + $0x98] sm:$0xff] %v6642_v41  ;;  %v6543_v16 = vadd.f32 %v6494_v59, %v5714_v22  ;;  %v5726_v59 = vadd.f32 %v5725_v34, %v10778_v49 }
 0x5a3   : > { %v6579_v32 = vadd.f32 %v10806_v7, %v6543_v16 }
 0x5a5   : > { %v6611_v3 = vadd.f32 %v9089_v43, %v6579_v32  ;;  %v5730_v32 = vpop.f32.mrf.mxu2  ;;  %v6420_v43 = vadd.f32 %v6419_v40, %v6330_v8  ;;  %v9098_v8 = vld [vmem:[%s9404_s16 + $0xe8] sm:$0xff] }
 0x5a6   : > { %v6495_v48 = vpop.f32.mrf.mxu1 }
 0x5a7   : > { %v6643_v14 = vmax.f32 %v6611_v3, 0.0  ;;  %v6496_v57 = vadd.f32 %v6495_v48, %v6407_v47  ;;  %v6421_v60 = vpop.f32.mrf.mxu0  ;;  %v6332_v47 = vpop.f32.mrf.mxu3  ;;  %v9094_v3 = vld [vmem:[%s9404_s16 + $0xc8] sm:$0xff] }
 0x5a9   : > { %6675 = vst [vmem:[%s10818_s30 + $0xa0] sm:$0xff] %v6643_v14  ;;  %v6544_v46 = vadd.f32 %v6496_v57, %v5716_v35  ;;  %v5729_v14 = vadd.f32 %v5728_v36, %v10781_v28 }
 0x5ab   : > { %v6580_v1 = vadd.f32 %v10806_v7, %v6544_v46 }
 0x5ad   : > { %v6612_v9 = vadd.f32 %v9090_v21, %v6580_v1  ;;  %v5733_v18 = vpop.f32.mrf.mxu2  ;;  %v9095_v21 = vld [vmem:[%s9404_s16 + $0xd0] sm:$0xff] }
 0x5ae   : > { %v6498_v19 = vpop.f32.mrf.mxu1 }
 0x5af   : > { %v6644_v52 = vmax.f32 %v6612_v9, 0.0  ;;  %v6499_v15 = vadd.f32 %v6498_v19, %v6410_v17  ;;  %v6422_v17 = vadd.f32 %v6421_v60, %v6332_v47  ;;  %v6424_v55 = vpop.f32.mrf.mxu0  ;;  %v6335_v51 = vpop.f32.mrf.mxu3 }
 0x5b1   : > { %6676 = vst [vmem:[%s10818_s30 + $0xa8] sm:$0xff] %v6644_v52  ;;  %v6545_v45 = vadd.f32 %v6499_v15, %v5719_v50  ;;  %v5731_v50 = vadd.f32 %v5730_v32, %v10784_v4  ;;  %v9099_v32 = vld [vmem:[%s9404_s16 + $0xf0] sm:$0xff] }
 0x5b3   : > { %v6581_v26 = vadd.f32 %v10806_v7, %v6545_v45 }
 0x5b5   : > { %v6613_v6 = vadd.f32 %v9091_v33, %v6581_v26  ;;  %v6425_v26 = vadd.f32 %v6424_v55, %v6335_v51 }
 0x5b6   : > { %v6500_v11 = vpop.f32.mrf.mxu1 }
 0x5b7   : > { %v6645_v2 = vmax.f32 %v6613_v6, 0.0  ;;  %v6501_v24 = vadd.f32 %v6500_v11, %v6412_v27  ;;  %v9096_v27 = vld [vmem:[%s9404_s16 + $0xd8] sm:$0xff]  ;;  %v5734_v11 = vadd.f32 %v5733_v18, %v10787_v31  ;;  %v6337_v4 = vpop.f32.mrf.mxu3 }
 0x5b9   : > { %6677 = vst [vmem:[%s10818_s30 + $0xb0] sm:$0xff] %v6645_v2  ;;  %v6546_v62 = vadd.f32 %v6501_v24, %v5721_v44  ;;  %v6426_v44 = vpop.f32.mrf.mxu0  ;;  %v5735_v2 = vpop.f32.mrf.mxu2 }
 0x5bb   : > { %v6582_v39 = vadd.f32 %v10806_v7, %v6546_v62  ;;  %v6427_v62 = vadd.f32 %v6426_v44, %v6337_v4 }
 0x5bd   : > { %v6614_v23 = vadd.f32 %v9092_v12, %v6582_v39  ;;  %v9097_v39 = vld [vmem:[%s9404_s16 + $0xe0] sm:$0xff] }
 0x5be   : > { %v6503_v10 = vpop.f32.mrf.mxu1 }
 0x5bf   : > { %v6646_v53 = vmax.f32 %v6614_v23, 0.0  ;;  %v6504_v61 = vadd.f32 %v6503_v10, %v6415_v5  ;;  %v5736_v23 = vadd.f32 %v5735_v2, %v10790_v25 }
 0x5c1   : > { %6678 = vst [vmem:[%s10818_s30 + $0xb8] sm:$0xff] %v6646_v53  ;;  %v6547_v56 = vadd.f32 %v6504_v61, %v5724_v42  ;;  %v6340_v42 = vpop.f32.mrf.mxu3  ;;  %v5738_v40 = vpop.f32.mrf.mxu2 }
 0x5c3   : > { %v6583_v29 = vadd.f32 %v10806_v7, %v6547_v56 }
 0x5c4   : > { %v6429_v53 = vpop.f32.mrf.mxu0 }
 0x5c5   : > { %v6615_v22 = vadd.f32 %v9093_v58, %v6583_v29  ;;  %v6430_v36 = vadd.f32 %v6429_v53, %v6340_v42  ;;  %v5739_v58 = vadd.f32 %v5738_v40, %v10793_v0 }
 0x5c6   : > { %v6505_v41 = vpop.f32.mrf.mxu1 }
 0x5c7   : > { %v6647_v16 = vmax.f32 %v6615_v22, 0.0  ;;  %v6506_v30 = vadd.f32 %v6505_v41, %v6417_v38 }
 0x5c9   : > { %6679 = vst [vmem:[%s10818_s30 + $0xc0] sm:$0xff] %v6647_v16  ;;  %v6548_v13 = vadd.f32 %v6506_v30, %v5726_v59  ;;  %v6342_v59 = vpop.f32.mrf.mxu3 }
 0x5cb   : > { %v6584_v54 = vadd.f32 %v10806_v7, %v6548_v13  ;;  %v5740_v13 = vpop.f32.mrf.mxu2 }
 0x5cc   : > { %v6431_v16 = vpop.f32.mrf.mxu0  ;;  %v5741_v0 = vadd.f32 %v5740_v13, %v10796_v20 }
 0x5cd   : > { %v6616_v48 = vadd.f32 %v9094_v3, %v6584_v54  ;;  %v6432_v60 = vadd.f32 %v6431_v16, %v6342_v59 }
 0x5ce   : > { %v6508_v35 = vpop.f32.mrf.mxu1 }
 0x5cf   : > { %v6648_v57 = vmax.f32 %v6616_v48, 0.0  ;;  %v6509_v49 = vadd.f32 %v6508_v35, %v6420_v43 }
 0x5d1   : > { %6680 = vst [vmem:[%s10818_s30 + $0xc8] sm:$0xff] %v6648_v57  ;;  %v6549_v46 = vadd.f32 %v6509_v49, %v5729_v14  ;;  %v9100_v14 = vld [vmem:[%s9404_s16 + $0xf8] sm:$0xff] }
 0x5d3   : > { %v6585_v1 = vadd.f32 %v10806_v7, %v6549_v46 }
 0x5d5   : > { %v6617_v9 = vadd.f32 %v9095_v21, %v6585_v1 }
 0x5d6   : > { %v6510_v19 = vpop.f32.mrf.mxu1 }
 0x5d7   : > { %v6649_v52 = vmax.f32 %v6617_v9, 0.0  ;;  %v6511_v28 = vadd.f32 %v6510_v19, %v6422_v17 }
 0x5d9   : > { %6681 = vst [vmem:[%s10818_s30 + $0xd0] sm:$0xff] %v6649_v52  ;;  %v6550_v15 = vadd.f32 %v6511_v28, %v5731_v50 }
 0x5db   : > { %v6586_v45 = vadd.f32 %v10806_v7, %v6550_v15 }
 0x5dd   : > { %v6618_v33 = vadd.f32 %v9096_v27, %v6586_v45 }
 0x5de   : > { %v6513_v6 = vpop.f32.mrf.mxu1 }
 0x5df   : > { %v6650_v63 = vmax.f32 %v6618_v33, 0.0  ;;  %v6514_v34 = vadd.f32 %v6513_v6, %v6425_v26 }
 0x5e1   : > { %6682 = vst [vmem:[%s10818_s30 + $0xd8] sm:$0xff] %v6650_v63  ;;  %v6551_v24 = vadd.f32 %v6514_v34, %v5734_v11 }
 0x5e3   : > { %v6587_v37 = vadd.f32 %v10806_v7, %v6551_v24 }
 0x5e5   : > { %v6619_v5 = vadd.f32 %v9097_v39, %v6587_v37 }
 0x5e6   : > { %v6515_v12 = vpop.f32.mrf.mxu1 }
 0x5e7   : > { %v6651_v10 = vmax.f32 %v6619_v5, 0.0  ;;  %v6516_v31 = vadd.f32 %v6515_v12, %v6427_v62 }
 0x5e9   : > { %6683 = vst [vmem:[%s10818_s30 + $0xe0] sm:$0xff] %v6651_v10  ;;  %v6552_v61 = vadd.f32 %v6516_v31, %v5736_v23 }
 0x5eb   : > { %v6588_v56 = vadd.f32 %v10806_v7, %v6552_v61 }
 0x5ed   : > { %v6620_v29 = vadd.f32 %v9098_v8, %v6588_v56 }
 0x5ee   : > { %v6518_v38 = vpop.f32.mrf.mxu1 }
 0x5ef   : > { %v6652_v22 = vmax.f32 %v6620_v29, 0.0  ;;  %v6519_v25 = vadd.f32 %v6518_v38, %v6430_v36 }
 0x5f1   : > { %6684 = vst [vmem:[%s10818_s30 + $0xe8] sm:$0xff] %v6652_v22  ;;  %v6553_v41 = vadd.f32 %v6519_v25, %v5739_v58 }
 0x5f3   : > { %v6589_v30 = vadd.f32 %v10806_v7, %v6553_v41 }
 0x5f5   : > { %v6621_v54 = vadd.f32 %v9099_v32, %v6589_v30 }
 0x5f6   : > { %v6520_v47 = vpop.f32.mrf.mxu1 }
 0x5f7   : > { %v6653_v43 = vmax.f32 %v6621_v54, 0.0  ;;  %v6521_v3 = vadd.f32 %v6520_v47, %v6432_v60 }
 0x5f9   : > { %6685 = vst [vmem:[%s10818_s30 + $0xf0] sm:$0xff] %v6653_v43  ;;  %v6554_v48 = vadd.f32 %v6521_v3, %v5741_v0 }
 0x5fb   : > { %v6590_v35 = vadd.f32 %v10806_v7, %v6554_v48 }
 0x5fd   : > { %v6622_v57 = vadd.f32 %v9100_v14, %v6590_v35 }
 0x5ff   : > { %v6654_v49 = vmax.f32 %v6622_v57, 0.0 }
 0x601   : > { %6686 = vst [vmem:[%s10818_s30 + $0xf8] sm:$0xff] %v6654_v49 }
 0x602   : > { %9218 = shalt.err (!%p9215_p10)
}
 0x603   : > { %s9270_s8 = smov 128   ;;  %s9271_s16 = smov 8  }
 0x604   : > { %9001 = dma.vmem_to_hbm [thread:$0]  (%p9368_p3), %s6701_s15, 4096, %s6703_s24, %s6688_s22, %s9270_s8, %s9270_s8, %s9271_s16  }
 0x605 PF: > { %s6717_s30 = sand.u32 1, %s9249_s18   ;;  %p11224_p12 = scmp.ge.s32.totalorder %s9261_s21, 2 }
 0x606   : > { %s6718_s6 = scalar_lea.sflag [#allocation5], %s6717_s30 }
 0x607   : > { %p9015_p13 = pnand %p11224_p12, %p9337_p6 }
 0x609   : > { %p9016_p0 = pneg %p9015_p13 }
 0x60b   : > { %9244 = dma.done.wait (%p9016_p0), %s6718_s6, 4096  }
 0x60c   : > { %9246 = vsyncadd (%p9016_p0), %s6718_s6, 4294963200  ;;  %p19_p5 = scmp.ge.s32.totalorder %s9358_s14, 4   ;;  %s11225_s18 = smov %s9253_s19 }
 0x60d   : > { %s11226_s19 = smov %s9257_s20  ;;  %s11227_s20 = smov %s9374_s23 }
 0x60e   : > { %s11228_s21 = smov %s9358_s14  ;;  %21 = sbr.rel (!%p19_p5) target bundleno = 6 (0x6), region = 100 }
 0x613   :  { %6724 = vsyncpa [#allocation4], 1 }
 0x614   :  { %6726 = vsyncpa [#allocation4 + $0x1], 1 }
 0x615   :  { %6727 = vsyncpa [#allocation7], 1 }
 0x616   :  { %6728 = vsyncpa [#allocation5], 1 }
 0x617   :  { %6730 = vsyncpa [#allocation5 + $0x1], 1 }

</bundles_post_ra>
